<compile_context>
chip_gen: v5e
topology: v5e:2x2
jax: 0.10.0
libtpu: 0.0.40
codegen_flags: <defaults>
</compile_context>

<pallas_src>
import functools

import jax
import jax.numpy as jnp
from jax.experimental import pallas as pl
from jax.experimental.pallas import tpu as pltpu


# ----------------------------------------------------------------------------
# Pallas kernel: fused matmul (bf16 -> f32 acc) + bias + ReLU
# ----------------------------------------------------------------------------
def _mm_bias_relu_kernel(x_ref, w_ref, bias_ref, o_ref):
    k = pl.program_id(1)

    part = jnp.dot(x_ref[...], w_ref[...], preferred_element_type=jnp.float32)

    @pl.when(k == 0)
    def _():
        o_ref[...] = part

    @pl.when(k > 0)
    def _():
        o_ref[...] += part

    @pl.when(k == pl.num_programs(1) - 1)
    def _():
        o_ref[...] = jnp.maximum(o_ref[...] + bias_ref[...], 0.0)


def _pick_tile_m(M, cap=1024):
    """Full M when small; else the largest 128-multiple divisor <= cap."""
    if M <= cap:
        return M
    for t in (1024, 512, 256, 128):
        if M % t == 0:
            return t
    return M


def _pick_tile_k(K, max_tk=2048):
    """Largest multiple-of-128 divisor of K that is <= max_tk (else full K)."""
    if K <= max_tk:
        return K
    best = None
    t = 128
    while t <= max_tk:
        if K % t == 0:
            best = t
        t += 128
    return best if best is not None else K


def matmul_bias_relu(x, w, bias):
    """relu(x @ w + bias); bf16 MXU operands, f32 accumulate & output."""
    M, K = x.shape
    K2, N = w.shape
    assert K == K2
    # Pad output columns to a multiple of 128 for lane-dense stores.
    n_pad = (-N) % 128
    Np = N + n_pad
    if n_pad:
        w = jnp.pad(w, ((0, 0), (0, n_pad)))
        bias = jnp.pad(bias, ((0, n_pad),))

    tm = _pick_tile_m(M)
    tk = _pick_tile_k(K)
    grid = (M // tm, K // tk)
    bias2 = bias.reshape(1, Np).astype(jnp.float32)

    out = pl.pallas_call(
        _mm_bias_relu_kernel,
        out_shape=jax.ShapeDtypeStruct((M, Np), jnp.float32),
        grid_spec=pltpu.PrefetchScalarGridSpec(
            num_scalar_prefetch=0,
            grid=grid,
            in_specs=[
                pl.BlockSpec((tm, tk), lambda i, k: (i, k)),   # X tile (bf16)
                pl.BlockSpec((tk, Np), lambda i, k: (k, 0)),   # W tile (bf16)
                pl.BlockSpec((1, Np), lambda i, k: (0, 0)),    # folded bias
            ],
            out_specs=pl.BlockSpec((tm, Np), lambda i, k: (i, 0)),
        ),
        compiler_params=pltpu.CompilerParams(
            dimension_semantics=("parallel", "arbitrary"),
            vmem_limit_bytes=32 * 1024 * 1024),
        cost_estimate=pl.CostEstimate(
            flops=2 * M * K * Np,
            transcendentals=0,
            bytes_accessed=2 * M * K + 2 * K * Np + 4 * M * Np),
    )(x.astype(jnp.bfloat16), w.astype(jnp.bfloat16), bias2)

    return out if n_pad == 0 else out[:, :N]


# ----------------------------------------------------------------------------
# Layer wrappers (glue: im2col / pooling / BN folding stay in plain JAX)
# ----------------------------------------------------------------------------
def fold_bn(p, eps=1e-5):
    """Fold conv/linear bias + inference-mode BatchNorm into scale & bias."""
    s = p["gamma"] / jnp.sqrt(p["var"] + eps)
    return s, (p["b"] - p["mean"]) * s + p["beta"]


def conv3x3_bn_relu(x, w, scale, bias, stride):
    """x: (N,H,W,Cin) NHWC; w: (3,3,Cin,Cout) HWIO; padding=1."""
    n, h, wd, cin = x.shape
    cout = w.shape[-1]
    ho = (h + 2 - 3) // stride + 1
    wo = (wd + 2 - 3) // stride + 1

    # im2col built directly in bf16 (matches MXU operand dtype, halves bytes).
    # TODO(synk): fully fusing the 9-tap gather into the Pallas kernel (windowed
    # DMA straight from the padded activation) would remove this 9x buffer; not
    # done here because it needs in-kernel multi-dim reshapes of strided slices.
    xp = jnp.pad(x.astype(jnp.bfloat16), ((0, 0), (1, 1), (1, 1), (0, 0)))
    taps = []
    for di in range(3):
        for dj in range(3):
            taps.append(xp[:, di:di + stride * (ho - 1) + 1:stride,
                            dj:dj + stride * (wo - 1) + 1:stride, :])
    patches = jnp.concatenate(taps, axis=-1).reshape(n * ho * wo, 9 * cin)

    # Fold the BN scale into the weights (per output channel).
    wf = (w * scale).reshape(9 * cin, cout)        # (kh,kw,Cin) row order
    y = matmul_bias_relu(patches, wf, bias)
    return y.reshape(n, ho, wo, cout)


def adaptive_avg_pool(x, out_h, out_w):
    """Exact nn.AdaptiveAvgPool2d bin semantics (NHWC), vectorized."""
    n, h, w, c = x.shape
    cs = jnp.cumsum(jnp.cumsum(x.astype(jnp.float32), axis=1), axis=2)
    cs = jnp.pad(cs, ((0, 0), (1, 0), (1, 0), (0, 0)))     # integral image
    ih = jnp.arange(out_h)
    iw = jnp.arange(out_w)
    h0 = (ih * h) // out_h
    h1 = ((ih + 1) * h + out_h - 1) // out_h
    w0 = (iw * w) // out_w
    w1 = ((iw + 1) * w + out_w - 1) // out_w
    a = cs[:, h1[:, None], w1[None, :], :]
    b = cs[:, h0[:, None], w1[None, :], :]
    d = cs[:, h1[:, None], w0[None, :], :]
    e = cs[:, h0[:, None], w0[None, :], :]
    area = ((h1 - h0)[:, None] * (w1 - w0)[None, :]).astype(jnp.float32)
    return (a - b - d + e) / area[None, :, :, None]         # (N,out_h,out_w,C)


# ----------------------------------------------------------------------------
# Model definition / parameters
# ----------------------------------------------------------------------------
CONV_DEFS = [
    ("conv1", 3, 48, 1), ("conv2", 48, 48, 2), ("conv3", 48, 64, 1),
    ("conv4", 64, 64, 2), ("conv5", 64, 64, 1), ("conv6", 64, 64, 2),
    ("conv7", 64, 128, 1), ("conv8", 128, 128, 1), ("conv9", 128, 128, 2),
]
FC_DEFS = [("fc1", 14 * 14 * 128, 128), ("fc2", 128, 256)]  # fc3 added below


def init_params(key, n_classes):
    params = {}
    for name, cin, cout, _ in CONV_DEFS:
        key, k1, k2, k3, k4 = jax.random.split(key, 5)
        params[name] = dict(
            w=jax.random.normal(k1, (3, 3, cin, cout), jnp.float32)
              * (1.0 / (3.0 * (cin ** 0.5))),
            b=0.01 * jax.random.normal(k2, (cout,), jnp.float32),
            gamma=1.0 + 0.1 * jax.random.normal(k3, (cout,), jnp.float32),
            beta=0.1 * jax.random.normal(k4, (cout,), jnp.float32),
            mean=jnp.zeros((cout,), jnp.float32),
            var=jnp.ones((cout,), jnp.float32),
        )
    for name, fin, fout in FC_DEFS + [("fc3", 256, n_classes)]:
        key, k1, k2, k3, k4 = jax.random.split(key, 5)
        params[name] = dict(
            w=jax.random.normal(k1, (fin, fout), jnp.float32) * (1.0 / (fin ** 0.5)),
            b=0.01 * jax.random.normal(k2, (fout,), jnp.float32),
            gamma=1.0 + 0.1 * jax.random.normal(k3, (fout,), jnp.float32),
            beta=0.1 * jax.random.normal(k4, (fout,), jnp.float32),
            mean=jnp.zeros((fout,), jnp.float32),
            var=jnp.ones((fout,), jnp.float32),
        )
    return params


def s_cnn_forward(params, x_nchw):
    # PyTorch convs take NCHW; convert once to NHWC for the kernel pipeline.
    x = jnp.transpose(x_nchw, (0, 2, 3, 1)).astype(jnp.float32)

    # conv1..conv9, each: conv -> BatchNorm2d (inference stats) -> ReLU
    for name, _, _, stride in CONV_DEFS:
        p = params[name]
        s, b = fold_bn(p)
        x = conv3x3_bn_relu(x, p["w"], s, b, stride)

    # AdaptiveAvgPool2d((14, 14))
    x = adaptive_avg_pool(x, 14, 14)                        # (N,14,14,128)

    # x.view(-1, 14*14*128) in PyTorch flattens NCHW -> (C,H,W) order.
    x = jnp.transpose(x, (0, 3, 1, 2)).reshape(x.shape[0], -1)

    # fc1/fc2/fc3, each: Linear -> BatchNorm1d (inference stats) -> ReLU
    for name in ("fc1", "fc2", "fc3"):
        p = params[name]
        s, b = fold_bn(p)
        x = matmul_bias_relu(x, p["w"] * s, b)
        # TODO(synk): F.dropout(x, 0.2) is stochastic; evaluated here as
        # identity (eval-mode dropout).
    return x


# ----------------------------------------------------------------------------
if __name__ == "__main__":
    key = jax.random.PRNGKey(0)
    k_param, k_x = jax.random.split(key)

    n_classes = 10
    params = init_params(k_param, n_classes)

    # Small CIFAR-like input, NCHW as PyTorch expects: (batch=2, C=3, 32, 32)
    x = jax.random.normal(k_x, (2, 3, 32, 32), jnp.float32)

    fwd = jax.jit(functools.partial(s_cnn_forward, params))
    out = fwd(x)
    jax.block_until_ready(out)

    assert out.shape == (2, n_classes), out.shape
    assert bool(jnp.all(jnp.isfinite(out)))
    print("KERNEL_OK")
</pallas_src>

<mosaic_0001>
module attributes {stable_mosaic.version = 11 : i64} {
  func.func @_mm_bias_relu_kernel(%arg0: i32, %arg1: i32, %arg2: memref<1024x27xbf16, #tpu.memory_space<vmem>>, %arg3: memref<27x128xbf16, #tpu.memory_space<vmem>>, %arg4: memref<1x128xf32, #tpu.memory_space<vmem>>, %arg5: memref<1024x128xf32, #tpu.memory_space<vmem>>) attributes {dimension_semantics = [#tpu.dimension_semantics<parallel>, #tpu.dimension_semantics<arbitrary>], iteration_bounds = array<i64: 2, 1>, scalar_prefetch = 0 : i64, scratch_operands = 0 : i64, tpu.core_type = #tpu.core_type<tc>, window_params = [{transform_indices = @transform_0, window_bounds = array<i64: 1024, 27>}, {transform_indices = @transform_1, window_bounds = array<i64: 27, 128>}, {pipeline_mode = #tpu.pipeline_mode<synchronous>, transform_indices = @transform_2, window_bounds = array<i64: 1, 128>}, {transform_indices = @transform_3, window_bounds = array<i64: 1024, 128>}]} {
    %c0 = arith.constant 0 : index
    %c0_0 = arith.constant 0 : index
    %0 = vector.load %arg2[%c0, %c0_0] : memref<1024x27xbf16, #tpu.memory_space<vmem>>, vector<1024x27xbf16>
    %c0_1 = arith.constant 0 : index
    %c0_2 = arith.constant 0 : index
    %1 = vector.load %arg3[%c0_1, %c0_2] : memref<27x128xbf16, #tpu.memory_space<vmem>>, vector<27x128xbf16>
    %cst = arith.constant dense<0.000000e+00> : vector<1024x128xf32>
    %2 = tpu.matmul %0, %1, %cst {dimension_numbers = #tpu.dot_dimension_numbers<[1], [0], [0], [1], [0, 0, 1, 1], [], []>} : vector<1024x27xbf16>, vector<27x128xbf16>, vector<1024x128xf32> -> vector<1024x128xf32>
    %c0_i32 = arith.constant 0 : i32
    %3 = arith.cmpi eq, %arg1, %c0_i32 : i32
    %4 = arith.extui %3 : i1 to i32
    %c0_i32_3 = arith.constant 0 : i32
    %5 = arith.cmpi ne, %4, %c0_i32_3 : i32
    scf.if %5 {
      %c0_8 = arith.constant 0 : index
      %c0_9 = arith.constant 0 : index
      %12 = vector.load %arg5[%c0_8, %c0_9] : memref<1024x128xf32, #tpu.memory_space<vmem>>, vector<1024x128xf32>
      tpu.vector_store %arg5[%c0_8, %c0_9], %2 {strides = array<i32>} : memref<1024x128xf32, #tpu.memory_space<vmem>>, vector<1024x128xf32>,
    } else {
    }
    %c0_i32_4 = arith.constant 0 : i32
    %6 = arith.cmpi sgt, %arg1, %c0_i32_4 : i32
    %7 = arith.extui %6 : i1 to i32
    %c0_i32_5 = arith.constant 0 : i32
    %8 = arith.cmpi ne, %7, %c0_i32_5 : i32
    scf.if %8 {
      %c0_8 = arith.constant 0 : index
      %c0_9 = arith.constant 0 : index
      %12 = vector.load %arg5[%c0_8, %c0_9] : memref<1024x128xf32, #tpu.memory_space<vmem>>, vector<1024x128xf32>
      %13 = arith.addf %12, %2 : vector<1024x128xf32>
      %c0_10 = arith.constant 0 : index
      %c0_11 = arith.constant 0 : index
      %14 = vector.load %arg5[%c0_10, %c0_11] : memref<1024x128xf32, #tpu.memory_space<vmem>>, vector<1024x128xf32>
      tpu.vector_store %arg5[%c0_10, %c0_11], %13 {strides = array<i32>} : memref<1024x128xf32, #tpu.memory_space<vmem>>, vector<1024x128xf32>,
    } else {
    }
    %c0_i32_6 = arith.constant 0 : i32
    %9 = arith.cmpi eq, %arg1, %c0_i32_6 : i32
    %10 = arith.extui %9 : i1 to i32
    %c0_i32_7 = arith.constant 0 : i32
    %11 = arith.cmpi ne, %10, %c0_i32_7 : i32
    scf.if %11 {
      %c0_8 = arith.constant 0 : index
      %c0_9 = arith.constant 0 : index
      %12 = vector.load %arg5[%c0_8, %c0_9] : memref<1024x128xf32, #tpu.memory_space<vmem>>, vector<1024x128xf32>
      %c0_10 = arith.constant 0 : index
      %c0_11 = arith.constant 0 : index
      %13 = vector.load %arg4[%c0_10, %c0_11] : memref<1x128xf32, #tpu.memory_space<vmem>>, vector<1x128xf32>
      %14 = vector.broadcast %13 : vector<1x128xf32> to vector<1024x128xf32>
      %15 = arith.addf %12, %14 : vector<1024x128xf32>
      %cst_12 = arith.constant 0.000000e+00 : f32
      %16 = vector.broadcast %cst_12 : f32 to vector<1024x128xf32>
      %17 = arith.maximumf %15, %16 : vector<1024x128xf32>
      %c0_13 = arith.constant 0 : index
      %c0_14 = arith.constant 0 : index
      %18 = vector.load %arg5[%c0_13, %c0_14] : memref<1024x128xf32, #tpu.memory_space<vmem>>, vector<1024x128xf32>
      tpu.vector_store %arg5[%c0_13, %c0_14], %17 {strides = array<i32>} : memref<1024x128xf32, #tpu.memory_space<vmem>>, vector<1024x128xf32>,
    } else {
    }
    return
  }
  func.func @transform_0(%arg0: i32, %arg1: i32) -> (i32, i32) {
    %c0_i32 = arith.constant 0 : i32
    return %arg0, %arg1 : i32, i32
  }
  func.func @transform_1(%arg0: i32, %arg1: i32) -> (i32, i32) {
    %c0_i32 = arith.constant 0 : i32
    %c0_i32_0 = arith.constant 0 : i32
    return %arg1, %c0_i32 : i32, i32
  }
  func.func @transform_2(%arg0: i32, %arg1: i32) -> (i32, i32) {
    %c0_i32 = arith.constant 0 : i32
    %c0_i32_0 = arith.constant 0 : i32
    %c0_i32_1 = arith.constant 0 : i32
    return %c0_i32, %c0_i32_0 : i32, i32
  }
  func.func @transform_3(%arg0: i32, %arg1: i32) -> (i32, i32) {
    %c0_i32 = arith.constant 0 : i32
    %c0_i32_0 = arith.constant 0 : i32
    return %arg0, %c0_i32 : i32, i32
  }
}

module attributes {stable_mosaic.version = 11 : i64} {
  func.func @_mm_bias_relu_kernel(%arg0: i32, %arg1: i32, %arg2: memref<512x432xbf16, #tpu.memory_space<vmem>>, %arg3: memref<432x128xbf16, #tpu.memory_space<vmem>>, %arg4: memref<1x128xf32, #tpu.memory_space<vmem>>, %arg5: memref<512x128xf32, #tpu.memory_space<vmem>>) attributes {dimension_semantics = [#tpu.dimension_semantics<parallel>, #tpu.dimension_semantics<arbitrary>], iteration_bounds = array<i64: 1, 1>, scalar_prefetch = 0 : i64, scratch_operands = 0 : i64, tpu.core_type = #tpu.core_type<tc>, window_params = [{transform_indices = @transform_0, window_bounds = array<i64: 512, 432>}, {transform_indices = @transform_1, window_bounds = array<i64: 432, 128>}, {pipeline_mode = #tpu.pipeline_mode<synchronous>, transform_indices = @transform_2, window_bounds = array<i64: 1, 128>}, {transform_indices = @transform_3, window_bounds = array<i64: 512, 128>}]} {
    %c0 = arith.constant 0 : index
    %c0_0 = arith.constant 0 : index
    %0 = vector.load %arg2[%c0, %c0_0] : memref<512x432xbf16, #tpu.memory_space<vmem>>, vector<512x432xbf16>
    %c0_1 = arith.constant 0 : index
    %c0_2 = arith.constant 0 : index
    %1 = vector.load %arg3[%c0_1, %c0_2] : memref<432x128xbf16, #tpu.memory_space<vmem>>, vector<432x128xbf16>
    %cst = arith.constant dense<0.000000e+00> : vector<512x128xf32>
    %2 = tpu.matmul %0, %1, %cst {dimension_numbers = #tpu.dot_dimension_numbers<[1], [0], [0], [1], [0, 0, 1, 1], [], []>} : vector<512x432xbf16>, vector<432x128xbf16>, vector<512x128xf32> -> vector<512x128xf32>
    %c0_i32 = arith.constant 0 : i32
    %3 = arith.cmpi eq, %arg1, %c0_i32 : i32
    %4 = arith.extui %3 : i1 to i32
    %c0_i32_3 = arith.constant 0 : i32
    %5 = arith.cmpi ne, %4, %c0_i32_3 : i32
    scf.if %5 {
      %c0_8 = arith.constant 0 : index
      %c0_9 = arith.constant 0 : index
      %12 = vector.load %arg5[%c0_8, %c0_9] : memref<512x128xf32, #tpu.memory_space<vmem>>, vector<512x128xf32>
      tpu.vector_store %arg5[%c0_8, %c0_9], %2 {strides = array<i32>} : memref<512x128xf32, #tpu.memory_space<vmem>>, vector<512x128xf32>,
    } else {
    }
    %c0_i32_4 = arith.constant 0 : i32
    %6 = arith.cmpi sgt, %arg1, %c0_i32_4 : i32
    %7 = arith.extui %6 : i1 to i32
    %c0_i32_5 = arith.constant 0 : i32
    %8 = arith.cmpi ne, %7, %c0_i32_5 : i32
    scf.if %8 {
      %c0_8 = arith.constant 0 : index
      %c0_9 = arith.constant 0 : index
      %12 = vector.load %arg5[%c0_8, %c0_9] : memref<512x128xf32, #tpu.memory_space<vmem>>, vector<512x128xf32>
      %13 = arith.addf %12, %2 : vector<512x128xf32>
      %c0_10 = arith.constant 0 : index
      %c0_11 = arith.constant 0 : index
      %14 = vector.load %arg5[%c0_10, %c0_11] : memref<512x128xf32, #tpu.memory_space<vmem>>, vector<512x128xf32>
      tpu.vector_store %arg5[%c0_10, %c0_11], %13 {strides = array<i32>} : memref<512x128xf32, #tpu.memory_space<vmem>>, vector<512x128xf32>,
    } else {
    }
    %c0_i32_6 = arith.constant 0 : i32
    %9 = arith.cmpi eq, %arg1, %c0_i32_6 : i32
    %10 = arith.extui %9 : i1 to i32
    %c0_i32_7 = arith.constant 0 : i32
    %11 = arith.cmpi ne, %10, %c0_i32_7 : i32
    scf.if %11 {
      %c0_8 = arith.constant 0 : index
      %c0_9 = arith.constant 0 : index
      %12 = vector.load %arg5[%c0_8, %c0_9] : memref<512x128xf32, #tpu.memory_space<vmem>>, vector<512x128xf32>
      %c0_10 = arith.constant 0 : index
      %c0_11 = arith.constant 0 : index
      %13 = vector.load %arg4[%c0_10, %c0_11] : memref<1x128xf32, #tpu.memory_space<vmem>>, vector<1x128xf32>
      %14 = vector.broadcast %13 : vector<1x128xf32> to vector<512x128xf32>
      %15 = arith.addf %12, %14 : vector<512x128xf32>
      %cst_12 = arith.constant 0.000000e+00 : f32
      %16 = vector.broadcast %cst_12 : f32 to vector<512x128xf32>
      %17 = arith.maximumf %15, %16 : vector<512x128xf32>
      %c0_13 = arith.constant 0 : index
      %c0_14 = arith.constant 0 : index
      %18 = vector.load %arg5[%c0_13, %c0_14] : memref<512x128xf32, #tpu.memory_space<vmem>>, vector<512x128xf32>
      tpu.vector_store %arg5[%c0_13, %c0_14], %17 {strides = array<i32>} : memref<512x128xf32, #tpu.memory_space<vmem>>, vector<512x128xf32>,
    } else {
    }
    return
  }
  func.func @transform_0(%arg0: i32, %arg1: i32) -> (i32, i32) {
    %c0_i32 = arith.constant 0 : i32
    return %arg0, %arg1 : i32, i32
  }
  func.func @transform_1(%arg0: i32, %arg1: i32) -> (i32, i32) {
    %c0_i32 = arith.constant 0 : i32
    %c0_i32_0 = arith.constant 0 : i32
    return %arg1, %c0_i32 : i32, i32
  }
  func.func @transform_2(%arg0: i32, %arg1: i32) -> (i32, i32) {
    %c0_i32 = arith.constant 0 : i32
    %c0_i32_0 = arith.constant 0 : i32
    %c0_i32_1 = arith.constant 0 : i32
    return %c0_i32, %c0_i32_0 : i32, i32
  }
  func.func @transform_3(%arg0: i32, %arg1: i32) -> (i32, i32) {
    %c0_i32 = arith.constant 0 : i32
    %c0_i32_0 = arith.constant 0 : i32
    return %arg0, %c0_i32 : i32, i32
  }
}

module attributes {stable_mosaic.version = 11 : i64} {
  func.func @_mm_bias_relu_kernel(%arg0: i32, %arg1: i32, %arg2: memref<128x576xbf16, #tpu.memory_space<vmem>>, %arg3: memref<576x128xbf16, #tpu.memory_space<vmem>>, %arg4: memref<1x128xf32, #tpu.memory_space<vmem>>, %arg5: memref<128x128xf32, #tpu.memory_space<vmem>>) attributes {dimension_semantics = [#tpu.dimension_semantics<parallel>, #tpu.dimension_semantics<arbitrary>], iteration_bounds = array<i64: 1, 1>, scalar_prefetch = 0 : i64, scratch_operands = 0 : i64, tpu.core_type = #tpu.core_type<tc>, window_params = [{transform_indices = @transform_0, window_bounds = array<i64: 128, 576>}, {transform_indices = @transform_1, window_bounds = array<i64: 576, 128>}, {pipeline_mode = #tpu.pipeline_mode<synchronous>, transform_indices = @transform_2, window_bounds = array<i64: 1, 128>}, {transform_indices = @transform_3, window_bounds = array<i64: 128, 128>}]} {
    %c0 = arith.constant 0 : index
    %c0_0 = arith.constant 0 : index
    %0 = vector.load %arg2[%c0, %c0_0] : memref<128x576xbf16, #tpu.memory_space<vmem>>, vector<128x576xbf16>
    %c0_1 = arith.constant 0 : index
    %c0_2 = arith.constant 0 : index
    %1 = vector.load %arg3[%c0_1, %c0_2] : memref<576x128xbf16, #tpu.memory_space<vmem>>, vector<576x128xbf16>
    %cst = arith.constant dense<0.000000e+00> : vector<128x128xf32>
    %2 = tpu.matmul %0, %1, %cst {dimension_numbers = #tpu.dot_dimension_numbers<[1], [0], [0], [1], [0, 0, 1, 1], [], []>} : vector<128x576xbf16>, vector<576x128xbf16>, vector<128x128xf32> -> vector<128x128xf32>
    %c0_i32 = arith.constant 0 : i32
    %3 = arith.cmpi eq, %arg1, %c0_i32 : i32
    %4 = arith.extui %3 : i1 to i32
    %c0_i32_3 = arith.constant 0 : i32
    %5 = arith.cmpi ne, %4, %c0_i32_3 : i32
    scf.if %5 {
      %c0_8 = arith.constant 0 : index
      %c0_9 = arith.constant 0 : index
      %12 = vector.load %arg5[%c0_8, %c0_9] : memref<128x128xf32, #tpu.memory_space<vmem>>, vector<128x128xf32>
      tpu.vector_store %arg5[%c0_8, %c0_9], %2 {strides = array<i32>} : memref<128x128xf32, #tpu.memory_space<vmem>>, vector<128x128xf32>,
    } else {
    }
    %c0_i32_4 = arith.constant 0 : i32
    %6 = arith.cmpi sgt, %arg1, %c0_i32_4 : i32
    %7 = arith.extui %6 : i1 to i32
    %c0_i32_5 = arith.constant 0 : i32
    %8 = arith.cmpi ne, %7, %c0_i32_5 : i32
    scf.if %8 {
      %c0_8 = arith.constant 0 : index
      %c0_9 = arith.constant 0 : index
      %12 = vector.load %arg5[%c0_8, %c0_9] : memref<128x128xf32, #tpu.memory_space<vmem>>, vector<128x128xf32>
      %13 = arith.addf %12, %2 : vector<128x128xf32>
      %c0_10 = arith.constant 0 : index
      %c0_11 = arith.constant 0 : index
      %14 = vector.load %arg5[%c0_10, %c0_11] : memref<128x128xf32, #tpu.memory_space<vmem>>, vector<128x128xf32>
      tpu.vector_store %arg5[%c0_10, %c0_11], %13 {strides = array<i32>} : memref<128x128xf32, #tpu.memory_space<vmem>>, vector<128x128xf32>,
    } else {
    }
    %c0_i32_6 = arith.constant 0 : i32
    %9 = arith.cmpi eq, %arg1, %c0_i32_6 : i32
    %10 = arith.extui %9 : i1 to i32
    %c0_i32_7 = arith.constant 0 : i32
    %11 = arith.cmpi ne, %10, %c0_i32_7 : i32
    scf.if %11 {
      %c0_8 = arith.constant 0 : index
      %c0_9 = arith.constant 0 : index
      %12 = vector.load %arg5[%c0_8, %c0_9] : memref<128x128xf32, #tpu.memory_space<vmem>>, vector<128x128xf32>
      %c0_10 = arith.constant 0 : index
      %c0_11 = arith.constant 0 : index
      %13 = vector.load %arg4[%c0_10, %c0_11] : memref<1x128xf32, #tpu.memory_space<vmem>>, vector<1x128xf32>
      %14 = vector.broadcast %13 : vector<1x128xf32> to vector<128x128xf32>
      %15 = arith.addf %12, %14 : vector<128x128xf32>
      %cst_12 = arith.constant 0.000000e+00 : f32
      %16 = vector.broadcast %cst_12 : f32 to vector<128x128xf32>
      %17 = arith.maximumf %15, %16 : vector<128x128xf32>
      %c0_13 = arith.constant 0 : index
      %c0_14 = arith.constant 0 : index
      %18 = vector.load %arg5[%c0_13, %c0_14] : memref<128x128xf32, #tpu.memory_space<vmem>>, vector<128x128xf32>
      tpu.vector_store %arg5[%c0_13, %c0_14], %17 {strides = array<i32>} : memref<128x128xf32, #tpu.memory_space<vmem>>, vector<128x128xf32>,
    } else {
    }
    return
  }
  func.func @transform_0(%arg0: i32, %arg1: i32) -> (i32, i32) {
    %c0_i32 = arith.constant 0 : i32
    return %arg0, %arg1 : i32, i32
  }
  func.func @transform_1(%arg0: i32, %arg1: i32) -> (i32, i32) {
    %c0_i32 = arith.constant 0 : i32
    %c0_i32_0 = arith.constant 0 : i32
    return %arg1, %c0_i32 : i32, i32
  }
  func.func @transform_2(%arg0: i32, %arg1: i32) -> (i32, i32) {
    %c0_i32 = arith.constant 0 : i32
    %c0_i32_0 = arith.constant 0 : i32
    %c0_i32_1 = arith.constant 0 : i32
    return %c0_i32, %c0_i32_0 : i32, i32
  }
  func.func @transform_3(%arg0: i32, %arg1: i32) -> (i32, i32) {
    %c0_i32 = arith.constant 0 : i32
    %c0_i32_0 = arith.constant 0 : i32
    return %arg0, %c0_i32 : i32, i32
  }
}

module attributes {stable_mosaic.version = 11 : i64} {
  func.func @_mm_bias_relu_kernel(%arg0: i32, %arg1: i32, %arg2: memref<32x576xbf16, #tpu.memory_space<vmem>>, %arg3: memref<576x128xbf16, #tpu.memory_space<vmem>>, %arg4: memref<1x128xf32, #tpu.memory_space<vmem>>, %arg5: memref<32x128xf32, #tpu.memory_space<vmem>>) attributes {dimension_semantics = [#tpu.dimension_semantics<parallel>, #tpu.dimension_semantics<arbitrary>], iteration_bounds = array<i64: 1, 1>, scalar_prefetch = 0 : i64, scratch_operands = 0 : i64, tpu.core_type = #tpu.core_type<tc>, window_params = [{transform_indices = @transform_0, window_bounds = array<i64: 32, 576>}, {transform_indices = @transform_1, window_bounds = array<i64: 576, 128>}, {pipeline_mode = #tpu.pipeline_mode<synchronous>, transform_indices = @transform_2, window_bounds = array<i64: 1, 128>}, {transform_indices = @transform_3, window_bounds = array<i64: 32, 128>}]} {
    %c0 = arith.constant 0 : index
    %c0_0 = arith.constant 0 : index
    %0 = vector.load %arg2[%c0, %c0_0] : memref<32x576xbf16, #tpu.memory_space<vmem>>, vector<32x576xbf16>
    %c0_1 = arith.constant 0 : index
    %c0_2 = arith.constant 0 : index
    %1 = vector.load %arg3[%c0_1, %c0_2] : memref<576x128xbf16, #tpu.memory_space<vmem>>, vector<576x128xbf16>
    %cst = arith.constant dense<0.000000e+00> : vector<32x128xf32>
    %2 = tpu.matmul %0, %1, %cst {dimension_numbers = #tpu.dot_dimension_numbers<[1], [0], [0], [1], [0, 0, 1, 1], [], []>} : vector<32x576xbf16>, vector<576x128xbf16>, vector<32x128xf32> -> vector<32x128xf32>
    %c0_i32 = arith.constant 0 : i32
    %3 = arith.cmpi eq, %arg1, %c0_i32 : i32
    %4 = arith.extui %3 : i1 to i32
    %c0_i32_3 = arith.constant 0 : i32
    %5 = arith.cmpi ne, %4, %c0_i32_3 : i32
    scf.if %5 {
      %c0_8 = arith.constant 0 : index
      %c0_9 = arith.constant 0 : index
      %12 = vector.load %arg5[%c0_8, %c0_9] : memref<32x128xf32, #tpu.memory_space<vmem>>, vector<32x128xf32>
      tpu.vector_store %arg5[%c0_8, %c0_9], %2 {strides = array<i32>} : memref<32x128xf32, #tpu.memory_space<vmem>>, vector<32x128xf32>,
    } else {
    }
    %c0_i32_4 = arith.constant 0 : i32
    %6 = arith.cmpi sgt, %arg1, %c0_i32_4 : i32
    %7 = arith.extui %6 : i1 to i32
    %c0_i32_5 = arith.constant 0 : i32
    %8 = arith.cmpi ne, %7, %c0_i32_5 : i32
    scf.if %8 {
      %c0_8 = arith.constant 0 : index
      %c0_9 = arith.constant 0 : index
      %12 = vector.load %arg5[%c0_8, %c0_9] : memref<32x128xf32, #tpu.memory_space<vmem>>, vector<32x128xf32>
      %13 = arith.addf %12, %2 : vector<32x128xf32>
      %c0_10 = arith.constant 0 : index
      %c0_11 = arith.constant 0 : index
      %14 = vector.load %arg5[%c0_10, %c0_11] : memref<32x128xf32, #tpu.memory_space<vmem>>, vector<32x128xf32>
      tpu.vector_store %arg5[%c0_10, %c0_11], %13 {strides = array<i32>} : memref<32x128xf32, #tpu.memory_space<vmem>>, vector<32x128xf32>,
    } else {
    }
    %c0_i32_6 = arith.constant 0 : i32
    %9 = arith.cmpi eq, %arg1, %c0_i32_6 : i32
    %10 = arith.extui %9 : i1 to i32
    %c0_i32_7 = arith.constant 0 : i32
    %11 = arith.cmpi ne, %10, %c0_i32_7 : i32
    scf.if %11 {
      %c0_8 = arith.constant 0 : index
      %c0_9 = arith.constant 0 : index
      %12 = vector.load %arg5[%c0_8, %c0_9] : memref<32x128xf32, #tpu.memory_space<vmem>>, vector<32x128xf32>
      %c0_10 = arith.constant 0 : index
      %c0_11 = arith.constant 0 : index
      %13 = vector.load %arg4[%c0_10, %c0_11] : memref<1x128xf32, #tpu.memory_space<vmem>>, vector<1x128xf32>
      %14 = vector.broadcast %13 : vector<1x128xf32> to vector<32x128xf32>
      %15 = arith.addf %12, %14 : vector<32x128xf32>
      %cst_12 = arith.constant 0.000000e+00 : f32
      %16 = vector.broadcast %cst_12 : f32 to vector<32x128xf32>
      %17 = arith.maximumf %15, %16 : vector<32x128xf32>
      %c0_13 = arith.constant 0 : index
      %c0_14 = arith.constant 0 : index
      %18 = vector.load %arg5[%c0_13, %c0_14] : memref<32x128xf32, #tpu.memory_space<vmem>>, vector<32x128xf32>
      tpu.vector_store %arg5[%c0_13, %c0_14], %17 {strides = array<i32>} : memref<32x128xf32, #tpu.memory_space<vmem>>, vector<32x128xf32>,
    } else {
    }
    return
  }
  func.func @transform_0(%arg0: i32, %arg1: i32) -> (i32, i32) {
    %c0_i32 = arith.constant 0 : i32
    return %arg0, %arg1 : i32, i32
  }
  func.func @transform_1(%arg0: i32, %arg1: i32) -> (i32, i32) {
    %c0_i32 = arith.constant 0 : i32
    %c0_i32_0 = arith.constant 0 : i32
    return %arg1, %c0_i32 : i32, i32
  }
  func.func @transform_2(%arg0: i32, %arg1: i32) -> (i32, i32) {
    %c0_i32 = arith.constant 0 : i32
    %c0_i32_0 = arith.constant 0 : i32
    %c0_i32_1 = arith.constant 0 : i32
    return %c0_i32, %c0_i32_0 : i32, i32
  }
  func.func @transform_3(%arg0: i32, %arg1: i32) -> (i32, i32) {
    %c0_i32 = arith.constant 0 : i32
    %c0_i32_0 = arith.constant 0 : i32
    return %arg0, %c0_i32 : i32, i32
  }
}

module attributes {stable_mosaic.version = 11 : i64} {
  func.func @_mm_bias_relu_kernel(%arg0: i32, %arg1: i32, %arg2: memref<32x1152xbf16, #tpu.memory_space<vmem>>, %arg3: memref<1152x128xbf16, #tpu.memory_space<vmem>>, %arg4: memref<1x128xf32, #tpu.memory_space<vmem>>, %arg5: memref<32x128xf32, #tpu.memory_space<vmem>>) attributes {dimension_semantics = [#tpu.dimension_semantics<parallel>, #tpu.dimension_semantics<arbitrary>], iteration_bounds = array<i64: 1, 1>, scalar_prefetch = 0 : i64, scratch_operands = 0 : i64, tpu.core_type = #tpu.core_type<tc>, window_params = [{transform_indices = @transform_0, window_bounds = array<i64: 32, 1152>}, {transform_indices = @transform_1, window_bounds = array<i64: 1152, 128>}, {pipeline_mode = #tpu.pipeline_mode<synchronous>, transform_indices = @transform_2, window_bounds = array<i64: 1, 128>}, {transform_indices = @transform_3, window_bounds = array<i64: 32, 128>}]} {
    %c0 = arith.constant 0 : index
    %c0_0 = arith.constant 0 : index
    %0 = vector.load %arg2[%c0, %c0_0] : memref<32x1152xbf16, #tpu.memory_space<vmem>>, vector<32x1152xbf16>
    %c0_1 = arith.constant 0 : index
    %c0_2 = arith.constant 0 : index
    %1 = vector.load %arg3[%c0_1, %c0_2] : memref<1152x128xbf16, #tpu.memory_space<vmem>>, vector<1152x128xbf16>
    %cst = arith.constant dense<0.000000e+00> : vector<32x128xf32>
    %2 = tpu.matmul %0, %1, %cst {dimension_numbers = #tpu.dot_dimension_numbers<[1], [0], [0], [1], [0, 0, 1, 1], [], []>} : vector<32x1152xbf16>, vector<1152x128xbf16>, vector<32x128xf32> -> vector<32x128xf32>
    %c0_i32 = arith.constant 0 : i32
    %3 = arith.cmpi eq, %arg1, %c0_i32 : i32
    %4 = arith.extui %3 : i1 to i32
    %c0_i32_3 = arith.constant 0 : i32
    %5 = arith.cmpi ne, %4, %c0_i32_3 : i32
    scf.if %5 {
      %c0_8 = arith.constant 0 : index
      %c0_9 = arith.constant 0 : index
      %12 = vector.load %arg5[%c0_8, %c0_9] : memref<32x128xf32, #tpu.memory_space<vmem>>, vector<32x128xf32>
      tpu.vector_store %arg5[%c0_8, %c0_9], %2 {strides = array<i32>} : memref<32x128xf32, #tpu.memory_space<vmem>>, vector<32x128xf32>,
    } else {
    }
    %c0_i32_4 = arith.constant 0 : i32
    %6 = arith.cmpi sgt, %arg1, %c0_i32_4 : i32
    %7 = arith.extui %6 : i1 to i32
    %c0_i32_5 = arith.constant 0 : i32
    %8 = arith.cmpi ne, %7, %c0_i32_5 : i32
    scf.if %8 {
      %c0_8 = arith.constant 0 : index
      %c0_9 = arith.constant 0 : index
      %12 = vector.load %arg5[%c0_8, %c0_9] : memref<32x128xf32, #tpu.memory_space<vmem>>, vector<32x128xf32>
      %13 = arith.addf %12, %2 : vector<32x128xf32>
      %c0_10 = arith.constant 0 : index
      %c0_11 = arith.constant 0 : index
      %14 = vector.load %arg5[%c0_10, %c0_11] : memref<32x128xf32, #tpu.memory_space<vmem>>, vector<32x128xf32>
      tpu.vector_store %arg5[%c0_10, %c0_11], %13 {strides = array<i32>} : memref<32x128xf32, #tpu.memory_space<vmem>>, vector<32x128xf32>,
    } else {
    }
    %c0_i32_6 = arith.constant 0 : i32
    %9 = arith.cmpi eq, %arg1, %c0_i32_6 : i32
    %10 = arith.extui %9 : i1 to i32
    %c0_i32_7 = arith.constant 0 : i32
    %11 = arith.cmpi ne, %10, %c0_i32_7 : i32
    scf.if %11 {
      %c0_8 = arith.constant 0 : index
      %c0_9 = arith.constant 0 : index
      %12 = vector.load %arg5[%c0_8, %c0_9] : memref<32x128xf32, #tpu.memory_space<vmem>>, vector<32x128xf32>
      %c0_10 = arith.constant 0 : index
      %c0_11 = arith.constant 0 : index
      %13 = vector.load %arg4[%c0_10, %c0_11] : memref<1x128xf32, #tpu.memory_space<vmem>>, vector<1x128xf32>
      %14 = vector.broadcast %13 : vector<1x128xf32> to vector<32x128xf32>
      %15 = arith.addf %12, %14 : vector<32x128xf32>
      %cst_12 = arith.constant 0.000000e+00 : f32
      %16 = vector.broadcast %cst_12 : f32 to vector<32x128xf32>
      %17 = arith.maximumf %15, %16 : vector<32x128xf32>
      %c0_13 = arith.constant 0 : index
      %c0_14 = arith.constant 0 : index
      %18 = vector.load %arg5[%c0_13, %c0_14] : memref<32x128xf32, #tpu.memory_space<vmem>>, vector<32x128xf32>
      tpu.vector_store %arg5[%c0_13, %c0_14], %17 {strides = array<i32>} : memref<32x128xf32, #tpu.memory_space<vmem>>, vector<32x128xf32>,
    } else {
    }
    return
  }
  func.func @transform_0(%arg0: i32, %arg1: i32) -> (i32, i32) {
    %c0_i32 = arith.constant 0 : i32
    return %arg0, %arg1 : i32, i32
  }
  func.func @transform_1(%arg0: i32, %arg1: i32) -> (i32, i32) {
    %c0_i32 = arith.constant 0 : i32
    %c0_i32_0 = arith.constant 0 : i32
    return %arg1, %c0_i32 : i32, i32
  }
  func.func @transform_2(%arg0: i32, %arg1: i32) -> (i32, i32) {
    %c0_i32 = arith.constant 0 : i32
    %c0_i32_0 = arith.constant 0 : i32
    %c0_i32_1 = arith.constant 0 : i32
    return %c0_i32, %c0_i32_0 : i32, i32
  }
  func.func @transform_3(%arg0: i32, %arg1: i32) -> (i32, i32) {
    %c0_i32 = arith.constant 0 : i32
    %c0_i32_0 = arith.constant 0 : i32
    return %arg0, %c0_i32 : i32, i32
  }
}

module attributes {stable_mosaic.version = 11 : i64} {
  func.func @_mm_bias_relu_kernel(%arg0: i32, %arg1: i32, %arg2: memref<8x1152xbf16, #tpu.memory_space<vmem>>, %arg3: memref<1152x128xbf16, #tpu.memory_space<vmem>>, %arg4: memref<1x128xf32, #tpu.memory_space<vmem>>, %arg5: memref<8x128xf32, #tpu.memory_space<vmem>>) attributes {dimension_semantics = [#tpu.dimension_semantics<parallel>, #tpu.dimension_semantics<arbitrary>], iteration_bounds = array<i64: 1, 1>, scalar_prefetch = 0 : i64, scratch_operands = 0 : i64, tpu.core_type = #tpu.core_type<tc>, window_params = [{transform_indices = @transform_0, window_bounds = array<i64: 8, 1152>}, {transform_indices = @transform_1, window_bounds = array<i64: 1152, 128>}, {pipeline_mode = #tpu.pipeline_mode<synchronous>, transform_indices = @transform_2, window_bounds = array<i64: 1, 128>}, {transform_indices = @transform_3, window_bounds = array<i64: 8, 128>}]} {
    %c0 = arith.constant 0 : index
    %c0_0 = arith.constant 0 : index
    %0 = vector.load %arg2[%c0, %c0_0] : memref<8x1152xbf16, #tpu.memory_space<vmem>>, vector<8x1152xbf16>
    %c0_1 = arith.constant 0 : index
    %c0_2 = arith.constant 0 : index
    %1 = vector.load %arg3[%c0_1, %c0_2] : memref<1152x128xbf16, #tpu.memory_space<vmem>>, vector<1152x128xbf16>
    %cst = arith.constant dense<0.000000e+00> : vector<8x128xf32>
    %2 = tpu.matmul %0, %1, %cst {dimension_numbers = #tpu.dot_dimension_numbers<[1], [0], [0], [1], [0, 0, 1, 1], [], []>} : vector<8x1152xbf16>, vector<1152x128xbf16>, vector<8x128xf32> -> vector<8x128xf32>
    %c0_i32 = arith.constant 0 : i32
    %3 = arith.cmpi eq, %arg1, %c0_i32 : i32
    %4 = arith.extui %3 : i1 to i32
    %c0_i32_3 = arith.constant 0 : i32
    %5 = arith.cmpi ne, %4, %c0_i32_3 : i32
    scf.if %5 {
      %c0_8 = arith.constant 0 : index
      %c0_9 = arith.constant 0 : index
      %12 = vector.load %arg5[%c0_8, %c0_9] : memref<8x128xf32, #tpu.memory_space<vmem>>, vector<8x128xf32>
      tpu.vector_store %arg5[%c0_8, %c0_9], %2 {strides = array<i32>} : memref<8x128xf32, #tpu.memory_space<vmem>>, vector<8x128xf32>,
    } else {
    }
    %c0_i32_4 = arith.constant 0 : i32
    %6 = arith.cmpi sgt, %arg1, %c0_i32_4 : i32
    %7 = arith.extui %6 : i1 to i32
    %c0_i32_5 = arith.constant 0 : i32
    %8 = arith.cmpi ne, %7, %c0_i32_5 : i32
    scf.if %8 {
      %c0_8 = arith.constant 0 : index
      %c0_9 = arith.constant 0 : index
      %12 = vector.load %arg5[%c0_8, %c0_9] : memref<8x128xf32, #tpu.memory_space<vmem>>, vector<8x128xf32>
      %13 = arith.addf %12, %2 : vector<8x128xf32>
      %c0_10 = arith.constant 0 : index
      %c0_11 = arith.constant 0 : index
      %14 = vector.load %arg5[%c0_10, %c0_11] : memref<8x128xf32, #tpu.memory_space<vmem>>, vector<8x128xf32>
      tpu.vector_store %arg5[%c0_10, %c0_11], %13 {strides = array<i32>} : memref<8x128xf32, #tpu.memory_space<vmem>>, vector<8x128xf32>,
    } else {
    }
    %c0_i32_6 = arith.constant 0 : i32
    %9 = arith.cmpi eq, %arg1, %c0_i32_6 : i32
    %10 = arith.extui %9 : i1 to i32
    %c0_i32_7 = arith.constant 0 : i32
    %11 = arith.cmpi ne, %10, %c0_i32_7 : i32
    scf.if %11 {
      %c0_8 = arith.constant 0 : index
      %c0_9 = arith.constant 0 : index
      %12 = vector.load %arg5[%c0_8, %c0_9] : memref<8x128xf32, #tpu.memory_space<vmem>>, vector<8x128xf32>
      %c0_10 = arith.constant 0 : index
      %c0_11 = arith.constant 0 : index
      %13 = vector.load %arg4[%c0_10, %c0_11] : memref<1x128xf32, #tpu.memory_space<vmem>>, vector<1x128xf32>
      %14 = vector.broadcast %13 : vector<1x128xf32> to vector<8x128xf32>
      %15 = arith.addf %12, %14 : vector<8x128xf32>
      %cst_12 = arith.constant 0.000000e+00 : f32
      %16 = vector.broadcast %cst_12 : f32 to vector<8x128xf32>
      %17 = arith.maximumf %15, %16 : vector<8x128xf32>
      %c0_13 = arith.constant 0 : index
      %c0_14 = arith.constant 0 : index
      %18 = vector.load %arg5[%c0_13, %c0_14] : memref<8x128xf32, #tpu.memory_space<vmem>>, vector<8x128xf32>
      tpu.vector_store %arg5[%c0_13, %c0_14], %17 {strides = array<i32>} : memref<8x128xf32, #tpu.memory_space<vmem>>, vector<8x128xf32>,
    } else {
    }
    return
  }
  func.func @transform_0(%arg0: i32, %arg1: i32) -> (i32, i32) {
    %c0_i32 = arith.constant 0 : i32
    return %arg0, %arg1 : i32, i32
  }
  func.func @transform_1(%arg0: i32, %arg1: i32) -> (i32, i32) {
    %c0_i32 = arith.constant 0 : i32
    %c0_i32_0 = arith.constant 0 : i32
    return %arg1, %c0_i32 : i32, i32
  }
  func.func @transform_2(%arg0: i32, %arg1: i32) -> (i32, i32) {
    %c0_i32 = arith.constant 0 : i32
    %c0_i32_0 = arith.constant 0 : i32
    %c0_i32_1 = arith.constant 0 : i32
    return %c0_i32, %c0_i32_0 : i32, i32
  }
  func.func @transform_3(%arg0: i32, %arg1: i32) -> (i32, i32) {
    %c0_i32 = arith.constant 0 : i32
    %c0_i32_0 = arith.constant 0 : i32
    return %arg0, %c0_i32 : i32, i32
  }
}

module attributes {stable_mosaic.version = 11 : i64} {
  func.func @_mm_bias_relu_kernel(%arg0: i32, %arg1: i32, %arg2: memref<2x1792xbf16, #tpu.memory_space<vmem>>, %arg3: memref<1792x128xbf16, #tpu.memory_space<vmem>>, %arg4: memref<1x128xf32, #tpu.memory_space<vmem>>, %arg5: memref<2x128xf32, #tpu.memory_space<vmem>>) attributes {dimension_semantics = [#tpu.dimension_semantics<parallel>, #tpu.dimension_semantics<arbitrary>], iteration_bounds = array<i64: 1, 14>, scalar_prefetch = 0 : i64, scratch_operands = 0 : i64, tpu.core_type = #tpu.core_type<tc>, window_params = [{transform_indices = @transform_0, window_bounds = array<i64: 2, 1792>}, {transform_indices = @transform_1, window_bounds = array<i64: 1792, 128>}, {pipeline_mode = #tpu.pipeline_mode<synchronous>, transform_indices = @transform_2, window_bounds = array<i64: 1, 128>}, {transform_indices = @transform_3, window_bounds = array<i64: 2, 128>}]} {
    %c0 = arith.constant 0 : index
    %c0_0 = arith.constant 0 : index
    %0 = vector.load %arg2[%c0, %c0_0] : memref<2x1792xbf16, #tpu.memory_space<vmem>>, vector<2x1792xbf16>
    %c0_1 = arith.constant 0 : index
    %c0_2 = arith.constant 0 : index
    %1 = vector.load %arg3[%c0_1, %c0_2] : memref<1792x128xbf16, #tpu.memory_space<vmem>>, vector<1792x128xbf16>
    %cst = arith.constant dense<0.000000e+00> : vector<2x128xf32>
    %2 = tpu.matmul %0, %1, %cst {dimension_numbers = #tpu.dot_dimension_numbers<[1], [0], [0], [1], [0, 0, 1, 1], [], []>} : vector<2x1792xbf16>, vector<1792x128xbf16>, vector<2x128xf32> -> vector<2x128xf32>
    %c0_i32 = arith.constant 0 : i32
    %3 = arith.cmpi eq, %arg1, %c0_i32 : i32
    %4 = arith.extui %3 : i1 to i32
    %c0_i32_3 = arith.constant 0 : i32
    %5 = arith.cmpi ne, %4, %c0_i32_3 : i32
    scf.if %5 {
      %c0_7 = arith.constant 0 : index
      %c0_8 = arith.constant 0 : index
      %12 = vector.load %arg5[%c0_7, %c0_8] : memref<2x128xf32, #tpu.memory_space<vmem>>, vector<2x128xf32>
      tpu.vector_store %arg5[%c0_7, %c0_8], %2 {strides = array<i32>} : memref<2x128xf32, #tpu.memory_space<vmem>>, vector<2x128xf32>,
    } else {
    }
    %c0_i32_4 = arith.constant 0 : i32
    %6 = arith.cmpi sgt, %arg1, %c0_i32_4 : i32
    %7 = arith.extui %6 : i1 to i32
    %c0_i32_5 = arith.constant 0 : i32
    %8 = arith.cmpi ne, %7, %c0_i32_5 : i32
    scf.if %8 {
      %c0_7 = arith.constant 0 : index
      %c0_8 = arith.constant 0 : index
      %12 = vector.load %arg5[%c0_7, %c0_8] : memref<2x128xf32, #tpu.memory_space<vmem>>, vector<2x128xf32>
      %13 = arith.addf %12, %2 : vector<2x128xf32>
      %c0_9 = arith.constant 0 : index
      %c0_10 = arith.constant 0 : index
      %14 = vector.load %arg5[%c0_9, %c0_10] : memref<2x128xf32, #tpu.memory_space<vmem>>, vector<2x128xf32>
      tpu.vector_store %arg5[%c0_9, %c0_10], %13 {strides = array<i32>} : memref<2x128xf32, #tpu.memory_space<vmem>>, vector<2x128xf32>,
    } else {
    }
    %c13_i32 = arith.constant 13 : i32
    %9 = arith.cmpi eq, %arg1, %c13_i32 : i32
    %10 = arith.extui %9 : i1 to i32
    %c0_i32_6 = arith.constant 0 : i32
    %11 = arith.cmpi ne, %10, %c0_i32_6 : i32
    scf.if %11 {
      %c0_7 = arith.constant 0 : index
      %c0_8 = arith.constant 0 : index
      %12 = vector.load %arg5[%c0_7, %c0_8] : memref<2x128xf32, #tpu.memory_space<vmem>>, vector<2x128xf32>
      %c0_9 = arith.constant 0 : index
      %c0_10 = arith.constant 0 : index
      %13 = vector.load %arg4[%c0_9, %c0_10] : memref<1x128xf32, #tpu.memory_space<vmem>>, vector<1x128xf32>
      %14 = vector.broadcast %13 : vector<1x128xf32> to vector<2x128xf32>
      %15 = arith.addf %12, %14 : vector<2x128xf32>
      %cst_11 = arith.constant 0.000000e+00 : f32
      %16 = vector.broadcast %cst_11 : f32 to vector<2x128xf32>
      %17 = arith.maximumf %15, %16 : vector<2x128xf32>
      %c0_12 = arith.constant 0 : index
      %c0_13 = arith.constant 0 : index
      %18 = vector.load %arg5[%c0_12, %c0_13] : memref<2x128xf32, #tpu.memory_space<vmem>>, vector<2x128xf32>
      tpu.vector_store %arg5[%c0_12, %c0_13], %17 {strides = array<i32>} : memref<2x128xf32, #tpu.memory_space<vmem>>, vector<2x128xf32>,
    } else {
    }
    return
  }
  func.func @transform_0(%arg0: i32, %arg1: i32) -> (i32, i32) {
    %c0_i32 = arith.constant 0 : i32
    return %arg0, %arg1 : i32, i32
  }
  func.func @transform_1(%arg0: i32, %arg1: i32) -> (i32, i32) {
    %c0_i32 = arith.constant 0 : i32
    %c0_i32_0 = arith.constant 0 : i32
    return %arg1, %c0_i32 : i32, i32
  }
  func.func @transform_2(%arg0: i32, %arg1: i32) -> (i32, i32) {
    %c0_i32 = arith.constant 0 : i32
    %c0_i32_0 = arith.constant 0 : i32
    %c0_i32_1 = arith.constant 0 : i32
    return %c0_i32, %c0_i32_0 : i32, i32
  }
  func.func @transform_3(%arg0: i32, %arg1: i32) -> (i32, i32) {
    %c0_i32 = arith.constant 0 : i32
    %c0_i32_0 = arith.constant 0 : i32
    return %arg0, %c0_i32 : i32, i32
  }
}

module attributes {stable_mosaic.version = 11 : i64} {
  func.func @_mm_bias_relu_kernel(%arg0: i32, %arg1: i32, %arg2: memref<2x128xbf16, #tpu.memory_space<vmem>>, %arg3: memref<128x256xbf16, #tpu.memory_space<vmem>>, %arg4: memref<1x256xf32, #tpu.memory_space<vmem>>, %arg5: memref<2x256xf32, #tpu.memory_space<vmem>>) attributes {dimension_semantics = [#tpu.dimension_semantics<parallel>, #tpu.dimension_semantics<arbitrary>], iteration_bounds = array<i64: 1, 1>, scalar_prefetch = 0 : i64, scratch_operands = 0 : i64, tpu.core_type = #tpu.core_type<tc>, window_params = [{transform_indices = @transform_0, window_bounds = array<i64: 2, 128>}, {transform_indices = @transform_1, window_bounds = array<i64: 128, 256>}, {pipeline_mode = #tpu.pipeline_mode<synchronous>, transform_indices = @transform_2, window_bounds = array<i64: 1, 256>}, {transform_indices = @transform_3, window_bounds = array<i64: 2, 256>}]} {
    %c0 = arith.constant 0 : index
    %c0_0 = arith.constant 0 : index
    %0 = vector.load %arg2[%c0, %c0_0] : memref<2x128xbf16, #tpu.memory_space<vmem>>, vector<2x128xbf16>
    %c0_1 = arith.constant 0 : index
    %c0_2 = arith.constant 0 : index
    %1 = vector.load %arg3[%c0_1, %c0_2] : memref<128x256xbf16, #tpu.memory_space<vmem>>, vector<128x256xbf16>
    %cst = arith.constant dense<0.000000e+00> : vector<2x256xf32>
    %2 = tpu.matmul %0, %1, %cst {dimension_numbers = #tpu.dot_dimension_numbers<[1], [0], [0], [1], [0, 0, 1, 1], [], []>} : vector<2x128xbf16>, vector<128x256xbf16>, vector<2x256xf32> -> vector<2x256xf32>
    %c0_i32 = arith.constant 0 : i32
    %3 = arith.cmpi eq, %arg1, %c0_i32 : i32
    %4 = arith.extui %3 : i1 to i32
    %c0_i32_3 = arith.constant 0 : i32
    %5 = arith.cmpi ne, %4, %c0_i32_3 : i32
    scf.if %5 {
      %c0_8 = arith.constant 0 : index
      %c0_9 = arith.constant 0 : index
      %12 = vector.load %arg5[%c0_8, %c0_9] : memref<2x256xf32, #tpu.memory_space<vmem>>, vector<2x256xf32>
      tpu.vector_store %arg5[%c0_8, %c0_9], %2 {strides = array<i32>} : memref<2x256xf32, #tpu.memory_space<vmem>>, vector<2x256xf32>,
    } else {
    }
    %c0_i32_4 = arith.constant 0 : i32
    %6 = arith.cmpi sgt, %arg1, %c0_i32_4 : i32
    %7 = arith.extui %6 : i1 to i32
    %c0_i32_5 = arith.constant 0 : i32
    %8 = arith.cmpi ne, %7, %c0_i32_5 : i32
    scf.if %8 {
      %c0_8 = arith.constant 0 : index
      %c0_9 = arith.constant 0 : index
      %12 = vector.load %arg5[%c0_8, %c0_9] : memref<2x256xf32, #tpu.memory_space<vmem>>, vector<2x256xf32>
      %13 = arith.addf %12, %2 : vector<2x256xf32>
      %c0_10 = arith.constant 0 : index
      %c0_11 = arith.constant 0 : index
      %14 = vector.load %arg5[%c0_10, %c0_11] : memref<2x256xf32, #tpu.memory_space<vmem>>, vector<2x256xf32>
      tpu.vector_store %arg5[%c0_10, %c0_11], %13 {strides = array<i32>} : memref<2x256xf32, #tpu.memory_space<vmem>>, vector<2x256xf32>,
    } else {
    }
    %c0_i32_6 = arith.constant 0 : i32
    %9 = arith.cmpi eq, %arg1, %c0_i32_6 : i32
    %10 = arith.extui %9 : i1 to i32
    %c0_i32_7 = arith.constant 0 : i32
    %11 = arith.cmpi ne, %10, %c0_i32_7 : i32
    scf.if %11 {
      %c0_8 = arith.constant 0 : index
      %c0_9 = arith.constant 0 : index
      %12 = vector.load %arg5[%c0_8, %c0_9] : memref<2x256xf32, #tpu.memory_space<vmem>>, vector<2x256xf32>
      %c0_10 = arith.constant 0 : index
      %c0_11 = arith.constant 0 : index
      %13 = vector.load %arg4[%c0_10, %c0_11] : memref<1x256xf32, #tpu.memory_space<vmem>>, vector<1x256xf32>
      %14 = vector.broadcast %13 : vector<1x256xf32> to vector<2x256xf32>
      %15 = arith.addf %12, %14 : vector<2x256xf32>
      %cst_12 = arith.constant 0.000000e+00 : f32
      %16 = vector.broadcast %cst_12 : f32 to vector<2x256xf32>
      %17 = arith.maximumf %15, %16 : vector<2x256xf32>
      %c0_13 = arith.constant 0 : index
      %c0_14 = arith.constant 0 : index
      %18 = vector.load %arg5[%c0_13, %c0_14] : memref<2x256xf32, #tpu.memory_space<vmem>>, vector<2x256xf32>
      tpu.vector_store %arg5[%c0_13, %c0_14], %17 {strides = array<i32>} : memref<2x256xf32, #tpu.memory_space<vmem>>, vector<2x256xf32>,
    } else {
    }
    return
  }
  func.func @transform_0(%arg0: i32, %arg1: i32) -> (i32, i32) {
    %c0_i32 = arith.constant 0 : i32
    return %arg0, %arg1 : i32, i32
  }
  func.func @transform_1(%arg0: i32, %arg1: i32) -> (i32, i32) {
    %c0_i32 = arith.constant 0 : i32
    %c0_i32_0 = arith.constant 0 : i32
    return %arg1, %c0_i32 : i32, i32
  }
  func.func @transform_2(%arg0: i32, %arg1: i32) -> (i32, i32) {
    %c0_i32 = arith.constant 0 : i32
    %c0_i32_0 = arith.constant 0 : i32
    %c0_i32_1 = arith.constant 0 : i32
    return %c0_i32, %c0_i32_0 : i32, i32
  }
  func.func @transform_3(%arg0: i32, %arg1: i32) -> (i32, i32) {
    %c0_i32 = arith.constant 0 : i32
    %c0_i32_0 = arith.constant 0 : i32
    return %arg0, %c0_i32 : i32, i32
  }
}

module attributes {stable_mosaic.version = 11 : i64} {
  func.func @_mm_bias_relu_kernel(%arg0: i32, %arg1: i32, %arg2: memref<2x256xbf16, #tpu.memory_space<vmem>>, %arg3: memref<256x128xbf16, #tpu.memory_space<vmem>>, %arg4: memref<1x128xf32, #tpu.memory_space<vmem>>, %arg5: memref<2x128xf32, #tpu.memory_space<vmem>>) attributes {dimension_semantics = [#tpu.dimension_semantics<parallel>, #tpu.dimension_semantics<arbitrary>], iteration_bounds = array<i64: 1, 1>, scalar_prefetch = 0 : i64, scratch_operands = 0 : i64, tpu.core_type = #tpu.core_type<tc>, window_params = [{transform_indices = @transform_0, window_bounds = array<i64: 2, 256>}, {transform_indices = @transform_1, window_bounds = array<i64: 256, 128>}, {pipeline_mode = #tpu.pipeline_mode<synchronous>, transform_indices = @transform_2, window_bounds = array<i64: 1, 128>}, {transform_indices = @transform_3, window_bounds = array<i64: 2, 128>}]} {
    %c0 = arith.constant 0 : index
    %c0_0 = arith.constant 0 : index
    %0 = vector.load %arg2[%c0, %c0_0] : memref<2x256xbf16, #tpu.memory_space<vmem>>, vector<2x256xbf16>
    %c0_1 = arith.constant 0 : index
    %c0_2 = arith.constant 0 : index
    %1 = vector.load %arg3[%c0_1, %c0_2] : memref<256x128xbf16, #tpu.memory_space<vmem>>, vector<256x128xbf16>
    %cst = arith.constant dense<0.000000e+00> : vector<2x128xf32>
    %2 = tpu.matmul %0, %1, %cst {dimension_numbers = #tpu.dot_dimension_numbers<[1], [0], [0], [1], [0, 0, 1, 1], [], []>} : vector<2x256xbf16>, vector<256x128xbf16>, vector<2x128xf32> -> vector<2x128xf32>
    %c0_i32 = arith.constant 0 : i32
    %3 = arith.cmpi eq, %arg1, %c0_i32 : i32
    %4 = arith.extui %3 : i1 to i32
    %c0_i32_3 = arith.constant 0 : i32
    %5 = arith.cmpi ne, %4, %c0_i32_3 : i32
    scf.if %5 {
      %c0_8 = arith.constant 0 : index
      %c0_9 = arith.constant 0 : index
      %12 = vector.load %arg5[%c0_8, %c0_9] : memref<2x128xf32, #tpu.memory_space<vmem>>, vector<2x128xf32>
      tpu.vector_store %arg5[%c0_8, %c0_9], %2 {strides = array<i32>} : memref<2x128xf32, #tpu.memory_space<vmem>>, vector<2x128xf32>,
    } else {
    }
    %c0_i32_4 = arith.constant 0 : i32
    %6 = arith.cmpi sgt, %arg1, %c0_i32_4 : i32
    %7 = arith.extui %6 : i1 to i32
    %c0_i32_5 = arith.constant 0 : i32
    %8 = arith.cmpi ne, %7, %c0_i32_5 : i32
    scf.if %8 {
      %c0_8 = arith.constant 0 : index
      %c0_9 = arith.constant 0 : index
      %12 = vector.load %arg5[%c0_8, %c0_9] : memref<2x128xf32, #tpu.memory_space<vmem>>, vector<2x128xf32>
      %13 = arith.addf %12, %2 : vector<2x128xf32>
      %c0_10 = arith.constant 0 : index
      %c0_11 = arith.constant 0 : index
      %14 = vector.load %arg5[%c0_10, %c0_11] : memref<2x128xf32, #tpu.memory_space<vmem>>, vector<2x128xf32>
      tpu.vector_store %arg5[%c0_10, %c0_11], %13 {strides = array<i32>} : memref<2x128xf32, #tpu.memory_space<vmem>>, vector<2x128xf32>,
    } else {
    }
    %c0_i32_6 = arith.constant 0 : i32
    %9 = arith.cmpi eq, %arg1, %c0_i32_6 : i32
    %10 = arith.extui %9 : i1 to i32
    %c0_i32_7 = arith.constant 0 : i32
    %11 = arith.cmpi ne, %10, %c0_i32_7 : i32
    scf.if %11 {
      %c0_8 = arith.constant 0 : index
      %c0_9 = arith.constant 0 : index
      %12 = vector.load %arg5[%c0_8, %c0_9] : memref<2x128xf32, #tpu.memory_space<vmem>>, vector<2x128xf32>
      %c0_10 = arith.constant 0 : index
      %c0_11 = arith.constant 0 : index
      %13 = vector.load %arg4[%c0_10, %c0_11] : memref<1x128xf32, #tpu.memory_space<vmem>>, vector<1x128xf32>
      %14 = vector.broadcast %13 : vector<1x128xf32> to vector<2x128xf32>
      %15 = arith.addf %12, %14 : vector<2x128xf32>
      %cst_12 = arith.constant 0.000000e+00 : f32
      %16 = vector.broadcast %cst_12 : f32 to vector<2x128xf32>
      %17 = arith.maximumf %15, %16 : vector<2x128xf32>
      %c0_13 = arith.constant 0 : index
      %c0_14 = arith.constant 0 : index
      %18 = vector.load %arg5[%c0_13, %c0_14] : memref<2x128xf32, #tpu.memory_space<vmem>>, vector<2x128xf32>
      tpu.vector_store %arg5[%c0_13, %c0_14], %17 {strides = array<i32>} : memref<2x128xf32, #tpu.memory_space<vmem>>, vector<2x128xf32>,
    } else {
    }
    return
  }
  func.func @transform_0(%arg0: i32, %arg1: i32) -> (i32, i32) {
    %c0_i32 = arith.constant 0 : i32
    return %arg0, %arg1 : i32, i32
  }
  func.func @transform_1(%arg0: i32, %arg1: i32) -> (i32, i32) {
    %c0_i32 = arith.constant 0 : i32
    %c0_i32_0 = arith.constant 0 : i32
    return %arg1, %c0_i32 : i32, i32
  }
  func.func @transform_2(%arg0: i32, %arg1: i32) -> (i32, i32) {
    %c0_i32 = arith.constant 0 : i32
    %c0_i32_0 = arith.constant 0 : i32
    %c0_i32_1 = arith.constant 0 : i32
    return %c0_i32, %c0_i32_0 : i32, i32
  }
  func.func @transform_3(%arg0: i32, %arg1: i32) -> (i32, i32) {
    %c0_i32 = arith.constant 0 : i32
    %c0_i32_0 = arith.constant 0 : i32
    return %arg0, %c0_i32 : i32, i32
  }
}

</mosaic_0001>

<bundles_post_ra>
// kernel: s_cnn_forward.12
= control target key start
LH: loop header
LB: loop body
LE: loop exit
PB: predicated region body
PF: predicated region fallthrough
CT: control target
= control target key end

     0   :  { %8 = vsyncpa [#allocation3], 0  ;;  %s3387_s0 = inlined_call_operand.vmem [shape: bf16[2048,27], index: 0, kind: input, shape index: {}]   ;;  %s3388_s1 = inlined_call_operand.hbm [shape: bf16[27,128], index: 1, kind: input, shape index: {}]   ;;  %s3389_s2 = inlined_call_operand.hbm [shape: f32[1,128], index: 2, kind: input, shape index: {}]   ;;  %s3390_s3 = inlined_call_operand.vmem [shape: f32[2048,128], index: 3, kind: output, shape index: {}]  }
   0x1   :  { %9 = vsyncpa [#allocation5], 0  ;;  %s2944_s12 = smov 0   ;;  %s2946_s13 = smov 0  }
   0x2   :  { %s2948_s14 = smov 0  }
   0x3 LB: > { %s2362_s15 = sadd.s32 4294967295, %s2917_s14   ;;  %s27_s16 = sadd.s32 1, %s2913_s13  ;;  %s2917_s14 = sphi %s2948_s14, %s15_s14   ;;  %s2913_s13 = sphi %s2946_s13, %s3394_s13   ;;  %s2909_s12 = sphi %s2944_s12, %s3393_s12  }
   0x4   : > { %p29_p0 = scmp.ge.s32.totalorder %s27_s16, 2  ;;  %p2364_p1 = scmp.ge.s32.totalorder %s2917_s14, 1 }
   0x5   : > { %p133_p2 = scmp.lt.s32.totalorder %s2917_s14, 3  ;;  %p2969_p4 = scmp.eq.s32.totalorder %s2362_s15, 0 }
   0x6   : > { %s3396_s16 = smov (%p29_p0, %s27_s16), 0  ;;  %s147_s21 = sshll.u32 %s3388_s1, 4  ;;  %s148_s21 = int_to_ptr.hbm [resolvable:$true] %s147_s21 }
   0x7   : > { %p2965_p3 = pnand %p2364_p1, %p133_p2  ;;  %s2919_s22 = smov [#allocation2]  }
   0x8   : > { %s149_s23 = sshll.u32 %s2919_s22, 4  ;;  %s162_s26 = sshll.u32 %s3389_s2, 4  ;;  %s150_s23 = int_to_ptr.vmem [resolvable:$true] %s149_s23  ;;  %s163_s26 = int_to_ptr.hbm [resolvable:$true] %s162_s26 }
   0x9   : > { %p2785_p5 = pneg %p2965_p3  ;;  %s2920_s27 = smov 64  }
   0xa   : > { %s2921_s28 = smov 4   ;;  %s2922_s29 = smov [#allocation4]  }
   0xb   : > { %p2786_p6 = pnand %p2969_p4, %p2785_p5  ;;  %s164_s30 = sshll.u32 %s2922_s29, 4  ;;  %s165_s30 = int_to_ptr.vmem [resolvable:$true] %s164_s30 }
   0xc   : > { %189 = sbr.rel (%p2965_p3) target bundleno = 420 (0x1a4), region = 32 }
   0xd   : > { %2788 = dma.hbm_to_vmem [thread:$0]  (!%p2786_p6), %s148_s21, 256, %s150_s23, [#allocation3], %s2920_s27, %s2920_s27, %s2921_s28  }
   0xe   : > { %2791 = dma.hbm_to_vmem [thread:$0]  (!%p2786_p6), %s163_s26, 16, %s165_s30, [#allocation5]  }
  0x11   : > { %2900 = dma.done.wait (%p2969_p4), [#allocation3], 256  }
  0x12   : > { %2902 = vsyncadd (%p2969_p4), [#allocation3], 4294967040 }
  0x13   : > { %2904 = dma.done.wait (%p2969_p4), [#allocation5], 16  }
  0x14   : > { %2906 = vsyncadd (%p2969_p4), [#allocation5], 4294967280  ;;  %s2371_s4 = sshll.u32 %s2909_s12, 7  ;;  %vm895_vm0 = vcmask 1044480   ;;  %vm896_vm1 = vcmask 1045504   ;;  %v2923_v0 = vmov 65535  }
  0x15   : > { %p223_p7 = scmp.lt.s32.totalorder %s2371_s4, 255  ;;  %v897_v1 = vsel %vm895_vm0, 4294967295, %v2923_v0  ;;  %v2637_v2 = vld [vmem:[#allocation2 + $0x8] sm:$0xf]  ;;  %v2770_v3 = vld [vmem:[#allocation2 + $0x8] sm:$0x30] }
  0x16   : > { %v898_v4 = vsel %vm896_vm1, %v897_v1, 0  ;;  %v2638_v5 = vor.u32 %v2770_v3, %v2637_v2  ;;  %v2769_v7 = vld [vmem:[#allocation2] sm:$0xff]  ;;  %vm702_vm2 = vcmask 220160   ;;  %v3066_v40 = vld [vmem:[#allocation4] ss:$0 sm:$0xff] }
  0x17   : > { %s3398_s4 = smov (!%p223_p7, %s2371_s4), 255 }
  0x18   : > { %s2372_s5 = sshll.u32 %s3398_s4, 2  ;;  %v900_v6 = vand.u32 %v2638_v5, %v898_v4  ;;  %s2374_s9 = sshll.u32 %s3398_s4, 3 }
  0x19   : > { %s3000_s8 = scalar_lea.vmem %s3387_s0, %s2372_s5  ;;  %s3078_s12 = scalar_lea.vmem %s3390_s3, %s2374_s9 }
  0x1a   : > { %908 = vmatpush.bf16.msra.mxu0 %v900_v6  ;;  %2771 = vmatpush.bf16.msra.mxu1 %v900_v6  ;;  %v2705_v8 = vld [vmem:[%s3000_s8] sm:$0xff]  ;;  %v2706_v12 = vld [vmem:[%s3000_s8 + $0x8] sm:$0xff]  ;;  %v2707_v16 = vld [vmem:[%s3000_s8 + $0x10] sm:$0xff] }
  0x1b   : > { %2772 = vmatpush.bf16.msra.mxu2 %v900_v6  ;;  %2773 = vmatpush.bf16.msra.mxu3 %v900_v6  ;;  %v2721_v9 = vld [vmem:[%s3000_s8 + $0x80] sm:$0xff]  ;;  %v2722_v13 = vld [vmem:[%s3000_s8 + $0x88] sm:$0xff]  ;;  %v2723_v17 = vld [vmem:[%s3000_s8 + $0x90] sm:$0xff] }
  0x1c   : > { %v2737_v10 = vld [vmem:[%s3000_s8 + $0x100] sm:$0xff]  ;;  %v2738_v14 = vld [vmem:[%s3000_s8 + $0x108] sm:$0xff]  ;;  %v2739_v18 = vld [vmem:[%s3000_s8 + $0x110] sm:$0xff] }
  0x1d   : > { %v2753_v11 = vld [vmem:[%s3000_s8 + $0x180] sm:$0xff]  ;;  %v2754_v15 = vld [vmem:[%s3000_s8 + $0x188] sm:$0xff]  ;;  %v2755_v19 = vld [vmem:[%s3000_s8 + $0x190] sm:$0xff] }
  0x1e   : > { %909 = vmatpush.bf16.msra.mxu0 %v2769_v7  ;;  %2774 = vmatpush.bf16.msra.mxu1 %v2769_v7  ;;  %v2708_v20 = vld [vmem:[%s3000_s8 + $0x18] sm:$0xff]  ;;  %v2709_v24 = vld [vmem:[%s3000_s8 + $0x20] sm:$0xff]  ;;  %v2710_v28 = vld [vmem:[%s3000_s8 + $0x28] sm:$0xff] }
  0x1f   : > { %2775 = vmatpush.bf16.msra.mxu2 %v2769_v7  ;;  %2776 = vmatpush.bf16.msra.mxu3 %v2769_v7  ;;  %v2724_v21 = vld [vmem:[%s3000_s8 + $0x98] sm:$0xff]  ;;  %v2725_v25 = vld [vmem:[%s3000_s8 + $0xa0] sm:$0xff]  ;;  %v2726_v29 = vld [vmem:[%s3000_s8 + $0xa8] sm:$0xff] }
  0x20   : > { %v2740_v22 = vld [vmem:[%s3000_s8 + $0x118] sm:$0xff]  ;;  %v2741_v26 = vld [vmem:[%s3000_s8 + $0x120] sm:$0xff]  ;;  %v2742_v30 = vld [vmem:[%s3000_s8 + $0x128] sm:$0xff] }
  0x21   : > { %2639 = vmatmul.msk.bf16.vlgmr.msra.gmra.mxu0 %vm702_vm2, %v2705_v8  ;;  %2655 = vmatmul.msk.bf16.vlgmr.msra.gmra.mxu1 %vm702_vm2, %v2721_v9  ;;  %v2756_v23 = vld [vmem:[%s3000_s8 + $0x198] sm:$0xff]  ;;  %v2757_v27 = vld [vmem:[%s3000_s8 + $0x1a0] sm:$0xff]  ;;  %v2758_v31 = vld [vmem:[%s3000_s8 + $0x1a8] sm:$0xff] }
  0x22   : > { %2671 = vmatmul.msk.bf16.vlgmr.msra.gmra.mxu2 %vm702_vm2, %v2737_v10  ;;  %2687 = vmatmul.msk.bf16.vlgmr.msra.gmra.mxu3 %vm702_vm2, %v2753_v11  ;;  %v2711_v32 = vld [vmem:[%s3000_s8 + $0x30] sm:$0xff]  ;;  %v2712_v36 = vld [vmem:[%s3000_s8 + $0x38] sm:$0xff]  ;;  %v2713_v41 = vld [vmem:[%s3000_s8 + $0x40] sm:$0xff] }
  0x23   : > { %v2727_v33 = vld [vmem:[%s3000_s8 + $0xb0] sm:$0xff]  ;;  %v2728_v37 = vld [vmem:[%s3000_s8 + $0xb8] sm:$0xff]  ;;  %v2729_v42 = vld [vmem:[%s3000_s8 + $0xc0] sm:$0xff] }
  0x24   : > { %v2743_v34 = vld [vmem:[%s3000_s8 + $0x130] sm:$0xff]  ;;  %v2744_v38 = vld [vmem:[%s3000_s8 + $0x138] sm:$0xff]  ;;  %v2745_v45 = vld [vmem:[%s3000_s8 + $0x140] sm:$0xff] }
  0x25   : > { %v2759_v35 = vld [vmem:[%s3000_s8 + $0x1b0] sm:$0xff]  ;;  %v2760_v39 = vld [vmem:[%s3000_s8 + $0x1b8] sm:$0xff]  ;;  %v2761_v46 = vld [vmem:[%s3000_s8 + $0x1c0] sm:$0xff] }
  0x26   : > { %v2714_v1 = vld [vmem:[%s3000_s8 + $0x48] sm:$0xff] }
  0x27   : > { %v2730_v2 = vld [vmem:[%s3000_s8 + $0xc8] sm:$0xff] }
  0x28   : > { %v2746_v7 = vld [vmem:[%s3000_s8 + $0x148] sm:$0xff] }
  0x29   : > { %v2762_v8 = vld [vmem:[%s3000_s8 + $0x1c8] sm:$0xff] }
  0x31   : > { %2640 = vmatmul.msk.bf16.gmra.mxu0 %vm702_vm2, %v2706_v12  ;;  %2656 = vmatmul.msk.bf16.gmra.mxu1 %vm702_vm2, %v2722_v13 }
  0x32   : > { %2672 = vmatmul.msk.bf16.gmra.mxu2 %vm702_vm2, %v2738_v14  ;;  %2688 = vmatmul.msk.bf16.gmra.mxu3 %vm702_vm2, %v2754_v15 }
  0x41   : > { %2641 = vmatmul.msk.bf16.gmra.mxu0 %vm702_vm2, %v2707_v16  ;;  %2657 = vmatmul.msk.bf16.gmra.mxu1 %vm702_vm2, %v2723_v17 }
  0x42   : > { %2673 = vmatmul.msk.bf16.gmra.mxu2 %vm702_vm2, %v2739_v18  ;;  %2689 = vmatmul.msk.bf16.gmra.mxu3 %vm702_vm2, %v2755_v19 }
  0x51   : > { %2642 = vmatmul.msk.bf16.gmra.mxu0 %vm702_vm2, %v2708_v20  ;;  %2658 = vmatmul.msk.bf16.gmra.mxu1 %vm702_vm2, %v2724_v21 }
  0x52   : > { %2674 = vmatmul.msk.bf16.gmra.mxu2 %vm702_vm2, %v2740_v22  ;;  %2690 = vmatmul.msk.bf16.gmra.mxu3 %vm702_vm2, %v2756_v23 }
  0x61   : > { %2643 = vmatmul.msk.bf16.gmra.mxu0 %vm702_vm2, %v2709_v24  ;;  %2659 = vmatmul.msk.bf16.gmra.mxu1 %vm702_vm2, %v2725_v25 }
  0x62   : > { %2675 = vmatmul.msk.bf16.gmra.mxu2 %vm702_vm2, %v2741_v26  ;;  %2691 = vmatmul.msk.bf16.gmra.mxu3 %vm702_vm2, %v2757_v27 }
  0x71   : > { %2644 = vmatmul.msk.bf16.gmra.mxu0 %vm702_vm2, %v2710_v28  ;;  %2660 = vmatmul.msk.bf16.gmra.mxu1 %vm702_vm2, %v2726_v29  ;;  %v2715_v29 = vld [vmem:[%s3000_s8 + $0x50] sm:$0xff] }
  0x72   : > { %2676 = vmatmul.msk.bf16.gmra.mxu2 %vm702_vm2, %v2742_v30  ;;  %2692 = vmatmul.msk.bf16.gmra.mxu3 %vm702_vm2, %v2758_v31  ;;  %v2731_v30 = vld [vmem:[%s3000_s8 + $0xd0] sm:$0xff] }
  0x81   : > { %2645 = vmatmul.msk.bf16.gmra.mxu0 %vm702_vm2, %v2711_v32  ;;  %2661 = vmatmul.msk.bf16.gmra.mxu1 %vm702_vm2, %v2727_v33 }
  0x82   : > { %2677 = vmatmul.msk.bf16.gmra.mxu2 %vm702_vm2, %v2743_v34  ;;  %2693 = vmatmul.msk.bf16.gmra.mxu3 %vm702_vm2, %v2759_v35  ;;  %v2747_v35 = vld [vmem:[%s3000_s8 + $0x150] sm:$0xff] }
  0x91   : > { %2646 = vmatmul.msk.bf16.gmra.mxu0 %vm702_vm2, %v2712_v36  ;;  %2662 = vmatmul.msk.bf16.gmra.mxu1 %vm702_vm2, %v2728_v37  ;;  %v2763_v36 = vld [vmem:[%s3000_s8 + $0x1d0] sm:$0xff] }
  0x92   : > { %2678 = vmatmul.msk.bf16.gmra.mxu2 %vm702_vm2, %v2744_v38  ;;  %2694 = vmatmul.msk.bf16.gmra.mxu3 %vm702_vm2, %v2760_v39 }
  0x9e   : > { %v911_v43 = vpop.f32.mrf.mxu0  ;;  %v991_v44 = vpop.f32.mrf.mxu1 }
  0x9f   : > { %v1886_v47 = vadd.f32 %v3066_v40, %v911_v43  ;;  %v1918_v48 = vadd.f32 %v3066_v40, %v991_v44 }
  0xa1   : > { %v2014_v49 = vmax.f32 %v1886_v47, 0.0  ;;  %v2046_v50 = vmax.f32 %v1918_v48, 0.0  ;;  %2647 = vmatmul.msk.bf16.gmra.mxu0 %vm702_vm2, %v2713_v41  ;;  %2663 = vmatmul.msk.bf16.gmra.mxu1 %vm702_vm2, %v2729_v42 }
  0xa2   : > { %2679 = vmatmul.msk.bf16.gmra.mxu2 %vm702_vm2, %v2745_v45  ;;  %2695 = vmatmul.msk.bf16.gmra.mxu3 %vm702_vm2, %v2761_v46 }
  0xa3   : > { %2142 = vst [vmem:[%s3078_s12] sm:$0xff] %v2014_v49 }
  0xa4   : > { %2174 = vst [vmem:[%s3078_s12 + $0x100] sm:$0xff] %v2046_v50 }
  0xa5   : > { %v1071_v51 = vpop.f32.mrf.mxu2  ;;  %v1151_v52 = vpop.f32.mrf.mxu3 }
  0xa6   : > { %v1950_v53 = vadd.f32 %v3066_v40, %v1071_v51  ;;  %v1982_v54 = vadd.f32 %v3066_v40, %v1151_v52  ;;  %v913_v55 = vpop.f32.mrf.mxu0  ;;  %v993_v56 = vpop.f32.mrf.mxu1 }
  0xa7   : > { %v1887_v57 = vadd.f32 %v3066_v40, %v913_v55  ;;  %v1919_v58 = vadd.f32 %v3066_v40, %v993_v56 }
  0xa8   : > { %v2078_v59 = vmax.f32 %v1950_v53, 0.0  ;;  %v2110_v60 = vmax.f32 %v1982_v54, 0.0 }
  0xa9   : > { %v2015_v61 = vmax.f32 %v1887_v57, 0.0  ;;  %v2047_v62 = vmax.f32 %v1919_v58, 0.0  ;;  %v2716_v58 = vld [vmem:[%s3000_s8 + $0x58] sm:$0xff] }
  0xaa   : > { %2206 = vst [vmem:[%s3078_s12 + $0x200] sm:$0xff] %v2078_v59  ;;  %v2732_v59 = vld [vmem:[%s3000_s8 + $0xd8] sm:$0xff] }
  0xab   : > { %2238 = vst [vmem:[%s3078_s12 + $0x300] sm:$0xff] %v2110_v60 }
  0xac   : > { %2143 = vst [vmem:[%s3078_s12 + $0x8] sm:$0xff] %v2015_v61 }
  0xad   : > { %2175 = vst [vmem:[%s3078_s12 + $0x108] sm:$0xff] %v2047_v62  ;;  %v1073_v63 = vpop.f32.mrf.mxu2  ;;  %v1153_v0 = vpop.f32.mrf.mxu3 }
  0xae   : > { %v1951_v3 = vadd.f32 %v3066_v40, %v1073_v63  ;;  %v1983_v4 = vadd.f32 %v3066_v40, %v1153_v0  ;;  %v916_v5 = vpop.f32.mrf.mxu0  ;;  %v996_v6 = vpop.f32.mrf.mxu1  ;;  %v2748_v0 = vld [vmem:[%s3000_s8 + $0x158] sm:$0xff] }
  0xaf   : > { %v1888_v9 = vadd.f32 %v3066_v40, %v916_v5  ;;  %v1920_v10 = vadd.f32 %v3066_v40, %v996_v6 }
  0xb0   : > { %v2079_v11 = vmax.f32 %v1951_v3, 0.0  ;;  %v2111_v12 = vmax.f32 %v1983_v4, 0.0 }
  0xb1   : > { %v2016_v13 = vmax.f32 %v1888_v9, 0.0  ;;  %v2048_v14 = vmax.f32 %v1920_v10, 0.0  ;;  %2648 = vmatmul.msk.bf16.gmra.mxu0 %vm702_vm2, %v2714_v1  ;;  %2664 = vmatmul.msk.bf16.gmra.mxu1 %vm702_vm2, %v2730_v2  ;;  %v2764_v1 = vld [vmem:[%s3000_s8 + $0x1d8] sm:$0xff] }
  0xb2   : > { %2207 = vst [vmem:[%s3078_s12 + $0x208] sm:$0xff] %v2079_v11  ;;  %2680 = vmatmul.msk.bf16.gmra.mxu2 %vm702_vm2, %v2746_v7  ;;  %2696 = vmatmul.msk.bf16.gmra.mxu3 %vm702_vm2, %v2762_v8 }
  0xb3   : > { %2239 = vst [vmem:[%s3078_s12 + $0x308] sm:$0xff] %v2111_v12 }
  0xb4   : > { %2144 = vst [vmem:[%s3078_s12 + $0x10] sm:$0xff] %v2016_v13 }
  0xb5   : > { %2176 = vst [vmem:[%s3078_s12 + $0x110] sm:$0xff] %v2048_v14  ;;  %v1076_v15 = vpop.f32.mrf.mxu2  ;;  %v1156_v16 = vpop.f32.mrf.mxu3 }
  0xb6   : > { %v1952_v17 = vadd.f32 %v3066_v40, %v1076_v15  ;;  %v1984_v18 = vadd.f32 %v3066_v40, %v1156_v16  ;;  %v918_v19 = vpop.f32.mrf.mxu0  ;;  %v998_v20 = vpop.f32.mrf.mxu1 }
  0xb7   : > { %v1889_v21 = vadd.f32 %v3066_v40, %v918_v19  ;;  %v1921_v22 = vadd.f32 %v3066_v40, %v998_v20 }
  0xb8   : > { %v2080_v23 = vmax.f32 %v1952_v17, 0.0  ;;  %v2112_v24 = vmax.f32 %v1984_v18, 0.0 }
  0xb9   : > { %v2017_v25 = vmax.f32 %v1889_v21, 0.0  ;;  %v2049_v26 = vmax.f32 %v1921_v22, 0.0  ;;  %v2717_v22 = vld [vmem:[%s3000_s8 + $0x60] sm:$0xff] }
  0xba   : > { %2208 = vst [vmem:[%s3078_s12 + $0x210] sm:$0xff] %v2080_v23  ;;  %v2733_v23 = vld [vmem:[%s3000_s8 + $0xe0] sm:$0xff] }
  0xbb   : > { %2240 = vst [vmem:[%s3078_s12 + $0x310] sm:$0xff] %v2112_v24 }
  0xbc   : > { %2145 = vst [vmem:[%s3078_s12 + $0x18] sm:$0xff] %v2017_v25 }
  0xbd   : > { %2177 = vst [vmem:[%s3078_s12 + $0x118] sm:$0xff] %v2049_v26  ;;  %v1078_v27 = vpop.f32.mrf.mxu2  ;;  %v1158_v28 = vpop.f32.mrf.mxu3 }
  0xbe   : > { %v1953_v31 = vadd.f32 %v3066_v40, %v1078_v27  ;;  %v1985_v32 = vadd.f32 %v3066_v40, %v1158_v28  ;;  %v921_v33 = vpop.f32.mrf.mxu0  ;;  %v1001_v34 = vpop.f32.mrf.mxu1  ;;  %v2749_v28 = vld [vmem:[%s3000_s8 + $0x160] sm:$0xff] }
  0xbf   : > { %v1890_v37 = vadd.f32 %v3066_v40, %v921_v33  ;;  %v1922_v38 = vadd.f32 %v3066_v40, %v1001_v34 }
  0xc0   : > { %v2081_v39 = vmax.f32 %v1953_v31, 0.0  ;;  %v2113_v41 = vmax.f32 %v1985_v32, 0.0 }
  0xc1   : > { %v2018_v42 = vmax.f32 %v1890_v37, 0.0  ;;  %v2050_v43 = vmax.f32 %v1922_v38, 0.0  ;;  %2649 = vmatmul.msk.bf16.gmra.mxu0 %vm702_vm2, %v2715_v29  ;;  %2665 = vmatmul.msk.bf16.gmra.mxu1 %vm702_vm2, %v2731_v30  ;;  %v2765_v29 = vld [vmem:[%s3000_s8 + $0x1e0] sm:$0xff] }
  0xc2   : > { %2209 = vst [vmem:[%s3078_s12 + $0x218] sm:$0xff] %v2081_v39  ;;  %2681 = vmatmul.msk.bf16.gmra.mxu2 %vm702_vm2, %v2747_v35  ;;  %2697 = vmatmul.msk.bf16.gmra.mxu3 %vm702_vm2, %v2763_v36 }
  0xc3   : > { %2241 = vst [vmem:[%s3078_s12 + $0x318] sm:$0xff] %v2113_v41 }
  0xc4   : > { %2146 = vst [vmem:[%s3078_s12 + $0x20] sm:$0xff] %v2018_v42 }
  0xc5   : > { %2178 = vst [vmem:[%s3078_s12 + $0x120] sm:$0xff] %v2050_v43  ;;  %v1081_v44 = vpop.f32.mrf.mxu2  ;;  %v1161_v45 = vpop.f32.mrf.mxu3 }
  0xc6   : > { %v1954_v46 = vadd.f32 %v3066_v40, %v1081_v44  ;;  %v1986_v47 = vadd.f32 %v3066_v40, %v1161_v45  ;;  %v923_v48 = vpop.f32.mrf.mxu0  ;;  %v1003_v49 = vpop.f32.mrf.mxu1 }
  0xc7   : > { %v1891_v50 = vadd.f32 %v3066_v40, %v923_v48  ;;  %v1923_v51 = vadd.f32 %v3066_v40, %v1003_v49 }
  0xc8   : > { %v2082_v52 = vmax.f32 %v1954_v46, 0.0  ;;  %v2114_v53 = vmax.f32 %v1986_v47, 0.0 }
  0xc9   : > { %v2019_v54 = vmax.f32 %v1891_v50, 0.0  ;;  %v2051_v55 = vmax.f32 %v1923_v51, 0.0  ;;  %v2718_v51 = vld [vmem:[%s3000_s8 + $0x68] sm:$0xff] }
  0xca   : > { %2210 = vst [vmem:[%s3078_s12 + $0x220] sm:$0xff] %v2082_v52  ;;  %v2734_v52 = vld [vmem:[%s3000_s8 + $0xe8] sm:$0xff] }
  0xcb   : > { %2242 = vst [vmem:[%s3078_s12 + $0x320] sm:$0xff] %v2114_v53 }
  0xcc   : > { %2147 = vst [vmem:[%s3078_s12 + $0x28] sm:$0xff] %v2019_v54 }
  0xcd   : > { %2179 = vst [vmem:[%s3078_s12 + $0x128] sm:$0xff] %v2051_v55  ;;  %v1083_v56 = vpop.f32.mrf.mxu2  ;;  %v1163_v57 = vpop.f32.mrf.mxu3 }
  0xce   : > { %v1955_v60 = vadd.f32 %v3066_v40, %v1083_v56  ;;  %v1987_v61 = vadd.f32 %v3066_v40, %v1163_v57  ;;  %v926_v62 = vpop.f32.mrf.mxu0  ;;  %v1006_v63 = vpop.f32.mrf.mxu1  ;;  %v2750_v57 = vld [vmem:[%s3000_s8 + $0x168] sm:$0xff] }
  0xcf   : > { %v1892_v2 = vadd.f32 %v3066_v40, %v926_v62  ;;  %v1924_v3 = vadd.f32 %v3066_v40, %v1006_v63 }
  0xd0   : > { %v2083_v4 = vmax.f32 %v1955_v60, 0.0  ;;  %v2115_v5 = vmax.f32 %v1987_v61, 0.0 }
  0xd1   : > { %v2020_v6 = vmax.f32 %v1892_v2, 0.0  ;;  %v2052_v7 = vmax.f32 %v1924_v3, 0.0  ;;  %2650 = vmatmul.msk.bf16.gmra.mxu0 %vm702_vm2, %v2716_v58  ;;  %2666 = vmatmul.msk.bf16.gmra.mxu1 %vm702_vm2, %v2732_v59  ;;  %v2766_v58 = vld [vmem:[%s3000_s8 + $0x1e8] sm:$0xff] }
  0xd2   : > { %2211 = vst [vmem:[%s3078_s12 + $0x228] sm:$0xff] %v2083_v4  ;;  %2682 = vmatmul.msk.bf16.gmra.mxu2 %vm702_vm2, %v2748_v0  ;;  %2698 = vmatmul.msk.bf16.gmra.mxu3 %vm702_vm2, %v2764_v1 }
  0xd3   : > { %2243 = vst [vmem:[%s3078_s12 + $0x328] sm:$0xff] %v2115_v5 }
  0xd4   : > { %2148 = vst [vmem:[%s3078_s12 + $0x30] sm:$0xff] %v2020_v6 }
  0xd5   : > { %2180 = vst [vmem:[%s3078_s12 + $0x130] sm:$0xff] %v2052_v7  ;;  %v1086_v8 = vpop.f32.mrf.mxu2  ;;  %v1166_v9 = vpop.f32.mrf.mxu3 }
  0xd6   : > { %v1956_v10 = vadd.f32 %v3066_v40, %v1086_v8  ;;  %v1988_v11 = vadd.f32 %v3066_v40, %v1166_v9  ;;  %v928_v12 = vpop.f32.mrf.mxu0  ;;  %v1008_v13 = vpop.f32.mrf.mxu1 }
  0xd7   : > { %v1893_v14 = vadd.f32 %v3066_v40, %v928_v12  ;;  %v1925_v15 = vadd.f32 %v3066_v40, %v1008_v13 }
  0xd8   : > { %v2084_v16 = vmax.f32 %v1956_v10, 0.0  ;;  %v2116_v17 = vmax.f32 %v1988_v11, 0.0 }
  0xd9   : > { %v2021_v18 = vmax.f32 %v1893_v14, 0.0  ;;  %v2053_v19 = vmax.f32 %v1925_v15, 0.0  ;;  %v2719_v15 = vld [vmem:[%s3000_s8 + $0x70] sm:$0xff] }
  0xda   : > { %2212 = vst [vmem:[%s3078_s12 + $0x230] sm:$0xff] %v2084_v16  ;;  %v2735_v16 = vld [vmem:[%s3000_s8 + $0xf0] sm:$0xff] }
  0xdb   : > { %2244 = vst [vmem:[%s3078_s12 + $0x330] sm:$0xff] %v2116_v17 }
  0xdc   : > { %2149 = vst [vmem:[%s3078_s12 + $0x38] sm:$0xff] %v2021_v18 }
  0xdd   : > { %2181 = vst [vmem:[%s3078_s12 + $0x138] sm:$0xff] %v2053_v19  ;;  %v1088_v20 = vpop.f32.mrf.mxu2  ;;  %v1168_v21 = vpop.f32.mrf.mxu3 }
  0xde   : > { %v1957_v24 = vadd.f32 %v3066_v40, %v1088_v20  ;;  %v1989_v25 = vadd.f32 %v3066_v40, %v1168_v21  ;;  %v931_v26 = vpop.f32.mrf.mxu0  ;;  %v1011_v27 = vpop.f32.mrf.mxu1  ;;  %v2751_v21 = vld [vmem:[%s3000_s8 + $0x170] sm:$0xff] }
  0xdf   : > { %v1894_v30 = vadd.f32 %v3066_v40, %v931_v26  ;;  %v1926_v31 = vadd.f32 %v3066_v40, %v1011_v27 }
  0xe0   : > { %v2085_v32 = vmax.f32 %v1957_v24, 0.0  ;;  %v2117_v33 = vmax.f32 %v1989_v25, 0.0 }
  0xe1   : > { %v2022_v34 = vmax.f32 %v1894_v30, 0.0  ;;  %v2054_v35 = vmax.f32 %v1926_v31, 0.0  ;;  %2651 = vmatmul.msk.bf16.gmra.mxu0 %vm702_vm2, %v2717_v22  ;;  %2667 = vmatmul.msk.bf16.gmra.mxu1 %vm702_vm2, %v2733_v23  ;;  %v2767_v22 = vld [vmem:[%s3000_s8 + $0x1f0] sm:$0xff] }
  0xe2   : > { %2213 = vst [vmem:[%s3078_s12 + $0x238] sm:$0xff] %v2085_v32  ;;  %2683 = vmatmul.msk.bf16.gmra.mxu2 %vm702_vm2, %v2749_v28  ;;  %2699 = vmatmul.msk.bf16.gmra.mxu3 %vm702_vm2, %v2765_v29 }
  0xe3   : > { %2245 = vst [vmem:[%s3078_s12 + $0x338] sm:$0xff] %v2117_v33 }
  0xe4   : > { %2150 = vst [vmem:[%s3078_s12 + $0x40] sm:$0xff] %v2022_v34 }
  0xe5   : > { %2182 = vst [vmem:[%s3078_s12 + $0x140] sm:$0xff] %v2054_v35  ;;  %v1091_v36 = vpop.f32.mrf.mxu2  ;;  %v1171_v37 = vpop.f32.mrf.mxu3 }
  0xe6   : > { %v1958_v38 = vadd.f32 %v3066_v40, %v1091_v36  ;;  %v1990_v39 = vadd.f32 %v3066_v40, %v1171_v37  ;;  %v933_v41 = vpop.f32.mrf.mxu0  ;;  %v1013_v42 = vpop.f32.mrf.mxu1 }
  0xe7   : > { %v1895_v43 = vadd.f32 %v3066_v40, %v933_v41  ;;  %v1927_v44 = vadd.f32 %v3066_v40, %v1013_v42 }
  0xe8   : > { %v2086_v45 = vmax.f32 %v1958_v38, 0.0  ;;  %v2118_v46 = vmax.f32 %v1990_v39, 0.0 }
  0xe9   : > { %v2023_v47 = vmax.f32 %v1895_v43, 0.0  ;;  %v2055_v48 = vmax.f32 %v1927_v44, 0.0  ;;  %v2720_v44 = vld [vmem:[%s3000_s8 + $0x78] sm:$0xff] }
  0xea   : > { %2214 = vst [vmem:[%s3078_s12 + $0x240] sm:$0xff] %v2086_v45  ;;  %v2736_v45 = vld [vmem:[%s3000_s8 + $0xf8] sm:$0xff] }
  0xeb   : > { %2246 = vst [vmem:[%s3078_s12 + $0x340] sm:$0xff] %v2118_v46 }
  0xec   : > { %2151 = vst [vmem:[%s3078_s12 + $0x48] sm:$0xff] %v2023_v47 }
  0xed   : > { %2183 = vst [vmem:[%s3078_s12 + $0x148] sm:$0xff] %v2055_v48  ;;  %v1093_v49 = vpop.f32.mrf.mxu2  ;;  %v1173_v50 = vpop.f32.mrf.mxu3 }
  0xee   : > { %v1959_v53 = vadd.f32 %v3066_v40, %v1093_v49  ;;  %v1991_v54 = vadd.f32 %v3066_v40, %v1173_v50  ;;  %v936_v55 = vpop.f32.mrf.mxu0  ;;  %v1016_v56 = vpop.f32.mrf.mxu1  ;;  %v2752_v50 = vld [vmem:[%s3000_s8 + $0x178] sm:$0xff] }
  0xef   : > { %v1896_v59 = vadd.f32 %v3066_v40, %v936_v55  ;;  %v1928_v60 = vadd.f32 %v3066_v40, %v1016_v56 }
  0xf0   : > { %v2087_v61 = vmax.f32 %v1959_v53, 0.0  ;;  %v2119_v62 = vmax.f32 %v1991_v54, 0.0 }
  0xf1   : > { %v2024_v63 = vmax.f32 %v1896_v59, 0.0  ;;  %v2056_v0 = vmax.f32 %v1928_v60, 0.0  ;;  %2652 = vmatmul.msk.bf16.gmra.mxu0 %vm702_vm2, %v2718_v51  ;;  %2668 = vmatmul.msk.bf16.gmra.mxu1 %vm702_vm2, %v2734_v52  ;;  %v2768_v51 = vld [vmem:[%s3000_s8 + $0x1f8] sm:$0xff] }
  0xf2   : > { %2215 = vst [vmem:[%s3078_s12 + $0x248] sm:$0xff] %v2087_v61  ;;  %2684 = vmatmul.msk.bf16.gmra.mxu2 %vm702_vm2, %v2750_v57  ;;  %2700 = vmatmul.msk.bf16.gmra.mxu3 %vm702_vm2, %v2766_v58 }
  0xf3   : > { %2247 = vst [vmem:[%s3078_s12 + $0x348] sm:$0xff] %v2119_v62 }
  0xf4   : > { %2152 = vst [vmem:[%s3078_s12 + $0x50] sm:$0xff] %v2024_v63 }
  0xf5   : > { %2184 = vst [vmem:[%s3078_s12 + $0x150] sm:$0xff] %v2056_v0  ;;  %v1096_v1 = vpop.f32.mrf.mxu2  ;;  %v1176_v2 = vpop.f32.mrf.mxu3 }
  0xf6   : > { %v1960_v3 = vadd.f32 %v3066_v40, %v1096_v1  ;;  %v1992_v4 = vadd.f32 %v3066_v40, %v1176_v2  ;;  %v938_v5 = vpop.f32.mrf.mxu0  ;;  %v1018_v6 = vpop.f32.mrf.mxu1 }
  0xf7   : > { %v1897_v7 = vadd.f32 %v3066_v40, %v938_v5  ;;  %v1929_v8 = vadd.f32 %v3066_v40, %v1018_v6 }
  0xf8   : > { %v2088_v9 = vmax.f32 %v1960_v3, 0.0  ;;  %v2120_v10 = vmax.f32 %v1992_v4, 0.0 }
  0xf9   : > { %v2025_v11 = vmax.f32 %v1897_v7, 0.0  ;;  %v2057_v12 = vmax.f32 %v1929_v8, 0.0 }
  0xfa   : > { %2216 = vst [vmem:[%s3078_s12 + $0x250] sm:$0xff] %v2088_v9 }
  0xfb   : > { %2248 = vst [vmem:[%s3078_s12 + $0x350] sm:$0xff] %v2120_v10 }
  0xfc   : > { %2153 = vst [vmem:[%s3078_s12 + $0x58] sm:$0xff] %v2025_v11 }
  0xfd   : > { %2185 = vst [vmem:[%s3078_s12 + $0x158] sm:$0xff] %v2057_v12  ;;  %v1098_v13 = vpop.f32.mrf.mxu2  ;;  %v1178_v14 = vpop.f32.mrf.mxu3 }
  0xfe   : > { %v1961_v17 = vadd.f32 %v3066_v40, %v1098_v13  ;;  %v1993_v18 = vadd.f32 %v3066_v40, %v1178_v14  ;;  %v941_v19 = vpop.f32.mrf.mxu0  ;;  %v1021_v20 = vpop.f32.mrf.mxu1 }
  0xff   : > { %v1898_v23 = vadd.f32 %v3066_v40, %v941_v19  ;;  %v1930_v24 = vadd.f32 %v3066_v40, %v1021_v20 }
 0x100   : > { %v2089_v25 = vmax.f32 %v1961_v17, 0.0  ;;  %v2121_v26 = vmax.f32 %v1993_v18, 0.0 }
 0x101   : > { %v2026_v27 = vmax.f32 %v1898_v23, 0.0  ;;  %v2058_v28 = vmax.f32 %v1930_v24, 0.0  ;;  %2653 = vmatmul.msk.bf16.gmra.mxu0 %vm702_vm2, %v2719_v15  ;;  %2669 = vmatmul.msk.bf16.gmra.mxu1 %vm702_vm2, %v2735_v16 }
 0x102   : > { %2217 = vst [vmem:[%s3078_s12 + $0x258] sm:$0xff] %v2089_v25  ;;  %2685 = vmatmul.msk.bf16.gmra.mxu2 %vm702_vm2, %v2751_v21  ;;  %2701 = vmatmul.msk.bf16.gmra.mxu3 %vm702_vm2, %v2767_v22 }
 0x103   : > { %2249 = vst [vmem:[%s3078_s12 + $0x358] sm:$0xff] %v2121_v26 }
 0x104   : > { %2154 = vst [vmem:[%s3078_s12 + $0x60] sm:$0xff] %v2026_v27 }
 0x105   : > { %2186 = vst [vmem:[%s3078_s12 + $0x160] sm:$0xff] %v2058_v28  ;;  %v1101_v29 = vpop.f32.mrf.mxu2  ;;  %v1181_v30 = vpop.f32.mrf.mxu3 }
 0x106   : > { %v1962_v31 = vadd.f32 %v3066_v40, %v1101_v29  ;;  %v1994_v32 = vadd.f32 %v3066_v40, %v1181_v30  ;;  %v943_v33 = vpop.f32.mrf.mxu0  ;;  %v1023_v34 = vpop.f32.mrf.mxu1 }
 0x107   : > { %v1899_v35 = vadd.f32 %v3066_v40, %v943_v33  ;;  %v1931_v36 = vadd.f32 %v3066_v40, %v1023_v34 }
 0x108   : > { %v2090_v37 = vmax.f32 %v1962_v31, 0.0  ;;  %v2122_v38 = vmax.f32 %v1994_v32, 0.0 }
 0x109   : > { %v2027_v39 = vmax.f32 %v1899_v35, 0.0  ;;  %v2059_v41 = vmax.f32 %v1931_v36, 0.0 }
 0x10a   : > { %2218 = vst [vmem:[%s3078_s12 + $0x260] sm:$0xff] %v2090_v37 }
 0x10b   : > { %2250 = vst [vmem:[%s3078_s12 + $0x360] sm:$0xff] %v2122_v38 }
 0x10c   : > { %2155 = vst [vmem:[%s3078_s12 + $0x68] sm:$0xff] %v2027_v39 }
 0x10d   : > { %2187 = vst [vmem:[%s3078_s12 + $0x168] sm:$0xff] %v2059_v41  ;;  %v1103_v42 = vpop.f32.mrf.mxu2  ;;  %v1183_v43 = vpop.f32.mrf.mxu3 }
 0x10e   : > { %v1963_v46 = vadd.f32 %v3066_v40, %v1103_v42  ;;  %v1995_v47 = vadd.f32 %v3066_v40, %v1183_v43  ;;  %v946_v48 = vpop.f32.mrf.mxu0  ;;  %v1026_v49 = vpop.f32.mrf.mxu1 }
 0x10f   : > { %v1900_v52 = vadd.f32 %v3066_v40, %v946_v48  ;;  %v1932_v53 = vadd.f32 %v3066_v40, %v1026_v49 }
 0x110   : > { %v2091_v54 = vmax.f32 %v1963_v46, 0.0  ;;  %v2123_v55 = vmax.f32 %v1995_v47, 0.0 }
 0x111   : > { %v2028_v56 = vmax.f32 %v1900_v52, 0.0  ;;  %v2060_v57 = vmax.f32 %v1932_v53, 0.0  ;;  %2654 = vmatmul.msk.bf16.gmra.mxu0 %vm702_vm2, %v2720_v44  ;;  %2670 = vmatmul.msk.bf16.gmra.mxu1 %vm702_vm2, %v2736_v45 }
 0x112   : > { %2219 = vst [vmem:[%s3078_s12 + $0x268] sm:$0xff] %v2091_v54  ;;  %2686 = vmatmul.msk.bf16.gmra.mxu2 %vm702_vm2, %v2752_v50  ;;  %2702 = vmatmul.msk.bf16.gmra.mxu3 %vm702_vm2, %v2768_v51 }
 0x113   : > { %2251 = vst [vmem:[%s3078_s12 + $0x368] sm:$0xff] %v2123_v55 }
 0x114   : > { %2156 = vst [vmem:[%s3078_s12 + $0x70] sm:$0xff] %v2028_v56 }
 0x115   : > { %2188 = vst [vmem:[%s3078_s12 + $0x170] sm:$0xff] %v2060_v57  ;;  %v1106_v58 = vpop.f32.mrf.mxu2  ;;  %v1186_v59 = vpop.f32.mrf.mxu3 }
 0x116   : > { %v1964_v60 = vadd.f32 %v3066_v40, %v1106_v58  ;;  %v1996_v61 = vadd.f32 %v3066_v40, %v1186_v59  ;;  %v948_v62 = vpop.f32.mrf.mxu0  ;;  %v1028_v63 = vpop.f32.mrf.mxu1 }
 0x117   : > { %v1901_v0 = vadd.f32 %v3066_v40, %v948_v62  ;;  %v1933_v1 = vadd.f32 %v3066_v40, %v1028_v63 }
 0x118   : > { %v2092_v2 = vmax.f32 %v1964_v60, 0.0  ;;  %v2124_v3 = vmax.f32 %v1996_v61, 0.0 }
 0x119   : > { %v2029_v4 = vmax.f32 %v1901_v0, 0.0  ;;  %v2061_v5 = vmax.f32 %v1933_v1, 0.0 }
 0x11a   : > { %2220 = vst [vmem:[%s3078_s12 + $0x270] sm:$0xff] %v2092_v2 }
 0x11b   : > { %2252 = vst [vmem:[%s3078_s12 + $0x370] sm:$0xff] %v2124_v3 }
 0x11c   : > { %2157 = vst [vmem:[%s3078_s12 + $0x78] sm:$0xff] %v2029_v4 }
 0x11d   : > { %2189 = vst [vmem:[%s3078_s12 + $0x178] sm:$0xff] %v2061_v5  ;;  %v1108_v6 = vpop.f32.mrf.mxu2  ;;  %v1188_v7 = vpop.f32.mrf.mxu3 }
 0x11e   : > { %v1965_v8 = vadd.f32 %v3066_v40, %v1108_v6  ;;  %v1997_v9 = vadd.f32 %v3066_v40, %v1188_v7  ;;  %v951_v10 = vpop.f32.mrf.mxu0  ;;  %v1031_v11 = vpop.f32.mrf.mxu1 }
 0x11f   : > { %v1902_v12 = vadd.f32 %v3066_v40, %v951_v10  ;;  %v1934_v13 = vadd.f32 %v3066_v40, %v1031_v11 }
 0x120   : > { %v2093_v14 = vmax.f32 %v1965_v8, 0.0  ;;  %v2125_v15 = vmax.f32 %v1997_v9, 0.0 }
 0x121   : > { %v2030_v16 = vmax.f32 %v1902_v12, 0.0  ;;  %v2062_v17 = vmax.f32 %v1934_v13, 0.0 }
 0x122   : > { %2221 = vst [vmem:[%s3078_s12 + $0x278] sm:$0xff] %v2093_v14 }
 0x123   : > { %2253 = vst [vmem:[%s3078_s12 + $0x378] sm:$0xff] %v2125_v15 }
 0x124   : > { %2158 = vst [vmem:[%s3078_s12 + $0x80] sm:$0xff] %v2030_v16 }
 0x125   : > { %2190 = vst [vmem:[%s3078_s12 + $0x180] sm:$0xff] %v2062_v17  ;;  %v1111_v18 = vpop.f32.mrf.mxu2  ;;  %v1191_v19 = vpop.f32.mrf.mxu3 }
 0x126   : > { %v1966_v20 = vadd.f32 %v3066_v40, %v1111_v18  ;;  %v1998_v21 = vadd.f32 %v3066_v40, %v1191_v19  ;;  %v953_v22 = vpop.f32.mrf.mxu0  ;;  %v1033_v23 = vpop.f32.mrf.mxu1 }
 0x127   : > { %v1903_v24 = vadd.f32 %v3066_v40, %v953_v22  ;;  %v1935_v25 = vadd.f32 %v3066_v40, %v1033_v23 }
 0x128   : > { %v2094_v26 = vmax.f32 %v1966_v20, 0.0  ;;  %v2126_v27 = vmax.f32 %v1998_v21, 0.0 }
 0x129   : > { %v2031_v28 = vmax.f32 %v1903_v24, 0.0  ;;  %v2063_v29 = vmax.f32 %v1935_v25, 0.0 }
 0x12a   : > { %2222 = vst [vmem:[%s3078_s12 + $0x280] sm:$0xff] %v2094_v26 }
 0x12b   : > { %2254 = vst [vmem:[%s3078_s12 + $0x380] sm:$0xff] %v2126_v27 }
 0x12c   : > { %2159 = vst [vmem:[%s3078_s12 + $0x88] sm:$0xff] %v2031_v28 }
 0x12d   : > { %2191 = vst [vmem:[%s3078_s12 + $0x188] sm:$0xff] %v2063_v29  ;;  %v1113_v30 = vpop.f32.mrf.mxu2  ;;  %v1193_v31 = vpop.f32.mrf.mxu3 }
 0x12e   : > { %v1967_v32 = vadd.f32 %v3066_v40, %v1113_v30  ;;  %v1999_v33 = vadd.f32 %v3066_v40, %v1193_v31  ;;  %v956_v34 = vpop.f32.mrf.mxu0  ;;  %v1036_v35 = vpop.f32.mrf.mxu1 }
 0x12f   : > { %v1904_v36 = vadd.f32 %v3066_v40, %v956_v34  ;;  %v1936_v37 = vadd.f32 %v3066_v40, %v1036_v35 }
 0x130   : > { %v2095_v38 = vmax.f32 %v1967_v32, 0.0  ;;  %v2127_v39 = vmax.f32 %v1999_v33, 0.0 }
 0x131   : > { %v2032_v41 = vmax.f32 %v1904_v36, 0.0  ;;  %v2064_v42 = vmax.f32 %v1936_v37, 0.0 }
 0x132   : > { %2223 = vst [vmem:[%s3078_s12 + $0x288] sm:$0xff] %v2095_v38 }
 0x133   : > { %2255 = vst [vmem:[%s3078_s12 + $0x388] sm:$0xff] %v2127_v39 }
 0x134   : > { %2160 = vst [vmem:[%s3078_s12 + $0x90] sm:$0xff] %v2032_v41 }
 0x135   : > { %2192 = vst [vmem:[%s3078_s12 + $0x190] sm:$0xff] %v2064_v42  ;;  %v1116_v43 = vpop.f32.mrf.mxu2  ;;  %v1196_v44 = vpop.f32.mrf.mxu3 }
 0x136   : > { %v1968_v45 = vadd.f32 %v3066_v40, %v1116_v43  ;;  %v2000_v46 = vadd.f32 %v3066_v40, %v1196_v44  ;;  %v958_v47 = vpop.f32.mrf.mxu0  ;;  %v1038_v48 = vpop.f32.mrf.mxu1 }
 0x137   : > { %v1905_v49 = vadd.f32 %v3066_v40, %v958_v47  ;;  %v1937_v50 = vadd.f32 %v3066_v40, %v1038_v48 }
 0x138   : > { %v2096_v51 = vmax.f32 %v1968_v45, 0.0  ;;  %v2128_v52 = vmax.f32 %v2000_v46, 0.0 }
 0x139   : > { %v2033_v53 = vmax.f32 %v1905_v49, 0.0  ;;  %v2065_v54 = vmax.f32 %v1937_v50, 0.0 }
 0x13a   : > { %2224 = vst [vmem:[%s3078_s12 + $0x290] sm:$0xff] %v2096_v51 }
 0x13b   : > { %2256 = vst [vmem:[%s3078_s12 + $0x390] sm:$0xff] %v2128_v52 }
 0x13c   : > { %2161 = vst [vmem:[%s3078_s12 + $0x98] sm:$0xff] %v2033_v53 }
 0x13d   : > { %2193 = vst [vmem:[%s3078_s12 + $0x198] sm:$0xff] %v2065_v54  ;;  %v1118_v55 = vpop.f32.mrf.mxu2  ;;  %v1198_v56 = vpop.f32.mrf.mxu3 }
 0x13e   : > { %v1969_v57 = vadd.f32 %v3066_v40, %v1118_v55  ;;  %v2001_v58 = vadd.f32 %v3066_v40, %v1198_v56  ;;  %v961_v59 = vpop.f32.mrf.mxu0  ;;  %v1041_v60 = vpop.f32.mrf.mxu1 }
 0x13f   : > { %v1906_v61 = vadd.f32 %v3066_v40, %v961_v59  ;;  %v1938_v62 = vadd.f32 %v3066_v40, %v1041_v60 }
 0x140   : > { %v2097_v63 = vmax.f32 %v1969_v57, 0.0  ;;  %v2129_v0 = vmax.f32 %v2001_v58, 0.0 }
 0x141   : > { %v2034_v1 = vmax.f32 %v1906_v61, 0.0  ;;  %v2066_v2 = vmax.f32 %v1938_v62, 0.0 }
 0x142   : > { %2225 = vst [vmem:[%s3078_s12 + $0x298] sm:$0xff] %v2097_v63 }
 0x143   : > { %2257 = vst [vmem:[%s3078_s12 + $0x398] sm:$0xff] %v2129_v0 }
 0x144   : > { %2162 = vst [vmem:[%s3078_s12 + $0xa0] sm:$0xff] %v2034_v1 }
 0x145   : > { %2194 = vst [vmem:[%s3078_s12 + $0x1a0] sm:$0xff] %v2066_v2  ;;  %v1121_v3 = vpop.f32.mrf.mxu2  ;;  %v1201_v4 = vpop.f32.mrf.mxu3 }
 0x146   : > { %v1970_v5 = vadd.f32 %v3066_v40, %v1121_v3  ;;  %v2002_v6 = vadd.f32 %v3066_v40, %v1201_v4  ;;  %v963_v7 = vpop.f32.mrf.mxu0  ;;  %v1043_v8 = vpop.f32.mrf.mxu1 }
 0x147   : > { %v1907_v9 = vadd.f32 %v3066_v40, %v963_v7  ;;  %v1939_v10 = vadd.f32 %v3066_v40, %v1043_v8 }
 0x148   : > { %v2098_v11 = vmax.f32 %v1970_v5, 0.0  ;;  %v2130_v12 = vmax.f32 %v2002_v6, 0.0 }
 0x149   : > { %v2035_v13 = vmax.f32 %v1907_v9, 0.0  ;;  %v2067_v14 = vmax.f32 %v1939_v10, 0.0 }
 0x14a   : > { %2226 = vst [vmem:[%s3078_s12 + $0x2a0] sm:$0xff] %v2098_v11 }
 0x14b   : > { %2258 = vst [vmem:[%s3078_s12 + $0x3a0] sm:$0xff] %v2130_v12 }
 0x14c   : > { %2163 = vst [vmem:[%s3078_s12 + $0xa8] sm:$0xff] %v2035_v13 }
 0x14d   : > { %2195 = vst [vmem:[%s3078_s12 + $0x1a8] sm:$0xff] %v2067_v14  ;;  %v1123_v15 = vpop.f32.mrf.mxu2  ;;  %v1203_v16 = vpop.f32.mrf.mxu3 }
 0x14e   : > { %v1971_v17 = vadd.f32 %v3066_v40, %v1123_v15  ;;  %v2003_v18 = vadd.f32 %v3066_v40, %v1203_v16  ;;  %v966_v19 = vpop.f32.mrf.mxu0  ;;  %v1046_v20 = vpop.f32.mrf.mxu1 }
 0x14f   : > { %v1908_v21 = vadd.f32 %v3066_v40, %v966_v19  ;;  %v1940_v22 = vadd.f32 %v3066_v40, %v1046_v20 }
 0x150   : > { %v2099_v23 = vmax.f32 %v1971_v17, 0.0  ;;  %v2131_v24 = vmax.f32 %v2003_v18, 0.0 }
 0x151   : > { %v2036_v25 = vmax.f32 %v1908_v21, 0.0  ;;  %v2068_v26 = vmax.f32 %v1940_v22, 0.0 }
 0x152   : > { %2227 = vst [vmem:[%s3078_s12 + $0x2a8] sm:$0xff] %v2099_v23 }
 0x153   : > { %2259 = vst [vmem:[%s3078_s12 + $0x3a8] sm:$0xff] %v2131_v24 }
 0x154   : > { %2164 = vst [vmem:[%s3078_s12 + $0xb0] sm:$0xff] %v2036_v25 }
 0x155   : > { %2196 = vst [vmem:[%s3078_s12 + $0x1b0] sm:$0xff] %v2068_v26  ;;  %v1126_v27 = vpop.f32.mrf.mxu2  ;;  %v1206_v28 = vpop.f32.mrf.mxu3 }
 0x156   : > { %v1972_v29 = vadd.f32 %v3066_v40, %v1126_v27  ;;  %v2004_v30 = vadd.f32 %v3066_v40, %v1206_v28  ;;  %v968_v31 = vpop.f32.mrf.mxu0  ;;  %v1048_v32 = vpop.f32.mrf.mxu1 }
 0x157   : > { %v1909_v33 = vadd.f32 %v3066_v40, %v968_v31  ;;  %v1941_v34 = vadd.f32 %v3066_v40, %v1048_v32 }
 0x158   : > { %v2100_v35 = vmax.f32 %v1972_v29, 0.0  ;;  %v2132_v36 = vmax.f32 %v2004_v30, 0.0  ;;  %v2826_v30 = vld [vmem:[#allocation4] ss:$0 sm:$0xff] }
 0x159   : > { %v2037_v37 = vmax.f32 %v1909_v33, 0.0  ;;  %v2069_v38 = vmax.f32 %v1941_v34, 0.0 }
 0x15a   : > { %2228 = vst [vmem:[%s3078_s12 + $0x2b0] sm:$0xff] %v2100_v35 }
 0x15b   : > { %2260 = vst [vmem:[%s3078_s12 + $0x3b0] sm:$0xff] %v2132_v36 }
 0x15c   : > { %2165 = vst [vmem:[%s3078_s12 + $0xb8] sm:$0xff] %v2037_v37 }
 0x15d   : > { %2197 = vst [vmem:[%s3078_s12 + $0x1b8] sm:$0xff] %v2069_v38  ;;  %v1128_v39 = vpop.f32.mrf.mxu2  ;;  %v1208_v41 = vpop.f32.mrf.mxu3 }
 0x15e   : > { %v1973_v42 = vadd.f32 %v3066_v40, %v1128_v39  ;;  %v2005_v43 = vadd.f32 %v3066_v40, %v1208_v41  ;;  %v971_v44 = vpop.f32.mrf.mxu0  ;;  %v1051_v45 = vpop.f32.mrf.mxu1 }
 0x15f   : > { %v1910_v46 = vadd.f32 %v3066_v40, %v971_v44  ;;  %v1942_v47 = vadd.f32 %v3066_v40, %v1051_v45 }
 0x160   : > { %v2101_v48 = vmax.f32 %v1973_v42, 0.0  ;;  %v2133_v49 = vmax.f32 %v2005_v43, 0.0 }
 0x161   : > { %v2038_v50 = vmax.f32 %v1910_v46, 0.0  ;;  %v2070_v51 = vmax.f32 %v1942_v47, 0.0 }
 0x162   : > { %2229 = vst [vmem:[%s3078_s12 + $0x2b8] sm:$0xff] %v2101_v48 }
 0x163   : > { %2261 = vst [vmem:[%s3078_s12 + $0x3b8] sm:$0xff] %v2133_v49 }
 0x164   : > { %2166 = vst [vmem:[%s3078_s12 + $0xc0] sm:$0xff] %v2038_v50 }
 0x165   : > { %2198 = vst [vmem:[%s3078_s12 + $0x1c0] sm:$0xff] %v2070_v51  ;;  %v1131_v52 = vpop.f32.mrf.mxu2  ;;  %v1211_v53 = vpop.f32.mrf.mxu3 }
 0x166   : > { %v1974_v54 = vadd.f32 %v3066_v40, %v1131_v52  ;;  %v2006_v55 = vadd.f32 %v3066_v40, %v1211_v53  ;;  %v973_v56 = vpop.f32.mrf.mxu0  ;;  %v1053_v57 = vpop.f32.mrf.mxu1 }
 0x167   : > { %v1911_v58 = vadd.f32 %v3066_v40, %v973_v56  ;;  %v1943_v59 = vadd.f32 %v3066_v40, %v1053_v57 }
 0x168   : > { %v2102_v60 = vmax.f32 %v1974_v54, 0.0  ;;  %v2134_v61 = vmax.f32 %v2006_v55, 0.0 }
 0x169   : > { %v2039_v62 = vmax.f32 %v1911_v58, 0.0  ;;  %v2071_v63 = vmax.f32 %v1943_v59, 0.0 }
 0x16a   : > { %2230 = vst [vmem:[%s3078_s12 + $0x2c0] sm:$0xff] %v2102_v60 }
 0x16b   : > { %2262 = vst [vmem:[%s3078_s12 + $0x3c0] sm:$0xff] %v2134_v61 }
 0x16c   : > { %2167 = vst [vmem:[%s3078_s12 + $0xc8] sm:$0xff] %v2039_v62 }
 0x16d   : > { %2199 = vst [vmem:[%s3078_s12 + $0x1c8] sm:$0xff] %v2071_v63  ;;  %v1133_v0 = vpop.f32.mrf.mxu2  ;;  %v1213_v1 = vpop.f32.mrf.mxu3 }
 0x16e   : > { %v1975_v2 = vadd.f32 %v3066_v40, %v1133_v0  ;;  %v2007_v3 = vadd.f32 %v3066_v40, %v1213_v1  ;;  %v976_v4 = vpop.f32.mrf.mxu0  ;;  %v1056_v5 = vpop.f32.mrf.mxu1 }
 0x16f   : > { %v1912_v6 = vadd.f32 %v3066_v40, %v976_v4  ;;  %v1944_v7 = vadd.f32 %v3066_v40, %v1056_v5 }
 0x170   : > { %v2103_v8 = vmax.f32 %v1975_v2, 0.0  ;;  %v2135_v9 = vmax.f32 %v2007_v3, 0.0 }
 0x171   : > { %v2040_v10 = vmax.f32 %v1912_v6, 0.0  ;;  %v2072_v11 = vmax.f32 %v1944_v7, 0.0 }
 0x172   : > { %2231 = vst [vmem:[%s3078_s12 + $0x2c8] sm:$0xff] %v2103_v8 }
 0x173   : > { %2263 = vst [vmem:[%s3078_s12 + $0x3c8] sm:$0xff] %v2135_v9 }
 0x174   : > { %2168 = vst [vmem:[%s3078_s12 + $0xd0] sm:$0xff] %v2040_v10 }
 0x175   : > { %2200 = vst [vmem:[%s3078_s12 + $0x1d0] sm:$0xff] %v2072_v11  ;;  %v1136_v12 = vpop.f32.mrf.mxu2  ;;  %v1216_v13 = vpop.f32.mrf.mxu3 }
 0x176   : > { %v1976_v14 = vadd.f32 %v3066_v40, %v1136_v12  ;;  %v2008_v15 = vadd.f32 %v3066_v40, %v1216_v13  ;;  %v978_v16 = vpop.f32.mrf.mxu0  ;;  %v1058_v17 = vpop.f32.mrf.mxu1 }
 0x177   : > { %v1913_v18 = vadd.f32 %v3066_v40, %v978_v16  ;;  %v1945_v19 = vadd.f32 %v3066_v40, %v1058_v17 }
 0x178   : > { %v2104_v20 = vmax.f32 %v1976_v14, 0.0  ;;  %v2136_v21 = vmax.f32 %v2008_v15, 0.0 }
 0x179   : > { %v2041_v22 = vmax.f32 %v1913_v18, 0.0  ;;  %v2073_v23 = vmax.f32 %v1945_v19, 0.0 }
 0x17a   : > { %2232 = vst [vmem:[%s3078_s12 + $0x2d0] sm:$0xff] %v2104_v20 }
 0x17b   : > { %2264 = vst [vmem:[%s3078_s12 + $0x3d0] sm:$0xff] %v2136_v21 }
 0x17c   : > { %2169 = vst [vmem:[%s3078_s12 + $0xd8] sm:$0xff] %v2041_v22 }
 0x17d   : > { %2201 = vst [vmem:[%s3078_s12 + $0x1d8] sm:$0xff] %v2073_v23  ;;  %v1138_v24 = vpop.f32.mrf.mxu2  ;;  %v1218_v25 = vpop.f32.mrf.mxu3 }
 0x17e   : > { %v1977_v26 = vadd.f32 %v3066_v40, %v1138_v24  ;;  %v2009_v27 = vadd.f32 %v3066_v40, %v1218_v25  ;;  %v981_v28 = vpop.f32.mrf.mxu0  ;;  %v1061_v29 = vpop.f32.mrf.mxu1 }
 0x17f   : > { %v1914_v31 = vadd.f32 %v2826_v30, %v981_v28  ;;  %v1946_v32 = vadd.f32 %v2826_v30, %v1061_v29 }
 0x180   : > { %v2105_v33 = vmax.f32 %v1977_v26, 0.0  ;;  %v2137_v34 = vmax.f32 %v2009_v27, 0.0 }
 0x181   : > { %v2042_v35 = vmax.f32 %v1914_v31, 0.0  ;;  %v2074_v36 = vmax.f32 %v1946_v32, 0.0 }
 0x182   : > { %2233 = vst [vmem:[%s3078_s12 + $0x2d8] sm:$0xff] %v2105_v33 }
 0x183   : > { %2265 = vst [vmem:[%s3078_s12 + $0x3d8] sm:$0xff] %v2137_v34 }
 0x184   : > { %2170 = vst [vmem:[%s3078_s12 + $0xe0] sm:$0xff] %v2042_v35 }
 0x185   : > { %2202 = vst [vmem:[%s3078_s12 + $0x1e0] sm:$0xff] %v2074_v36  ;;  %v1141_v37 = vpop.f32.mrf.mxu2  ;;  %v1221_v38 = vpop.f32.mrf.mxu3 }
 0x186   : > { %v1978_v40 = vadd.f32 %v2826_v30, %v1141_v37  ;;  %v2010_v39 = vadd.f32 %v2826_v30, %v1221_v38  ;;  %v983_v41 = vpop.f32.mrf.mxu0  ;;  %v1063_v42 = vpop.f32.mrf.mxu1 }
 0x187   : > { %v1915_v43 = vadd.f32 %v2826_v30, %v983_v41  ;;  %v1947_v44 = vadd.f32 %v2826_v30, %v1063_v42 }
 0x188   : > { %v2106_v45 = vmax.f32 %v1978_v40, 0.0  ;;  %v2138_v46 = vmax.f32 %v2010_v39, 0.0 }
 0x189   : > { %v2043_v47 = vmax.f32 %v1915_v43, 0.0  ;;  %v2075_v48 = vmax.f32 %v1947_v44, 0.0 }
 0x18a   : > { %2234 = vst [vmem:[%s3078_s12 + $0x2e0] sm:$0xff] %v2106_v45 }
 0x18b   : > { %2266 = vst [vmem:[%s3078_s12 + $0x3e0] sm:$0xff] %v2138_v46 }
 0x18c   : > { %2171 = vst [vmem:[%s3078_s12 + $0xe8] sm:$0xff] %v2043_v47 }
 0x18d   : > { %2203 = vst [vmem:[%s3078_s12 + $0x1e8] sm:$0xff] %v2075_v48  ;;  %v1143_v49 = vpop.f32.mrf.mxu2  ;;  %v1223_v50 = vpop.f32.mrf.mxu3 }
 0x18e   : > { %v1979_v51 = vadd.f32 %v2826_v30, %v1143_v49  ;;  %v2011_v52 = vadd.f32 %v2826_v30, %v1223_v50  ;;  %v986_v53 = vpop.f32.mrf.mxu0  ;;  %v1066_v54 = vpop.f32.mrf.mxu1 }
 0x18f   : > { %v1916_v55 = vadd.f32 %v2826_v30, %v986_v53  ;;  %v1948_v56 = vadd.f32 %v2826_v30, %v1066_v54 }
 0x190   : > { %v2107_v57 = vmax.f32 %v1979_v51, 0.0  ;;  %v2139_v58 = vmax.f32 %v2011_v52, 0.0 }
 0x191   : > { %v2044_v59 = vmax.f32 %v1916_v55, 0.0  ;;  %v2076_v60 = vmax.f32 %v1948_v56, 0.0 }
 0x192   : > { %2235 = vst [vmem:[%s3078_s12 + $0x2e8] sm:$0xff] %v2107_v57 }
 0x193   : > { %2267 = vst [vmem:[%s3078_s12 + $0x3e8] sm:$0xff] %v2139_v58 }
 0x194   : > { %2172 = vst [vmem:[%s3078_s12 + $0xf0] sm:$0xff] %v2044_v59 }
 0x195   : > { %2204 = vst [vmem:[%s3078_s12 + $0x1f0] sm:$0xff] %v2076_v60  ;;  %v1146_v61 = vpop.f32.mrf.mxu2  ;;  %v1226_v62 = vpop.f32.mrf.mxu3 }
 0x196   : > { %v1980_v63 = vadd.f32 %v2826_v30, %v1146_v61  ;;  %v2012_v0 = vadd.f32 %v2826_v30, %v1226_v62  ;;  %v988_v1 = vpop.f32.mrf.mxu0  ;;  %v1068_v2 = vpop.f32.mrf.mxu1 }
 0x197   : > { %v1917_v3 = vadd.f32 %v2826_v30, %v988_v1  ;;  %v1949_v4 = vadd.f32 %v2826_v30, %v1068_v2 }
 0x198   : > { %v2108_v5 = vmax.f32 %v1980_v63, 0.0  ;;  %v2140_v6 = vmax.f32 %v2012_v0, 0.0 }
 0x199   : > { %v2045_v7 = vmax.f32 %v1917_v3, 0.0  ;;  %v2077_v8 = vmax.f32 %v1949_v4, 0.0 }
 0x19a   : > { %2236 = vst [vmem:[%s3078_s12 + $0x2f0] sm:$0xff] %v2108_v5 }
 0x19b   : > { %2268 = vst [vmem:[%s3078_s12 + $0x3f0] sm:$0xff] %v2140_v6 }
 0x19c   : > { %2173 = vst [vmem:[%s3078_s12 + $0xf8] sm:$0xff] %v2045_v7 }
 0x19d   : > { %2205 = vst [vmem:[%s3078_s12 + $0x1f8] sm:$0xff] %v2077_v8  ;;  %v1148_v9 = vpop.f32.mrf.mxu2  ;;  %v1228_v10 = vpop.f32.mrf.mxu3 }
 0x19e   : > { %v1981_v11 = vadd.f32 %v2826_v30, %v1148_v9  ;;  %v2013_v12 = vadd.f32 %v2826_v30, %v1228_v10 }
 0x1a0   : > { %v2109_v13 = vmax.f32 %v1981_v11, 0.0  ;;  %v2141_v14 = vmax.f32 %v2013_v12, 0.0 }
 0x1a2   : > { %2237 = vst [vmem:[%s3078_s12 + $0x2f8] sm:$0xff] %v2109_v13 }
 0x1a3   : > { %2269 = vst [vmem:[%s3078_s12 + $0x3f8] sm:$0xff] %v2141_v14 }
 0x1a4 PF: > { %s15_s14 = sadd.s32 1, %s2917_s14   ;;  %s3393_s12 = smov %s2913_s13 }
 0x1a5   : > { %p12_p8 = scmp.ge.s32.totalorder %s15_s14, 4   ;;  %s3394_s13 = smov %s3396_s16 }
 0x1a7   :  { %14 = sbr.rel (!%p12_p8) target bundleno = 3 (0x3), region = 84 }
 0x1ac   :  { %2292 = vsyncpa [#allocation3], 1 }
 0x1ad   :  { %2294 = vsyncpa [#allocation3 + $0x1], 1 }
 0x1ae   :  { %2295 = vsyncpa [#allocation5], 1 }

// kernel: s_cnn_forward.13
= control target key start
LH: loop header
LB: loop body
LE: loop exit
PB: predicated region body
PF: predicated region fallthrough
CT: control target
= control target key end

     0   :  { %vm967_vm0 = vcmask 392192   ;;  %s4247_s1 = inlined_call_operand.vmem [shape: bf16[432,128], index: 1, kind: input, shape index: {}]   ;;  %s4248_s0 = inlined_call_operand.vmem [shape: bf16[512,432], index: 0, kind: input, shape index: {}]   ;;  %s4249_s2 = inlined_call_operand.vmem [shape: f32[1,128], index: 2, kind: input, shape index: {}]   ;;  %s4250_s3 = inlined_call_operand.vmem [shape: f32[512,128], index: 3, kind: output, shape index: {}]  }
   0x1   :  { %v3058_v0 = vld [vmem:[%s4247_s1 + $0x38] sm:$0xff]  ;;  %v3057_v3 = vld [vmem:[%s4247_s1 + $0x30] sm:$0xff]  ;;  %v3056_v7 = vld [vmem:[%s4247_s1 + $0x28] sm:$0xff] }
   0x2   :  { %v3066_v1 = vld [vmem:[%s4247_s1 + $0x78] sm:$0xff]  ;;  %1064 = vmatpush.bf16.msra.mxu0 %v3058_v0  ;;  %v3065_v4 = vld [vmem:[%s4247_s1 + $0x70] sm:$0xff]  ;;  %v3064_v8 = vld [vmem:[%s4247_s1 + $0x68] sm:$0xff] }
   0x3   :  { %v3074_v2 = vld [vmem:[%s4247_s1 + $0xb8] sm:$0xff]  ;;  %1233 = vmatpush.bf16.msra.mxu1 %v3066_v1  ;;  %v3073_v5 = vld [vmem:[%s4247_s1 + $0xb0] sm:$0xff]  ;;  %v3072_v9 = vld [vmem:[%s4247_s1 + $0xa8] sm:$0xff] }
   0x4   :  { %1402 = vmatpush.bf16.msra.mxu2 %v3074_v2  ;;  %v3077_v6 = vld [vmem:[%s4247_s1 + $0xd0] sm:$0xff]  ;;  %v3076_v10 = vld [vmem:[%s4247_s1 + $0xc8] sm:$0xff]  ;;  %v3055_v11 = vld [vmem:[%s4247_s1 + $0x20] sm:$0xff] }
   0x5   :  { %1576 = vmatpush.bf16.msra.mxu3 %v3077_v6  ;;  %v3063_v12 = vld [vmem:[%s4247_s1 + $0x60] sm:$0xff]  ;;  %v2924_v15 = vld [vmem:[%s4248_s0 + $0xc] sm:$0xf]  ;;  %v2283_v16 = vld [vmem:[%s4248_s0 + $0x18] sm:$0xf0] }
   0x6   :  { %1065 = vmatpush.bf16.msra.mxu0 %v3057_v3  ;;  %v3071_v13 = vld [vmem:[%s4247_s1 + $0xa0] sm:$0xff]  ;;  %v3054_v17 = vld [vmem:[%s4247_s1 + $0x18] sm:$0xff]  ;;  %v2286_v20 = vor.u32 %v2924_v15, %v2283_v16  ;;  %v3053_v21 = vld [vmem:[%s4247_s1 + $0x10] sm:$0xff] }
   0x7   :  { %1234 = vmatpush.bf16.msra.mxu1 %v3065_v4  ;;  %v3075_v14 = vld [vmem:[%s4247_s1 + $0xc0] sm:$0xff]  ;;  %v3062_v18 = vld [vmem:[%s4247_s1 + $0x58] sm:$0xff]  ;;  %v3061_v22 = vld [vmem:[%s4247_s1 + $0x50] sm:$0xff] }
   0x8   :  { %1403 = vmatpush.bf16.msra.mxu2 %v3073_v5  ;;  %v3070_v19 = vld [vmem:[%s4247_s1 + $0x98] sm:$0xff]  ;;  %v3069_v23 = vld [vmem:[%s4247_s1 + $0x90] sm:$0xff]  ;;  %v3052_v24 = vld [vmem:[%s4247_s1 + $0x8] sm:$0xff] }
   0x9   :  { %1577 = vmatpush.bf16.msra.mxu3 %v3076_v10  ;;  %v3060_v25 = vld [vmem:[%s4247_s1 + $0x48] sm:$0xff]  ;;  %v3051_v27 = vld [vmem:[%s4247_s1] sm:$0xff]  ;;  %v2925_v30 = vld [vmem:[%s4248_s0 + $0xc] sm:$0xf0] }
   0xa   :  { %1066 = vmatpush.bf16.msra.mxu0 %v3056_v7  ;;  %v3068_v26 = vld [vmem:[%s4247_s1 + $0x88] sm:$0xff]  ;;  %v3059_v28 = vld [vmem:[%s4247_s1 + $0x40] sm:$0xff]  ;;  %v2275_v32 = vld [vmem:[%s4248_s0 + $0x10] sm:$0xf0] }
   0xb   :  { %1235 = vmatpush.bf16.msra.mxu1 %v3064_v8  ;;  %v2273_v29 = vld [vmem:[%s4248_s0] sm:$0xf]  ;;  %v2923_v31 = vld [vmem:[%s4248_s0 + $0x4] sm:$0xf]  ;;  %v2281_v34 = vld [vmem:[%s4248_s0 + $0x8] sm:$0xf] }
   0xc   :  { %1404 = vmatpush.bf16.msra.mxu2 %v3072_v9  ;;  %v3067_v33 = vld [vmem:[%s4247_s1 + $0x80] sm:$0xff]  ;;  %v2926_v35 = vld [vmem:[%s4248_s0 + $0x14] sm:$0xf0]  ;;  %v2928_v36 = vld [vmem:[%s4248_s0 + $0x2c] sm:$0xf]  ;;  %v2274_v38 = vor.u32 %v2925_v30, %v2273_v29  ;;  %v2278_v39 = vor.u32 %v2923_v31, %v2275_v32 }
   0xd   :  { %1578 = vmatpush.bf16.msra.mxu3 %v3075_v14  ;;  %v2299_v37 = vld [vmem:[%s4248_s0 + $0x38] sm:$0xf0]  ;;  %v2282_v40 = vor.u32 %v2926_v35, %v2281_v34  ;;  %v2289_v42 = vld [vmem:[%s4248_s0 + $0x20] sm:$0xf]  ;;  %v2929_v43 = vld [vmem:[%s4248_s0 + $0x2c] sm:$0xf0] }
   0xe   :  { %1067 = vmatpush.bf16.msra.mxu0 %v3055_v11  ;;  %v2302_v41 = vor.u32 %v2928_v36, %v2299_v37  ;;  %v2927_v44 = vld [vmem:[%s4248_s0 + $0x24] sm:$0xf]  ;;  %v2291_v45 = vld [vmem:[%s4248_s0 + $0x30] sm:$0xf0]  ;;  %v2297_v46 = vld [vmem:[%s4248_s0 + $0x28] sm:$0xf]  ;;  %v2290_v50 = vor.u32 %v2929_v43, %v2289_v42 }
   0xf   :  { %1236 = vmatpush.bf16.msra.mxu1 %v3063_v12  ;;  %v2930_v47 = vld [vmem:[%s4248_s0 + $0x34] sm:$0xf0]  ;;  %v2932_v48 = vld [vmem:[%s4248_s0 + $0x4c] sm:$0xf]  ;;  %v2315_v49 = vld [vmem:[%s4248_s0 + $0x58] sm:$0xf0]  ;;  %v2294_v51 = vor.u32 %v2927_v44, %v2291_v45 }
  0x10   :  { %1405 = vmatpush.bf16.msra.mxu2 %v3071_v13  ;;  %2891 = vmatmul.msk.bf16.vlgmr.msra.gmra.mxu3 %vm967_vm0, %v2286_v20  ;;  %v2298_v52 = vor.u32 %v2930_v47, %v2297_v46  ;;  %v2318_v53 = vor.u32 %v2932_v48, %v2315_v49  ;;  %v2305_v54 = vld [vmem:[%s4248_s0 + $0x40] sm:$0xf]  ;;  %v2933_v55 = vld [vmem:[%s4248_s0 + $0x4c] sm:$0xf0]  ;;  %v2931_v56 = vld [vmem:[%s4248_s0 + $0x44] sm:$0xf] }
  0x11   :  { %v2307_v57 = vld [vmem:[%s4248_s0 + $0x50] sm:$0xf0]  ;;  %v2313_v58 = vld [vmem:[%s4248_s0 + $0x48] sm:$0xf]  ;;  %v2934_v59 = vld [vmem:[%s4248_s0 + $0x54] sm:$0xf0]  ;;  %v2306_v62 = vor.u32 %v2933_v55, %v2305_v54 }
  0x12   :  { %1068 = vmatpush.bf16.msra.mxu0 %v3054_v17  ;;  %v2936_v60 = vld [vmem:[%s4248_s0 + $0x6c] sm:$0xf]  ;;  %v2331_v61 = vld [vmem:[%s4248_s0 + $0x78] sm:$0xf0]  ;;  %v2310_v63 = vor.u32 %v2931_v56, %v2307_v57  ;;  %v2314_v0 = vor.u32 %v2934_v59, %v2313_v58  ;;  %v2321_v2 = vld [vmem:[%s4248_s0 + $0x60] sm:$0xf] }
  0x13   :  { %1237 = vmatpush.bf16.msra.mxu1 %v3062_v18  ;;  %v2334_v1 = vor.u32 %v2936_v60, %v2331_v61  ;;  %v2937_v3 = vld [vmem:[%s4248_s0 + $0x6c] sm:$0xf0]  ;;  %v2935_v4 = vld [vmem:[%s4248_s0 + $0x64] sm:$0xf]  ;;  %v2323_v5 = vld [vmem:[%s4248_s0 + $0x70] sm:$0xf0] }
  0x14   :  { %1406 = vmatpush.bf16.msra.mxu2 %v3070_v19  ;;  %v2329_v6 = vld [vmem:[%s4248_s0 + $0x68] sm:$0xf]  ;;  %v2938_v7 = vld [vmem:[%s4248_s0 + $0x74] sm:$0xf0]  ;;  %v2940_v8 = vld [vmem:[%s4248_s0 + $0x8c] sm:$0xf]  ;;  %v2322_v10 = vor.u32 %v2937_v3, %v2321_v2  ;;  %v2326_v11 = vor.u32 %v2935_v4, %v2323_v5 }
  0x15   :  { %v2347_v9 = vld [vmem:[%s4248_s0 + $0x98] sm:$0xf0]  ;;  %v2330_v12 = vor.u32 %v2938_v7, %v2329_v6  ;;  %v2337_v14 = vld [vmem:[%s4248_s0 + $0x80] sm:$0xf]  ;;  %v2941_v15 = vld [vmem:[%s4248_s0 + $0x8c] sm:$0xf0] }
  0x16   :  { %1069 = vmatpush.bf16.msra.mxu0 %v3053_v21  ;;  %v2350_v13 = vor.u32 %v2940_v8, %v2347_v9  ;;  %v2939_v16 = vld [vmem:[%s4248_s0 + $0x84] sm:$0xf]  ;;  %v2339_v17 = vld [vmem:[%s4248_s0 + $0x90] sm:$0xf0]  ;;  %v2345_v18 = vld [vmem:[%s4248_s0 + $0x88] sm:$0xf] }
  0x17   :  { %1238 = vmatpush.bf16.msra.mxu1 %v3061_v22  ;;  %v2942_v19 = vld [vmem:[%s4248_s0 + $0x94] sm:$0xf0]  ;;  %v2944_v20 = vld [vmem:[%s4248_s0 + $0xac] sm:$0xf]  ;;  %v2363_v21 = vld [vmem:[%s4248_s0 + $0xb8] sm:$0xf0]  ;;  %v2338_v22 = vor.u32 %v2941_v15, %v2337_v14 }
  0x18   :  { %1407 = vmatpush.bf16.msra.mxu2 %v3069_v23  ;;  %v2342_v23 = vor.u32 %v2939_v16, %v2339_v17  ;;  %v2355_v29 = vld [vmem:[%s4248_s0 + $0xb0] sm:$0xf0]  ;;  %v2361_v30 = vld [vmem:[%s4248_s0 + $0xa8] sm:$0xf]  ;;  %v2946_v31 = vld [vmem:[%s4248_s0 + $0xb4] sm:$0xf0] }
  0x19   :  { %v2948_v32 = vld [vmem:[%s4248_s0 + $0xcc] sm:$0xf]  ;;  %v2362_v36 = vor.u32 %v2946_v31, %v2361_v30  ;;  %v2377_v42 = vld [vmem:[%s4248_s0 + $0xc8] sm:$0xf]  ;;  %v2950_v43 = vld [vmem:[%s4248_s0 + $0xd4] sm:$0xf0] }
  0x1a   :  { %1070 = vmatpush.bf16.msra.mxu0 %v3052_v24  ;;  %v2346_v24 = vor.u32 %v2942_v19, %v2345_v18  ;;  %v2952_v44 = vld [vmem:[%s4248_s0 + $0xec] sm:$0xf]  ;;  %v2395_v45 = vld [vmem:[%s4248_s0 + $0xf8] sm:$0xf0]  ;;  %v2378_v48 = vor.u32 %v2950_v43, %v2377_v42  ;;  %v2393_v54 = vld [vmem:[%s4248_s0 + $0xe8] sm:$0xf] }
  0x1b   :  { %1239 = vmatpush.bf16.msra.mxu1 %v3060_v25  ;;  %v2366_v25 = vor.u32 %v2944_v20, %v2363_v21  ;;  %v2398_v49 = vor.u32 %v2952_v44, %v2395_v45  ;;  %v2954_v55 = vld [vmem:[%s4248_s0 + $0xf4] sm:$0xf0]  ;;  %v2956_v56 = vld [vmem:[%s4248_s0 + $0x10c] sm:$0xf]  ;;  %v2411_v57 = vld [vmem:[%s4248_s0 + $0x118] sm:$0xf0] }
  0x1c   :  { %1408 = vmatpush.bf16.msra.mxu2 %v3068_v26  ;;  %v2353_v26 = vld [vmem:[%s4248_s0 + $0xa0] sm:$0xf]  ;;  %v2394_v60 = vor.u32 %v2954_v55, %v2393_v54  ;;  %v2414_v61 = vor.u32 %v2956_v56, %v2411_v57  ;;  %v2403_v2 = vld [vmem:[%s4248_s0 + $0x110] sm:$0xf0]  ;;  %v2409_v3 = vld [vmem:[%s4248_s0 + $0x108] sm:$0xf] }
  0x1d   :  { %v2958_v4 = vld [vmem:[%s4248_s0 + $0x114] sm:$0xf0]  ;;  %v2960_v5 = vld [vmem:[%s4248_s0 + $0x12c] sm:$0xf]  ;;  %v2427_v6 = vld [vmem:[%s4248_s0 + $0x138] sm:$0xf0] }
  0x1e   :  { %1071 = vmatpush.bf16.msra.mxu0 %v3051_v27  ;;  %v2945_v27 = vld [vmem:[%s4248_s0 + $0xac] sm:$0xf0]  ;;  %v3416_v17 = vld [vmem:[%s4249_s2] ss:$0 sm:$0xff]  ;;  %v2964_v31 = vld [vmem:[%s4248_s0 + $0x14c] sm:$0xf] }
  0x1f   :  { %1240 = vmatpush.bf16.msra.mxu1 %v3059_v28  ;;  %v2943_v28 = vld [vmem:[%s4248_s0 + $0xa4] sm:$0xf]  ;;  %v2354_v34 = vor.u32 %v2945_v27, %v2353_v26  ;;  %v2419_v26 = vld [vmem:[%s4248_s0 + $0x130] sm:$0xf0]  ;;  %v2425_v27 = vld [vmem:[%s4248_s0 + $0x128] sm:$0xf] }
  0x20   :  { %1409 = vmatpush.bf16.msra.mxu2 %v3067_v33  ;;  %2892 = vmatmul.msk.bf16.gmra.mxu3 %vm967_vm0, %v2302_v41  ;;  %v2379_v33 = vld [vmem:[%s4248_s0 + $0xd8] sm:$0xf0]  ;;  %v2358_v35 = vor.u32 %v2943_v28, %v2355_v29  ;;  %v2371_v41 = vld [vmem:[%s4248_s0 + $0xd0] sm:$0xf0]  ;;  %v2962_v28 = vld [vmem:[%s4248_s0 + $0x134] sm:$0xf0] }
  0x21   :  { %1072 = vmatmul.bf16.vlgmr.msra.gmra.mxu0 %v2274_v38  ;;  %v2382_v37 = vor.u32 %v2948_v32, %v2379_v33  ;;  %v2369_v38 = vld [vmem:[%s4248_s0 + $0xc0] sm:$0xf]  ;;  %v2443_v32 = vld [vmem:[%s4248_s0 + $0x158] sm:$0xf0]  ;;  %v2965_v54 = vld [vmem:[%s4248_s0 + $0x14c] sm:$0xf0] }
  0x22   :  { %1241 = vmatmul.bf16.vlgmr.msra.gmra.mxu1 %v2278_v39  ;;  %v2949_v39 = vld [vmem:[%s4248_s0 + $0xcc] sm:$0xf0]  ;;  %v2963_v55 = vld [vmem:[%s4248_s0 + $0x144] sm:$0xf]  ;;  %v2435_v56 = vld [vmem:[%s4248_s0 + $0x150] sm:$0xf0] }
  0x23   :  { %1410 = vmatmul.bf16.vlgmr.msra.gmra.mxu2 %v2282_v40  ;;  %v2947_v40 = vld [vmem:[%s4248_s0 + $0xc4] sm:$0xf]  ;;  %v2370_v46 = vor.u32 %v2949_v39, %v2369_v38  ;;  %v2426_v39 = vor.u32 %v2962_v28, %v2425_v27  ;;  %v2441_v57 = vld [vmem:[%s4248_s0 + $0x148] sm:$0xf]  ;;  %v2972_v28 = vld [vmem:[%s4248_s0 + $0x18c] sm:$0xf] }
  0x24   :  { %v2374_v47 = vor.u32 %v2947_v40, %v2371_v41  ;;  %v2446_v41 = vor.u32 %v2964_v31, %v2443_v32 }
  0x30   :  { %2893 = vmatmul.msk.bf16.gmra.mxu3 %vm967_vm0, %v2318_v53  ;;  %v2387_v53 = vld [vmem:[%s4248_s0 + $0xf0] sm:$0xf0] }
  0x31   :  { %1077 = vmatmul.bf16.gmra.mxu0 %v2290_v50  ;;  %v2385_v50 = vld [vmem:[%s4248_s0 + $0xe0] sm:$0xf] }
  0x32   :  { %1246 = vmatmul.bf16.gmra.mxu1 %v2294_v51  ;;  %v2953_v51 = vld [vmem:[%s4248_s0 + $0xec] sm:$0xf0] }
  0x33   :  { %1415 = vmatmul.bf16.gmra.mxu2 %v2298_v52  ;;  %v2951_v52 = vld [vmem:[%s4248_s0 + $0xe4] sm:$0xf]  ;;  %v2386_v58 = vor.u32 %v2953_v51, %v2385_v50 }
  0x34   :  { %v2390_v59 = vor.u32 %v2951_v52, %v2387_v53  ;;  %v2433_v52 = vld [vmem:[%s4248_s0 + $0x140] sm:$0xf] }
  0x40   :  { %2894 = vmatmul.msk.bf16.gmra.mxu3 %vm967_vm0, %v2334_v1  ;;  %v2955_v1 = vld [vmem:[%s4248_s0 + $0x104] sm:$0xf] }
  0x41   :  { %1082 = vmatmul.bf16.gmra.mxu0 %v2306_v62  ;;  %v2406_v8 = vor.u32 %v2955_v1, %v2403_v2  ;;  %v2438_v1 = vor.u32 %v2963_v55, %v2435_v56  ;;  %v2974_v55 = vld [vmem:[%s4248_s0 + $0x194] sm:$0xf0] }
  0x42   :  { %1251 = vmatmul.bf16.gmra.mxu1 %v2310_v63  ;;  %v2401_v63 = vld [vmem:[%s4248_s0 + $0x100] sm:$0xf] }
  0x43   :  { %1420 = vmatmul.bf16.gmra.mxu2 %v2314_v0  ;;  %v2957_v0 = vld [vmem:[%s4248_s0 + $0x10c] sm:$0xf0] }
  0x44   :  { %v2402_v7 = vor.u32 %v2957_v0, %v2401_v63  ;;  %v2434_v0 = vor.u32 %v2965_v54, %v2433_v52  ;;  %v2971_v52 = vld [vmem:[%s4248_s0 + $0x184] sm:$0xf]  ;;  %v2473_v54 = vld [vmem:[%s4248_s0 + $0x188] sm:$0xf] }
  0x50   :  { %2895 = vmatmul.msk.bf16.gmra.mxu3 %vm967_vm0, %v2350_v13  ;;  %v2430_v13 = vor.u32 %v2960_v5, %v2427_v6 }
  0x51   :  { %1087 = vmatmul.bf16.gmra.mxu0 %v2322_v10 }
  0x52   :  { %1256 = vmatmul.bf16.gmra.mxu1 %v2326_v11  ;;  %v2410_v11 = vor.u32 %v2958_v4, %v2409_v3 }
  0x53   :  { %1425 = vmatmul.bf16.gmra.mxu2 %v2330_v12 }
  0x60   :  { %2896 = vmatmul.msk.bf16.gmra.mxu3 %vm967_vm0, %v2366_v25  ;;  %v2959_v25 = vld [vmem:[%s4248_s0 + $0x124] sm:$0xf] }
  0x61   :  { %1092 = vmatmul.bf16.gmra.mxu0 %v2338_v22  ;;  %v2417_v22 = vld [vmem:[%s4248_s0 + $0x120] sm:$0xf] }
  0x62   :  { %1261 = vmatmul.bf16.gmra.mxu1 %v2342_v23 }
  0x63   :  { %1430 = vmatmul.bf16.gmra.mxu2 %v2346_v24  ;;  %v2961_v24 = vld [vmem:[%s4248_s0 + $0x12c] sm:$0xf0] }
  0x70   :  { %2897 = vmatmul.msk.bf16.gmra.mxu3 %vm967_vm0, %v2382_v37 }
  0x71   :  { %1097 = vmatmul.bf16.gmra.mxu0 %v2354_v34  ;;  %v2418_v34 = vor.u32 %v2961_v24, %v2417_v22  ;;  %v2967_v22 = vld [vmem:[%s4248_s0 + $0x164] sm:$0xf]  ;;  %v2457_v24 = vld [vmem:[%s4248_s0 + $0x168] sm:$0xf] }
  0x72   :  { %1266 = vmatmul.bf16.gmra.mxu1 %v2358_v35  ;;  %v2422_v35 = vor.u32 %v2959_v25, %v2419_v26  ;;  %v2970_v25 = vld [vmem:[%s4248_s0 + $0x174] sm:$0xf0] }
  0x73   :  { %1435 = vmatmul.bf16.gmra.mxu2 %v2362_v36 }
  0x80   :  { %2898 = vmatmul.msk.bf16.gmra.mxu3 %vm967_vm0, %v2398_v49 }
  0x81   :  { %1102 = vmatmul.bf16.gmra.mxu0 %v2370_v46 }
  0x82   :  { %1271 = vmatmul.bf16.gmra.mxu1 %v2374_v47 }
  0x83   :  { %1440 = vmatmul.bf16.gmra.mxu2 %v2378_v48 }
  0x90   :  { %2899 = vmatmul.msk.bf16.gmra.mxu3 %vm967_vm0, %v2414_v61  ;;  %v2968_v61 = vld [vmem:[%s4248_s0 + $0x16c] sm:$0xf] }
  0x91   :  { %1107 = vmatmul.bf16.gmra.mxu0 %v2386_v58  ;;  %v2966_v58 = vld [vmem:[%s4248_s0 + $0x154] sm:$0xf0] }
  0x92   :  { %1276 = vmatmul.bf16.gmra.mxu1 %v2390_v59  ;;  %v2442_v5 = vor.u32 %v2966_v58, %v2441_v57  ;;  %v2976_v58 = vld [vmem:[%s4248_s0 + $0x1ac] sm:$0xf] }
  0x93   :  { %1445 = vmatmul.bf16.gmra.mxu2 %v2394_v60  ;;  %v1580_v62 = vpop.f32.mrf.mxu3 }
  0x9b   :  { %v1582_v12 = vpop.f32.mrf.mxu3 }
  0x9e   :  { %v1073_v9 = vpop.f32.mrf.mxu0 }
  0x9f   :  { %v1242_v10 = vpop.f32.mrf.mxu1 }
  0xa0   :  { %v1243_v14 = vadd.f32 %v1242_v10, %v1073_v9  ;;  %2900 = vmatmul.msk.bf16.gmra.mxu3 %vm967_vm0, %v2430_v13 }
  0xa1   :  { %1112 = vmatmul.bf16.gmra.mxu0 %v2402_v7 }
  0xa2   :  { %1281 = vmatmul.bf16.gmra.mxu1 %v2406_v8 }
  0xa3   :  { %1450 = vmatmul.bf16.gmra.mxu2 %v2410_v11  ;;  %v1585_v20 = vpop.f32.mrf.mxu3 }
  0xa6   :  { %v1411_v15 = vpop.f32.mrf.mxu2  ;;  %v1075_v18 = vpop.f32.mrf.mxu0 }
  0xa7   :  { %v1412_v16 = vadd.f32 %v1411_v15, %v1243_v14  ;;  %v1244_v19 = vpop.f32.mrf.mxu1 }
  0xa8   :  { %v1245_v30 = vadd.f32 %v1244_v19, %v1075_v18  ;;  %v2449_v19 = vld [vmem:[%s4248_s0 + $0x160] sm:$0xf] }
  0xa9   :  { %v1581_v21 = vadd.f32 %v1580_v62, %v1412_v16  ;;  %v2459_v62 = vld [vmem:[%s4248_s0 + $0x178] sm:$0xf0] }
  0xaa   :  { %v2462_v7 = vor.u32 %v2968_v61, %v2459_v62 }
  0xab   :  { %v2075_v23 = vadd.f32 %v3416_v17, %v1581_v21  ;;  %v1587_v40 = vpop.f32.mrf.mxu3  ;;  %v2969_v21 = vld [vmem:[%s4248_s0 + $0x16c] sm:$0xf0] }
  0xac   :  { %v2450_v31 = vor.u32 %v2969_v21, %v2449_v19  ;;  %v2975_v19 = vld [vmem:[%s4248_s0 + $0x1a4] sm:$0xf]  ;;  %v2489_v21 = vld [vmem:[%s4248_s0 + $0x1a8] sm:$0xf] }
  0xad   :  { %v2139_v29 = vmax.f32 %v2075_v23, 0.0  ;;  %v2451_v23 = vld [vmem:[%s4248_s0 + $0x170] sm:$0xf0] }
  0xae   :  { %v1413_v33 = vpop.f32.mrf.mxu2  ;;  %v1078_v37 = vpop.f32.mrf.mxu0  ;;  %v2454_v32 = vor.u32 %v2967_v22, %v2451_v23  ;;  %v2978_v22 = vld [vmem:[%s4248_s0 + $0x1b4] sm:$0xf0] }
  0xaf   :  { %2203 = vst [vmem:[%s4250_s3] sm:$0xff] %v2139_v29  ;;  %v1414_v36 = vadd.f32 %v1413_v33, %v1245_v30  ;;  %v1247_v38 = vpop.f32.mrf.mxu1  ;;  %v2475_v29 = vld [vmem:[%s4248_s0 + $0x198] sm:$0xf0] }
  0xb0   :  { %v1248_v44 = vadd.f32 %v1247_v38, %v1078_v37  ;;  %2901 = vmatmul.msk.bf16.gmra.mxu3 %vm967_vm0, %v2446_v41  ;;  %v2478_v38 = vor.u32 %v2972_v28, %v2475_v29 }
  0xb1   :  { %v1583_v42 = vadd.f32 %v1582_v12, %v1414_v36  ;;  %1117 = vmatmul.bf16.gmra.mxu0 %v2418_v34  ;;  %v2458_v36 = vor.u32 %v2970_v25, %v2457_v24  ;;  %v2980_v25 = vld [vmem:[%s4248_s0 + $0x1cc] sm:$0xf] }
  0xb2   :  { %1286 = vmatmul.bf16.gmra.mxu1 %v2422_v35 }
  0xb3   :  { %v2076_v43 = vadd.f32 %v3416_v17, %v1583_v42  ;;  %1455 = vmatmul.bf16.gmra.mxu2 %v2426_v39  ;;  %v1590_v50 = vpop.f32.mrf.mxu3 }
  0xb5   :  { %v2140_v45 = vmax.f32 %v2076_v43, 0.0 }
  0xb6   :  { %v1416_v46 = vpop.f32.mrf.mxu2  ;;  %v1080_v48 = vpop.f32.mrf.mxu0 }
  0xb7   :  { %2204 = vst [vmem:[%s4250_s3 + $0x8] sm:$0xff] %v2140_v45  ;;  %v1417_v47 = vadd.f32 %v1416_v46, %v1248_v44  ;;  %v1249_v49 = vpop.f32.mrf.mxu1 }
  0xb8   :  { %v1250_v60 = vadd.f32 %v1249_v49, %v1080_v48  ;;  %v2465_v49 = vld [vmem:[%s4248_s0 + $0x180] sm:$0xf] }
  0xb9   :  { %v1586_v51 = vadd.f32 %v1585_v20, %v1417_v47 }
  0xbb   :  { %v2077_v53 = vadd.f32 %v3416_v17, %v1586_v51  ;;  %v1592_v6 = vpop.f32.mrf.mxu3  ;;  %v2973_v51 = vld [vmem:[%s4248_s0 + $0x18c] sm:$0xf0] }
  0xbc   :  { %v2466_v61 = vor.u32 %v2973_v51, %v2465_v49  ;;  %v2979_v49 = vld [vmem:[%s4248_s0 + $0x1c4] sm:$0xf]  ;;  %v2505_v51 = vld [vmem:[%s4248_s0 + $0x1c8] sm:$0xf] }
  0xbd   :  { %v2141_v59 = vmax.f32 %v2077_v53, 0.0  ;;  %v2467_v53 = vld [vmem:[%s4248_s0 + $0x190] sm:$0xf0] }
  0xbe   :  { %v1418_v63 = vpop.f32.mrf.mxu2  ;;  %v1083_v3 = vpop.f32.mrf.mxu0  ;;  %v2470_v62 = vor.u32 %v2971_v52, %v2467_v53  ;;  %v2982_v52 = vld [vmem:[%s4248_s0 + $0x1d4] sm:$0xf0] }
  0xbf   :  { %2205 = vst [vmem:[%s4250_s3 + $0x10] sm:$0xff] %v2141_v59  ;;  %v1419_v2 = vadd.f32 %v1418_v63, %v1250_v60  ;;  %v1252_v4 = vpop.f32.mrf.mxu1  ;;  %v2491_v59 = vld [vmem:[%s4248_s0 + $0x1b8] sm:$0xf0] }
  0xc0   :  { %v1253_v10 = vadd.f32 %v1252_v4, %v1083_v3  ;;  %2902 = vmatmul.msk.bf16.gmra.mxu3 %vm967_vm0, %v2462_v7  ;;  %v2494_v4 = vor.u32 %v2976_v58, %v2491_v59 }
  0xc1   :  { %v1588_v8 = vadd.f32 %v1587_v40, %v1419_v2  ;;  %1122 = vmatmul.bf16.gmra.mxu0 %v2434_v0  ;;  %v2474_v2 = vor.u32 %v2974_v55, %v2473_v54  ;;  %v2984_v55 = vld [vmem:[%s4248_s0 + $0x1ec] sm:$0xf] }
  0xc2   :  { %1291 = vmatmul.bf16.gmra.mxu1 %v2438_v1 }
  0xc3   :  { %v2078_v9 = vadd.f32 %v3416_v17, %v1588_v8  ;;  %1460 = vmatmul.bf16.gmra.mxu2 %v2442_v5  ;;  %v1595_v16 = vpop.f32.mrf.mxu3 }
  0xc5   :  { %v2142_v11 = vmax.f32 %v2078_v9, 0.0 }
  0xc6   :  { %v1421_v12 = vpop.f32.mrf.mxu2  ;;  %v1085_v14 = vpop.f32.mrf.mxu0 }
  0xc7   :  { %2206 = vst [vmem:[%s4250_s3 + $0x18] sm:$0xff] %v2142_v11  ;;  %v1422_v13 = vadd.f32 %v1421_v12, %v1253_v10  ;;  %v1254_v15 = vpop.f32.mrf.mxu1 }
  0xc8   :  { %v1255_v27 = vadd.f32 %v1254_v15, %v1085_v14  ;;  %v2481_v15 = vld [vmem:[%s4248_s0 + $0x1a0] sm:$0xf] }
  0xc9   :  { %v1591_v18 = vadd.f32 %v1590_v50, %v1422_v13 }
  0xcb   :  { %v2079_v20 = vadd.f32 %v3416_v17, %v1591_v18  ;;  %v1597_v37 = vpop.f32.mrf.mxu3  ;;  %v2977_v18 = vld [vmem:[%s4248_s0 + $0x1ac] sm:$0xf0] }
  0xcc   :  { %v2482_v28 = vor.u32 %v2977_v18, %v2481_v15  ;;  %v2983_v15 = vld [vmem:[%s4248_s0 + $0x1e4] sm:$0xf]  ;;  %v2521_v18 = vld [vmem:[%s4248_s0 + $0x1e8] sm:$0xf] }
  0xcd   :  { %v2143_v26 = vmax.f32 %v2079_v20, 0.0  ;;  %v2483_v20 = vld [vmem:[%s4248_s0 + $0x1b0] sm:$0xf0] }
  0xce   :  { %v1423_v30 = vpop.f32.mrf.mxu2  ;;  %v1088_v34 = vpop.f32.mrf.mxu0  ;;  %v2486_v29 = vor.u32 %v2975_v19, %v2483_v20  ;;  %v2986_v19 = vld [vmem:[%s4248_s0 + $0x1f4] sm:$0xf0] }
  0xcf   :  { %2207 = vst [vmem:[%s4250_s3 + $0x20] sm:$0xff] %v2143_v26  ;;  %v1424_v33 = vadd.f32 %v1423_v30, %v1255_v27  ;;  %v1257_v35 = vpop.f32.mrf.mxu1  ;;  %v2507_v26 = vld [vmem:[%s4248_s0 + $0x1d8] sm:$0xf0] }
  0xd0   :  { %v1258_v41 = vadd.f32 %v1257_v35, %v1088_v34  ;;  %2903 = vmatmul.msk.bf16.gmra.mxu3 %vm967_vm0, %v2478_v38  ;;  %v2510_v35 = vor.u32 %v2980_v25, %v2507_v26 }
  0xd1   :  { %v1593_v39 = vadd.f32 %v1592_v6, %v1424_v33  ;;  %1127 = vmatmul.bf16.gmra.mxu0 %v2450_v31  ;;  %v2490_v33 = vor.u32 %v2978_v22, %v2489_v21  ;;  %v2988_v22 = vld [vmem:[%s4248_s0 + $0x20c] sm:$0xf] }
  0xd2   :  { %1296 = vmatmul.bf16.gmra.mxu1 %v2454_v32 }
  0xd3   :  { %v2080_v40 = vadd.f32 %v3416_v17, %v1593_v39  ;;  %1465 = vmatmul.bf16.gmra.mxu2 %v2458_v36  ;;  %v1600_v47 = vpop.f32.mrf.mxu3 }
  0xd5   :  { %v2144_v42 = vmax.f32 %v2080_v40, 0.0 }
  0xd6   :  { %v1426_v43 = vpop.f32.mrf.mxu2  ;;  %v1090_v45 = vpop.f32.mrf.mxu0 }
  0xd7   :  { %2208 = vst [vmem:[%s4250_s3 + $0x28] sm:$0xff] %v2144_v42  ;;  %v1427_v44 = vadd.f32 %v1426_v43, %v1258_v41  ;;  %v1259_v46 = vpop.f32.mrf.mxu1 }
  0xd8   :  { %v1260_v57 = vadd.f32 %v1259_v46, %v1090_v45  ;;  %v2497_v46 = vld [vmem:[%s4248_s0 + $0x1c0] sm:$0xf] }
  0xd9   :  { %v1596_v48 = vadd.f32 %v1595_v16, %v1427_v44 }
  0xdb   :  { %v2081_v50 = vadd.f32 %v3416_v17, %v1596_v48  ;;  %v1602_v3 = vpop.f32.mrf.mxu3  ;;  %v2981_v48 = vld [vmem:[%s4248_s0 + $0x1cc] sm:$0xf0] }
  0xdc   :  { %v2498_v58 = vor.u32 %v2981_v48, %v2497_v46  ;;  %v2987_v46 = vld [vmem:[%s4248_s0 + $0x204] sm:$0xf]  ;;  %v2537_v48 = vld [vmem:[%s4248_s0 + $0x208] sm:$0xf] }
  0xdd   :  { %v2145_v56 = vmax.f32 %v2081_v50, 0.0  ;;  %v2499_v50 = vld [vmem:[%s4248_s0 + $0x1d0] sm:$0xf0] }
  0xde   :  { %v1428_v60 = vpop.f32.mrf.mxu2  ;;  %v1093_v0 = vpop.f32.mrf.mxu0  ;;  %v2502_v59 = vor.u32 %v2979_v49, %v2499_v50  ;;  %v2990_v49 = vld [vmem:[%s4248_s0 + $0x214] sm:$0xf0] }
  0xdf   :  { %2209 = vst [vmem:[%s4250_s3 + $0x30] sm:$0xff] %v2145_v56  ;;  %v1429_v63 = vadd.f32 %v1428_v60, %v1260_v57  ;;  %v1262_v1 = vpop.f32.mrf.mxu1  ;;  %v2523_v56 = vld [vmem:[%s4248_s0 + $0x1f8] sm:$0xf0] }
  0xe0   :  { %v1263_v7 = vadd.f32 %v1262_v1, %v1093_v0  ;;  %2904 = vmatmul.msk.bf16.gmra.mxu3 %vm967_vm0, %v2494_v4  ;;  %v2526_v1 = vor.u32 %v2984_v55, %v2523_v56 }
  0xe1   :  { %v1598_v5 = vadd.f32 %v1597_v37, %v1429_v63  ;;  %1132 = vmatmul.bf16.gmra.mxu0 %v2466_v61  ;;  %v2506_v63 = vor.u32 %v2982_v52, %v2505_v51  ;;  %v2992_v52 = vld [vmem:[%s4248_s0 + $0x22c] sm:$0xf] }
  0xe2   :  { %1301 = vmatmul.bf16.gmra.mxu1 %v2470_v62 }
  0xe3   :  { %v2082_v6 = vadd.f32 %v3416_v17, %v1598_v5  ;;  %1470 = vmatmul.bf16.gmra.mxu2 %v2474_v2  ;;  %v1605_v13 = vpop.f32.mrf.mxu3 }
  0xe5   :  { %v2146_v8 = vmax.f32 %v2082_v6, 0.0 }
  0xe6   :  { %v1431_v9 = vpop.f32.mrf.mxu2  ;;  %v1095_v11 = vpop.f32.mrf.mxu0 }
  0xe7   :  { %2210 = vst [vmem:[%s4250_s3 + $0x38] sm:$0xff] %v2146_v8  ;;  %v1432_v10 = vadd.f32 %v1431_v9, %v1263_v7  ;;  %v1264_v12 = vpop.f32.mrf.mxu1 }
  0xe8   :  { %v1265_v24 = vadd.f32 %v1264_v12, %v1095_v11  ;;  %v2513_v12 = vld [vmem:[%s4248_s0 + $0x1e0] sm:$0xf] }
  0xe9   :  { %v1601_v14 = vadd.f32 %v1600_v47, %v1432_v10 }
  0xeb   :  { %v2083_v16 = vadd.f32 %v3416_v17, %v1601_v14  ;;  %v1607_v34 = vpop.f32.mrf.mxu3  ;;  %v2985_v14 = vld [vmem:[%s4248_s0 + $0x1ec] sm:$0xf0] }
  0xec   :  { %v2514_v25 = vor.u32 %v2985_v14, %v2513_v12  ;;  %v2991_v12 = vld [vmem:[%s4248_s0 + $0x224] sm:$0xf]  ;;  %v2553_v14 = vld [vmem:[%s4248_s0 + $0x228] sm:$0xf] }
  0xed   :  { %v2147_v23 = vmax.f32 %v2083_v16, 0.0  ;;  %v2515_v16 = vld [vmem:[%s4248_s0 + $0x1f0] sm:$0xf0] }
  0xee   :  { %v1433_v27 = vpop.f32.mrf.mxu2  ;;  %v1098_v31 = vpop.f32.mrf.mxu0  ;;  %v2518_v26 = vor.u32 %v2983_v15, %v2515_v16  ;;  %v2994_v15 = vld [vmem:[%s4248_s0 + $0x234] sm:$0xf0] }
  0xef   :  { %2211 = vst [vmem:[%s4250_s3 + $0x40] sm:$0xff] %v2147_v23  ;;  %v1434_v30 = vadd.f32 %v1433_v27, %v1265_v24  ;;  %v1267_v32 = vpop.f32.mrf.mxu1  ;;  %v2539_v23 = vld [vmem:[%s4248_s0 + $0x218] sm:$0xf0] }
  0xf0   :  { %v1268_v38 = vadd.f32 %v1267_v32, %v1098_v31  ;;  %2905 = vmatmul.msk.bf16.gmra.mxu3 %vm967_vm0, %v2510_v35  ;;  %v2542_v32 = vor.u32 %v2988_v22, %v2539_v23 }
  0xf1   :  { %v1603_v36 = vadd.f32 %v1602_v3, %v1434_v30  ;;  %1137 = vmatmul.bf16.gmra.mxu0 %v2482_v28  ;;  %v2522_v30 = vor.u32 %v2986_v19, %v2521_v18  ;;  %v2996_v19 = vld [vmem:[%s4248_s0 + $0x24c] sm:$0xf] }
  0xf2   :  { %1306 = vmatmul.bf16.gmra.mxu1 %v2486_v29 }
  0xf3   :  { %v2084_v37 = vadd.f32 %v3416_v17, %v1603_v36  ;;  %1475 = vmatmul.bf16.gmra.mxu2 %v2490_v33  ;;  %v1610_v44 = vpop.f32.mrf.mxu3 }
  0xf5   :  { %v2148_v39 = vmax.f32 %v2084_v37, 0.0 }
  0xf6   :  { %v1436_v40 = vpop.f32.mrf.mxu2  ;;  %v1100_v42 = vpop.f32.mrf.mxu0 }
  0xf7   :  { %2212 = vst [vmem:[%s4250_s3 + $0x48] sm:$0xff] %v2148_v39  ;;  %v1437_v41 = vadd.f32 %v1436_v40, %v1268_v38  ;;  %v1269_v43 = vpop.f32.mrf.mxu1 }
  0xf8   :  { %v1270_v54 = vadd.f32 %v1269_v43, %v1100_v42  ;;  %v2529_v43 = vld [vmem:[%s4248_s0 + $0x200] sm:$0xf] }
  0xf9   :  { %v1606_v45 = vadd.f32 %v1605_v13, %v1437_v41 }
  0xfb   :  { %v2085_v47 = vadd.f32 %v3416_v17, %v1606_v45  ;;  %v1612_v0 = vpop.f32.mrf.mxu3  ;;  %v2989_v45 = vld [vmem:[%s4248_s0 + $0x20c] sm:$0xf0] }
  0xfc   :  { %v2530_v55 = vor.u32 %v2989_v45, %v2529_v43  ;;  %v2995_v43 = vld [vmem:[%s4248_s0 + $0x244] sm:$0xf]  ;;  %v2569_v45 = vld [vmem:[%s4248_s0 + $0x248] sm:$0xf] }
  0xfd   :  { %v2149_v53 = vmax.f32 %v2085_v47, 0.0  ;;  %v2531_v47 = vld [vmem:[%s4248_s0 + $0x210] sm:$0xf0] }
  0xfe   :  { %v1438_v57 = vpop.f32.mrf.mxu2  ;;  %v1103_v61 = vpop.f32.mrf.mxu0  ;;  %v2534_v56 = vor.u32 %v2987_v46, %v2531_v47  ;;  %v2998_v46 = vld [vmem:[%s4248_s0 + $0x254] sm:$0xf0] }
  0xff   :  { %2213 = vst [vmem:[%s4250_s3 + $0x50] sm:$0xff] %v2149_v53  ;;  %v1439_v60 = vadd.f32 %v1438_v57, %v1270_v54  ;;  %v1272_v62 = vpop.f32.mrf.mxu1  ;;  %v2555_v53 = vld [vmem:[%s4248_s0 + $0x238] sm:$0xf0] }
 0x100   :  { %v1273_v4 = vadd.f32 %v1272_v62, %v1103_v61  ;;  %2906 = vmatmul.msk.bf16.gmra.mxu3 %vm967_vm0, %v2526_v1  ;;  %v2558_v62 = vor.u32 %v2992_v52, %v2555_v53 }
 0x101   :  { %v1608_v2 = vadd.f32 %v1607_v34, %v1439_v60  ;;  %1142 = vmatmul.bf16.gmra.mxu0 %v2498_v58  ;;  %v2538_v60 = vor.u32 %v2990_v49, %v2537_v48  ;;  %v3000_v49 = vld [vmem:[%s4248_s0 + $0x26c] sm:$0xf] }
 0x102   :  { %1311 = vmatmul.bf16.gmra.mxu1 %v2502_v59 }
 0x103   :  { %v2086_v3 = vadd.f32 %v3416_v17, %v1608_v2  ;;  %1480 = vmatmul.bf16.gmra.mxu2 %v2506_v63  ;;  %v1615_v10 = vpop.f32.mrf.mxu3 }
 0x105   :  { %v2150_v5 = vmax.f32 %v2086_v3, 0.0 }
 0x106   :  { %v1441_v6 = vpop.f32.mrf.mxu2  ;;  %v1105_v8 = vpop.f32.mrf.mxu0 }
 0x107   :  { %2214 = vst [vmem:[%s4250_s3 + $0x58] sm:$0xff] %v2150_v5  ;;  %v1442_v7 = vadd.f32 %v1441_v6, %v1273_v4  ;;  %v1274_v9 = vpop.f32.mrf.mxu1 }
 0x108   :  { %v1275_v21 = vadd.f32 %v1274_v9, %v1105_v8  ;;  %v2545_v9 = vld [vmem:[%s4248_s0 + $0x220] sm:$0xf] }
 0x109   :  { %v1611_v11 = vadd.f32 %v1610_v44, %v1442_v7 }
 0x10b   :  { %v2087_v13 = vadd.f32 %v3416_v17, %v1611_v11  ;;  %v1617_v31 = vpop.f32.mrf.mxu3  ;;  %v2993_v11 = vld [vmem:[%s4248_s0 + $0x22c] sm:$0xf0] }
 0x10c   :  { %v2546_v22 = vor.u32 %v2993_v11, %v2545_v9  ;;  %v2999_v9 = vld [vmem:[%s4248_s0 + $0x264] sm:$0xf]  ;;  %v2585_v11 = vld [vmem:[%s4248_s0 + $0x268] sm:$0xf] }
 0x10d   :  { %v2151_v20 = vmax.f32 %v2087_v13, 0.0  ;;  %v2547_v13 = vld [vmem:[%s4248_s0 + $0x230] sm:$0xf0] }
 0x10e   :  { %v1443_v24 = vpop.f32.mrf.mxu2  ;;  %v1108_v28 = vpop.f32.mrf.mxu0  ;;  %v2550_v23 = vor.u32 %v2991_v12, %v2547_v13  ;;  %v3002_v12 = vld [vmem:[%s4248_s0 + $0x274] sm:$0xf0] }
 0x10f   :  { %2215 = vst [vmem:[%s4250_s3 + $0x60] sm:$0xff] %v2151_v20  ;;  %v1444_v27 = vadd.f32 %v1443_v24, %v1275_v21  ;;  %v1277_v29 = vpop.f32.mrf.mxu1  ;;  %v2571_v20 = vld [vmem:[%s4248_s0 + $0x258] sm:$0xf0] }
 0x110   :  { %v1278_v35 = vadd.f32 %v1277_v29, %v1108_v28  ;;  %2907 = vmatmul.msk.bf16.gmra.mxu3 %vm967_vm0, %v2542_v32  ;;  %v2574_v29 = vor.u32 %v2996_v19, %v2571_v20 }
 0x111   :  { %v1613_v33 = vadd.f32 %v1612_v0, %v1444_v27  ;;  %1147 = vmatmul.bf16.gmra.mxu0 %v2514_v25  ;;  %v2554_v27 = vor.u32 %v2994_v15, %v2553_v14  ;;  %v3004_v15 = vld [vmem:[%s4248_s0 + $0x28c] sm:$0xf] }
 0x112   :  { %1316 = vmatmul.bf16.gmra.mxu1 %v2518_v26 }
 0x113   :  { %v2088_v34 = vadd.f32 %v3416_v17, %v1613_v33  ;;  %1485 = vmatmul.bf16.gmra.mxu2 %v2522_v30  ;;  %v1620_v41 = vpop.f32.mrf.mxu3 }
 0x115   :  { %v2152_v36 = vmax.f32 %v2088_v34, 0.0 }
 0x116   :  { %v1446_v37 = vpop.f32.mrf.mxu2  ;;  %v1110_v39 = vpop.f32.mrf.mxu0 }
 0x117   :  { %2216 = vst [vmem:[%s4250_s3 + $0x68] sm:$0xff] %v2152_v36  ;;  %v1447_v38 = vadd.f32 %v1446_v37, %v1278_v35  ;;  %v1279_v40 = vpop.f32.mrf.mxu1 }
 0x118   :  { %v1280_v51 = vadd.f32 %v1279_v40, %v1110_v39  ;;  %v2561_v40 = vld [vmem:[%s4248_s0 + $0x240] sm:$0xf] }
 0x119   :  { %v1616_v42 = vadd.f32 %v1615_v10, %v1447_v38 }
 0x11b   :  { %v2089_v44 = vadd.f32 %v3416_v17, %v1616_v42  ;;  %v1622_v61 = vpop.f32.mrf.mxu3  ;;  %v2997_v42 = vld [vmem:[%s4248_s0 + $0x24c] sm:$0xf0] }
 0x11c   :  { %v2562_v52 = vor.u32 %v2997_v42, %v2561_v40  ;;  %v3003_v40 = vld [vmem:[%s4248_s0 + $0x284] sm:$0xf]  ;;  %v2601_v42 = vld [vmem:[%s4248_s0 + $0x288] sm:$0xf] }
 0x11d   :  { %v2153_v50 = vmax.f32 %v2089_v44, 0.0  ;;  %v2563_v44 = vld [vmem:[%s4248_s0 + $0x250] sm:$0xf0] }
 0x11e   :  { %v1448_v54 = vpop.f32.mrf.mxu2  ;;  %v1113_v58 = vpop.f32.mrf.mxu0  ;;  %v2566_v53 = vor.u32 %v2995_v43, %v2563_v44  ;;  %v3006_v43 = vld [vmem:[%s4248_s0 + $0x294] sm:$0xf0] }
 0x11f   :  { %2217 = vst [vmem:[%s4250_s3 + $0x70] sm:$0xff] %v2153_v50  ;;  %v1449_v57 = vadd.f32 %v1448_v54, %v1280_v51  ;;  %v1282_v59 = vpop.f32.mrf.mxu1  ;;  %v2587_v50 = vld [vmem:[%s4248_s0 + $0x278] sm:$0xf0] }
 0x120   :  { %v1283_v1 = vadd.f32 %v1282_v59, %v1113_v58  ;;  %2908 = vmatmul.msk.bf16.gmra.mxu3 %vm967_vm0, %v2558_v62  ;;  %v2590_v59 = vor.u32 %v3000_v49, %v2587_v50 }
 0x121   :  { %v1618_v63 = vadd.f32 %v1617_v31, %v1449_v57  ;;  %1152 = vmatmul.bf16.gmra.mxu0 %v2530_v55  ;;  %v2570_v57 = vor.u32 %v2998_v46, %v2569_v45  ;;  %v3008_v46 = vld [vmem:[%s4248_s0 + $0x2ac] sm:$0xf] }
 0x122   :  { %1321 = vmatmul.bf16.gmra.mxu1 %v2534_v56 }
 0x123   :  { %v2090_v0 = vadd.f32 %v3416_v17, %v1618_v63  ;;  %1490 = vmatmul.bf16.gmra.mxu2 %v2538_v60  ;;  %v1625_v7 = vpop.f32.mrf.mxu3 }
 0x125   :  { %v2154_v2 = vmax.f32 %v2090_v0, 0.0 }
 0x126   :  { %v1451_v3 = vpop.f32.mrf.mxu2  ;;  %v1115_v5 = vpop.f32.mrf.mxu0 }
 0x127   :  { %2218 = vst [vmem:[%s4250_s3 + $0x78] sm:$0xff] %v2154_v2  ;;  %v1452_v4 = vadd.f32 %v1451_v3, %v1283_v1  ;;  %v1284_v6 = vpop.f32.mrf.mxu1 }
 0x128   :  { %v1285_v18 = vadd.f32 %v1284_v6, %v1115_v5  ;;  %v2577_v6 = vld [vmem:[%s4248_s0 + $0x260] sm:$0xf] }
 0x129   :  { %v1621_v8 = vadd.f32 %v1620_v41, %v1452_v4 }
 0x12b   :  { %v2091_v10 = vadd.f32 %v3416_v17, %v1621_v8  ;;  %v1627_v28 = vpop.f32.mrf.mxu3  ;;  %v3001_v8 = vld [vmem:[%s4248_s0 + $0x26c] sm:$0xf0] }
 0x12c   :  { %v2578_v19 = vor.u32 %v3001_v8, %v2577_v6  ;;  %v3007_v6 = vld [vmem:[%s4248_s0 + $0x2a4] sm:$0xf]  ;;  %v2617_v8 = vld [vmem:[%s4248_s0 + $0x2a8] sm:$0xf] }
 0x12d   :  { %v2155_v16 = vmax.f32 %v2091_v10, 0.0  ;;  %v2579_v10 = vld [vmem:[%s4248_s0 + $0x270] sm:$0xf0] }
 0x12e   :  { %v1453_v21 = vpop.f32.mrf.mxu2  ;;  %v1118_v25 = vpop.f32.mrf.mxu0  ;;  %v2582_v20 = vor.u32 %v2999_v9, %v2579_v10  ;;  %v3010_v9 = vld [vmem:[%s4248_s0 + $0x2b4] sm:$0xf0] }
 0x12f   :  { %2219 = vst [vmem:[%s4250_s3 + $0x80] sm:$0xff] %v2155_v16  ;;  %v1454_v24 = vadd.f32 %v1453_v21, %v1285_v18  ;;  %v1287_v26 = vpop.f32.mrf.mxu1  ;;  %v2603_v16 = vld [vmem:[%s4248_s0 + $0x298] sm:$0xf0] }
 0x130   :  { %v1288_v32 = vadd.f32 %v1287_v26, %v1118_v25  ;;  %2909 = vmatmul.msk.bf16.gmra.mxu3 %vm967_vm0, %v2574_v29  ;;  %v2606_v26 = vor.u32 %v3004_v15, %v2603_v16 }
 0x131   :  { %v1623_v30 = vadd.f32 %v1622_v61, %v1454_v24  ;;  %1157 = vmatmul.bf16.gmra.mxu0 %v2546_v22  ;;  %v2586_v24 = vor.u32 %v3002_v12, %v2585_v11  ;;  %v3012_v12 = vld [vmem:[%s4248_s0 + $0x2cc] sm:$0xf] }
 0x132   :  { %1326 = vmatmul.bf16.gmra.mxu1 %v2550_v23 }
 0x133   :  { %v2092_v31 = vadd.f32 %v3416_v17, %v1623_v30  ;;  %1495 = vmatmul.bf16.gmra.mxu2 %v2554_v27  ;;  %v1630_v38 = vpop.f32.mrf.mxu3 }
 0x135   :  { %v2156_v33 = vmax.f32 %v2092_v31, 0.0 }
 0x136   :  { %v1456_v34 = vpop.f32.mrf.mxu2  ;;  %v1120_v36 = vpop.f32.mrf.mxu0 }
 0x137   :  { %2220 = vst [vmem:[%s4250_s3 + $0x88] sm:$0xff] %v2156_v33  ;;  %v1457_v35 = vadd.f32 %v1456_v34, %v1288_v32  ;;  %v1289_v37 = vpop.f32.mrf.mxu1 }
 0x138   :  { %v1290_v48 = vadd.f32 %v1289_v37, %v1120_v36  ;;  %v2593_v37 = vld [vmem:[%s4248_s0 + $0x280] sm:$0xf] }
 0x139   :  { %v1626_v39 = vadd.f32 %v1625_v7, %v1457_v35 }
 0x13b   :  { %v2093_v41 = vadd.f32 %v3416_v17, %v1626_v39  ;;  %v1632_v58 = vpop.f32.mrf.mxu3  ;;  %v3005_v39 = vld [vmem:[%s4248_s0 + $0x28c] sm:$0xf0] }
 0x13c   :  { %v2594_v49 = vor.u32 %v3005_v39, %v2593_v37  ;;  %v3011_v37 = vld [vmem:[%s4248_s0 + $0x2c4] sm:$0xf]  ;;  %v2633_v39 = vld [vmem:[%s4248_s0 + $0x2c8] sm:$0xf] }
 0x13d   :  { %v2157_v47 = vmax.f32 %v2093_v41, 0.0  ;;  %v2595_v41 = vld [vmem:[%s4248_s0 + $0x290] sm:$0xf0] }
 0x13e   :  { %v1458_v51 = vpop.f32.mrf.mxu2  ;;  %v1123_v55 = vpop.f32.mrf.mxu0  ;;  %v2598_v50 = vor.u32 %v3003_v40, %v2595_v41  ;;  %v3014_v40 = vld [vmem:[%s4248_s0 + $0x2d4] sm:$0xf0] }
 0x13f   :  { %2221 = vst [vmem:[%s4250_s3 + $0x90] sm:$0xff] %v2157_v47  ;;  %v1459_v54 = vadd.f32 %v1458_v51, %v1290_v48  ;;  %v1292_v56 = vpop.f32.mrf.mxu1  ;;  %v2619_v47 = vld [vmem:[%s4248_s0 + $0x2b8] sm:$0xf0] }
 0x140   :  { %v1293_v62 = vadd.f32 %v1292_v56, %v1123_v55  ;;  %2910 = vmatmul.msk.bf16.gmra.mxu3 %vm967_vm0, %v2590_v59  ;;  %v2622_v56 = vor.u32 %v3008_v46, %v2619_v47 }
 0x141   :  { %v1628_v60 = vadd.f32 %v1627_v28, %v1459_v54  ;;  %1162 = vmatmul.bf16.gmra.mxu0 %v2562_v52  ;;  %v2602_v54 = vor.u32 %v3006_v43, %v2601_v42  ;;  %v3016_v43 = vld [vmem:[%s4248_s0 + $0x2ec] sm:$0xf] }
 0x142   :  { %1331 = vmatmul.bf16.gmra.mxu1 %v2566_v53 }
 0x143   :  { %v2094_v61 = vadd.f32 %v3416_v17, %v1628_v60  ;;  %1500 = vmatmul.bf16.gmra.mxu2 %v2570_v57  ;;  %v1635_v4 = vpop.f32.mrf.mxu3 }
 0x145   :  { %v2158_v63 = vmax.f32 %v2094_v61, 0.0 }
 0x146   :  { %v1461_v0 = vpop.f32.mrf.mxu2  ;;  %v1125_v2 = vpop.f32.mrf.mxu0 }
 0x147   :  { %2222 = vst [vmem:[%s4250_s3 + $0x98] sm:$0xff] %v2158_v63  ;;  %v1462_v1 = vadd.f32 %v1461_v0, %v1293_v62  ;;  %v1294_v3 = vpop.f32.mrf.mxu1 }
 0x148   :  { %v1295_v14 = vadd.f32 %v1294_v3, %v1125_v2  ;;  %v2609_v3 = vld [vmem:[%s4248_s0 + $0x2a0] sm:$0xf] }
 0x149   :  { %v1631_v5 = vadd.f32 %v1630_v38, %v1462_v1 }
 0x14b   :  { %v2095_v7 = vadd.f32 %v3416_v17, %v1631_v5  ;;  %v1637_v25 = vpop.f32.mrf.mxu3  ;;  %v3009_v5 = vld [vmem:[%s4248_s0 + $0x2ac] sm:$0xf0] }
 0x14c   :  { %v2610_v15 = vor.u32 %v3009_v5, %v2609_v3  ;;  %v3015_v3 = vld [vmem:[%s4248_s0 + $0x2e4] sm:$0xf]  ;;  %v2649_v5 = vld [vmem:[%s4248_s0 + $0x2e8] sm:$0xf] }
 0x14d   :  { %v2159_v13 = vmax.f32 %v2095_v7, 0.0  ;;  %v2611_v7 = vld [vmem:[%s4248_s0 + $0x2b0] sm:$0xf0] }
 0x14e   :  { %v1463_v18 = vpop.f32.mrf.mxu2  ;;  %v1128_v22 = vpop.f32.mrf.mxu0  ;;  %v2614_v16 = vor.u32 %v3007_v6, %v2611_v7 }
 0x14f   :  { %2223 = vst [vmem:[%s4250_s3 + $0xa0] sm:$0xff] %v2159_v13  ;;  %v1464_v21 = vadd.f32 %v1463_v18, %v1295_v14  ;;  %v1297_v23 = vpop.f32.mrf.mxu1  ;;  %v2635_v13 = vld [vmem:[%s4248_s0 + $0x2d8] sm:$0xf0] }
 0x150   :  { %v1298_v29 = vadd.f32 %v1297_v23, %v1128_v22  ;;  %2911 = vmatmul.msk.bf16.gmra.mxu3 %vm967_vm0, %v2606_v26  ;;  %v2638_v23 = vor.u32 %v3012_v12, %v2635_v13 }
 0x151   :  { %v1633_v27 = vadd.f32 %v1632_v58, %v1464_v21  ;;  %1167 = vmatmul.bf16.gmra.mxu0 %v2578_v19  ;;  %v2618_v21 = vor.u32 %v3010_v9, %v2617_v8  ;;  %v3020_v8 = vld [vmem:[%s4248_s0 + $0x30c] sm:$0xf]  ;;  %v2667_v9 = vld [vmem:[%s4248_s0 + $0x318] sm:$0xf0] }
 0x152   :  { %1336 = vmatmul.bf16.gmra.mxu1 %v2582_v20 }
 0x153   :  { %v2096_v28 = vadd.f32 %v3416_v17, %v1633_v27  ;;  %1505 = vmatmul.bf16.gmra.mxu2 %v2586_v24  ;;  %v1640_v35 = vpop.f32.mrf.mxu3 }
 0x155   :  { %v2160_v30 = vmax.f32 %v2096_v28, 0.0 }
 0x156   :  { %v1466_v31 = vpop.f32.mrf.mxu2  ;;  %v1130_v33 = vpop.f32.mrf.mxu0 }
 0x157   :  { %2224 = vst [vmem:[%s4250_s3 + $0xa8] sm:$0xff] %v2160_v30  ;;  %v1467_v32 = vadd.f32 %v1466_v31, %v1298_v29  ;;  %v1299_v34 = vpop.f32.mrf.mxu1 }
 0x158   :  { %v1300_v45 = vadd.f32 %v1299_v34, %v1130_v33  ;;  %v2625_v34 = vld [vmem:[%s4248_s0 + $0x2c0] sm:$0xf] }
 0x159   :  { %v1636_v36 = vadd.f32 %v1635_v4, %v1467_v32 }
 0x15b   :  { %v2097_v38 = vadd.f32 %v3416_v17, %v1636_v36  ;;  %v1642_v55 = vpop.f32.mrf.mxu3  ;;  %v3013_v36 = vld [vmem:[%s4248_s0 + $0x2cc] sm:$0xf0] }
 0x15c   :  { %v2626_v46 = vor.u32 %v3013_v36, %v2625_v34  ;;  %v3019_v34 = vld [vmem:[%s4248_s0 + $0x304] sm:$0xf]  ;;  %v2665_v36 = vld [vmem:[%s4248_s0 + $0x308] sm:$0xf] }
 0x15d   :  { %v2161_v44 = vmax.f32 %v2097_v38, 0.0  ;;  %v2627_v38 = vld [vmem:[%s4248_s0 + $0x2d0] sm:$0xf0] }
 0x15e   :  { %v1468_v48 = vpop.f32.mrf.mxu2  ;;  %v1133_v52 = vpop.f32.mrf.mxu0  ;;  %v2630_v47 = vor.u32 %v3011_v37, %v2627_v38  ;;  %v3022_v37 = vld [vmem:[%s4248_s0 + $0x314] sm:$0xf0] }
 0x15f   :  { %2225 = vst [vmem:[%s4250_s3 + $0xb0] sm:$0xff] %v2161_v44  ;;  %v1469_v51 = vadd.f32 %v1468_v48, %v1300_v45  ;;  %v1302_v53 = vpop.f32.mrf.mxu1  ;;  %v2651_v44 = vld [vmem:[%s4248_s0 + $0x2f8] sm:$0xf0] }
 0x160   :  { %v1303_v59 = vadd.f32 %v1302_v53, %v1133_v52  ;;  %2912 = vmatmul.msk.bf16.gmra.mxu3 %vm967_vm0, %v2622_v56  ;;  %v2654_v53 = vor.u32 %v3016_v43, %v2651_v44 }
 0x161   :  { %v1638_v57 = vadd.f32 %v1637_v25, %v1469_v51  ;;  %1172 = vmatmul.bf16.gmra.mxu0 %v2594_v49  ;;  %v2634_v51 = vor.u32 %v3014_v40, %v2633_v39  ;;  %v3024_v40 = vld [vmem:[%s4248_s0 + $0x32c] sm:$0xf] }
 0x162   :  { %1341 = vmatmul.bf16.gmra.mxu1 %v2598_v50 }
 0x163   :  { %v2098_v58 = vadd.f32 %v3416_v17, %v1638_v57  ;;  %1510 = vmatmul.bf16.gmra.mxu2 %v2602_v54  ;;  %v1645_v1 = vpop.f32.mrf.mxu3 }
 0x165   :  { %v2162_v60 = vmax.f32 %v2098_v58, 0.0 }
 0x166   :  { %v1471_v61 = vpop.f32.mrf.mxu2  ;;  %v1135_v63 = vpop.f32.mrf.mxu0 }
 0x167   :  { %2226 = vst [vmem:[%s4250_s3 + $0xb8] sm:$0xff] %v2162_v60  ;;  %v1472_v62 = vadd.f32 %v1471_v61, %v1303_v59  ;;  %v1304_v0 = vpop.f32.mrf.mxu1 }
 0x168   :  { %v1305_v11 = vadd.f32 %v1304_v0, %v1135_v63  ;;  %v2641_v0 = vld [vmem:[%s4248_s0 + $0x2e0] sm:$0xf] }
 0x169   :  { %v1641_v2 = vadd.f32 %v1640_v35, %v1472_v62 }
 0x16b   :  { %v2099_v4 = vadd.f32 %v3416_v17, %v1641_v2  ;;  %v1647_v22 = vpop.f32.mrf.mxu3  ;;  %v3017_v2 = vld [vmem:[%s4248_s0 + $0x2ec] sm:$0xf0] }
 0x16d   :  { %v2163_v10 = vmax.f32 %v2099_v4, 0.0  ;;  %v2643_v4 = vld [vmem:[%s4248_s0 + $0x2f0] sm:$0xf0] }
 0x16e   :  { %v1473_v14 = vpop.f32.mrf.mxu2  ;;  %v1138_v19 = vpop.f32.mrf.mxu0  ;;  %v2646_v12 = vor.u32 %v3015_v3, %v2643_v4  ;;  %v3026_v3 = vld [vmem:[%s4248_s0 + $0x334] sm:$0xf0] }
 0x16f   :  { %2227 = vst [vmem:[%s4250_s3 + $0xc0] sm:$0xff] %v2163_v10  ;;  %v1474_v18 = vadd.f32 %v1473_v14, %v1305_v11  ;;  %v1307_v20 = vpop.f32.mrf.mxu1  ;;  %v2642_v11 = vor.u32 %v3017_v2, %v2641_v0  ;;  %v3023_v0 = vld [vmem:[%s4248_s0 + $0x324] sm:$0xf]  ;;  %v2681_v2 = vld [vmem:[%s4248_s0 + $0x328] sm:$0xf] }
 0x170   :  { %v1308_v26 = vadd.f32 %v1307_v20, %v1138_v19  ;;  %2913 = vmatmul.msk.bf16.gmra.mxu3 %vm967_vm0, %v2638_v23  ;;  %v2670_v19 = vor.u32 %v3020_v8, %v2667_v9 }
 0x171   :  { %v1643_v24 = vadd.f32 %v1642_v55, %v1474_v18  ;;  %1177 = vmatmul.bf16.gmra.mxu0 %v2610_v15 }
 0x172   :  { %1346 = vmatmul.bf16.gmra.mxu1 %v2614_v16 }
 0x173   :  { %v2100_v25 = vadd.f32 %v3416_v17, %v1643_v24  ;;  %1515 = vmatmul.bf16.gmra.mxu2 %v2618_v21  ;;  %v1650_v32 = vpop.f32.mrf.mxu3  ;;  %v3911_v21 = vld [vmem:[%s4249_s2] ss:$0 sm:$0xff] }
 0x175   :  { %v2164_v27 = vmax.f32 %v2100_v25, 0.0 }
 0x176   :  { %v1476_v28 = vpop.f32.mrf.mxu2  ;;  %v1140_v30 = vpop.f32.mrf.mxu0 }
 0x177   :  { %2228 = vst [vmem:[%s4250_s3 + $0xc8] sm:$0xff] %v2164_v27  ;;  %v1477_v29 = vadd.f32 %v1476_v28, %v1308_v26  ;;  %v1309_v31 = vpop.f32.mrf.mxu1 }
 0x178   :  { %v1310_v42 = vadd.f32 %v1309_v31, %v1140_v30  ;;  %v2657_v31 = vld [vmem:[%s4248_s0 + $0x300] sm:$0xf] }
 0x179   :  { %v1646_v33 = vadd.f32 %v1645_v1, %v1477_v29 }
 0x17b   :  { %v2101_v35 = vadd.f32 %v3416_v17, %v1646_v33  ;;  %v1652_v52 = vpop.f32.mrf.mxu3  ;;  %v3021_v33 = vld [vmem:[%s4248_s0 + $0x30c] sm:$0xf0] }
 0x17c   :  { %v2658_v43 = vor.u32 %v3021_v33, %v2657_v31  ;;  %v3027_v31 = vld [vmem:[%s4248_s0 + $0x344] sm:$0xf]  ;;  %v2697_v33 = vld [vmem:[%s4248_s0 + $0x348] sm:$0xf] }
 0x17d   :  { %v2165_v41 = vmax.f32 %v2101_v35, 0.0  ;;  %v2659_v35 = vld [vmem:[%s4248_s0 + $0x310] sm:$0xf0] }
 0x17e   :  { %v1478_v45 = vpop.f32.mrf.mxu2  ;;  %v1143_v49 = vpop.f32.mrf.mxu0  ;;  %v2662_v44 = vor.u32 %v3019_v34, %v2659_v35  ;;  %v3030_v34 = vld [vmem:[%s4248_s0 + $0x354] sm:$0xf0] }
 0x17f   :  { %2229 = vst [vmem:[%s4250_s3 + $0xd0] sm:$0xff] %v2165_v41  ;;  %v1479_v48 = vadd.f32 %v1478_v45, %v1310_v42  ;;  %v1312_v50 = vpop.f32.mrf.mxu1  ;;  %v2683_v41 = vld [vmem:[%s4248_s0 + $0x338] sm:$0xf0] }
 0x180   :  { %v1313_v56 = vadd.f32 %v1312_v50, %v1143_v49  ;;  %2914 = vmatmul.msk.bf16.gmra.mxu3 %vm967_vm0, %v2654_v53  ;;  %v2686_v50 = vor.u32 %v3024_v40, %v2683_v41 }
 0x181   :  { %v1648_v54 = vadd.f32 %v1647_v22, %v1479_v48  ;;  %1182 = vmatmul.bf16.gmra.mxu0 %v2626_v46  ;;  %v2666_v48 = vor.u32 %v3022_v37, %v2665_v36  ;;  %v3032_v37 = vld [vmem:[%s4248_s0 + $0x36c] sm:$0xf] }
 0x182   :  { %1351 = vmatmul.bf16.gmra.mxu1 %v2630_v47 }
 0x183   :  { %v2102_v55 = vadd.f32 %v3416_v17, %v1648_v54  ;;  %1520 = vmatmul.bf16.gmra.mxu2 %v2634_v51  ;;  %v1655_v62 = vpop.f32.mrf.mxu3 }
 0x185   :  { %v2166_v57 = vmax.f32 %v2102_v55, 0.0 }
 0x186   :  { %v1481_v58 = vpop.f32.mrf.mxu2  ;;  %v1145_v60 = vpop.f32.mrf.mxu0 }
 0x187   :  { %2230 = vst [vmem:[%s4250_s3 + $0xd8] sm:$0xff] %v2166_v57  ;;  %v1482_v59 = vadd.f32 %v1481_v58, %v1313_v56  ;;  %v1314_v61 = vpop.f32.mrf.mxu1 }
 0x188   :  { %v1315_v7 = vadd.f32 %v1314_v61, %v1145_v60  ;;  %v2673_v61 = vld [vmem:[%s4248_s0 + $0x320] sm:$0xf] }
 0x189   :  { %v1651_v63 = vadd.f32 %v1650_v32, %v1482_v59 }
 0x18b   :  { %v2103_v1 = vadd.f32 %v3416_v17, %v1651_v63  ;;  %v3018_v17 = vld [vmem:[%s4248_s0 + $0x2f4] sm:$0xf0]  ;;  %v1657_v18 = vpop.f32.mrf.mxu3  ;;  %v3025_v63 = vld [vmem:[%s4248_s0 + $0x32c] sm:$0xf0] }
 0x18c   :  { %v2650_v16 = vor.u32 %v3018_v17, %v2649_v5  ;;  %v3028_v17 = vld [vmem:[%s4248_s0 + $0x34c] sm:$0xf]  ;;  %v2674_v8 = vor.u32 %v3025_v63, %v2673_v61  ;;  %v3031_v61 = vld [vmem:[%s4248_s0 + $0x364] sm:$0xf]  ;;  %v2713_v63 = vld [vmem:[%s4248_s0 + $0x368] sm:$0xf] }
 0x18d   :  { %v2167_v6 = vmax.f32 %v2103_v1, 0.0  ;;  %v2675_v1 = vld [vmem:[%s4248_s0 + $0x330] sm:$0xf0] }
 0x18e   :  { %v1483_v10 = vpop.f32.mrf.mxu2  ;;  %v1148_v14 = vpop.f32.mrf.mxu0  ;;  %v2678_v9 = vor.u32 %v3023_v0, %v2675_v1  ;;  %v3034_v0 = vld [vmem:[%s4248_s0 + $0x374] sm:$0xf0] }
 0x18f   :  { %2231 = vst [vmem:[%s4250_s3 + $0xe0] sm:$0xff] %v2167_v6  ;;  %v1484_v13 = vadd.f32 %v1483_v10, %v1315_v7  ;;  %v1317_v15 = vpop.f32.mrf.mxu1  ;;  %v2699_v6 = vld [vmem:[%s4248_s0 + $0x358] sm:$0xf0] }
 0x190   :  { %v1318_v23 = vadd.f32 %v1317_v15, %v1148_v14  ;;  %2915 = vmatmul.msk.bf16.gmra.mxu3 %vm967_vm0, %v2670_v19  ;;  %v2702_v15 = vor.u32 %v3028_v17, %v2699_v6 }
 0x191   :  { %v1653_v20 = vadd.f32 %v1652_v52, %v1484_v13  ;;  %1187 = vmatmul.bf16.gmra.mxu0 %v2642_v11  ;;  %v2682_v13 = vor.u32 %v3026_v3, %v2681_v2  ;;  %v3036_v3 = vld [vmem:[%s4248_s0 + $0x38c] sm:$0xf] }
 0x192   :  { %1356 = vmatmul.bf16.gmra.mxu1 %v2646_v12 }
 0x193   :  { %v2104_v22 = vadd.f32 %v3911_v21, %v1653_v20  ;;  %1525 = vmatmul.bf16.gmra.mxu2 %v2650_v16  ;;  %v1660_v29 = vpop.f32.mrf.mxu3 }
 0x195   :  { %v2168_v24 = vmax.f32 %v2104_v22, 0.0 }
 0x196   :  { %v1486_v25 = vpop.f32.mrf.mxu2  ;;  %v1150_v27 = vpop.f32.mrf.mxu0 }
 0x197   :  { %2232 = vst [vmem:[%s4250_s3 + $0xe8] sm:$0xff] %v2168_v24  ;;  %v1487_v26 = vadd.f32 %v1486_v25, %v1318_v23  ;;  %v1319_v28 = vpop.f32.mrf.mxu1 }
 0x198   :  { %v1320_v39 = vadd.f32 %v1319_v28, %v1150_v27  ;;  %v2689_v28 = vld [vmem:[%s4248_s0 + $0x340] sm:$0xf] }
 0x199   :  { %v1656_v30 = vadd.f32 %v1655_v62, %v1487_v26 }
 0x19b   :  { %v2105_v32 = vadd.f32 %v3911_v21, %v1656_v30  ;;  %v1662_v49 = vpop.f32.mrf.mxu3  ;;  %v3029_v30 = vld [vmem:[%s4248_s0 + $0x34c] sm:$0xf0] }
 0x19c   :  { %v2690_v40 = vor.u32 %v3029_v30, %v2689_v28  ;;  %v3035_v28 = vld [vmem:[%s4248_s0 + $0x384] sm:$0xf]  ;;  %v2729_v30 = vld [vmem:[%s4248_s0 + $0x388] sm:$0xf] }
 0x19d   :  { %v2169_v38 = vmax.f32 %v2105_v32, 0.0  ;;  %v2691_v32 = vld [vmem:[%s4248_s0 + $0x350] sm:$0xf0] }
 0x19e   :  { %v1488_v42 = vpop.f32.mrf.mxu2  ;;  %v1153_v46 = vpop.f32.mrf.mxu0  ;;  %v2694_v41 = vor.u32 %v3027_v31, %v2691_v32  ;;  %v3038_v31 = vld [vmem:[%s4248_s0 + $0x394] sm:$0xf0] }
 0x19f   :  { %2233 = vst [vmem:[%s4250_s3 + $0xf0] sm:$0xff] %v2169_v38  ;;  %v1489_v45 = vadd.f32 %v1488_v42, %v1320_v39  ;;  %v1322_v47 = vpop.f32.mrf.mxu1  ;;  %v2715_v38 = vld [vmem:[%s4248_s0 + $0x378] sm:$0xf0] }
 0x1a0   :  { %v1323_v53 = vadd.f32 %v1322_v47, %v1153_v46  ;;  %2916 = vmatmul.msk.bf16.gmra.mxu3 %vm967_vm0, %v2686_v50  ;;  %v2718_v47 = vor.u32 %v3032_v37, %v2715_v38 }
 0x1a1   :  { %v1658_v51 = vadd.f32 %v1657_v18, %v1489_v45  ;;  %1192 = vmatmul.bf16.gmra.mxu0 %v2658_v43  ;;  %v2698_v45 = vor.u32 %v3030_v34, %v2697_v33  ;;  %v3040_v34 = vld [vmem:[%s4248_s0 + $0x3ac] sm:$0xf] }
 0x1a2   :  { %1361 = vmatmul.bf16.gmra.mxu1 %v2662_v44 }
 0x1a3   :  { %v2106_v52 = vadd.f32 %v3911_v21, %v1658_v51  ;;  %1530 = vmatmul.bf16.gmra.mxu2 %v2666_v48  ;;  %v1665_v59 = vpop.f32.mrf.mxu3 }
 0x1a5   :  { %v2170_v54 = vmax.f32 %v2106_v52, 0.0 }
 0x1a6   :  { %v1491_v55 = vpop.f32.mrf.mxu2  ;;  %v1155_v57 = vpop.f32.mrf.mxu0 }
 0x1a7   :  { %2234 = vst [vmem:[%s4250_s3 + $0xf8] sm:$0xff] %v2170_v54  ;;  %v1492_v56 = vadd.f32 %v1491_v55, %v1323_v53  ;;  %v1324_v58 = vpop.f32.mrf.mxu1 }
 0x1a8   :  { %v1325_v5 = vadd.f32 %v1324_v58, %v1155_v57  ;;  %v2705_v58 = vld [vmem:[%s4248_s0 + $0x360] sm:$0xf] }
 0x1a9   :  { %v1661_v60 = vadd.f32 %v1660_v29, %v1492_v56 }
 0x1ab   :  { %v2107_v62 = vadd.f32 %v3911_v21, %v1661_v60  ;;  %v1667_v14 = vpop.f32.mrf.mxu3  ;;  %v3033_v60 = vld [vmem:[%s4248_s0 + $0x36c] sm:$0xf0] }
 0x1ac   :  { %v2706_v17 = vor.u32 %v3033_v60, %v2705_v58  ;;  %v3039_v58 = vld [vmem:[%s4248_s0 + $0x3a4] sm:$0xf]  ;;  %v2745_v60 = vld [vmem:[%s4248_s0 + $0x3a8] sm:$0xf] }
 0x1ad   :  { %v2171_v4 = vmax.f32 %v2107_v62, 0.0  ;;  %v2707_v62 = vld [vmem:[%s4248_s0 + $0x370] sm:$0xf0] }
 0x1ae   :  { %v1493_v7 = vpop.f32.mrf.mxu2  ;;  %v1158_v11 = vpop.f32.mrf.mxu0  ;;  %v2710_v6 = vor.u32 %v3031_v61, %v2707_v62  ;;  %v3042_v61 = vld [vmem:[%s4248_s0 + $0x3b4] sm:$0xf0] }
 0x1af   :  { %2235 = vst [vmem:[%s4250_s3 + $0x100] sm:$0xff] %v2171_v4  ;;  %v1494_v10 = vadd.f32 %v1493_v7, %v1325_v5  ;;  %v1327_v12 = vpop.f32.mrf.mxu1  ;;  %v2731_v4 = vld [vmem:[%s4248_s0 + $0x398] sm:$0xf0] }
 0x1b0   :  { %v1328_v19 = vadd.f32 %v1327_v12, %v1158_v11  ;;  %2917 = vmatmul.msk.bf16.gmra.mxu3 %vm967_vm0, %v2702_v15  ;;  %v2734_v12 = vor.u32 %v3036_v3, %v2731_v4 }
 0x1b1   :  { %v1663_v16 = vadd.f32 %v1662_v49, %v1494_v10  ;;  %1197 = vmatmul.bf16.gmra.mxu0 %v2674_v8  ;;  %v2714_v10 = vor.u32 %v3034_v0, %v2713_v63  ;;  %v3044_v0 = vld [vmem:[%s4248_s0 + $0x3cc] sm:$0xf] }
 0x1b2   :  { %1366 = vmatmul.bf16.gmra.mxu1 %v2678_v9 }
 0x1b3   :  { %v2108_v18 = vadd.f32 %v3911_v21, %v1663_v16  ;;  %1535 = vmatmul.bf16.gmra.mxu2 %v2682_v13  ;;  %v1670_v26 = vpop.f32.mrf.mxu3 }
 0x1b5   :  { %v2172_v20 = vmax.f32 %v2108_v18, 0.0 }
 0x1b6   :  { %v1496_v22 = vpop.f32.mrf.mxu2  ;;  %v1160_v24 = vpop.f32.mrf.mxu0 }
 0x1b7   :  { %2236 = vst [vmem:[%s4250_s3 + $0x108] sm:$0xff] %v2172_v20  ;;  %v1497_v23 = vadd.f32 %v1496_v22, %v1328_v19  ;;  %v1329_v25 = vpop.f32.mrf.mxu1 }
 0x1b8   :  { %v1330_v36 = vadd.f32 %v1329_v25, %v1160_v24  ;;  %v2721_v25 = vld [vmem:[%s4248_s0 + $0x380] sm:$0xf] }
 0x1b9   :  { %v1666_v27 = vadd.f32 %v1665_v59, %v1497_v23 }
 0x1bb   :  { %v2109_v29 = vadd.f32 %v3911_v21, %v1666_v27  ;;  %v1672_v46 = vpop.f32.mrf.mxu3  ;;  %v3037_v27 = vld [vmem:[%s4248_s0 + $0x38c] sm:$0xf0] }
 0x1bc   :  { %v2722_v37 = vor.u32 %v3037_v27, %v2721_v25  ;;  %v3043_v25 = vld [vmem:[%s4248_s0 + $0x3c4] sm:$0xf]  ;;  %v2761_v27 = vld [vmem:[%s4248_s0 + $0x3c8] sm:$0xf] }
 0x1bd   :  { %v2173_v35 = vmax.f32 %v2109_v29, 0.0  ;;  %v2723_v29 = vld [vmem:[%s4248_s0 + $0x390] sm:$0xf0] }
 0x1be   :  { %v1498_v39 = vpop.f32.mrf.mxu2  ;;  %v1163_v43 = vpop.f32.mrf.mxu0  ;;  %v2726_v38 = vor.u32 %v3035_v28, %v2723_v29  ;;  %v3046_v28 = vld [vmem:[%s4248_s0 + $0x3d4] sm:$0xf0] }
 0x1bf   :  { %2237 = vst [vmem:[%s4250_s3 + $0x110] sm:$0xff] %v2173_v35  ;;  %v1499_v42 = vadd.f32 %v1498_v39, %v1330_v36  ;;  %v1332_v44 = vpop.f32.mrf.mxu1  ;;  %v2747_v35 = vld [vmem:[%s4248_s0 + $0x3b8] sm:$0xf0] }
 0x1c0   :  { %v1333_v50 = vadd.f32 %v1332_v44, %v1163_v43  ;;  %2918 = vmatmul.msk.bf16.gmra.mxu3 %vm967_vm0, %v2718_v47  ;;  %v2750_v44 = vor.u32 %v3040_v34, %v2747_v35 }
 0x1c1   :  { %v1668_v48 = vadd.f32 %v1667_v14, %v1499_v42  ;;  %1202 = vmatmul.bf16.gmra.mxu0 %v2690_v40  ;;  %v2730_v42 = vor.u32 %v3038_v31, %v2729_v30  ;;  %v3048_v31 = vld [vmem:[%s4248_s0 + $0x3ec] sm:$0xf] }
 0x1c2   :  { %1371 = vmatmul.bf16.gmra.mxu1 %v2694_v41 }
 0x1c3   :  { %v2110_v49 = vadd.f32 %v3911_v21, %v1668_v48  ;;  %1540 = vmatmul.bf16.gmra.mxu2 %v2698_v45  ;;  %v1675_v56 = vpop.f32.mrf.mxu3 }
 0x1c5   :  { %v2174_v51 = vmax.f32 %v2110_v49, 0.0 }
 0x1c6   :  { %v1501_v52 = vpop.f32.mrf.mxu2  ;;  %v1165_v54 = vpop.f32.mrf.mxu0 }
 0x1c7   :  { %2238 = vst [vmem:[%s4250_s3 + $0x118] sm:$0xff] %v2174_v51  ;;  %v1502_v53 = vadd.f32 %v1501_v52, %v1333_v50  ;;  %v1334_v55 = vpop.f32.mrf.mxu1 }
 0x1c8   :  { %v1335_v2 = vadd.f32 %v1334_v55, %v1165_v54  ;;  %v2737_v55 = vld [vmem:[%s4248_s0 + $0x3a0] sm:$0xf] }
 0x1c9   :  { %v1671_v57 = vadd.f32 %v1670_v26, %v1502_v53 }
 0x1cb   :  { %v2111_v59 = vadd.f32 %v3911_v21, %v1671_v57  ;;  %v1677_v11 = vpop.f32.mrf.mxu3  ;;  %v3041_v57 = vld [vmem:[%s4248_s0 + $0x3ac] sm:$0xf0] }
 0x1cc   :  { %v2738_v3 = vor.u32 %v3041_v57, %v2737_v55  ;;  %v3047_v55 = vld [vmem:[%s4248_s0 + $0x3e4] sm:$0xf]  ;;  %v2777_v57 = vld [vmem:[%s4248_s0 + $0x3e8] sm:$0xf] }
 0x1cd   :  { %v2175_v1 = vmax.f32 %v2111_v59, 0.0  ;;  %v2739_v59 = vld [vmem:[%s4248_s0 + $0x3b0] sm:$0xf0] }
 0x1ce   :  { %v1503_v5 = vpop.f32.mrf.mxu2  ;;  %v1168_v8 = vpop.f32.mrf.mxu0  ;;  %v2742_v4 = vor.u32 %v3039_v58, %v2739_v59  ;;  %v3050_v58 = vld [vmem:[%s4248_s0 + $0x3f4] sm:$0xf0] }
 0x1cf   :  { %2239 = vst [vmem:[%s4250_s3 + $0x120] sm:$0xff] %v2175_v1  ;;  %v1504_v7 = vadd.f32 %v1503_v5, %v1335_v2  ;;  %v1337_v9 = vpop.f32.mrf.mxu1  ;;  %v2763_v1 = vld [vmem:[%s4248_s0 + $0x3d8] sm:$0xf0] }
 0x1d0   :  { %v1338_v15 = vadd.f32 %v1337_v9, %v1168_v8  ;;  %2919 = vmatmul.msk.bf16.gmra.mxu3 %vm967_vm0, %v2734_v12  ;;  %v2766_v9 = vor.u32 %v3044_v0, %v2763_v1 }
 0x1d1   :  { %v1673_v13 = vadd.f32 %v1672_v46, %v1504_v7  ;;  %1207 = vmatmul.bf16.gmra.mxu0 %v2706_v17  ;;  %v2746_v7 = vor.u32 %v3042_v61, %v2745_v60 }
 0x1d2   :  { %1376 = vmatmul.bf16.gmra.mxu1 %v2710_v6 }
 0x1d3   :  { %v2112_v14 = vadd.f32 %v3911_v21, %v1673_v13  ;;  %1545 = vmatmul.bf16.gmra.mxu2 %v2714_v10  ;;  %v1680_v23 = vpop.f32.mrf.mxu3 }
 0x1d5   :  { %v2176_v16 = vmax.f32 %v2112_v14, 0.0 }
 0x1d6   :  { %v1506_v18 = vpop.f32.mrf.mxu2  ;;  %v1170_v20 = vpop.f32.mrf.mxu0 }
 0x1d7   :  { %2240 = vst [vmem:[%s4250_s3 + $0x128] sm:$0xff] %v2176_v16  ;;  %v1507_v19 = vadd.f32 %v1506_v18, %v1338_v15  ;;  %v1339_v22 = vpop.f32.mrf.mxu1 }
 0x1d8   :  { %v1340_v33 = vadd.f32 %v1339_v22, %v1170_v20  ;;  %v2753_v22 = vld [vmem:[%s4248_s0 + $0x3c0] sm:$0xf] }
 0x1d9   :  { %v1676_v24 = vadd.f32 %v1675_v56, %v1507_v19 }
 0x1db   :  { %v2113_v26 = vadd.f32 %v3911_v21, %v1676_v24  ;;  %v1682_v43 = vpop.f32.mrf.mxu3  ;;  %v3045_v24 = vld [vmem:[%s4248_s0 + $0x3cc] sm:$0xf0] }
 0x1dc   :  { %v2754_v34 = vor.u32 %v3045_v24, %v2753_v22 }
 0x1dd   :  { %v2177_v32 = vmax.f32 %v2113_v26, 0.0  ;;  %v2755_v26 = vld [vmem:[%s4248_s0 + $0x3d0] sm:$0xf0] }
 0x1de   :  { %v1508_v36 = vpop.f32.mrf.mxu2  ;;  %v1173_v40 = vpop.f32.mrf.mxu0  ;;  %v2758_v35 = vor.u32 %v3043_v25, %v2755_v26 }
 0x1df   :  { %2241 = vst [vmem:[%s4250_s3 + $0x130] sm:$0xff] %v2177_v32  ;;  %v1509_v39 = vadd.f32 %v1508_v36, %v1340_v33  ;;  %v1342_v41 = vpop.f32.mrf.mxu1  ;;  %v2779_v32 = vld [vmem:[%s4248_s0 + $0x3f8] sm:$0xf0] }
 0x1e0   :  { %v1343_v47 = vadd.f32 %v1342_v41, %v1173_v40  ;;  %2920 = vmatmul.msk.bf16.gmra.mxu3 %vm967_vm0, %v2750_v44  ;;  %v2782_v41 = vor.u32 %v3048_v31, %v2779_v32 }
 0x1e1   :  { %v1678_v45 = vadd.f32 %v1677_v11, %v1509_v39  ;;  %1212 = vmatmul.bf16.gmra.mxu0 %v2722_v37  ;;  %v2762_v39 = vor.u32 %v3046_v28, %v2761_v27 }
 0x1e2   :  { %1381 = vmatmul.bf16.gmra.mxu1 %v2726_v38 }
 0x1e3   :  { %v2114_v46 = vadd.f32 %v3911_v21, %v1678_v45  ;;  %1550 = vmatmul.bf16.gmra.mxu2 %v2730_v42  ;;  %v1685_v53 = vpop.f32.mrf.mxu3 }
 0x1e5   :  { %v2178_v48 = vmax.f32 %v2114_v46, 0.0 }
 0x1e6   :  { %v1511_v49 = vpop.f32.mrf.mxu2  ;;  %v1175_v51 = vpop.f32.mrf.mxu0 }
 0x1e7   :  { %2242 = vst [vmem:[%s4250_s3 + $0x138] sm:$0xff] %v2178_v48  ;;  %v1512_v50 = vadd.f32 %v1511_v49, %v1343_v47  ;;  %v1344_v52 = vpop.f32.mrf.mxu1 }
 0x1e8   :  { %v1345_v63 = vadd.f32 %v1344_v52, %v1175_v51  ;;  %v2769_v52 = vld [vmem:[%s4248_s0 + $0x3e0] sm:$0xf] }
 0x1e9   :  { %v1681_v54 = vadd.f32 %v1680_v23, %v1512_v50 }
 0x1eb   :  { %v2115_v56 = vadd.f32 %v3911_v21, %v1681_v54  ;;  %v1687_v8 = vpop.f32.mrf.mxu3  ;;  %v3049_v54 = vld [vmem:[%s4248_s0 + $0x3ec] sm:$0xf0] }
 0x1ed   :  { %v2179_v62 = vmax.f32 %v2115_v56, 0.0  ;;  %v2771_v56 = vld [vmem:[%s4248_s0 + $0x3f0] sm:$0xf0] }
 0x1ee   :  { %v1513_v2 = vpop.f32.mrf.mxu2  ;;  %v1178_v17 = vpop.f32.mrf.mxu0 }
 0x1ef   :  { %2243 = vst [vmem:[%s4250_s3 + $0x140] sm:$0xff] %v2179_v62  ;;  %v1514_v5 = vadd.f32 %v1513_v2, %v1345_v63  ;;  %v1347_v6 = vpop.f32.mrf.mxu1  ;;  %v2770_v62 = vor.u32 %v3049_v54, %v2769_v52  ;;  %v2774_v63 = vor.u32 %v3047_v55, %v2771_v56 }
 0x1f0   :  { %v1348_v12 = vadd.f32 %v1347_v6, %v1178_v17  ;;  %2921 = vmatmul.msk.bf16.gmra.mxu3 %vm967_vm0, %v2766_v9 }
 0x1f1   :  { %v1683_v10 = vadd.f32 %v1682_v43, %v1514_v5  ;;  %1217 = vmatmul.bf16.gmra.mxu0 %v2738_v3  ;;  %v2778_v3 = vor.u32 %v3050_v58, %v2777_v57 }
 0x1f2   :  { %1386 = vmatmul.bf16.gmra.mxu1 %v2742_v4 }
 0x1f3   :  { %v2116_v11 = vadd.f32 %v3911_v21, %v1683_v10  ;;  %1555 = vmatmul.bf16.gmra.mxu2 %v2746_v7  ;;  %v1690_v19 = vpop.f32.mrf.mxu3 }
 0x1f5   :  { %v2180_v13 = vmax.f32 %v2116_v11, 0.0 }
 0x1f6   :  { %v1516_v14 = vpop.f32.mrf.mxu2  ;;  %v1180_v16 = vpop.f32.mrf.mxu0 }
 0x1f7   :  { %2244 = vst [vmem:[%s4250_s3 + $0x148] sm:$0xff] %v2180_v13  ;;  %v1517_v15 = vadd.f32 %v1516_v14, %v1348_v12  ;;  %v1349_v18 = vpop.f32.mrf.mxu1 }
 0x1f8   :  { %v1350_v30 = vadd.f32 %v1349_v18, %v1180_v16 }
 0x1f9   :  { %v1686_v20 = vadd.f32 %v1685_v53, %v1517_v15 }
 0x1fb   :  { %v2117_v23 = vadd.f32 %v3911_v21, %v1686_v20  ;;  %v1692_v40 = vpop.f32.mrf.mxu3 }
 0x1fd   :  { %v2181_v29 = vmax.f32 %v2117_v23, 0.0 }
 0x1fe   :  { %v1518_v33 = vpop.f32.mrf.mxu2  ;;  %v1183_v37 = vpop.f32.mrf.mxu0 }
 0x1ff   :  { %2245 = vst [vmem:[%s4250_s3 + $0x150] sm:$0xff] %v2181_v29  ;;  %v1519_v36 = vadd.f32 %v1518_v33, %v1350_v30  ;;  %v1352_v38 = vpop.f32.mrf.mxu1 }
 0x200   :  { %v1353_v44 = vadd.f32 %v1352_v38, %v1183_v37  ;;  %2922 = vmatmul.msk.bf16.gmra.mxu3 %vm967_vm0, %v2782_v41 }
 0x201   :  { %v1688_v42 = vadd.f32 %v1687_v8, %v1519_v36  ;;  %1222 = vmatmul.bf16.gmra.mxu0 %v2754_v34 }
 0x202   :  { %1391 = vmatmul.bf16.gmra.mxu1 %v2758_v35 }
 0x203   :  { %v2118_v43 = vadd.f32 %v3911_v21, %v1688_v42  ;;  %1560 = vmatmul.bf16.gmra.mxu2 %v2762_v39  ;;  %v1695_v50 = vpop.f32.mrf.mxu3 }
 0x205   :  { %v2182_v45 = vmax.f32 %v2118_v43, 0.0 }
 0x206   :  { %v1521_v46 = vpop.f32.mrf.mxu2  ;;  %v1185_v48 = vpop.f32.mrf.mxu0 }
 0x207   :  { %2246 = vst [vmem:[%s4250_s3 + $0x158] sm:$0xff] %v2182_v45  ;;  %v1522_v47 = vadd.f32 %v1521_v46, %v1353_v44  ;;  %v1354_v49 = vpop.f32.mrf.mxu1 }
 0x208   :  { %v1355_v60 = vadd.f32 %v1354_v49, %v1185_v48 }
 0x209   :  { %v1691_v51 = vadd.f32 %v1690_v19, %v1522_v47 }
 0x20b   :  { %v2119_v53 = vadd.f32 %v3911_v21, %v1691_v51  ;;  %v1697_v4 = vpop.f32.mrf.mxu3 }
 0x20d   :  { %v2183_v59 = vmax.f32 %v2119_v53, 0.0 }
 0x20e   :  { %v1523_v61 = vpop.f32.mrf.mxu2  ;;  %v1188_v1 = vpop.f32.mrf.mxu0 }
 0x20f   :  { %2247 = vst [vmem:[%s4250_s3 + $0x160] sm:$0xff] %v2183_v59  ;;  %v1524_v0 = vadd.f32 %v1523_v61, %v1355_v60  ;;  %v1357_v2 = vpop.f32.mrf.mxu1 }
 0x210   :  { %v1358_v6 = vadd.f32 %v1357_v2, %v1188_v1 }
 0x211   :  { %v1693_v5 = vadd.f32 %v1692_v40, %v1524_v0  ;;  %1227 = vmatmul.bf16.gmra.mxu0 %v2770_v62 }
 0x212   :  { %1396 = vmatmul.bf16.gmra.mxu1 %v2774_v63 }
 0x213   :  { %v2120_v17 = vadd.f32 %v3911_v21, %v1693_v5  ;;  %1565 = vmatmul.bf16.gmra.mxu2 %v2778_v3  ;;  %v1700_v12 = vpop.f32.mrf.mxu3 }
 0x215   :  { %v2184_v7 = vmax.f32 %v2120_v17, 0.0 }
 0x216   :  { %v1526_v8 = vpop.f32.mrf.mxu2  ;;  %v1190_v10 = vpop.f32.mrf.mxu0 }
 0x217   :  { %2248 = vst [vmem:[%s4250_s3 + $0x168] sm:$0xff] %v2184_v7  ;;  %v1527_v9 = vadd.f32 %v1526_v8, %v1358_v6  ;;  %v1359_v11 = vpop.f32.mrf.mxu1 }
 0x218   :  { %v1360_v16 = vadd.f32 %v1359_v11, %v1190_v10 }
 0x219   :  { %v1696_v13 = vadd.f32 %v1695_v50, %v1527_v9 }
 0x21b   :  { %v2121_v14 = vadd.f32 %v3911_v21, %v1696_v13  ;;  %v1702_v23 = vpop.f32.mrf.mxu3 }
 0x21d   :  { %v2185_v15 = vmax.f32 %v2121_v14, 0.0 }
 0x21e   :  { %v1528_v18 = vpop.f32.mrf.mxu2  ;;  %v1193_v20 = vpop.f32.mrf.mxu0 }
 0x21f   :  { %2249 = vst [vmem:[%s4250_s3 + $0x170] sm:$0xff] %v2185_v15  ;;  %v1529_v19 = vadd.f32 %v1528_v18, %v1360_v16  ;;  %v1362_v22 = vpop.f32.mrf.mxu1 }
 0x220   :  { %v1363_v26 = vadd.f32 %v1362_v22, %v1193_v20 }
 0x221   :  { %v1698_v24 = vadd.f32 %v1697_v4, %v1529_v19 }
 0x223   :  { %v2122_v25 = vadd.f32 %v3911_v21, %v1698_v24  ;;  %v1705_v32 = vpop.f32.mrf.mxu3 }
 0x225   :  { %v2186_v27 = vmax.f32 %v2122_v25, 0.0 }
 0x226   :  { %v1531_v28 = vpop.f32.mrf.mxu2  ;;  %v1195_v30 = vpop.f32.mrf.mxu0 }
 0x227   :  { %2250 = vst [vmem:[%s4250_s3 + $0x178] sm:$0xff] %v2186_v27  ;;  %v1532_v29 = vadd.f32 %v1531_v28, %v1363_v26  ;;  %v1364_v31 = vpop.f32.mrf.mxu1 }
 0x228   :  { %v1365_v36 = vadd.f32 %v1364_v31, %v1195_v30 }
 0x229   :  { %v1701_v33 = vadd.f32 %v1700_v12, %v1532_v29 }
 0x22b   :  { %v2123_v34 = vadd.f32 %v3911_v21, %v1701_v33  ;;  %v1707_v41 = vpop.f32.mrf.mxu3 }
 0x22d   :  { %v2187_v35 = vmax.f32 %v2123_v34, 0.0 }
 0x22e   :  { %v1533_v37 = vpop.f32.mrf.mxu2  ;;  %v1198_v39 = vpop.f32.mrf.mxu0 }
 0x22f   :  { %2251 = vst [vmem:[%s4250_s3 + $0x180] sm:$0xff] %v2187_v35  ;;  %v1534_v38 = vadd.f32 %v1533_v37, %v1365_v36  ;;  %v1367_v40 = vpop.f32.mrf.mxu1 }
 0x230   :  { %v1368_v44 = vadd.f32 %v1367_v40, %v1198_v39 }
 0x231   :  { %v1703_v42 = vadd.f32 %v1702_v23, %v1534_v38 }
 0x233   :  { %v2124_v43 = vadd.f32 %v3911_v21, %v1703_v42  ;;  %v1710_v50 = vpop.f32.mrf.mxu3 }
 0x235   :  { %v2188_v45 = vmax.f32 %v2124_v43, 0.0 }
 0x236   :  { %v1536_v46 = vpop.f32.mrf.mxu2  ;;  %v1200_v48 = vpop.f32.mrf.mxu0 }
 0x237   :  { %2252 = vst [vmem:[%s4250_s3 + $0x188] sm:$0xff] %v2188_v45  ;;  %v1537_v47 = vadd.f32 %v1536_v46, %v1368_v44  ;;  %v1369_v49 = vpop.f32.mrf.mxu1 }
 0x238   :  { %v1370_v54 = vadd.f32 %v1369_v49, %v1200_v48 }
 0x239   :  { %v1706_v51 = vadd.f32 %v1705_v32, %v1537_v47 }
 0x23b   :  { %v2125_v52 = vadd.f32 %v3911_v21, %v1706_v51  ;;  %v1712_v59 = vpop.f32.mrf.mxu3 }
 0x23d   :  { %v2189_v53 = vmax.f32 %v2125_v52, 0.0 }
 0x23e   :  { %v1538_v55 = vpop.f32.mrf.mxu2  ;;  %v1203_v57 = vpop.f32.mrf.mxu0 }
 0x23f   :  { %2253 = vst [vmem:[%s4250_s3 + $0x190] sm:$0xff] %v2189_v53  ;;  %v1539_v56 = vadd.f32 %v1538_v55, %v1370_v54  ;;  %v1372_v58 = vpop.f32.mrf.mxu1 }
 0x240   :  { %v1373_v62 = vadd.f32 %v1372_v58, %v1203_v57 }
 0x241   :  { %v1708_v60 = vadd.f32 %v1707_v41, %v1539_v56 }
 0x243   :  { %v2126_v61 = vadd.f32 %v3911_v21, %v1708_v60  ;;  %v1715_v4 = vpop.f32.mrf.mxu3 }
 0x245   :  { %v2190_v63 = vmax.f32 %v2126_v61, 0.0 }
 0x246   :  { %v1541_v0 = vpop.f32.mrf.mxu2  ;;  %v1205_v2 = vpop.f32.mrf.mxu0 }
 0x247   :  { %2254 = vst [vmem:[%s4250_s3 + $0x198] sm:$0xff] %v2190_v63  ;;  %v1542_v1 = vadd.f32 %v1541_v0, %v1373_v62  ;;  %v1374_v3 = vpop.f32.mrf.mxu1 }
 0x248   :  { %v1375_v7 = vadd.f32 %v1374_v3, %v1205_v2 }
 0x249   :  { %v1711_v5 = vadd.f32 %v1710_v50, %v1542_v1 }
 0x24b   :  { %v2127_v17 = vadd.f32 %v3911_v21, %v1711_v5  ;;  %v1717_v12 = vpop.f32.mrf.mxu3 }
 0x24d   :  { %v2191_v6 = vmax.f32 %v2127_v17, 0.0 }
 0x24e   :  { %v1543_v8 = vpop.f32.mrf.mxu2  ;;  %v1208_v10 = vpop.f32.mrf.mxu0 }
 0x24f   :  { %2255 = vst [vmem:[%s4250_s3 + $0x1a0] sm:$0xff] %v2191_v6  ;;  %v1544_v9 = vadd.f32 %v1543_v8, %v1375_v7  ;;  %v1377_v11 = vpop.f32.mrf.mxu1 }
 0x250   :  { %v1378_v15 = vadd.f32 %v1377_v11, %v1208_v10 }
 0x251   :  { %v1713_v13 = vadd.f32 %v1712_v59, %v1544_v9 }
 0x253   :  { %v2128_v14 = vadd.f32 %v3911_v21, %v1713_v13  ;;  %v1720_v24 = vpop.f32.mrf.mxu3 }
 0x255   :  { %v2192_v16 = vmax.f32 %v2128_v14, 0.0 }
 0x256   :  { %v1546_v18 = vpop.f32.mrf.mxu2  ;;  %v1210_v20 = vpop.f32.mrf.mxu0 }
 0x257   :  { %2256 = vst [vmem:[%s4250_s3 + $0x1a8] sm:$0xff] %v2192_v16  ;;  %v1547_v19 = vadd.f32 %v1546_v18, %v1378_v15  ;;  %v1379_v22 = vpop.f32.mrf.mxu1 }
 0x258   :  { %v1380_v27 = vadd.f32 %v1379_v22, %v1210_v20 }
 0x259   :  { %v1716_v23 = vadd.f32 %v1715_v4, %v1547_v19 }
 0x25b   :  { %v2129_v25 = vadd.f32 %v3911_v21, %v1716_v23  ;;  %v1722_v35 = vpop.f32.mrf.mxu3 }
 0x25d   :  { %v2193_v26 = vmax.f32 %v2129_v25, 0.0 }
 0x25e   :  { %v1548_v28 = vpop.f32.mrf.mxu2  ;;  %v1213_v30 = vpop.f32.mrf.mxu0 }
 0x25f   :  { %2257 = vst [vmem:[%s4250_s3 + $0x1b0] sm:$0xff] %v2193_v26  ;;  %v1549_v29 = vadd.f32 %v1548_v28, %v1380_v27  ;;  %v1382_v31 = vpop.f32.mrf.mxu1 }
 0x260   :  { %v1383_v34 = vadd.f32 %v1382_v31, %v1213_v30 }
 0x261   :  { %v1718_v32 = vadd.f32 %v1717_v12, %v1549_v29 }
 0x263   :  { %v2130_v33 = vadd.f32 %v3911_v21, %v1718_v32  ;;  %v1725_v46 = vpop.f32.mrf.mxu3 }
 0x265   :  { %v2194_v36 = vmax.f32 %v2130_v33, 0.0 }
 0x266   :  { %v1551_v37 = vpop.f32.mrf.mxu2  ;;  %v1215_v39 = vpop.f32.mrf.mxu0 }
 0x267   :  { %2258 = vst [vmem:[%s4250_s3 + $0x1b8] sm:$0xff] %v2194_v36  ;;  %v1552_v38 = vadd.f32 %v1551_v37, %v1383_v34  ;;  %v1384_v40 = vpop.f32.mrf.mxu1 }
 0x268   :  { %v1385_v44 = vadd.f32 %v1384_v40, %v1215_v39 }
 0x269   :  { %v1721_v41 = vadd.f32 %v1720_v24, %v1552_v38 }
 0x26b   :  { %v2131_v42 = vadd.f32 %v3911_v21, %v1721_v41  ;;  %v1727_v58 = vpop.f32.mrf.mxu3 }
 0x26d   :  { %v2195_v43 = vmax.f32 %v2131_v42, 0.0 }
 0x26e   :  { %v1553_v45 = vpop.f32.mrf.mxu2  ;;  %v1218_v48 = vpop.f32.mrf.mxu0 }
 0x26f   :  { %2259 = vst [vmem:[%s4250_s3 + $0x1c0] sm:$0xff] %v2195_v43  ;;  %v1554_v47 = vadd.f32 %v1553_v45, %v1385_v44  ;;  %v1387_v49 = vpop.f32.mrf.mxu1 }
 0x270   :  { %v1388_v52 = vadd.f32 %v1387_v49, %v1218_v48 }
 0x271   :  { %v1723_v50 = vadd.f32 %v1722_v35, %v1554_v47 }
 0x273   :  { %v2132_v51 = vadd.f32 %v3911_v21, %v1723_v50  ;;  %v1730_v4 = vpop.f32.mrf.mxu3 }
 0x275   :  { %v2196_v53 = vmax.f32 %v2132_v51, 0.0 }
 0x276   :  { %v1556_v54 = vpop.f32.mrf.mxu2  ;;  %v1220_v56 = vpop.f32.mrf.mxu0 }
 0x277   :  { %2260 = vst [vmem:[%s4250_s3 + $0x1c8] sm:$0xff] %v2196_v53  ;;  %v1557_v55 = vadd.f32 %v1556_v54, %v1388_v52  ;;  %v1389_v57 = vpop.f32.mrf.mxu1 }
 0x278   :  { %v1390_v62 = vadd.f32 %v1389_v57, %v1220_v56 }
 0x279   :  { %v1726_v59 = vadd.f32 %v1725_v46, %v1557_v55 }
 0x27b   :  { %v2133_v60 = vadd.f32 %v3911_v21, %v1726_v59  ;;  %v1732_v13 = vpop.f32.mrf.mxu3 }
 0x27d   :  { %v2197_v61 = vmax.f32 %v2133_v60, 0.0 }
 0x27e   :  { %v1558_v63 = vpop.f32.mrf.mxu2  ;;  %v1223_v1 = vpop.f32.mrf.mxu0 }
 0x27f   :  { %2261 = vst [vmem:[%s4250_s3 + $0x1d0] sm:$0xff] %v2197_v61  ;;  %v1559_v0 = vadd.f32 %v1558_v63, %v1390_v62  ;;  %v1392_v2 = vpop.f32.mrf.mxu1 }
 0x280   :  { %v1393_v17 = vadd.f32 %v1392_v2, %v1223_v1 }
 0x281   :  { %v1728_v3 = vadd.f32 %v1727_v58, %v1559_v0 }
 0x283   :  { %v2134_v5 = vadd.f32 %v3911_v21, %v1728_v3  ;;  %v1735_v26 = vpop.f32.mrf.mxu3 }
 0x285   :  { %v2198_v6 = vmax.f32 %v2134_v5, 0.0 }
 0x286   :  { %v1561_v7 = vpop.f32.mrf.mxu2  ;;  %v1225_v9 = vpop.f32.mrf.mxu0 }
 0x287   :  { %2262 = vst [vmem:[%s4250_s3 + $0x1d8] sm:$0xff] %v2198_v6  ;;  %v1562_v8 = vadd.f32 %v1561_v7, %v1393_v17  ;;  %v1394_v10 = vpop.f32.mrf.mxu1 }
 0x288   :  { %v1395_v15 = vadd.f32 %v1394_v10, %v1225_v9 }
 0x289   :  { %v1731_v11 = vadd.f32 %v1730_v4, %v1562_v8 }
 0x28b   :  { %v2135_v12 = vadd.f32 %v3911_v21, %v1731_v11  ;;  %v1737_v37 = vpop.f32.mrf.mxu3 }
 0x28d   :  { %v2199_v14 = vmax.f32 %v2135_v12, 0.0 }
 0x28e   :  { %v1563_v16 = vpop.f32.mrf.mxu2  ;;  %v1228_v19 = vpop.f32.mrf.mxu0 }
 0x28f   :  { %2263 = vst [vmem:[%s4250_s3 + $0x1e0] sm:$0xff] %v2199_v14  ;;  %v1564_v18 = vadd.f32 %v1563_v16, %v1395_v15  ;;  %v1397_v20 = vpop.f32.mrf.mxu1 }
 0x290   :  { %v1398_v24 = vadd.f32 %v1397_v20, %v1228_v19 }
 0x291   :  { %v1733_v22 = vadd.f32 %v1732_v13, %v1564_v18 }
 0x293   :  { %v2136_v23 = vadd.f32 %v3911_v21, %v1733_v22 }
 0x295   :  { %v2200_v25 = vmax.f32 %v2136_v23, 0.0 }
 0x296   :  { %v1566_v27 = vpop.f32.mrf.mxu2  ;;  %v1230_v30 = vpop.f32.mrf.mxu0 }
 0x297   :  { %2264 = vst [vmem:[%s4250_s3 + $0x1e8] sm:$0xff] %v2200_v25  ;;  %v1567_v28 = vadd.f32 %v1566_v27, %v1398_v24  ;;  %v1399_v31 = vpop.f32.mrf.mxu1 }
 0x298   :  { %v1400_v34 = vadd.f32 %v1399_v31, %v1230_v30 }
 0x299   :  { %v1736_v29 = vadd.f32 %v1735_v26, %v1567_v28 }
 0x29b   :  { %v2137_v32 = vadd.f32 %v3911_v21, %v1736_v29 }
 0x29d   :  { %v2201_v33 = vmax.f32 %v2137_v32, 0.0 }
 0x29e   :  { %v1568_v35 = vpop.f32.mrf.mxu2 }
 0x29f   :  { %2265 = vst [vmem:[%s4250_s3 + $0x1f0] sm:$0xff] %v2201_v33  ;;  %v1569_v36 = vadd.f32 %v1568_v35, %v1400_v34 }
 0x2a1   :  { %v1738_v38 = vadd.f32 %v1737_v37, %v1569_v36 }
 0x2a3   :  { %v2138_v39 = vadd.f32 %v3911_v21, %v1738_v38 }
 0x2a5   :  { %v2202_v40 = vmax.f32 %v2138_v39, 0.0 }
 0x2a7   :  { %2266 = vst [vmem:[%s4250_s3 + $0x1f8] sm:$0xff] %v2202_v40 }

// kernel: s_cnn_forward.15
= control target key start
LH: loop header
LB: loop body
LE: loop exit
PB: predicated region body
PF: predicated region fallthrough
CT: control target
= control target key end

     0   :  { %vm551_vm0 = vcmask 523264   ;;  %s1862_s1 = inlined_call_operand.vmem [shape: bf16[576,128], index: 1, kind: input, shape index: {}]   ;;  %s1863_s0 = inlined_call_operand.vmem [shape: bf16[128,576], index: 0, kind: input, shape index: {}]   ;;  %s1864_s2 = inlined_call_operand.vmem [shape: f32[1,128], index: 2, kind: input, shape index: {}]   ;;  %s1865_s3 = inlined_call_operand.vmem [shape: f32[128,128], index: 3, kind: output, shape index: {}]  }
   0x1   :  { %v1327_v0 = vld [vmem:[%s1862_s1 + $0x38] sm:$0xff]  ;;  %v1326_v1 = vld [vmem:[%s1862_s1 + $0x30] sm:$0xff]  ;;  %v1325_v2 = vld [vmem:[%s1862_s1 + $0x28] sm:$0xff] }
   0x2   :  { %1356 = vmatpush.bf16.msra.mxu1 %v1327_v0  ;;  %1357 = vmatpush.bf16.msra.mxu2 %v1327_v0  ;;  %v1324_v3 = vld [vmem:[%s1862_s1 + $0x20] sm:$0xff]  ;;  %v1323_v4 = vld [vmem:[%s1862_s1 + $0x18] sm:$0xff]  ;;  %v1322_v5 = vld [vmem:[%s1862_s1 + $0x10] sm:$0xff] }
   0x3   :  { %1358 = vmatpush.bf16.msra.mxu3 %v1327_v0  ;;  %576 = vmatpush.bf16.msra.mxu0 %v1327_v0  ;;  %v1321_v6 = vld [vmem:[%s1862_s1 + $0x8] sm:$0xff]  ;;  %v1320_v7 = vld [vmem:[%s1862_s1] sm:$0xff]  ;;  %v1010_v8 = vld [vmem:[%s1863_s0 + $0x50] sm:$0xf] }
   0x4   :  { %v1292_v9 = vld [vmem:[%s1863_s0 + $0x60] sm:$0xf0]  ;;  %v1050_v10 = vld [vmem:[%s1863_s0 + $0xa0] sm:$0xf]  ;;  %v1302_v11 = vld [vmem:[%s1863_s0 + $0xb0] sm:$0xf0] }
   0x5   :  { %v1090_v12 = vld [vmem:[%s1863_s0 + $0xf0] sm:$0xf]  ;;  %v1312_v13 = vld [vmem:[%s1863_s0 + $0x100] sm:$0xf0]  ;;  %v970_v14 = vld [vmem:[%s1863_s0] sm:$0xf]  ;;  %v1011_v18 = vor.u32 %v1292_v9, %v1010_v8  ;;  %v1051_v19 = vor.u32 %v1302_v11, %v1050_v10 }
   0x6   :  { %1359 = vmatpush.bf16.msra.mxu1 %v1326_v1  ;;  %1360 = vmatpush.bf16.msra.mxu2 %v1326_v1  ;;  %v1282_v15 = vld [vmem:[%s1863_s0 + $0x10] sm:$0xf0]  ;;  %v1343_v16 = vld [vmem:[%s1862_s1 + $0xb8] sm:$0xff]  ;;  %v1091_v20 = vor.u32 %v1312_v13, %v1090_v12  ;;  %v1341_v28 = vld [vmem:[%s1862_s1 + $0xa8] sm:$0xff] }
   0x7   :  { %1361 = vmatpush.bf16.msra.mxu3 %v1326_v1  ;;  %577 = vmatpush.bf16.msra.mxu0 %v1326_v1  ;;  %v1335_v17 = vld [vmem:[%s1862_s1 + $0x78] sm:$0xff]  ;;  %v971_v21 = vor.u32 %v1282_v15, %v970_v14  ;;  %v1342_v24 = vld [vmem:[%s1862_s1 + $0xb0] sm:$0xff]  ;;  %v1333_v29 = vld [vmem:[%s1862_s1 + $0x68] sm:$0xff] }
   0x8   :  { %v1351_v22 = vld [vmem:[%s1862_s1 + $0xf8] sm:$0xff]  ;;  %v1334_v25 = vld [vmem:[%s1862_s1 + $0x70] sm:$0xff]  ;;  %v1349_v30 = vld [vmem:[%s1862_s1 + $0xe8] sm:$0xff] }
   0x9   :  { %v1355_v23 = vld [vmem:[%s1862_s1 + $0x118] sm:$0xff]  ;;  %v1350_v26 = vld [vmem:[%s1862_s1 + $0xf0] sm:$0xff]  ;;  %v1353_v31 = vld [vmem:[%s1862_s1 + $0x108] sm:$0xff] }
   0xa   :  { %1362 = vmatpush.bf16.msra.mxu1 %v1325_v2  ;;  %1363 = vmatpush.bf16.msra.mxu2 %v1325_v2  ;;  %v1354_v27 = vld [vmem:[%s1862_s1 + $0x110] sm:$0xff]  ;;  %v1340_v32 = vld [vmem:[%s1862_s1 + $0xa0] sm:$0xff]  ;;  %v1030_v35 = vld [vmem:[%s1863_s0 + $0x78] sm:$0xf] }
   0xb   :  { %1364 = vmatpush.bf16.msra.mxu3 %v1325_v2  ;;  %578 = vmatpush.bf16.msra.mxu0 %v1325_v2  ;;  %v1332_v33 = vld [vmem:[%s1862_s1 + $0x60] sm:$0xff]  ;;  %v1297_v36 = vld [vmem:[%s1863_s0 + $0x88] sm:$0xf0]  ;;  %v1070_v37 = vld [vmem:[%s1863_s0 + $0xc8] sm:$0xf] }
   0xc   :  { %v1348_v34 = vld [vmem:[%s1862_s1 + $0xe0] sm:$0xff]  ;;  %v1307_v38 = vld [vmem:[%s1863_s0 + $0xd8] sm:$0xf0]  ;;  %v1110_v39 = vld [vmem:[%s1863_s0 + $0x118] sm:$0xf]  ;;  %v1031_v46 = vor.u32 %v1297_v36, %v1030_v35 }
   0xd   :  { %v1317_v40 = vld [vmem:[%s1863_s0 + $0x128] sm:$0xf0]  ;;  %v990_v41 = vld [vmem:[%s1863_s0 + $0x28] sm:$0xf]  ;;  %v1287_v42 = vld [vmem:[%s1863_s0 + $0x38] sm:$0xf0]  ;;  %v1071_v47 = vor.u32 %v1307_v38, %v1070_v37 }
   0xe   :  { %1365 = vmatpush.bf16.msra.mxu1 %v1324_v3  ;;  %1366 = vmatpush.bf16.msra.mxu2 %v1324_v3  ;;  %v1352_v43 = vld [vmem:[%s1862_s1 + $0x100] sm:$0xff]  ;;  %v1339_v44 = vld [vmem:[%s1862_s1 + $0x98] sm:$0xff]  ;;  %v1111_v48 = vor.u32 %v1317_v40, %v1110_v39  ;;  %v991_v49 = vor.u32 %v1287_v42, %v990_v41  ;;  %v1338_v51 = vld [vmem:[%s1862_s1 + $0x90] sm:$0xff] }
   0xf   :  { %1367 = vmatpush.bf16.msra.mxu3 %v1324_v3  ;;  %579 = vmatpush.bf16.msra.mxu0 %v1324_v3  ;;  %v1331_v45 = vld [vmem:[%s1862_s1 + $0x58] sm:$0xff]  ;;  %v1330_v52 = vld [vmem:[%s1862_s1 + $0x50] sm:$0xff]  ;;  %v1337_v54 = vld [vmem:[%s1862_s1 + $0x88] sm:$0xff] }
  0x10   :  { %v1347_v50 = vld [vmem:[%s1862_s1 + $0xd8] sm:$0xff]  ;;  %v1346_v53 = vld [vmem:[%s1862_s1 + $0xd0] sm:$0xff]  ;;  %v1329_v55 = vld [vmem:[%s1862_s1 + $0x48] sm:$0xff] }
  0x11   :  { %v1345_v56 = vld [vmem:[%s1862_s1 + $0xc8] sm:$0xff]  ;;  %v1336_v57 = vld [vmem:[%s1862_s1 + $0x80] sm:$0xff]  ;;  %v972_v61 = vld [vmem:[%s1863_s0 + $0x14] sm:$0xf0] }
  0x12   :  { %1368 = vmatpush.bf16.msra.mxu1 %v1323_v4  ;;  %1369 = vmatpush.bf16.msra.mxu2 %v1323_v4  ;;  %v1328_v58 = vld [vmem:[%s1862_s1 + $0x40] sm:$0xff]  ;;  %v978_v62 = vld [vmem:[%s1863_s0 + $0x8] sm:$0xf]  ;;  %v1283_v63 = vld [vmem:[%s1863_s0 + $0x18] sm:$0xf0] }
  0x13   :  { %1370 = vmatpush.bf16.msra.mxu3 %v1323_v4  ;;  %580 = vmatpush.bf16.msra.mxu0 %v1323_v4  ;;  %v1344_v59 = vld [vmem:[%s1862_s1 + $0xc0] sm:$0xff]  ;;  %v1281_v0 = vld [vmem:[%s1863_s0 + $0xc] sm:$0xf]  ;;  %v986_v2 = vld [vmem:[%s1863_s0 + $0x10] sm:$0xf] }
  0x14   :  { %v1280_v60 = vld [vmem:[%s1863_s0 + $0x4] sm:$0xf]  ;;  %v980_v1 = vld [vmem:[%s1863_s0 + $0x1c] sm:$0xf0]  ;;  %v1285_v8 = vld [vmem:[%s1863_s0 + $0x2c] sm:$0xf] }
  0x15   :  { %v1284_v3 = vld [vmem:[%s1863_s0 + $0x20] sm:$0xf0]  ;;  %v975_v4 = vor.u32 %v1280_v60, %v972_v61  ;;  %v992_v9 = vld [vmem:[%s1863_s0 + $0x3c] sm:$0xf0]  ;;  %v998_v10 = vld [vmem:[%s1863_s0 + $0x30] sm:$0xf] }
  0x16   :  { %1371 = vmatpush.bf16.msra.mxu1 %v1322_v5  ;;  %1372 = vmatpush.bf16.msra.mxu2 %v1322_v5  ;;  %v1288_v11 = vld [vmem:[%s1863_s0 + $0x40] sm:$0xf0]  ;;  %v1286_v12 = vld [vmem:[%s1863_s0 + $0x34] sm:$0xf]  ;;  %v1000_v13 = vld [vmem:[%s1863_s0 + $0x44] sm:$0xf0] }
  0x17   :  { %1373 = vmatpush.bf16.msra.mxu3 %v1322_v5  ;;  %581 = vmatpush.bf16.msra.mxu0 %v1322_v5  ;;  %v979_v5 = vor.u32 %v1283_v63, %v978_v62  ;;  %v1006_v14 = vld [vmem:[%s1863_s0 + $0x38] sm:$0xf]  ;;  %v1289_v15 = vld [vmem:[%s1863_s0 + $0x48] sm:$0xf0]  ;;  %v1298_v35 = vld [vmem:[%s1863_s0 + $0x90] sm:$0xf0] }
  0x18   :  { %v1296_v36 = vld [vmem:[%s1863_s0 + $0x84] sm:$0xf]  ;;  %v1040_v37 = vld [vmem:[%s1863_s0 + $0x94] sm:$0xf0]  ;;  %v1046_v38 = vld [vmem:[%s1863_s0 + $0x88] sm:$0xf] }
  0x19   :  { %v1299_v39 = vld [vmem:[%s1863_s0 + $0x98] sm:$0xf0]  ;;  %v1043_v42 = vor.u32 %v1296_v36, %v1040_v37  ;;  %v1306_v60 = vld [vmem:[%s1863_s0 + $0xd4] sm:$0xf]  ;;  %v1080_v61 = vld [vmem:[%s1863_s0 + $0xe4] sm:$0xf0] }
  0x1a   :  { %1374 = vmatpush.bf16.msra.mxu1 %v1321_v6  ;;  %1375 = vmatpush.bf16.msra.mxu2 %v1321_v6  ;;  %v1086_v62 = vld [vmem:[%s1863_s0 + $0xd8] sm:$0xf]  ;;  %v1309_v63 = vld [vmem:[%s1863_s0 + $0xe8] sm:$0xf0] }
  0x1b   :  { %1376 = vmatpush.bf16.msra.mxu3 %v1321_v6  ;;  %582 = vmatpush.bf16.msra.mxu0 %v1321_v6  ;;  %v983_v6 = vor.u32 %v1281_v0, %v980_v1 }
  0x1e   :  { %1377 = vmatpush.bf16.msra.mxu1 %v1320_v7  ;;  %1378 = vmatpush.bf16.msra.mxu2 %v1320_v7 }
  0x1f   :  { %1379 = vmatpush.bf16.msra.mxu3 %v1320_v7  ;;  %583 = vmatpush.bf16.msra.mxu0 %v1320_v7  ;;  %v987_v7 = vor.u32 %v1284_v3, %v986_v2  ;;  %v1083_v2 = vor.u32 %v1306_v60, %v1080_v61  ;;  %v1087_v3 = vor.u32 %v1309_v63, %v1086_v62 }
  0x21   :  { %594 = vmatmul.bf16.vlgmr.msra.gmra.mxu1 %v1011_v18  ;;  %604 = vmatmul.bf16.vlgmr.msra.gmra.mxu2 %v1051_v19  ;;  %v1003_v18 = vor.u32 %v1286_v12, %v1000_v13  ;;  %v1007_v19 = vor.u32 %v1289_v15, %v1006_v14 }
  0x22   :  { %674 = vmatpush.bf16.msrb.mxu2 %v1343_v16  ;;  %625 = vmatpush.bf16.msrb.mxu1 %v1335_v17  ;;  %v995_v16 = vor.u32 %v1285_v8, %v992_v9  ;;  %v999_v17 = vor.u32 %v1288_v11, %v998_v10  ;;  %v1311_v8 = vld [vmem:[%s1863_s0 + $0xfc] sm:$0xf]  ;;  %v1100_v9 = vld [vmem:[%s1863_s0 + $0x10c] sm:$0xf0]  ;;  %v1106_v10 = vld [vmem:[%s1863_s0 + $0x100] sm:$0xf] }
  0x23   :  { %614 = vmatmul.bf16.vlgmr.msra.gmra.mxu3 %v1091_v20  ;;  %584 = vmatmul.bf16.vlgmr.msra.gmra.mxu0 %v971_v21  ;;  %v1290_v20 = vld [vmem:[%s1863_s0 + $0x54] sm:$0xf]  ;;  %v1012_v21 = vld [vmem:[%s1863_s0 + $0x64] sm:$0xf0]  ;;  %v1103_v15 = vor.u32 %v1311_v8, %v1100_v9 }
  0x24   :  { %723 = vmatpush.bf16.msrb.mxu3 %v1351_v22  ;;  %776 = vmatpush.bf16.msrb.mxu0 %v1355_v23  ;;  %v1018_v22 = vld [vmem:[%s1863_s0 + $0x58] sm:$0xf]  ;;  %v1293_v23 = vld [vmem:[%s1863_s0 + $0x68] sm:$0xf0]  ;;  %v1314_v11 = vld [vmem:[%s1863_s0 + $0x110] sm:$0xf0] }
  0x26   :  { %675 = vmatpush.bf16.msrb.mxu2 %v1342_v24  ;;  %626 = vmatpush.bf16.msrb.mxu1 %v1334_v25  ;;  %v1291_v24 = vld [vmem:[%s1863_s0 + $0x5c] sm:$0xf]  ;;  %v1020_v25 = vld [vmem:[%s1863_s0 + $0x6c] sm:$0xf0] }
  0x28   :  { %724 = vmatpush.bf16.msrb.mxu3 %v1350_v26  ;;  %777 = vmatpush.bf16.msrb.mxu0 %v1354_v27  ;;  %v1026_v26 = vld [vmem:[%s1863_s0 + $0x60] sm:$0xf]  ;;  %v1294_v27 = vld [vmem:[%s1863_s0 + $0x70] sm:$0xf0] }
  0x2a   :  { %676 = vmatpush.bf16.msrb.mxu2 %v1341_v28  ;;  %627 = vmatpush.bf16.msrb.mxu1 %v1333_v29  ;;  %v1015_v28 = vor.u32 %v1290_v20, %v1012_v21  ;;  %v1019_v29 = vor.u32 %v1293_v23, %v1018_v22  ;;  %v1315_v22 = vld [vmem:[%s1863_s0 + $0x11c] sm:$0xf]  ;;  %v1112_v23 = vld [vmem:[%s1863_s0 + $0x12c] sm:$0xf0] }
  0x2c   :  { %725 = vmatpush.bf16.msrb.mxu3 %v1349_v30  ;;  %778 = vmatpush.bf16.msrb.mxu0 %v1353_v31  ;;  %v1023_v30 = vor.u32 %v1291_v24, %v1020_v25  ;;  %v1027_v31 = vor.u32 %v1294_v27, %v1026_v26  ;;  %v1118_v24 = vld [vmem:[%s1863_s0 + $0x120] sm:$0xf]  ;;  %v1318_v25 = vld [vmem:[%s1863_s0 + $0x130] sm:$0xf0]  ;;  %v1316_v26 = vld [vmem:[%s1863_s0 + $0x124] sm:$0xf] }
  0x2d   :  { %v1120_v27 = vld [vmem:[%s1863_s0 + $0x134] sm:$0xf0] }
  0x2e   :  { %677 = vmatpush.bf16.msrb.mxu2 %v1340_v32  ;;  %628 = vmatpush.bf16.msrb.mxu1 %v1332_v33  ;;  %v1295_v32 = vld [vmem:[%s1863_s0 + $0x7c] sm:$0xf]  ;;  %v1032_v33 = vld [vmem:[%s1863_s0 + $0x8c] sm:$0xf0] }
  0x2f   :  { %v1035_v40 = vor.u32 %v1295_v32, %v1032_v33  ;;  %v1115_v32 = vor.u32 %v1315_v22, %v1112_v23  ;;  %v1119_v33 = vor.u32 %v1318_v25, %v1118_v24 }
  0x30   :  { %726 = vmatpush.bf16.msrb.mxu3 %v1348_v34  ;;  %779 = vmatpush.bf16.msrb.mxu0 %v1352_v43  ;;  %v1038_v34 = vld [vmem:[%s1863_s0 + $0x80] sm:$0xf]  ;;  %v1047_v43 = vor.u32 %v1299_v39, %v1046_v38 }
  0x31   :  { %599 = vmatmul.bf16.gmra.mxu1 %v1031_v46  ;;  %609 = vmatmul.bf16.gmra.mxu2 %v1071_v47  ;;  %v1039_v41 = vor.u32 %v1298_v35, %v1038_v34  ;;  %v1058_v46 = vld [vmem:[%s1863_s0 + $0xa8] sm:$0xf]  ;;  %v1303_v47 = vld [vmem:[%s1863_s0 + $0xb8] sm:$0xf0]  ;;  %v1123_v35 = vor.u32 %v1316_v26, %v1120_v27 }
  0x32   :  { %678 = vmatpush.bf16.msrb.mxu2 %v1339_v44  ;;  %629 = vmatpush.bf16.msrb.mxu1 %v1331_v45  ;;  %v1300_v44 = vld [vmem:[%s1863_s0 + $0xa4] sm:$0xf]  ;;  %v1052_v45 = vld [vmem:[%s1863_s0 + $0xb4] sm:$0xf0] }
  0x33   :  { %619 = vmatmul.bf16.gmra.mxu3 %v1111_v48  ;;  %589 = vmatmul.bf16.gmra.mxu0 %v991_v49  ;;  %v1301_v48 = vld [vmem:[%s1863_s0 + $0xac] sm:$0xf]  ;;  %v1060_v49 = vld [vmem:[%s1863_s0 + $0xbc] sm:$0xf0] }
  0x34   :  { %727 = vmatpush.bf16.msrb.mxu3 %v1347_v50  ;;  %v1066_v50 = vld [vmem:[%s1863_s0 + $0xb0] sm:$0xf] }
  0x36   :  { %679 = vmatpush.bf16.msrb.mxu2 %v1338_v51  ;;  %630 = vmatpush.bf16.msrb.mxu1 %v1330_v52  ;;  %v1304_v51 = vld [vmem:[%s1863_s0 + $0xc0] sm:$0xf0]  ;;  %v1055_v52 = vor.u32 %v1300_v44, %v1052_v45 }
  0x38   :  { %728 = vmatpush.bf16.msrb.mxu3 %v1346_v53  ;;  %v1059_v53 = vor.u32 %v1303_v47, %v1058_v46 }
  0x3a   :  { %680 = vmatpush.bf16.msrb.mxu2 %v1337_v54  ;;  %631 = vmatpush.bf16.msrb.mxu1 %v1329_v55  ;;  %v1063_v54 = vor.u32 %v1301_v48, %v1060_v49  ;;  %v1067_v55 = vor.u32 %v1304_v51, %v1066_v50 }
  0x3c   :  { %729 = vmatpush.bf16.msrb.mxu3 %v1345_v56  ;;  %v1305_v56 = vld [vmem:[%s1863_s0 + $0xcc] sm:$0xf] }
  0x3e   :  { %681 = vmatpush.bf16.msrb.mxu2 %v1336_v57  ;;  %632 = vmatpush.bf16.msrb.mxu1 %v1328_v58  ;;  %v1072_v57 = vld [vmem:[%s1863_s0 + $0xdc] sm:$0xf0]  ;;  %v1078_v58 = vld [vmem:[%s1863_s0 + $0xd0] sm:$0xf] }
  0x3f   :  { %v1075_v0 = vor.u32 %v1305_v56, %v1072_v57 }
  0x40   :  { %730 = vmatpush.bf16.msrb.mxu3 %v1344_v59  ;;  %v1308_v59 = vld [vmem:[%s1863_s0 + $0xe0] sm:$0xf0] }
  0x41   :  { %633 = vmatmul.bf16.vlgmr.msrb.gmra.mxu1 %v975_v4  ;;  %682 = vmatmul.bf16.vlgmr.msrb.gmra.mxu2 %v979_v5  ;;  %v1079_v1 = vor.u32 %v1308_v59, %v1078_v58  ;;  %v1310_v4 = vld [vmem:[%s1863_s0 + $0xf4] sm:$0xf]  ;;  %v1092_v5 = vld [vmem:[%s1863_s0 + $0x104] sm:$0xf0] }
  0x42   :  { %v1095_v12 = vor.u32 %v1310_v4, %v1092_v5 }
  0x43   :  { %731 = vmatmul.bf16.vlgmr.msrb.gmra.mxu3 %v983_v6  ;;  %1272 = vmatmul.msk.bf16.vlgmr.msrb.gmra.mxu0 %vm551_vm0, %v987_v7  ;;  %v1098_v6 = vld [vmem:[%s1863_s0 + $0xf8] sm:$0xf]  ;;  %v1313_v7 = vld [vmem:[%s1863_s0 + $0x108] sm:$0xf0] }
  0x44   :  { %v1099_v13 = vor.u32 %v1313_v7, %v1098_v6 }
  0x51   :  { %638 = vmatmul.bf16.gmra.mxu1 %v995_v16  ;;  %687 = vmatmul.bf16.gmra.mxu2 %v999_v17  ;;  %v1107_v16 = vor.u32 %v1314_v11, %v1106_v10 }
  0x53   :  { %736 = vmatmul.bf16.gmra.mxu3 %v1003_v18  ;;  %1273 = vmatmul.msk.bf16.gmra.mxu0 %vm551_vm0, %v1007_v19 }
  0x61   :  { %643 = vmatmul.bf16.gmra.mxu1 %v1015_v28  ;;  %692 = vmatmul.bf16.gmra.mxu2 %v1019_v29  ;;  %v1126_v28 = vld [vmem:[%s1863_s0 + $0x128] sm:$0xf]  ;;  %v1319_v29 = vld [vmem:[%s1863_s0 + $0x138] sm:$0xf0] }
  0x62   :  { %v1127_v36 = vor.u32 %v1319_v29, %v1126_v28 }
  0x63   :  { %741 = vmatmul.bf16.gmra.mxu3 %v1023_v30  ;;  %1274 = vmatmul.msk.bf16.gmra.mxu0 %vm551_vm0, %v1027_v31 }
  0x71   :  { %648 = vmatmul.bf16.gmra.mxu1 %v1035_v40  ;;  %697 = vmatmul.bf16.gmra.mxu2 %v1039_v41 }
  0x73   :  { %746 = vmatmul.bf16.gmra.mxu3 %v1043_v42  ;;  %1275 = vmatmul.msk.bf16.gmra.mxu0 %vm551_vm0, %v1047_v43 }
  0x81   :  { %653 = vmatmul.bf16.gmra.mxu1 %v1055_v52  ;;  %702 = vmatmul.bf16.gmra.mxu2 %v1059_v53  ;;  %v1784_v52 = vld [vmem:[%s1864_s2] ss:$0 sm:$0xff] }
  0x83   :  { %751 = vmatmul.bf16.gmra.mxu3 %v1063_v54  ;;  %1276 = vmatmul.msk.bf16.gmra.mxu0 %vm551_vm0, %v1067_v55 }
  0x91   :  { %658 = vmatmul.bf16.gmra.mxu1 %v1075_v0  ;;  %707 = vmatmul.bf16.gmra.mxu2 %v1079_v1 }
  0x93   :  { %756 = vmatmul.bf16.gmra.mxu3 %v1083_v2  ;;  %1277 = vmatmul.msk.bf16.gmra.mxu0 %vm551_vm0, %v1087_v3 }
  0x9e   :  { %v1731_v14 = vpop.f32.mrf.mxu1 }
  0xa0   :  { %v585_v17 = vpop.f32.mrf.mxu0 }
  0xa1   :  { %663 = vmatmul.bf16.gmra.mxu1 %v1095_v12  ;;  %712 = vmatmul.bf16.gmra.mxu2 %v1099_v13 }
  0xa3   :  { %761 = vmatmul.bf16.gmra.mxu3 %v1103_v15  ;;  %1278 = vmatmul.msk.bf16.gmra.mxu0 %vm551_vm0, %v1107_v16 }
  0xa4   :  { %v1734_v18 = vpop.f32.mrf.mxu2 }
  0xa6   :  { %v1736_v19 = vpop.f32.mrf.mxu3  ;;  %v1738_v20 = vpop.f32.mrf.mxu1 }
  0xa8   :  { %v587_v21 = vpop.f32.mrf.mxu0 }
  0xac   :  { %v1764_v30 = vpop.f32.mrf.mxu2 }
  0xae   :  { %v1766_v31 = vpop.f32.mrf.mxu3  ;;  %v1768_v34 = vpop.f32.mrf.mxu1 }
  0xb0   :  { %v590_v37 = vpop.f32.mrf.mxu0 }
  0xb1   :  { %668 = vmatmul.bf16.gmra.mxu1 %v1115_v32  ;;  %717 = vmatmul.bf16.gmra.mxu2 %v1119_v33 }
  0xb3   :  { %766 = vmatmul.bf16.gmra.mxu3 %v1123_v35  ;;  %1279 = vmatmul.msk.bf16.gmra.mxu0 %vm551_vm0, %v1127_v36 }
  0xb4   :  { %v1771_v38 = vpop.f32.mrf.mxu2 }
  0xb6   :  { %v1773_v39 = vpop.f32.mrf.mxu3  ;;  %v1775_v40 = vpop.f32.mrf.mxu1 }
  0xb8   :  { %v592_v41 = vpop.f32.mrf.mxu0 }
  0xbc   :  { %v1777_v42 = vpop.f32.mrf.mxu2 }
  0xbe   :  { %v1779_v43 = vpop.f32.mrf.mxu3  ;;  %v634_v44 = vpop.f32.mrf.mxu1 }
  0xbf   :  { %v635_v46 = vadd.f32 %v634_v44, %v585_v17 }
  0xc0   :  { %v781_v45 = vpop.f32.mrf.mxu0 }
  0xc4   :  { %v683_v47 = vpop.f32.mrf.mxu2 }
  0xc5   :  { %v684_v48 = vadd.f32 %v683_v47, %v635_v46 }
  0xc6   :  { %v732_v49 = vpop.f32.mrf.mxu3  ;;  %v636_v50 = vpop.f32.mrf.mxu1 }
  0xc7   :  { %v733_v51 = vadd.f32 %v732_v49, %v684_v48  ;;  %v637_v56 = vadd.f32 %v636_v50, %v587_v21 }
  0xc8   :  { %v783_v53 = vpop.f32.mrf.mxu0 }
  0xc9   :  { %v782_v54 = vadd.f32 %v781_v45, %v733_v51 }
  0xcb   :  { %v916_v55 = vadd.f32 %v1784_v52, %v782_v54 }
  0xcc   :  { %v685_v57 = vpop.f32.mrf.mxu2 }
  0xcd   :  { %v932_v58 = vmax.f32 %v916_v55, 0.0  ;;  %v686_v59 = vadd.f32 %v685_v57, %v637_v56 }
  0xce   :  { %v734_v60 = vpop.f32.mrf.mxu3  ;;  %v639_v61 = vpop.f32.mrf.mxu1 }
  0xcf   :  { %948 = vst [vmem:[%s1865_s3] sm:$0xff] %v932_v58  ;;  %v735_v62 = vadd.f32 %v734_v60, %v686_v59  ;;  %v640_v2 = vadd.f32 %v639_v61, %v590_v37 }
  0xd0   :  { %v786_v63 = vpop.f32.mrf.mxu0 }
  0xd1   :  { %v784_v0 = vadd.f32 %v783_v53, %v735_v62 }
  0xd3   :  { %v917_v1 = vadd.f32 %v1784_v52, %v784_v0 }
  0xd4   :  { %v688_v3 = vpop.f32.mrf.mxu2 }
  0xd5   :  { %v933_v4 = vmax.f32 %v917_v1, 0.0  ;;  %v689_v5 = vadd.f32 %v688_v3, %v640_v2 }
  0xd6   :  { %v737_v6 = vpop.f32.mrf.mxu3  ;;  %v641_v7 = vpop.f32.mrf.mxu1 }
  0xd7   :  { %949 = vst [vmem:[%s1865_s3 + $0x8] sm:$0xff] %v933_v4  ;;  %v738_v8 = vadd.f32 %v737_v6, %v689_v5  ;;  %v642_v12 = vadd.f32 %v641_v7, %v592_v41 }
  0xd8   :  { %v788_v9 = vpop.f32.mrf.mxu0 }
  0xd9   :  { %v787_v10 = vadd.f32 %v786_v63, %v738_v8 }
  0xdb   :  { %v918_v11 = vadd.f32 %v1784_v52, %v787_v10 }
  0xdc   :  { %v690_v13 = vpop.f32.mrf.mxu2 }
  0xdd   :  { %v934_v15 = vmax.f32 %v918_v11, 0.0  ;;  %v691_v16 = vadd.f32 %v690_v13, %v642_v12 }
  0xde   :  { %v739_v17 = vpop.f32.mrf.mxu3  ;;  %v644_v21 = vpop.f32.mrf.mxu1 }
  0xdf   :  { %950 = vst [vmem:[%s1865_s3 + $0x10] sm:$0xff] %v934_v15  ;;  %v740_v22 = vadd.f32 %v739_v17, %v691_v16  ;;  %v645_v26 = vadd.f32 %v644_v21, %v1731_v14 }
  0xe0   :  { %v791_v23 = vpop.f32.mrf.mxu0 }
  0xe1   :  { %v789_v24 = vadd.f32 %v788_v9, %v740_v22 }
  0xe3   :  { %v919_v25 = vadd.f32 %v1784_v52, %v789_v24 }
  0xe4   :  { %v693_v27 = vpop.f32.mrf.mxu2 }
  0xe5   :  { %v935_v28 = vmax.f32 %v919_v25, 0.0  ;;  %v694_v29 = vadd.f32 %v693_v27, %v645_v26 }
  0xe6   :  { %v742_v32 = vpop.f32.mrf.mxu3  ;;  %v646_v33 = vpop.f32.mrf.mxu1 }
  0xe7   :  { %951 = vst [vmem:[%s1865_s3 + $0x18] sm:$0xff] %v935_v28  ;;  %v743_v35 = vadd.f32 %v742_v32, %v694_v29  ;;  %v647_v44 = vadd.f32 %v646_v33, %v1738_v20 }
  0xe8   :  { %v793_v36 = vpop.f32.mrf.mxu0 }
  0xe9   :  { %v792_v37 = vadd.f32 %v791_v23, %v743_v35 }
  0xeb   :  { %v920_v41 = vadd.f32 %v1784_v52, %v792_v37 }
  0xec   :  { %v695_v45 = vpop.f32.mrf.mxu2 }
  0xed   :  { %v936_v46 = vmax.f32 %v920_v41, 0.0  ;;  %v696_v47 = vadd.f32 %v695_v45, %v647_v44 }
  0xee   :  { %v744_v14 = vpop.f32.mrf.mxu3  ;;  %v649_v48 = vpop.f32.mrf.mxu1 }
  0xef   :  { %952 = vst [vmem:[%s1865_s3 + $0x20] sm:$0xff] %v936_v46  ;;  %v745_v49 = vadd.f32 %v744_v14, %v696_v47  ;;  %v650_v54 = vadd.f32 %v649_v48, %v1768_v34 }
  0xf0   :  { %v796_v50 = vpop.f32.mrf.mxu0 }
  0xf1   :  { %v794_v51 = vadd.f32 %v793_v36, %v745_v49 }
  0xf3   :  { %v921_v53 = vadd.f32 %v1784_v52, %v794_v51 }
  0xf4   :  { %v698_v55 = vpop.f32.mrf.mxu2 }
  0xf5   :  { %v937_v56 = vmax.f32 %v921_v53, 0.0  ;;  %v699_v57 = vadd.f32 %v698_v55, %v650_v54 }
  0xf6   :  { %v747_v20 = vpop.f32.mrf.mxu3  ;;  %v651_v58 = vpop.f32.mrf.mxu1 }
  0xf7   :  { %953 = vst [vmem:[%s1865_s3 + $0x28] sm:$0xff] %v937_v56  ;;  %v748_v59 = vadd.f32 %v747_v20, %v699_v57  ;;  %v652_v63 = vadd.f32 %v651_v58, %v1775_v40 }
  0xf8   :  { %v798_v60 = vpop.f32.mrf.mxu0 }
  0xf9   :  { %v797_v61 = vadd.f32 %v796_v50, %v748_v59 }
  0xfb   :  { %v922_v62 = vadd.f32 %v1784_v52, %v797_v61 }
  0xfc   :  { %v700_v0 = vpop.f32.mrf.mxu2 }
  0xfd   :  { %v938_v1 = vmax.f32 %v922_v62, 0.0  ;;  %v701_v2 = vadd.f32 %v700_v0, %v652_v63 }
  0xfe   :  { %v749_v34 = vpop.f32.mrf.mxu3  ;;  %v654_v3 = vpop.f32.mrf.mxu1 }
  0xff   :  { %954 = vst [vmem:[%s1865_s3 + $0x30] sm:$0xff] %v938_v1  ;;  %v750_v4 = vadd.f32 %v749_v34, %v701_v2  ;;  %v655_v8 = vadd.f32 %v654_v3, %v1734_v18 }
 0x100   :  { %v801_v5 = vpop.f32.mrf.mxu0 }
 0x101   :  { %v799_v6 = vadd.f32 %v798_v60, %v750_v4 }
 0x103   :  { %v923_v7 = vadd.f32 %v1784_v52, %v799_v6 }
 0x104   :  { %v703_v9 = vpop.f32.mrf.mxu2 }
 0x105   :  { %v939_v10 = vmax.f32 %v923_v7, 0.0  ;;  %v704_v11 = vadd.f32 %v703_v9, %v655_v8 }
 0x106   :  { %v752_v40 = vpop.f32.mrf.mxu3  ;;  %v656_v12 = vpop.f32.mrf.mxu1 }
 0x107   :  { %955 = vst [vmem:[%s1865_s3 + $0x38] sm:$0xff] %v939_v10  ;;  %v753_v13 = vadd.f32 %v752_v40, %v704_v11  ;;  %v657_v21 = vadd.f32 %v656_v12, %v1764_v30 }
 0x108   :  { %v803_v15 = vpop.f32.mrf.mxu0 }
 0x109   :  { %v802_v16 = vadd.f32 %v801_v5, %v753_v13 }
 0x10b   :  { %v924_v17 = vadd.f32 %v1784_v52, %v802_v16 }
 0x10c   :  { %v705_v22 = vpop.f32.mrf.mxu2 }
 0x10d   :  { %v940_v23 = vmax.f32 %v924_v17, 0.0  ;;  %v706_v24 = vadd.f32 %v705_v22, %v657_v21 }
 0x10e   :  { %v754_v18 = vpop.f32.mrf.mxu3  ;;  %v659_v25 = vpop.f32.mrf.mxu1 }
 0x10f   :  { %956 = vst [vmem:[%s1865_s3 + $0x40] sm:$0xff] %v940_v23  ;;  %v755_v26 = vadd.f32 %v754_v18, %v706_v24  ;;  %v660_v32 = vadd.f32 %v659_v25, %v1771_v38 }
 0x110   :  { %v806_v27 = vpop.f32.mrf.mxu0 }
 0x111   :  { %v804_v28 = vadd.f32 %v803_v15, %v755_v26 }
 0x113   :  { %v925_v29 = vadd.f32 %v1784_v52, %v804_v28 }
 0x114   :  { %v708_v33 = vpop.f32.mrf.mxu2 }
 0x115   :  { %v941_v35 = vmax.f32 %v925_v29, 0.0  ;;  %v709_v36 = vadd.f32 %v708_v33, %v660_v32 }
 0x116   :  { %v757_v30 = vpop.f32.mrf.mxu3  ;;  %v661_v37 = vpop.f32.mrf.mxu1 }
 0x117   :  { %957 = vst [vmem:[%s1865_s3 + $0x48] sm:$0xff] %v941_v35  ;;  %v758_v41 = vadd.f32 %v757_v30, %v709_v36  ;;  %v662_v47 = vadd.f32 %v661_v37, %v1777_v42 }
 0x118   :  { %v808_v44 = vpop.f32.mrf.mxu0 }
 0x119   :  { %v807_v45 = vadd.f32 %v806_v27, %v758_v41 }
 0x11b   :  { %v926_v46 = vadd.f32 %v1784_v52, %v807_v45 }
 0x11c   :  { %v710_v14 = vpop.f32.mrf.mxu2 }
 0x11d   :  { %v942_v48 = vmax.f32 %v926_v46, 0.0  ;;  %v711_v49 = vadd.f32 %v710_v14, %v662_v47 }
 0x11e   :  { %v759_v38 = vpop.f32.mrf.mxu3  ;;  %v664_v50 = vpop.f32.mrf.mxu1 }
 0x11f   :  { %958 = vst [vmem:[%s1865_s3 + $0x50] sm:$0xff] %v942_v48  ;;  %v760_v51 = vadd.f32 %v759_v38, %v711_v49  ;;  %v665_v56 = vadd.f32 %v664_v50, %v1736_v19 }
 0x120   :  { %v811_v54 = vpop.f32.mrf.mxu0 }
 0x121   :  { %v809_v53 = vadd.f32 %v808_v44, %v760_v51 }
 0x123   :  { %v927_v55 = vadd.f32 %v1784_v52, %v809_v53 }
 0x124   :  { %v713_v57 = vpop.f32.mrf.mxu2 }
 0x125   :  { %v943_v20 = vmax.f32 %v927_v55, 0.0  ;;  %v714_v58 = vadd.f32 %v713_v57, %v665_v56 }
 0x126   :  { %v762_v42 = vpop.f32.mrf.mxu3  ;;  %v666_v59 = vpop.f32.mrf.mxu1 }
 0x127   :  { %959 = vst [vmem:[%s1865_s3 + $0x58] sm:$0xff] %v943_v20  ;;  %v763_v60 = vadd.f32 %v762_v42, %v714_v58  ;;  %v667_v63 = vadd.f32 %v666_v59, %v1766_v31 }
 0x128   :  { %v813_v0 = vpop.f32.mrf.mxu0 }
 0x129   :  { %v812_v61 = vadd.f32 %v811_v54, %v763_v60 }
 0x12b   :  { %v928_v62 = vadd.f32 %v1784_v52, %v812_v61 }
 0x12c   :  { %v715_v1 = vpop.f32.mrf.mxu2 }
 0x12d   :  { %v944_v2 = vmax.f32 %v928_v62, 0.0  ;;  %v716_v34 = vadd.f32 %v715_v1, %v667_v63 }
 0x12e   :  { %v764_v19 = vpop.f32.mrf.mxu3  ;;  %v669_v3 = vpop.f32.mrf.mxu1 }
 0x12f   :  { %960 = vst [vmem:[%s1865_s3 + $0x60] sm:$0xff] %v944_v2  ;;  %v765_v4 = vadd.f32 %v764_v19, %v716_v34  ;;  %v670_v7 = vadd.f32 %v669_v3, %v1773_v39 }
 0x130   :  { %v816_v11 = vpop.f32.mrf.mxu0 }
 0x131   :  { %v814_v5 = vadd.f32 %v813_v0, %v765_v4 }
 0x133   :  { %v929_v6 = vadd.f32 %v1784_v52, %v814_v5 }
 0x134   :  { %v718_v8 = vpop.f32.mrf.mxu2 }
 0x135   :  { %v945_v9 = vmax.f32 %v929_v6, 0.0  ;;  %v719_v10 = vadd.f32 %v718_v8, %v670_v7 }
 0x136   :  { %v767_v31 = vpop.f32.mrf.mxu3  ;;  %v671_v12 = vpop.f32.mrf.mxu1 }
 0x137   :  { %961 = vst [vmem:[%s1865_s3 + $0x68] sm:$0xff] %v945_v9  ;;  %v768_v40 = vadd.f32 %v767_v31, %v719_v10  ;;  %v672_v16 = vadd.f32 %v671_v12, %v1779_v43 }
 0x138   :  { %v818_v24 = vpop.f32.mrf.mxu0 }
 0x139   :  { %v817_v13 = vadd.f32 %v816_v11, %v768_v40 }
 0x13b   :  { %v930_v15 = vadd.f32 %v1784_v52, %v817_v13 }
 0x13c   :  { %v720_v17 = vpop.f32.mrf.mxu2 }
 0x13d   :  { %v946_v21 = vmax.f32 %v930_v15, 0.0  ;;  %v721_v22 = vadd.f32 %v720_v17, %v672_v16 }
 0x13e   :  { %v769_v39 = vpop.f32.mrf.mxu3 }
 0x13f   :  { %962 = vst [vmem:[%s1865_s3 + $0x70] sm:$0xff] %v946_v21  ;;  %v770_v23 = vadd.f32 %v769_v39, %v721_v22 }
 0x141   :  { %v819_v18 = vadd.f32 %v818_v24, %v770_v23 }
 0x143   :  { %v931_v25 = vadd.f32 %v1784_v52, %v819_v18 }
 0x145   :  { %v947_v26 = vmax.f32 %v931_v25, 0.0 }
 0x147   :  { %963 = vst [vmem:[%s1865_s3 + $0x78] sm:$0xff] %v947_v26 }

// kernel: s_cnn_forward.17
= control target key start
LH: loop header
LB: loop body
LE: loop exit
PB: predicated region body
PF: predicated region fallthrough
CT: control target
= control target key end

     0   :  { %vm365_vm0 = vcmask 523264   ;;  %s958_s1 = inlined_call_operand.vmem [shape: bf16[576,128], index: 1, kind: input, shape index: {}]   ;;  %s959_s0 = inlined_call_operand.vmem [shape: bf16[32,576], index: 0, kind: input, shape index: {}]   ;;  %s960_s2 = inlined_call_operand.vmem [shape: f32[1,128], index: 2, kind: input, shape index: {}]   ;;  %s961_s3 = inlined_call_operand.vmem [shape: f32[32,128], index: 3, kind: output, shape index: {}]  }
   0x1   :  { %v721_v0 = vld [vmem:[%s958_s1 + $0x38] sm:$0xff]  ;;  %v720_v4 = vld [vmem:[%s958_s1 + $0x30] sm:$0xff]  ;;  %v719_v8 = vld [vmem:[%s958_s1 + $0x28] sm:$0xff] }
   0x2   :  { %v729_v1 = vld [vmem:[%s958_s1 + $0x78] sm:$0xff]  ;;  %372 = vmatpush.bf16.msra.mxu0 %v721_v0  ;;  %v728_v5 = vld [vmem:[%s958_s1 + $0x70] sm:$0xff]  ;;  %v727_v9 = vld [vmem:[%s958_s1 + $0x68] sm:$0xff] }
   0x3   :  { %v737_v2 = vld [vmem:[%s958_s1 + $0xb8] sm:$0xff]  ;;  %391 = vmatpush.bf16.msra.mxu1 %v729_v1  ;;  %v736_v6 = vld [vmem:[%s958_s1 + $0xb0] sm:$0xff]  ;;  %v735_v10 = vld [vmem:[%s958_s1 + $0xa8] sm:$0xff] }
   0x4   :  { %v745_v3 = vld [vmem:[%s958_s1 + $0xf8] sm:$0xff]  ;;  %410 = vmatpush.bf16.msra.mxu2 %v737_v2  ;;  %v744_v7 = vld [vmem:[%s958_s1 + $0xf0] sm:$0xff]  ;;  %v743_v11 = vld [vmem:[%s958_s1 + $0xe8] sm:$0xff] }
   0x5   :  { %429 = vmatpush.bf16.msra.mxu3 %v745_v3  ;;  %v718_v12 = vld [vmem:[%s958_s1 + $0x20] sm:$0xff]  ;;  %v717_v16 = vld [vmem:[%s958_s1 + $0x18] sm:$0xff]  ;;  %v716_v20 = vld [vmem:[%s958_s1 + $0x10] sm:$0xff] }
   0x6   :  { %373 = vmatpush.bf16.msra.mxu0 %v720_v4  ;;  %v726_v13 = vld [vmem:[%s958_s1 + $0x60] sm:$0xff]  ;;  %v725_v17 = vld [vmem:[%s958_s1 + $0x58] sm:$0xff]  ;;  %v724_v21 = vld [vmem:[%s958_s1 + $0x50] sm:$0xff] }
   0x7   :  { %392 = vmatpush.bf16.msra.mxu1 %v728_v5  ;;  %v734_v14 = vld [vmem:[%s958_s1 + $0xa0] sm:$0xff]  ;;  %v733_v18 = vld [vmem:[%s958_s1 + $0x98] sm:$0xff]  ;;  %v732_v22 = vld [vmem:[%s958_s1 + $0x90] sm:$0xff] }
   0x8   :  { %411 = vmatpush.bf16.msra.mxu2 %v736_v6  ;;  %v742_v15 = vld [vmem:[%s958_s1 + $0xe0] sm:$0xff]  ;;  %v741_v19 = vld [vmem:[%s958_s1 + $0xd8] sm:$0xff]  ;;  %v740_v23 = vld [vmem:[%s958_s1 + $0xd0] sm:$0xff] }
   0x9   :  { %430 = vmatpush.bf16.msra.mxu3 %v744_v7  ;;  %v715_v24 = vld [vmem:[%s958_s1 + $0x8] sm:$0xff]  ;;  %v714_v28 = vld [vmem:[%s958_s1] sm:$0xff]  ;;  %v706_v33 = vld [vmem:[%s959_s0 + $0x10] sm:$0xf0] }
   0xa   :  { %374 = vmatpush.bf16.msra.mxu0 %v719_v8  ;;  %v723_v25 = vld [vmem:[%s958_s1 + $0x48] sm:$0xff]  ;;  %v722_v29 = vld [vmem:[%s958_s1 + $0x40] sm:$0xff]  ;;  %v522_v35 = vld [vmem:[%s959_s0 + $0x14] sm:$0xf0] }
   0xb   :  { %393 = vmatpush.bf16.msra.mxu1 %v727_v9  ;;  %v731_v26 = vld [vmem:[%s958_s1 + $0x88] sm:$0xff]  ;;  %v730_v30 = vld [vmem:[%s958_s1 + $0x80] sm:$0xff]  ;;  %v707_v37 = vld [vmem:[%s959_s0 + $0x18] sm:$0xf0] }
   0xc   :  { %412 = vmatpush.bf16.msra.mxu2 %v735_v10  ;;  %v739_v27 = vld [vmem:[%s958_s1 + $0xc8] sm:$0xff]  ;;  %v738_v31 = vld [vmem:[%s958_s1 + $0xc0] sm:$0xff]  ;;  %v749_v40 = vld [vmem:[%s958_s1 + $0x118] sm:$0xff] }
   0xd   :  { %431 = vmatpush.bf16.msra.mxu3 %v743_v11  ;;  %v520_v32 = vld [vmem:[%s959_s0] sm:$0xf]  ;;  %v704_v34 = vld [vmem:[%s959_s0 + $0x4] sm:$0xf]  ;;  %v528_v36 = vld [vmem:[%s959_s0 + $0x8] sm:$0xf] }
   0xe   :  { %375 = vmatpush.bf16.msra.mxu0 %v718_v12  ;;  %v705_v38 = vld [vmem:[%s959_s0 + $0xc] sm:$0xf]  ;;  %v530_v39 = vld [vmem:[%s959_s0 + $0x1c] sm:$0xf0]  ;;  %v521_v41 = vor.u32 %v706_v33, %v520_v32  ;;  %v525_v42 = vor.u32 %v704_v34, %v522_v35  ;;  %v529_v43 = vor.u32 %v707_v37, %v528_v36  ;;  %v748_v45 = vld [vmem:[%s958_s1 + $0x110] sm:$0xff] }
   0xf   :  { %394 = vmatpush.bf16.msra.mxu1 %v726_v13  ;;  %v533_v44 = vor.u32 %v705_v38, %v530_v39  ;;  %v747_v46 = vld [vmem:[%s958_s1 + $0x108] sm:$0xff]  ;;  %v746_v47 = vld [vmem:[%s958_s1 + $0x100] sm:$0xff]  ;;  %v711_v49 = vld [vmem:[%s959_s0 + $0x38] sm:$0xf0] }
  0x10   :  { %413 = vmatpush.bf16.msra.mxu2 %v734_v14  ;;  %v540_v48 = vld [vmem:[%s959_s0 + $0x28] sm:$0xf]  ;;  %v709_v50 = vld [vmem:[%s959_s0 + $0x2c] sm:$0xf]  ;;  %v542_v51 = vld [vmem:[%s959_s0 + $0x3c] sm:$0xf0] }
  0x11   :  { %432 = vmatpush.bf16.msra.mxu3 %v742_v15  ;;  %v548_v52 = vld [vmem:[%s959_s0 + $0x30] sm:$0xf]  ;;  %v712_v53 = vld [vmem:[%s959_s0 + $0x40] sm:$0xf0]  ;;  %v710_v54 = vld [vmem:[%s959_s0 + $0x34] sm:$0xf]  ;;  %v541_v56 = vor.u32 %v711_v49, %v540_v48  ;;  %v545_v57 = vor.u32 %v709_v50, %v542_v51 }
  0x12   :  { %376 = vmatpush.bf16.msra.mxu0 %v717_v16  ;;  %v550_v55 = vld [vmem:[%s959_s0 + $0x44] sm:$0xf0]  ;;  %v549_v58 = vor.u32 %v712_v53, %v548_v52  ;;  %v536_v60 = vld [vmem:[%s959_s0 + $0x10] sm:$0xf]  ;;  %v708_v61 = vld [vmem:[%s959_s0 + $0x20] sm:$0xf0] }
  0x13   :  { %395 = vmatpush.bf16.msra.mxu1 %v725_v17  ;;  %v553_v59 = vor.u32 %v710_v54, %v550_v55  ;;  %v556_v62 = vld [vmem:[%s959_s0 + $0x38] sm:$0xf]  ;;  %v713_v63 = vld [vmem:[%s959_s0 + $0x48] sm:$0xf0]  ;;  %v537_v0 = vor.u32 %v708_v61, %v536_v60 }
  0x14   :  { %414 = vmatpush.bf16.msra.mxu2 %v733_v18  ;;  %v557_v1 = vor.u32 %v713_v63, %v556_v62 }
  0x15   :  { %433 = vmatpush.bf16.msra.mxu3 %v741_v19 }
  0x16   :  { %377 = vmatpush.bf16.msra.mxu0 %v716_v20 }
  0x17   :  { %396 = vmatpush.bf16.msra.mxu1 %v724_v21 }
  0x18   :  { %415 = vmatpush.bf16.msra.mxu2 %v732_v22 }
  0x19   :  { %434 = vmatpush.bf16.msra.mxu3 %v740_v23  ;;  %v754_v23 = vld [vmem:[%s960_s2] ss:$0 sm:$0xff] }
  0x1a   :  { %378 = vmatpush.bf16.msra.mxu0 %v715_v24 }
  0x1b   :  { %397 = vmatpush.bf16.msra.mxu1 %v723_v25 }
  0x1c   :  { %416 = vmatpush.bf16.msra.mxu2 %v731_v26 }
  0x1d   :  { %435 = vmatpush.bf16.msra.mxu3 %v739_v27 }
  0x1e   :  { %379 = vmatpush.bf16.msra.mxu0 %v714_v28 }
  0x1f   :  { %398 = vmatpush.bf16.msra.mxu1 %v722_v29 }
  0x20   :  { %417 = vmatpush.bf16.msra.mxu2 %v730_v30 }
  0x21   :  { %436 = vmatpush.bf16.msra.mxu3 %v738_v31  ;;  %380 = vmatmul.bf16.vlgmr.msra.gmra.mxu0 %v521_v41 }
  0x22   :  { %452 = vmatpush.bf16.msrb.mxu0 %v749_v40  ;;  %399 = vmatmul.bf16.vlgmr.msra.gmra.mxu1 %v525_v42 }
  0x23   :  { %750 = vmatpush.bf16.msrb.mxu1 %v749_v40  ;;  %418 = vmatmul.bf16.vlgmr.msra.gmra.mxu2 %v529_v43 }
  0x24   :  { %437 = vmatmul.bf16.vlgmr.msra.gmra.mxu3 %v533_v44 }
  0x26   :  { %453 = vmatpush.bf16.msrb.mxu0 %v748_v45 }
  0x27   :  { %751 = vmatpush.bf16.msrb.mxu1 %v748_v45 }
  0x2a   :  { %454 = vmatpush.bf16.msrb.mxu0 %v747_v46 }
  0x2b   :  { %752 = vmatpush.bf16.msrb.mxu1 %v747_v46 }
  0x2e   :  { %455 = vmatpush.bf16.msrb.mxu0 %v746_v47 }
  0x2f   :  { %753 = vmatpush.bf16.msrb.mxu1 %v746_v47 }
  0x31   :  { %385 = vmatmul.bf16.gmra.mxu0 %v541_v56 }
  0x32   :  { %404 = vmatmul.bf16.gmra.mxu1 %v545_v57 }
  0x33   :  { %423 = vmatmul.bf16.gmra.mxu2 %v549_v58 }
  0x34   :  { %442 = vmatmul.bf16.gmra.mxu3 %v553_v59 }
  0x41   :  { %702 = vmatmul.msk.bf16.vlgmr.msrb.gmra.mxu0 %vm365_vm0, %v537_v0 }
  0x42   :  { %703 = vmatmul.msk.bf16.vlgmr.msrb.gmra.mxu1 %vm365_vm0, %v557_v1 }
  0x9e   :  { %v381_v2 = vpop.f32.mrf.mxu0 }
  0x9f   :  { %v400_v3 = vpop.f32.mrf.mxu1 }
  0xa0   :  { %v401_v15 = vadd.f32 %v400_v3, %v381_v2 }
  0xa6   :  { %v419_v4 = vpop.f32.mrf.mxu2  ;;  %v383_v6 = vpop.f32.mrf.mxu0 }
  0xa7   :  { %v438_v5 = vpop.f32.mrf.mxu3  ;;  %v402_v7 = vpop.f32.mrf.mxu1  ;;  %v420_v17 = vadd.f32 %v419_v4, %v401_v15 }
  0xa8   :  { %v403_v26 = vadd.f32 %v402_v7, %v383_v6 }
  0xa9   :  { %v439_v20 = vadd.f32 %v438_v5, %v420_v17 }
  0xae   :  { %v421_v8 = vpop.f32.mrf.mxu2  ;;  %v386_v9 = vpop.f32.mrf.mxu0 }
  0xaf   :  { %v405_v10 = vpop.f32.mrf.mxu1  ;;  %v440_v11 = vpop.f32.mrf.mxu3  ;;  %v422_v30 = vadd.f32 %v421_v8, %v403_v26 }
  0xb0   :  { %v406_v16 = vadd.f32 %v405_v10, %v386_v9 }
  0xb1   :  { %v441_v37 = vadd.f32 %v440_v11, %v422_v30 }
  0xb6   :  { %v424_v12 = vpop.f32.mrf.mxu2  ;;  %v388_v13 = vpop.f32.mrf.mxu0 }
  0xb7   :  { %v407_v14 = vpop.f32.mrf.mxu1  ;;  %v425_v18 = vadd.f32 %v424_v12, %v406_v16  ;;  %v443_v19 = vpop.f32.mrf.mxu3 }
  0xb8   :  { %v408_v27 = vadd.f32 %v407_v14, %v388_v13 }
  0xb9   :  { %v444_v21 = vadd.f32 %v443_v19, %v425_v18 }
  0xbe   :  { %v426_v22 = vpop.f32.mrf.mxu2  ;;  %v457_v24 = vpop.f32.mrf.mxu0 }
  0xbf   :  { %v462_v25 = vpop.f32.mrf.mxu1  ;;  %v458_v28 = vadd.f32 %v457_v24, %v439_v20  ;;  %v427_v31 = vadd.f32 %v426_v22, %v408_v27  ;;  %v445_v36 = vpop.f32.mrf.mxu3 }
  0xc0   :  { %v463_v29 = vadd.f32 %v462_v25, %v444_v21 }
  0xc1   :  { %v502_v32 = vadd.f32 %v754_v23, %v458_v28  ;;  %v446_v38 = vadd.f32 %v445_v36, %v427_v31 }
  0xc2   :  { %v504_v33 = vadd.f32 %v754_v23, %v463_v29 }
  0xc3   :  { %v506_v34 = vmax.f32 %v502_v32, 0.0 }
  0xc4   :  { %v508_v35 = vmax.f32 %v504_v33, 0.0 }
  0xc5   :  { %510 = vst [vmem:[%s961_s3] sm:$0xff] %v506_v34 }
  0xc6   :  { %512 = vst [vmem:[%s961_s3 + $0x10] sm:$0xff] %v508_v35  ;;  %v459_v39 = vpop.f32.mrf.mxu0 }
  0xc7   :  { %v464_v40 = vpop.f32.mrf.mxu1  ;;  %v460_v41 = vadd.f32 %v459_v39, %v441_v37 }
  0xc8   :  { %v465_v42 = vadd.f32 %v464_v40, %v446_v38 }
  0xc9   :  { %v503_v43 = vadd.f32 %v754_v23, %v460_v41 }
  0xca   :  { %v505_v44 = vadd.f32 %v754_v23, %v465_v42 }
  0xcb   :  { %v507_v45 = vmax.f32 %v503_v43, 0.0 }
  0xcc   :  { %v509_v46 = vmax.f32 %v505_v44, 0.0 }
  0xcd   :  { %511 = vst [vmem:[%s961_s3 + $0x8] sm:$0xff] %v507_v45 }
  0xce   :  { %513 = vst [vmem:[%s961_s3 + $0x18] sm:$0xff] %v509_v46 }

// kernel: s_cnn_forward.19
= control target key start
LH: loop header
LB: loop body
LE: loop exit
PB: predicated region body
PF: predicated region fallthrough
CT: control target
= control target key end

     0   :  { %s1742_s1 = inlined_call_operand.vmem [shape: bf16[1152,128], index: 1, kind: input, shape index: {}]   ;;  %s1743_s0 = inlined_call_operand.vmem [shape: bf16[32,1152], index: 0, kind: input, shape index: {}]   ;;  %s1744_s2 = inlined_call_operand.vmem [shape: f32[1,128], index: 2, kind: input, shape index: {}]   ;;  %s1745_s3 = inlined_call_operand.vmem [shape: f32[32,128], index: 3, kind: output, shape index: {}]  }
   0x1   :  { %v1309_v0 = vld [vmem:[%s1742_s1 + $0x38] sm:$0xff]  ;;  %v1308_v4 = vld [vmem:[%s1742_s1 + $0x30] sm:$0xff]  ;;  %v1307_v8 = vld [vmem:[%s1742_s1 + $0x28] sm:$0xff] }
   0x2   :  { %v1317_v1 = vld [vmem:[%s1742_s1 + $0x78] sm:$0xff]  ;;  %702 = vmatpush.bf16.msra.mxu0 %v1309_v0  ;;  %v1316_v5 = vld [vmem:[%s1742_s1 + $0x70] sm:$0xff]  ;;  %v1315_v9 = vld [vmem:[%s1742_s1 + $0x68] sm:$0xff] }
   0x3   :  { %v1325_v2 = vld [vmem:[%s1742_s1 + $0xb8] sm:$0xff]  ;;  %721 = vmatpush.bf16.msra.mxu1 %v1317_v1  ;;  %v1324_v6 = vld [vmem:[%s1742_s1 + $0xb0] sm:$0xff]  ;;  %v1323_v10 = vld [vmem:[%s1742_s1 + $0xa8] sm:$0xff] }
   0x4   :  { %v1333_v3 = vld [vmem:[%s1742_s1 + $0xf8] sm:$0xff]  ;;  %740 = vmatpush.bf16.msra.mxu2 %v1325_v2  ;;  %v1332_v7 = vld [vmem:[%s1742_s1 + $0xf0] sm:$0xff]  ;;  %v1331_v11 = vld [vmem:[%s1742_s1 + $0xe8] sm:$0xff] }
   0x5   :  { %759 = vmatpush.bf16.msra.mxu3 %v1333_v3  ;;  %v1306_v12 = vld [vmem:[%s1742_s1 + $0x20] sm:$0xff]  ;;  %v1305_v16 = vld [vmem:[%s1742_s1 + $0x18] sm:$0xff]  ;;  %v1304_v20 = vld [vmem:[%s1742_s1 + $0x10] sm:$0xff] }
   0x6   :  { %703 = vmatpush.bf16.msra.mxu0 %v1308_v4  ;;  %v1314_v13 = vld [vmem:[%s1742_s1 + $0x60] sm:$0xff]  ;;  %v1313_v17 = vld [vmem:[%s1742_s1 + $0x58] sm:$0xff]  ;;  %v1312_v21 = vld [vmem:[%s1742_s1 + $0x50] sm:$0xff] }
   0x7   :  { %722 = vmatpush.bf16.msra.mxu1 %v1316_v5  ;;  %v1322_v14 = vld [vmem:[%s1742_s1 + $0xa0] sm:$0xff]  ;;  %v1321_v18 = vld [vmem:[%s1742_s1 + $0x98] sm:$0xff]  ;;  %v1320_v22 = vld [vmem:[%s1742_s1 + $0x90] sm:$0xff] }
   0x8   :  { %741 = vmatpush.bf16.msra.mxu2 %v1324_v6  ;;  %v1330_v15 = vld [vmem:[%s1742_s1 + $0xe0] sm:$0xff]  ;;  %v1329_v19 = vld [vmem:[%s1742_s1 + $0xd8] sm:$0xff]  ;;  %v1328_v23 = vld [vmem:[%s1742_s1 + $0xd0] sm:$0xff] }
   0x9   :  { %760 = vmatpush.bf16.msra.mxu3 %v1332_v7  ;;  %v1303_v24 = vld [vmem:[%s1742_s1 + $0x8] sm:$0xff]  ;;  %v1302_v28 = vld [vmem:[%s1742_s1] sm:$0xff]  ;;  %v936_v39 = vld [vmem:[%s1743_s0 + $0x2c] sm:$0xf0] }
   0xa   :  { %704 = vmatpush.bf16.msra.mxu0 %v1307_v8  ;;  %v1311_v25 = vld [vmem:[%s1742_s1 + $0x48] sm:$0xff]  ;;  %v1310_v29 = vld [vmem:[%s1742_s1 + $0x40] sm:$0xff]  ;;  %v1341_v40 = vld [vmem:[%s1742_s1 + $0x138] sm:$0xff] }
   0xb   :  { %723 = vmatpush.bf16.msra.mxu1 %v1315_v9  ;;  %v1319_v26 = vld [vmem:[%s1742_s1 + $0x88] sm:$0xff]  ;;  %v1318_v30 = vld [vmem:[%s1742_s1 + $0x80] sm:$0xff]  ;;  %v1349_v41 = vld [vmem:[%s1742_s1 + $0x178] sm:$0xff] }
   0xc   :  { %742 = vmatpush.bf16.msra.mxu2 %v1323_v10  ;;  %v1327_v27 = vld [vmem:[%s1742_s1 + $0xc8] sm:$0xff]  ;;  %v1326_v31 = vld [vmem:[%s1742_s1 + $0xc0] sm:$0xff]  ;;  %v1357_v46 = vld [vmem:[%s1742_s1 + $0x1b8] sm:$0xff] }
   0xd   :  { %761 = vmatpush.bf16.msra.mxu3 %v1331_v11  ;;  %v926_v32 = vld [vmem:[%s1743_s0] sm:$0xf]  ;;  %v1288_v33 = vld [vmem:[%s1743_s0 + $0x20] sm:$0xf0]  ;;  %v928_v35 = vld [vmem:[%s1743_s0 + $0x24] sm:$0xf0] }
   0xe   :  { %705 = vmatpush.bf16.msra.mxu0 %v1306_v12  ;;  %v1284_v34 = vld [vmem:[%s1743_s0 + $0x4] sm:$0xf]  ;;  %v934_v36 = vld [vmem:[%s1743_s0 + $0x8] sm:$0xf]  ;;  %v1289_v37 = vld [vmem:[%s1743_s0 + $0x28] sm:$0xf0]  ;;  %v927_v42 = vor.u32 %v1288_v33, %v926_v32 }
   0xf   :  { %724 = vmatpush.bf16.msra.mxu1 %v1314_v13  ;;  %v1285_v38 = vld [vmem:[%s1743_s0 + $0xc] sm:$0xf]  ;;  %v931_v43 = vor.u32 %v1284_v34, %v928_v35  ;;  %v935_v44 = vor.u32 %v1289_v37, %v934_v36  ;;  %v1365_v47 = vld [vmem:[%s1742_s1 + $0x1f8] sm:$0xff]  ;;  %v1340_v48 = vld [vmem:[%s1742_s1 + $0x130] sm:$0xff] }
  0x10   :  { %743 = vmatpush.bf16.msra.mxu2 %v1322_v14  ;;  %v939_v45 = vor.u32 %v1285_v38, %v936_v39  ;;  %v1348_v49 = vld [vmem:[%s1742_s1 + $0x170] sm:$0xff]  ;;  %v1339_v52 = vld [vmem:[%s1742_s1 + $0x128] sm:$0xff]  ;;  %v1338_v56 = vld [vmem:[%s1742_s1 + $0x120] sm:$0xff] }
  0x11   :  { %762 = vmatpush.bf16.msra.mxu3 %v1330_v15  ;;  %v1356_v50 = vld [vmem:[%s1742_s1 + $0x1b0] sm:$0xff]  ;;  %v1347_v53 = vld [vmem:[%s1742_s1 + $0x168] sm:$0xff]  ;;  %v1346_v57 = vld [vmem:[%s1742_s1 + $0x160] sm:$0xff] }
  0x12   :  { %706 = vmatpush.bf16.msra.mxu0 %v1305_v16  ;;  %v1364_v51 = vld [vmem:[%s1742_s1 + $0x1f0] sm:$0xff]  ;;  %v1355_v54 = vld [vmem:[%s1742_s1 + $0x1a8] sm:$0xff]  ;;  %v1354_v58 = vld [vmem:[%s1742_s1 + $0x1a0] sm:$0xff] }
  0x13   :  { %725 = vmatpush.bf16.msra.mxu1 %v1313_v17  ;;  %v1363_v55 = vld [vmem:[%s1742_s1 + $0x1e8] sm:$0xff]  ;;  %v1362_v59 = vld [vmem:[%s1742_s1 + $0x1e0] sm:$0xff]  ;;  %v964_v63 = vld [vmem:[%s1743_s0 + $0x6c] sm:$0xf0] }
  0x14   :  { %744 = vmatpush.bf16.msra.mxu2 %v1321_v18  ;;  %v962_v60 = vld [vmem:[%s1743_s0 + $0x48] sm:$0xf]  ;;  %v1297_v61 = vld [vmem:[%s1743_s0 + $0x68] sm:$0xf0]  ;;  %v970_v0 = vld [vmem:[%s1743_s0 + $0x50] sm:$0xf] }
  0x15   :  { %763 = vmatpush.bf16.msra.mxu3 %v1329_v19  ;;  %v1293_v62 = vld [vmem:[%s1743_s0 + $0x4c] sm:$0xf]  ;;  %v1298_v1 = vld [vmem:[%s1743_s0 + $0x70] sm:$0xf0]  ;;  %v972_v3 = vld [vmem:[%s1743_s0 + $0x74] sm:$0xf0]  ;;  %v963_v6 = vor.u32 %v1297_v61, %v962_v60 }
  0x16   :  { %707 = vmatpush.bf16.msra.mxu0 %v1304_v20  ;;  %v1294_v2 = vld [vmem:[%s1743_s0 + $0x54] sm:$0xf]  ;;  %v1337_v4 = vld [vmem:[%s1742_s1 + $0x118] sm:$0xff]  ;;  %v967_v7 = vor.u32 %v1293_v62, %v964_v63  ;;  %v971_v8 = vor.u32 %v1298_v1, %v970_v0  ;;  %v1335_v16 = vld [vmem:[%s1742_s1 + $0x108] sm:$0xff] }
  0x17   :  { %726 = vmatpush.bf16.msra.mxu1 %v1312_v21  ;;  %v1345_v5 = vld [vmem:[%s1742_s1 + $0x158] sm:$0xff]  ;;  %v975_v9 = vor.u32 %v1294_v2, %v972_v3  ;;  %v1336_v12 = vld [vmem:[%s1742_s1 + $0x110] sm:$0xff]  ;;  %v1343_v17 = vld [vmem:[%s1742_s1 + $0x148] sm:$0xff] }
  0x18   :  { %745 = vmatpush.bf16.msra.mxu2 %v1320_v22  ;;  %v1353_v10 = vld [vmem:[%s1742_s1 + $0x198] sm:$0xff]  ;;  %v1344_v13 = vld [vmem:[%s1742_s1 + $0x150] sm:$0xff]  ;;  %v1351_v18 = vld [vmem:[%s1742_s1 + $0x188] sm:$0xff] }
  0x19   :  { %764 = vmatpush.bf16.msra.mxu3 %v1328_v23  ;;  %v1361_v11 = vld [vmem:[%s1742_s1 + $0x1d8] sm:$0xff]  ;;  %v1352_v14 = vld [vmem:[%s1742_s1 + $0x190] sm:$0xff]  ;;  %v1359_v19 = vld [vmem:[%s1742_s1 + $0x1c8] sm:$0xff] }
  0x1a   :  { %708 = vmatpush.bf16.msra.mxu0 %v1303_v24  ;;  %v1360_v15 = vld [vmem:[%s1742_s1 + $0x1d0] sm:$0xff]  ;;  %v1334_v20 = vld [vmem:[%s1742_s1 + $0x100] sm:$0xff]  ;;  %v1371_v38 = vld [vmem:[%s1742_s1 + $0x228] sm:$0xff] }
  0x1b   :  { %727 = vmatpush.bf16.msra.mxu1 %v1311_v25  ;;  %v1342_v21 = vld [vmem:[%s1742_s1 + $0x140] sm:$0xff]  ;;  %v942_v24 = vld [vmem:[%s1743_s0 + $0x10] sm:$0xf]  ;;  %v1290_v25 = vld [vmem:[%s1743_s0 + $0x30] sm:$0xf0] }
  0x1c   :  { %746 = vmatpush.bf16.msra.mxu2 %v1319_v26  ;;  %v1350_v22 = vld [vmem:[%s1742_s1 + $0x180] sm:$0xff]  ;;  %v1373_v26 = vld [vmem:[%s1742_s1 + $0x238] sm:$0xff]  ;;  %v943_v33 = vor.u32 %v1290_v25, %v942_v24  ;;  %v1372_v37 = vld [vmem:[%s1742_s1 + $0x230] sm:$0xff] }
  0x1d   :  { %765 = vmatpush.bf16.msra.mxu3 %v1327_v27  ;;  %v1358_v23 = vld [vmem:[%s1742_s1 + $0x1c0] sm:$0xff]  ;;  %v1286_v27 = vld [vmem:[%s1743_s0 + $0x14] sm:$0xf] }
  0x1e   :  { %709 = vmatpush.bf16.msra.mxu0 %v1302_v28  ;;  %v944_v28 = vld [vmem:[%s1743_s0 + $0x34] sm:$0xf0]  ;;  %v952_v32 = vld [vmem:[%s1743_s0 + $0x3c] sm:$0xf0] }
  0x1f   :  { %728 = vmatpush.bf16.msra.mxu1 %v1310_v29  ;;  %v950_v29 = vld [vmem:[%s1743_s0 + $0x18] sm:$0xf]  ;;  %v947_v34 = vor.u32 %v1286_v27, %v944_v28  ;;  %v1370_v39 = vld [vmem:[%s1742_s1 + $0x220] sm:$0xff] }
  0x20   :  { %747 = vmatpush.bf16.msra.mxu2 %v1318_v30  ;;  %v1291_v30 = vld [vmem:[%s1743_s0 + $0x38] sm:$0xf0] }
  0x21   :  { %766 = vmatpush.bf16.msra.mxu3 %v1326_v31  ;;  %710 = vmatmul.bf16.vlgmr.msra.gmra.mxu0 %v927_v42  ;;  %v1287_v31 = vld [vmem:[%s1743_s0 + $0x1c] sm:$0xf]  ;;  %v951_v35 = vor.u32 %v1291_v30, %v950_v29 }
  0x22   :  { %778 = vmatpush.bf16.msrb.mxu0 %v1341_v40  ;;  %729 = vmatmul.bf16.vlgmr.msra.gmra.mxu1 %v931_v43  ;;  %v955_v36 = vor.u32 %v1287_v31, %v952_v32  ;;  %v978_v40 = vld [vmem:[%s1743_s0 + $0x58] sm:$0xf]  ;;  %v1295_v42 = vld [vmem:[%s1743_s0 + $0x5c] sm:$0xf]  ;;  %v980_v43 = vld [vmem:[%s1743_s0 + $0x7c] sm:$0xf0] }
  0x23   :  { %797 = vmatpush.bf16.msrb.mxu1 %v1349_v41  ;;  %748 = vmatmul.bf16.vlgmr.msra.gmra.mxu2 %v935_v44  ;;  %v1299_v41 = vld [vmem:[%s1743_s0 + $0x78] sm:$0xf0]  ;;  %v986_v44 = vld [vmem:[%s1743_s0 + $0x60] sm:$0xf] }
  0x24   :  { %767 = vmatmul.bf16.vlgmr.msra.gmra.mxu3 %v939_v45  ;;  %816 = vmatpush.bf16.msrb.mxu2 %v1357_v46  ;;  %v1300_v45 = vld [vmem:[%s1743_s0 + $0x80] sm:$0xf0] }
  0x25   :  { %835 = vmatpush.bf16.msrb.mxu3 %v1365_v47  ;;  %v1296_v46 = vld [vmem:[%s1743_s0 + $0x64] sm:$0xf]  ;;  %v988_v47 = vld [vmem:[%s1743_s0 + $0x84] sm:$0xf0] }
  0x26   :  { %779 = vmatpush.bf16.msrb.mxu0 %v1340_v48  ;;  %v1369_v48 = vld [vmem:[%s1742_s1 + $0x218] sm:$0xff] }
  0x27   :  { %798 = vmatpush.bf16.msrb.mxu1 %v1348_v49  ;;  %v979_v49 = vor.u32 %v1299_v41, %v978_v40 }
  0x28   :  { %817 = vmatpush.bf16.msrb.mxu2 %v1356_v50  ;;  %v983_v50 = vor.u32 %v1295_v42, %v980_v43 }
  0x29   :  { %836 = vmatpush.bf16.msrb.mxu3 %v1364_v51  ;;  %v987_v51 = vor.u32 %v1300_v45, %v986_v44 }
  0x2a   :  { %780 = vmatpush.bf16.msrb.mxu0 %v1339_v52  ;;  %v991_v52 = vor.u32 %v1296_v46, %v988_v47 }
  0x2b   :  { %799 = vmatpush.bf16.msrb.mxu1 %v1347_v53  ;;  %v1368_v53 = vld [vmem:[%s1742_s1 + $0x210] sm:$0xff] }
  0x2c   :  { %818 = vmatpush.bf16.msrb.mxu2 %v1355_v54  ;;  %v1367_v54 = vld [vmem:[%s1742_s1 + $0x208] sm:$0xff] }
  0x2d   :  { %837 = vmatpush.bf16.msrb.mxu3 %v1363_v55  ;;  %v1366_v55 = vld [vmem:[%s1742_s1 + $0x200] sm:$0xff] }
  0x2e   :  { %781 = vmatpush.bf16.msrb.mxu0 %v1338_v56  ;;  %v958_v56 = vld [vmem:[%s1743_s0 + $0x20] sm:$0xf] }
  0x2f   :  { %800 = vmatpush.bf16.msrb.mxu1 %v1346_v57  ;;  %v1292_v57 = vld [vmem:[%s1743_s0 + $0x40] sm:$0xf0] }
  0x30   :  { %819 = vmatpush.bf16.msrb.mxu2 %v1354_v58  ;;  %v994_v58 = vld [vmem:[%s1743_s0 + $0x68] sm:$0xf]  ;;  %v959_v60 = vor.u32 %v1292_v57, %v958_v56 }
  0x31   :  { %838 = vmatpush.bf16.msrb.mxu3 %v1362_v59  ;;  %715 = vmatmul.bf16.gmra.mxu0 %v963_v6  ;;  %v1301_v59 = vld [vmem:[%s1743_s0 + $0x88] sm:$0xf0] }
  0x32   :  { %782 = vmatpush.bf16.msrb.mxu0 %v1337_v4  ;;  %734 = vmatmul.bf16.gmra.mxu1 %v967_v7  ;;  %v995_v61 = vor.u32 %v1301_v59, %v994_v58 }
  0x33   :  { %801 = vmatpush.bf16.msrb.mxu1 %v1345_v5  ;;  %753 = vmatmul.bf16.gmra.mxu2 %v971_v8 }
  0x34   :  { %772 = vmatmul.bf16.gmra.mxu3 %v975_v9  ;;  %820 = vmatpush.bf16.msrb.mxu2 %v1353_v10 }
  0x35   :  { %839 = vmatpush.bf16.msrb.mxu3 %v1361_v11 }
  0x36   :  { %783 = vmatpush.bf16.msrb.mxu0 %v1336_v12 }
  0x37   :  { %802 = vmatpush.bf16.msrb.mxu1 %v1344_v13 }
  0x38   :  { %821 = vmatpush.bf16.msrb.mxu2 %v1352_v14 }
  0x39   :  { %840 = vmatpush.bf16.msrb.mxu3 %v1360_v15 }
  0x3a   :  { %784 = vmatpush.bf16.msrb.mxu0 %v1335_v16 }
  0x3b   :  { %803 = vmatpush.bf16.msrb.mxu1 %v1343_v17 }
  0x3c   :  { %822 = vmatpush.bf16.msrb.mxu2 %v1351_v18 }
  0x3d   :  { %841 = vmatpush.bf16.msrb.mxu3 %v1359_v19 }
  0x3e   :  { %785 = vmatpush.bf16.msrb.mxu0 %v1334_v20 }
  0x3f   :  { %804 = vmatpush.bf16.msrb.mxu1 %v1342_v21 }
  0x40   :  { %823 = vmatpush.bf16.msrb.mxu2 %v1350_v22 }
  0x41   :  { %842 = vmatpush.bf16.msrb.mxu3 %v1358_v23  ;;  %786 = vmatmul.bf16.vlgmr.msrb.gmra.mxu0 %v943_v33 }
  0x42   :  { %854 = vmatpush.bf16.msra.mxu0 %v1373_v26  ;;  %805 = vmatmul.bf16.vlgmr.msrb.gmra.mxu1 %v947_v34 }
  0x43   :  { %1374 = vmatpush.bf16.msra.mxu1 %v1373_v26  ;;  %824 = vmatmul.bf16.vlgmr.msrb.gmra.mxu2 %v951_v35 }
  0x44   :  { %843 = vmatmul.bf16.vlgmr.msrb.gmra.mxu3 %v955_v36 }
  0x46   :  { %855 = vmatpush.bf16.msra.mxu0 %v1372_v37 }
  0x47   :  { %1375 = vmatpush.bf16.msra.mxu1 %v1372_v37 }
  0x4a   :  { %856 = vmatpush.bf16.msra.mxu0 %v1371_v38 }
  0x4b   :  { %1376 = vmatpush.bf16.msra.mxu1 %v1371_v38 }
  0x4e   :  { %857 = vmatpush.bf16.msra.mxu0 %v1370_v39 }
  0x4f   :  { %1377 = vmatpush.bf16.msra.mxu1 %v1370_v39 }
  0x51   :  { %791 = vmatmul.bf16.gmra.mxu0 %v979_v49 }
  0x52   :  { %858 = vmatpush.bf16.msra.mxu0 %v1369_v48  ;;  %810 = vmatmul.bf16.gmra.mxu1 %v983_v50 }
  0x53   :  { %1378 = vmatpush.bf16.msra.mxu1 %v1369_v48  ;;  %829 = vmatmul.bf16.gmra.mxu2 %v987_v51  ;;  %v1382_v51 = vld [vmem:[%s1744_s2] ss:$0 sm:$0xff] }
  0x54   :  { %848 = vmatmul.bf16.gmra.mxu3 %v991_v52 }
  0x56   :  { %859 = vmatpush.bf16.msra.mxu0 %v1368_v53 }
  0x57   :  { %1379 = vmatpush.bf16.msra.mxu1 %v1368_v53 }
  0x5a   :  { %860 = vmatpush.bf16.msra.mxu0 %v1367_v54 }
  0x5b   :  { %1380 = vmatpush.bf16.msra.mxu1 %v1367_v54 }
  0x5e   :  { %861 = vmatpush.bf16.msra.mxu0 %v1366_v55 }
  0x5f   :  { %1381 = vmatpush.bf16.msra.mxu1 %v1366_v55 }
  0x61   :  { %862 = vmatmul.bf16.vlgmr.msra.gmra.mxu0 %v959_v60 }
  0x62   :  { %867 = vmatmul.bf16.vlgmr.msra.gmra.mxu1 %v995_v61 }
  0x9e   :  { %v711_v62 = vpop.f32.mrf.mxu0 }
  0x9f   :  { %v730_v63 = vpop.f32.mrf.mxu1 }
  0xa0   :  { %v731_v20 = vadd.f32 %v730_v63, %v711_v62 }
  0xa6   :  { %v749_v0 = vpop.f32.mrf.mxu2  ;;  %v713_v2 = vpop.f32.mrf.mxu0 }
  0xa7   :  { %v768_v1 = vpop.f32.mrf.mxu3  ;;  %v732_v3 = vpop.f32.mrf.mxu1  ;;  %v750_v22 = vadd.f32 %v749_v0, %v731_v20 }
  0xa8   :  { %v733_v30 = vadd.f32 %v732_v3, %v713_v2 }
  0xa9   :  { %v769_v28 = vadd.f32 %v768_v1, %v750_v22 }
  0xae   :  { %v751_v4 = vpop.f32.mrf.mxu2  ;;  %v716_v6 = vpop.f32.mrf.mxu0 }
  0xaf   :  { %v770_v5 = vpop.f32.mrf.mxu3  ;;  %v735_v7 = vpop.f32.mrf.mxu1  ;;  %v752_v34 = vadd.f32 %v751_v4, %v733_v30 }
  0xb0   :  { %v736_v21 = vadd.f32 %v735_v7, %v716_v6 }
  0xb1   :  { %v771_v41 = vadd.f32 %v770_v5, %v752_v34 }
  0xb6   :  { %v754_v8 = vpop.f32.mrf.mxu2  ;;  %v718_v10 = vpop.f32.mrf.mxu0 }
  0xb7   :  { %v773_v9 = vpop.f32.mrf.mxu3  ;;  %v737_v11 = vpop.f32.mrf.mxu1  ;;  %v755_v23 = vadd.f32 %v754_v8, %v736_v21 }
  0xb8   :  { %v738_v31 = vadd.f32 %v737_v11, %v718_v10 }
  0xb9   :  { %v774_v29 = vadd.f32 %v773_v9, %v755_v23 }
  0xbe   :  { %v756_v12 = vpop.f32.mrf.mxu2  ;;  %v787_v14 = vpop.f32.mrf.mxu0 }
  0xbf   :  { %v775_v13 = vpop.f32.mrf.mxu3  ;;  %v806_v15 = vpop.f32.mrf.mxu1  ;;  %v788_v32 = vadd.f32 %v787_v14, %v769_v28  ;;  %v757_v35 = vadd.f32 %v756_v12, %v738_v31 }
  0xc1   :  { %v807_v39 = vadd.f32 %v806_v15, %v788_v32  ;;  %v776_v42 = vadd.f32 %v775_v13, %v757_v35 }
  0xc6   :  { %v825_v16 = vpop.f32.mrf.mxu2  ;;  %v789_v18 = vpop.f32.mrf.mxu0 }
  0xc7   :  { %v844_v17 = vpop.f32.mrf.mxu3  ;;  %v808_v19 = vpop.f32.mrf.mxu1  ;;  %v826_v43 = vadd.f32 %v825_v16, %v807_v39  ;;  %v790_v46 = vadd.f32 %v789_v18, %v771_v41 }
  0xc9   :  { %v845_v48 = vadd.f32 %v844_v17, %v826_v43  ;;  %v809_v54 = vadd.f32 %v808_v19, %v790_v46 }
  0xce   :  { %v827_v24 = vpop.f32.mrf.mxu2  ;;  %v792_v25 = vpop.f32.mrf.mxu0 }
  0xcf   :  { %v811_v26 = vpop.f32.mrf.mxu1  ;;  %v846_v27 = vpop.f32.mrf.mxu3  ;;  %v793_v33 = vadd.f32 %v792_v25, %v774_v29  ;;  %v828_v58 = vadd.f32 %v827_v24, %v809_v54 }
  0xd1   :  { %v812_v40 = vadd.f32 %v811_v26, %v793_v33  ;;  %v847_v1 = vadd.f32 %v846_v27, %v828_v58 }
  0xd6   :  { %v830_v36 = vpop.f32.mrf.mxu2  ;;  %v794_v37 = vpop.f32.mrf.mxu0 }
  0xd7   :  { %v813_v38 = vpop.f32.mrf.mxu1  ;;  %v831_v44 = vadd.f32 %v830_v36, %v812_v40  ;;  %v849_v45 = vpop.f32.mrf.mxu3  ;;  %v795_v47 = vadd.f32 %v794_v37, %v776_v42 }
  0xd9   :  { %v850_v49 = vadd.f32 %v849_v45, %v831_v44  ;;  %v814_v55 = vadd.f32 %v813_v38, %v795_v47 }
  0xde   :  { %v832_v50 = vpop.f32.mrf.mxu2  ;;  %v863_v52 = vpop.f32.mrf.mxu0 }
  0xdf   :  { %v868_v53 = vpop.f32.mrf.mxu1  ;;  %v864_v56 = vadd.f32 %v863_v52, %v845_v48  ;;  %v833_v59 = vadd.f32 %v832_v50, %v814_v55  ;;  %v851_v0 = vpop.f32.mrf.mxu3 }
  0xe0   :  { %v869_v57 = vadd.f32 %v868_v53, %v850_v49 }
  0xe1   :  { %v908_v60 = vadd.f32 %v1382_v51, %v864_v56  ;;  %v852_v2 = vadd.f32 %v851_v0, %v833_v59 }
  0xe2   :  { %v910_v61 = vadd.f32 %v1382_v51, %v869_v57 }
  0xe3   :  { %v912_v62 = vmax.f32 %v908_v60, 0.0 }
  0xe4   :  { %v914_v63 = vmax.f32 %v910_v61, 0.0 }
  0xe5   :  { %916 = vst [vmem:[%s1745_s3] sm:$0xff] %v912_v62 }
  0xe6   :  { %918 = vst [vmem:[%s1745_s3 + $0x10] sm:$0xff] %v914_v63  ;;  %v865_v3 = vpop.f32.mrf.mxu0 }
  0xe7   :  { %v870_v4 = vpop.f32.mrf.mxu1  ;;  %v866_v5 = vadd.f32 %v865_v3, %v847_v1 }
  0xe8   :  { %v871_v6 = vadd.f32 %v870_v4, %v852_v2 }
  0xe9   :  { %v909_v7 = vadd.f32 %v1382_v51, %v866_v5 }
  0xea   :  { %v911_v8 = vadd.f32 %v1382_v51, %v871_v6 }
  0xeb   :  { %v913_v9 = vmax.f32 %v909_v7, 0.0 }
  0xec   :  { %v915_v10 = vmax.f32 %v911_v8, 0.0 }
  0xed   :  { %917 = vst [vmem:[%s1745_s3 + $0x8] sm:$0xff] %v913_v9 }
  0xee   :  { %919 = vst [vmem:[%s1745_s3 + $0x18] sm:$0xff] %v915_v10 }

// kernel: s_cnn_forward.20
= control target key start
LH: loop header
LB: loop body
LE: loop exit
PB: predicated region body
PF: predicated region fallthrough
CT: control target
= control target key end

     0   :  { %s1389_s1 = inlined_call_operand.vmem [shape: bf16[1152,128], index: 1, kind: input, shape index: {}]   ;;  %s1390_s0 = inlined_call_operand.vmem [shape: bf16[8,1152], index: 0, kind: input, shape index: {}]   ;;  %s1391_s2 = inlined_call_operand.vmem [shape: f32[1,128], index: 2, kind: input, shape index: {}]   ;;  %s1392_s3 = inlined_call_operand.vmem [shape: f32[8,128], index: 3, kind: output, shape index: {}]  }
   0x1   :  { %v1066_v0 = vld [vmem:[%s1389_s1 + $0x38] sm:$0xff]  ;;  %v1065_v4 = vld [vmem:[%s1389_s1 + $0x30] sm:$0xff]  ;;  %v1064_v8 = vld [vmem:[%s1389_s1 + $0x28] sm:$0xff] }
   0x2   :  { %v1082_v1 = vld [vmem:[%s1389_s1 + $0xb8] sm:$0xff]  ;;  %627 = vmatpush.bf16.msra.mxu0 %v1066_v0  ;;  %v1081_v5 = vld [vmem:[%s1389_s1 + $0xb0] sm:$0xff]  ;;  %v1080_v9 = vld [vmem:[%s1389_s1 + $0xa8] sm:$0xff] }
   0x3   :  { %v1090_v2 = vld [vmem:[%s1389_s1 + $0xf8] sm:$0xff]  ;;  %653 = vmatpush.bf16.msra.mxu2 %v1082_v1  ;;  %v1089_v6 = vld [vmem:[%s1389_s1 + $0xf0] sm:$0xff]  ;;  %v1088_v10 = vld [vmem:[%s1389_s1 + $0xe8] sm:$0xff] }
   0x4   :  { %v1074_v3 = vld [vmem:[%s1389_s1 + $0x78] sm:$0xff]  ;;  %666 = vmatpush.bf16.msra.mxu3 %v1090_v2  ;;  %v1073_v7 = vld [vmem:[%s1389_s1 + $0x70] sm:$0xff]  ;;  %v1072_v11 = vld [vmem:[%s1389_s1 + $0x68] sm:$0xff] }
   0x5   :  { %640 = vmatpush.bf16.msra.mxu1 %v1074_v3  ;;  %v1063_v12 = vld [vmem:[%s1389_s1 + $0x20] sm:$0xff]  ;;  %v1062_v16 = vld [vmem:[%s1389_s1 + $0x18] sm:$0xff]  ;;  %v1061_v20 = vld [vmem:[%s1389_s1 + $0x10] sm:$0xff] }
   0x6   :  { %628 = vmatpush.bf16.msra.mxu0 %v1065_v4  ;;  %v1079_v13 = vld [vmem:[%s1389_s1 + $0xa0] sm:$0xff]  ;;  %v1078_v17 = vld [vmem:[%s1389_s1 + $0x98] sm:$0xff]  ;;  %v1077_v21 = vld [vmem:[%s1389_s1 + $0x90] sm:$0xff] }
   0x7   :  { %654 = vmatpush.bf16.msra.mxu2 %v1081_v5  ;;  %v1087_v14 = vld [vmem:[%s1389_s1 + $0xe0] sm:$0xff]  ;;  %v1086_v18 = vld [vmem:[%s1389_s1 + $0xd8] sm:$0xff]  ;;  %v1085_v22 = vld [vmem:[%s1389_s1 + $0xd0] sm:$0xff] }
   0x8   :  { %667 = vmatpush.bf16.msra.mxu3 %v1089_v6  ;;  %v1071_v15 = vld [vmem:[%s1389_s1 + $0x60] sm:$0xff]  ;;  %v1070_v19 = vld [vmem:[%s1389_s1 + $0x58] sm:$0xff]  ;;  %v1069_v23 = vld [vmem:[%s1389_s1 + $0x50] sm:$0xff] }
   0x9   :  { %641 = vmatpush.bf16.msra.mxu1 %v1073_v7  ;;  %v1060_v24 = vld [vmem:[%s1389_s1 + $0x8] sm:$0xff]  ;;  %v14_v29 = vld [vmem:[%s1390_s0] sm:$0xff]  ;;  %v1098_v34 = vld [vmem:[%s1389_s1 + $0x138] sm:$0xff] }
   0xa   :  { %629 = vmatpush.bf16.msra.mxu0 %v1064_v8  ;;  %v1076_v25 = vld [vmem:[%s1389_s1 + $0x88] sm:$0xff]  ;;  %v1059_v30 = vld [vmem:[%s1389_s1] sm:$0xff]  ;;  %v168_v33 = vunpack.c.l.b16 %v14_v29  ;;  %v1114_v35 = vld [vmem:[%s1389_s1 + $0x1b8] sm:$0xff]  ;;  %v169_v39 = vunpack.c.h.b16 %v14_v29 }
   0xb   :  { %655 = vmatpush.bf16.msra.mxu2 %v1080_v9  ;;  %v1084_v26 = vld [vmem:[%s1389_s1 + $0xc8] sm:$0xff]  ;;  %v1075_v31 = vld [vmem:[%s1389_s1 + $0x80] sm:$0xff]  ;;  %v1122_v40 = vld [vmem:[%s1389_s1 + $0x1f8] sm:$0xff] }
   0xc   :  { %668 = vmatpush.bf16.msra.mxu3 %v1088_v10  ;;  %v1068_v27 = vld [vmem:[%s1389_s1 + $0x48] sm:$0xff]  ;;  %v1083_v36 = vld [vmem:[%s1389_s1 + $0xc0] sm:$0xff]  ;;  %v1106_v41 = vld [vmem:[%s1389_s1 + $0x178] sm:$0xff]  ;;  %v177_v43 = vpack.c.b16 %v168_v33, %v168_v33  ;;  %v178_v47 = vpack.c.b16 %v169_v39, %v169_v39 }
   0xd   :  { %642 = vmatpush.bf16.msra.mxu1 %v1072_v11  ;;  %v15_v28 = vld [vmem:[%s1390_s0 + $0x8] sm:$0xff]  ;;  %v1067_v37 = vld [vmem:[%s1389_s1 + $0x40] sm:$0xff]  ;;  %v1097_v44 = vld [vmem:[%s1389_s1 + $0x130] sm:$0xff] }
   0xe   :  { %630 = vmatpush.bf16.msra.mxu0 %v1063_v12  ;;  %v170_v32 = vunpack.c.l.b16 %v15_v28  ;;  %v171_v38 = vunpack.c.h.b16 %v15_v28  ;;  %v1113_v45 = vld [vmem:[%s1389_s1 + $0x1b0] sm:$0xff]  ;;  %v1096_v50 = vld [vmem:[%s1389_s1 + $0x128] sm:$0xff]  ;;  %v1095_v54 = vld [vmem:[%s1389_s1 + $0x120] sm:$0xff] }
   0xf   :  { %656 = vmatpush.bf16.msra.mxu2 %v1079_v13  ;;  %v1121_v48 = vld [vmem:[%s1389_s1 + $0x1f0] sm:$0xff]  ;;  %v1112_v51 = vld [vmem:[%s1389_s1 + $0x1a8] sm:$0xff]  ;;  %v1111_v55 = vld [vmem:[%s1389_s1 + $0x1a0] sm:$0xff] }
  0x10   :  { %669 = vmatpush.bf16.msra.mxu3 %v1087_v14  ;;  %v179_v42 = vpack.c.b16 %v170_v32, %v170_v32  ;;  %v180_v46 = vpack.c.b16 %v171_v38, %v171_v38  ;;  %v1105_v49 = vld [vmem:[%s1389_s1 + $0x170] sm:$0xff]  ;;  %v1120_v52 = vld [vmem:[%s1389_s1 + $0x1e8] sm:$0xff]  ;;  %v1119_v56 = vld [vmem:[%s1389_s1 + $0x1e0] sm:$0xff] }
  0x11   :  { %643 = vmatpush.bf16.msra.mxu1 %v1071_v15  ;;  %v1104_v53 = vld [vmem:[%s1389_s1 + $0x168] sm:$0xff]  ;;  %v1103_v57 = vld [vmem:[%s1389_s1 + $0x160] sm:$0xff]  ;;  %v1094_v58 = vld [vmem:[%s1389_s1 + $0x118] sm:$0xff] }
  0x12   :  { %631 = vmatpush.bf16.msra.mxu0 %v1062_v16  ;;  %v1110_v59 = vld [vmem:[%s1389_s1 + $0x198] sm:$0xff]  ;;  %v1093_v62 = vld [vmem:[%s1389_s1 + $0x110] sm:$0xff]  ;;  %v1092_v2 = vld [vmem:[%s1389_s1 + $0x108] sm:$0xff] }
  0x13   :  { %657 = vmatpush.bf16.msra.mxu2 %v1078_v17  ;;  %v1118_v60 = vld [vmem:[%s1389_s1 + $0x1d8] sm:$0xff]  ;;  %v1109_v63 = vld [vmem:[%s1389_s1 + $0x190] sm:$0xff]  ;;  %v1108_v3 = vld [vmem:[%s1389_s1 + $0x188] sm:$0xff] }
  0x14   :  { %670 = vmatpush.bf16.msra.mxu3 %v1086_v18  ;;  %v1102_v61 = vld [vmem:[%s1389_s1 + $0x158] sm:$0xff]  ;;  %v1117_v0 = vld [vmem:[%s1389_s1 + $0x1d0] sm:$0xff]  ;;  %v1116_v6 = vld [vmem:[%s1389_s1 + $0x1c8] sm:$0xff] }
  0x15   :  { %644 = vmatpush.bf16.msra.mxu1 %v1070_v19  ;;  %v1101_v1 = vld [vmem:[%s1389_s1 + $0x150] sm:$0xff]  ;;  %v17_v4 = vld [vmem:[%s1390_s0 + $0x18] sm:$0xff]  ;;  %v1100_v7 = vld [vmem:[%s1389_s1 + $0x148] sm:$0xff] }
  0x16   :  { %632 = vmatpush.bf16.msra.mxu0 %v1061_v20  ;;  %v16_v5 = vld [vmem:[%s1390_s0 + $0x10] sm:$0xff]  ;;  %v174_v8 = vunpack.c.l.b16 %v17_v4  ;;  %v1091_v10 = vld [vmem:[%s1389_s1 + $0x100] sm:$0xff]  ;;  %v1130_v12 = vld [vmem:[%s1389_s1 + $0x238] sm:$0xff]  ;;  %v175_v13 = vunpack.c.h.b16 %v17_v4 }
  0x17   :  { %658 = vmatpush.bf16.msra.mxu2 %v1077_v21  ;;  %v172_v9 = vunpack.c.l.b16 %v16_v5  ;;  %v1107_v11 = vld [vmem:[%s1389_s1 + $0x180] sm:$0xff]  ;;  %v173_v16 = vunpack.c.h.b16 %v16_v5  ;;  %v1129_v19 = vld [vmem:[%s1389_s1 + $0x230] sm:$0xff] }
  0x18   :  { %671 = vmatpush.bf16.msra.mxu3 %v1085_v22  ;;  %v1115_v14 = vld [vmem:[%s1389_s1 + $0x1c0] sm:$0xff]  ;;  %v183_v17 = vpack.c.b16 %v174_v8, %v174_v8  ;;  %v184_v20 = vpack.c.b16 %v175_v13, %v175_v13  ;;  %v1128_v22 = vld [vmem:[%s1389_s1 + $0x228] sm:$0xff] }
  0x19   :  { %645 = vmatpush.bf16.msra.mxu1 %v1069_v23  ;;  %v1099_v15 = vld [vmem:[%s1389_s1 + $0x140] sm:$0xff]  ;;  %v181_v18 = vpack.c.b16 %v172_v9, %v172_v9  ;;  %v182_v21 = vpack.c.b16 %v173_v16, %v173_v16 }
  0x1a   :  { %633 = vmatpush.bf16.msra.mxu0 %v1060_v24  ;;  %v1127_v23 = vld [vmem:[%s1389_s1 + $0x220] sm:$0xff]  ;;  %v1126_v24 = vld [vmem:[%s1389_s1 + $0x218] sm:$0xff] }
  0x1b   :  { %659 = vmatpush.bf16.msra.mxu2 %v1076_v25  ;;  %v1125_v25 = vld [vmem:[%s1389_s1 + $0x210] sm:$0xff]  ;;  %v1123_v29 = vld [vmem:[%s1389_s1 + $0x200] sm:$0xff] }
  0x1c   :  { %672 = vmatpush.bf16.msra.mxu3 %v1084_v26  ;;  %v1124_v26 = vld [vmem:[%s1389_s1 + $0x208] sm:$0xff] }
  0x1d   :  { %646 = vmatpush.bf16.msra.mxu1 %v1068_v27  ;;  %v18_v27 = vld [vmem:[%s1390_s0 + $0x20] sm:$0xf] }
  0x1e   :  { %634 = vmatpush.bf16.msra.mxu0 %v1059_v30  ;;  %v176_v28 = vunpack.c.l.b16 %v18_v27 }
  0x1f   :  { %660 = vmatpush.bf16.msra.mxu2 %v1075_v31 }
  0x20   :  { %673 = vmatpush.bf16.msra.mxu3 %v1083_v36  ;;  %v185_v30 = vpack.c.b16 %v176_v28, %v176_v28 }
  0x21   :  { %647 = vmatpush.bf16.msra.mxu1 %v1067_v37  ;;  %635 = vmatmul.bf16.vlgmr.msra.gmra.mxu0 %v177_v43 }
  0x22   :  { %679 = vmatpush.bf16.msrb.mxu0 %v1098_v34  ;;  %661 = vmatmul.bf16.vlgmr.msra.gmra.mxu2 %v179_v42 }
  0x23   :  { %705 = vmatpush.bf16.msrb.mxu2 %v1114_v35  ;;  %674 = vmatmul.bf16.vlgmr.msra.gmra.mxu3 %v180_v46 }
  0x24   :  { %718 = vmatpush.bf16.msrb.mxu3 %v1122_v40  ;;  %648 = vmatmul.bf16.vlgmr.msra.gmra.mxu1 %v178_v47 }
  0x25   :  { %692 = vmatpush.bf16.msrb.mxu1 %v1106_v41 }
  0x26   :  { %680 = vmatpush.bf16.msrb.mxu0 %v1097_v44 }
  0x27   :  { %706 = vmatpush.bf16.msrb.mxu2 %v1113_v45 }
  0x28   :  { %719 = vmatpush.bf16.msrb.mxu3 %v1121_v48 }
  0x29   :  { %693 = vmatpush.bf16.msrb.mxu1 %v1105_v49 }
  0x2a   :  { %681 = vmatpush.bf16.msrb.mxu0 %v1096_v50 }
  0x2b   :  { %707 = vmatpush.bf16.msrb.mxu2 %v1112_v51 }
  0x2c   :  { %720 = vmatpush.bf16.msrb.mxu3 %v1120_v52 }
  0x2d   :  { %694 = vmatpush.bf16.msrb.mxu1 %v1104_v53 }
  0x2e   :  { %682 = vmatpush.bf16.msrb.mxu0 %v1095_v54  ;;  %v1131_v54 = vld [vmem:[%s1391_s2] ss:$0 sm:$0xff] }
  0x2f   :  { %708 = vmatpush.bf16.msrb.mxu2 %v1111_v55 }
  0x30   :  { %721 = vmatpush.bf16.msrb.mxu3 %v1119_v56 }
  0x31   :  { %695 = vmatpush.bf16.msrb.mxu1 %v1103_v57 }
  0x32   :  { %683 = vmatpush.bf16.msrb.mxu0 %v1094_v58 }
  0x33   :  { %709 = vmatpush.bf16.msrb.mxu2 %v1110_v59 }
  0x34   :  { %722 = vmatpush.bf16.msrb.mxu3 %v1118_v60 }
  0x35   :  { %696 = vmatpush.bf16.msrb.mxu1 %v1102_v61 }
  0x36   :  { %684 = vmatpush.bf16.msrb.mxu0 %v1093_v62 }
  0x37   :  { %710 = vmatpush.bf16.msrb.mxu2 %v1109_v63 }
  0x38   :  { %723 = vmatpush.bf16.msrb.mxu3 %v1117_v0 }
  0x39   :  { %697 = vmatpush.bf16.msrb.mxu1 %v1101_v1 }
  0x3a   :  { %685 = vmatpush.bf16.msrb.mxu0 %v1092_v2 }
  0x3b   :  { %711 = vmatpush.bf16.msrb.mxu2 %v1108_v3 }
  0x3c   :  { %724 = vmatpush.bf16.msrb.mxu3 %v1116_v6 }
  0x3d   :  { %698 = vmatpush.bf16.msrb.mxu1 %v1100_v7 }
  0x3e   :  { %686 = vmatpush.bf16.msrb.mxu0 %v1091_v10 }
  0x3f   :  { %712 = vmatpush.bf16.msrb.mxu2 %v1107_v11 }
  0x40   :  { %725 = vmatpush.bf16.msrb.mxu3 %v1115_v14 }
  0x41   :  { %699 = vmatpush.bf16.msrb.mxu1 %v1099_v15  ;;  %687 = vmatmul.bf16.vlgmr.msrb.gmra.mxu0 %v181_v18 }
  0x42   :  { %731 = vmatpush.bf16.msra.mxu0 %v1130_v12  ;;  %713 = vmatmul.bf16.vlgmr.msrb.gmra.mxu2 %v183_v17 }
  0x43   :  { %726 = vmatmul.bf16.vlgmr.msrb.gmra.mxu3 %v184_v20 }
  0x44   :  { %700 = vmatmul.bf16.vlgmr.msrb.gmra.mxu1 %v182_v21 }
  0x46   :  { %732 = vmatpush.bf16.msra.mxu0 %v1129_v19 }
  0x4a   :  { %733 = vmatpush.bf16.msra.mxu0 %v1128_v22 }
  0x4e   :  { %734 = vmatpush.bf16.msra.mxu0 %v1127_v23 }
  0x52   :  { %735 = vmatpush.bf16.msra.mxu0 %v1126_v24 }
  0x56   :  { %736 = vmatpush.bf16.msra.mxu0 %v1125_v25 }
  0x5a   :  { %737 = vmatpush.bf16.msra.mxu0 %v1124_v26 }
  0x5e   :  { %738 = vmatpush.bf16.msra.mxu0 %v1123_v29 }
  0x61   :  { %739 = vmatmul.bf16.vlgmr.msra.gmra.mxu0 %v185_v30 }
  0x9e   :  { %v636_v31 = vpop.f32.mrf.mxu0 }
  0xa1   :  { %v649_v32 = vpop.f32.mrf.mxu1 }
  0xa2   :  { %v650_v41 = vadd.f32 %v649_v32, %v636_v31 }
  0xa5   :  { %v662_v33 = vpop.f32.mrf.mxu2 }
  0xa6   :  { %v675_v34 = vpop.f32.mrf.mxu3  ;;  %v638_v35 = vpop.f32.mrf.mxu0  ;;  %v663_v43 = vadd.f32 %v662_v33, %v650_v41 }
  0xa8   :  { %v676_v47 = vadd.f32 %v675_v34, %v663_v43 }
  0xa9   :  { %v651_v36 = vpop.f32.mrf.mxu1 }
  0xad   :  { %v664_v37 = vpop.f32.mrf.mxu2 }
  0xae   :  { %v677_v38 = vpop.f32.mrf.mxu3 }
  0xbe   :  { %v688_v39 = vpop.f32.mrf.mxu0 }
  0xbf   :  { %v689_v49 = vadd.f32 %v688_v39, %v676_v47 }
  0xc1   :  { %v701_v40 = vpop.f32.mrf.mxu1 }
  0xc2   :  { %v702_v51 = vadd.f32 %v701_v40, %v689_v49 }
  0xc5   :  { %v714_v42 = vpop.f32.mrf.mxu2 }
  0xc6   :  { %v727_v44 = vpop.f32.mrf.mxu3  ;;  %v690_v45 = vpop.f32.mrf.mxu0  ;;  %v715_v52 = vadd.f32 %v714_v42, %v702_v51 }
  0xc8   :  { %v728_v53 = vadd.f32 %v727_v44, %v715_v52 }
  0xc9   :  { %v703_v46 = vpop.f32.mrf.mxu1 }
  0xcd   :  { %v716_v48 = vpop.f32.mrf.mxu2 }
  0xce   :  { %v729_v50 = vpop.f32.mrf.mxu3 }
  0xde   :  { %v740_v55 = vpop.f32.mrf.mxu0 }
  0xdf   :  { %v741_v56 = vadd.f32 %v740_v55, %v728_v53 }
  0xe1   :  { %v764_v57 = vadd.f32 %v1131_v54, %v741_v56 }
  0xe3   :  { %v765_v58 = vmax.f32 %v764_v57, 0.0 }
  0xe5   :  { %766 = vst [vmem:[%s1392_s3] sm:$0xff] %v765_v58 }
  0xe6   :  { %v742_v59 = vpop.f32.mrf.mxu0 }

// kernel: s_cnn_forward.22
= control target key start
LH: loop header
LB: loop body
LE: loop exit
PB: predicated region body
PF: predicated region fallthrough
CT: control target
= control target key end

     0   :  { %vm144_vm0 = vcmask 1041408   ;;  %s391_s1 = inlined_call_operand.vmem [shape: bf16[128,256], index: 1, kind: input, shape index: {}]   ;;  %s392_s0 = inlined_call_operand.vmem [shape: bf16[2,128], index: 0, kind: input, shape index: {}]   ;;  %s393_s2 = inlined_call_operand.vmem [shape: f32[1,256], index: 2, kind: input, shape index: {}]   ;;  %s394_s3 = inlined_call_operand.vmem [shape: f32[2,256], index: 3, kind: output, shape index: {}]  }
   0x1   :  { %v238_v0 = vld [vmem:[%s391_s1 + $0x70] sm:$0xf]  ;;  %v259_v1 = vld [vmem:[%s391_s1 + $0x74] sm:$0xf0]  ;;  %v258_v2 = vld [vmem:[%s391_s1 + $0x74] sm:$0xf] }
   0x2   :  { %v239_v3 = vor.u32 %v259_v1, %v238_v0  ;;  %v240_v4 = vld [vmem:[%s391_s1 + $0x78] sm:$0xf0]  ;;  %v230_v5 = vld [vmem:[%s391_s1 + $0x60] sm:$0xf]  ;;  %v257_v6 = vld [vmem:[%s391_s1 + $0x64] sm:$0xf0] }
   0x3   :  { %v243_v7 = vor.u32 %v258_v2, %v240_v4  ;;  %v256_v8 = vld [vmem:[%s391_s1 + $0x64] sm:$0xf]  ;;  %v232_v9 = vld [vmem:[%s391_s1 + $0x68] sm:$0xf0]  ;;  %v231_v10 = vor.u32 %v257_v6, %v230_v5  ;;  %v222_v12 = vld [vmem:[%s391_s1 + $0x50] sm:$0xf] }
   0x4   :  { %111 = vmatpush.bf16.msra.mxu0 %v239_v3  ;;  %v235_v11 = vor.u32 %v256_v8, %v232_v9  ;;  %v255_v13 = vld [vmem:[%s391_s1 + $0x54] sm:$0xf0]  ;;  %v254_v14 = vld [vmem:[%s391_s1 + $0x54] sm:$0xf]  ;;  %v224_v15 = vld [vmem:[%s391_s1 + $0x58] sm:$0xf0] }
   0x5   :  { %124 = vmatpush.bf16.msra.mxu1 %v243_v7  ;;  %v223_v16 = vor.u32 %v255_v13, %v222_v12  ;;  %v227_v17 = vor.u32 %v254_v14, %v224_v15  ;;  %v214_v18 = vld [vmem:[%s391_s1 + $0x40] sm:$0xf]  ;;  %v253_v19 = vld [vmem:[%s391_s1 + $0x44] sm:$0xf0]  ;;  %v252_v20 = vld [vmem:[%s391_s1 + $0x44] sm:$0xf] }
   0x6   :  { %v216_v21 = vld [vmem:[%s391_s1 + $0x48] sm:$0xf0]  ;;  %v215_v22 = vor.u32 %v253_v19, %v214_v18  ;;  %v206_v24 = vld [vmem:[%s391_s1 + $0x30] sm:$0xf]  ;;  %v251_v25 = vld [vmem:[%s391_s1 + $0x34] sm:$0xf0] }
   0x7   :  { %v219_v23 = vor.u32 %v252_v20, %v216_v21  ;;  %v250_v26 = vld [vmem:[%s391_s1 + $0x34] sm:$0xf]  ;;  %v208_v27 = vld [vmem:[%s391_s1 + $0x38] sm:$0xf0]  ;;  %v207_v28 = vor.u32 %v251_v25, %v206_v24  ;;  %v198_v30 = vld [vmem:[%s391_s1 + $0x20] sm:$0xf] }
   0x8   :  { %112 = vmatpush.bf16.msra.mxu0 %v231_v10  ;;  %v211_v29 = vor.u32 %v250_v26, %v208_v27  ;;  %v249_v31 = vld [vmem:[%s391_s1 + $0x24] sm:$0xf0]  ;;  %v248_v32 = vld [vmem:[%s391_s1 + $0x24] sm:$0xf]  ;;  %v200_v33 = vld [vmem:[%s391_s1 + $0x28] sm:$0xf0] }
   0x9   :  { %125 = vmatpush.bf16.msra.mxu1 %v235_v11  ;;  %v199_v34 = vor.u32 %v249_v31, %v198_v30  ;;  %v203_v35 = vor.u32 %v248_v32, %v200_v33  ;;  %v190_v36 = vld [vmem:[%s391_s1 + $0x10] sm:$0xf]  ;;  %v247_v37 = vld [vmem:[%s391_s1 + $0x14] sm:$0xf0]  ;;  %v246_v38 = vld [vmem:[%s391_s1 + $0x14] sm:$0xf] }
   0xa   :  { %v192_v39 = vld [vmem:[%s391_s1 + $0x18] sm:$0xf0]  ;;  %v191_v40 = vor.u32 %v247_v37, %v190_v36  ;;  %v182_v42 = vld [vmem:[%s391_s1] sm:$0xf]  ;;  %v245_v43 = vld [vmem:[%s391_s1 + $0x4] sm:$0xf0] }
   0xb   :  { %v195_v41 = vor.u32 %v246_v38, %v192_v39  ;;  %v244_v44 = vld [vmem:[%s391_s1 + $0x4] sm:$0xf]  ;;  %v184_v45 = vld [vmem:[%s391_s1 + $0x8] sm:$0xf0]  ;;  %v183_v46 = vor.u32 %v245_v43, %v182_v42  ;;  %v14_v48 = vld [vmem:[%s392_s0] sm:$0x1] }
   0xc   :  { %113 = vmatpush.bf16.msra.mxu0 %v223_v16  ;;  %v187_v47 = vor.u32 %v244_v44, %v184_v45  ;;  %v165_v49 = vld [vmem:[%s393_s2] sm:$0x3] }
   0xd   :  { %126 = vmatpush.bf16.msra.mxu1 %v227_v17  ;;  %v168_v53 = vperm.slane %v165_v49, 1  ;;  %v167_v55 = vperm.slane %v165_v49, 0 }
   0xf   :  { %v169_v56 = vrot.slane %v168_v53, 6 }
  0x10   :  { %114 = vmatpush.bf16.msra.mxu0 %v215_v22 }
  0x11   :  { %127 = vmatpush.bf16.msra.mxu1 %v219_v23  ;;  %v171_v59 = vsel %vm144_vm0, %v167_v55, %v169_v56 }
  0x14   :  { %115 = vmatpush.bf16.msra.mxu0 %v207_v28 }
  0x15   :  { %128 = vmatpush.bf16.msra.mxu1 %v211_v29 }
  0x18   :  { %116 = vmatpush.bf16.msra.mxu0 %v199_v34 }
  0x19   :  { %129 = vmatpush.bf16.msra.mxu1 %v203_v35 }
  0x1c   :  { %117 = vmatpush.bf16.msra.mxu0 %v191_v40 }
  0x1d   :  { %130 = vmatpush.bf16.msra.mxu1 %v195_v41 }
  0x20   :  { %118 = vmatpush.bf16.msra.mxu0 %v183_v46 }
  0x21   :  { %131 = vmatpush.bf16.msra.mxu1 %v187_v47 }
  0x23   :  { %119 = vmatmul.bf16.vlgmr.msra.gmra.mxu0 %v14_v48 }
  0x24   :  { %132 = vmatmul.bf16.vlgmr.msra.gmra.mxu1 %v14_v48 }
  0xa0   :  { %v120_v50 = vpop.f32.mrf.mxu0 }
  0xa1   :  { %v133_v51 = vpop.f32.mrf.mxu1 }
  0xa2   :  { %v143_v52 = vrot.slane %v133_v51, 6 }
  0xa4   :  { %v145_v54 = vsel %vm144_vm0, %v120_v50, %v143_v52 }
  0xa5   :  { %147 = vst [vmem:[%s394_s3] sm:$0xf] %v145_v54 }
  0xa8   :  { %v122_v57 = vpop.f32.mrf.mxu0 }
  0xa9   :  { %v135_v58 = vpop.f32.mrf.mxu1 }
  0xac   :  { %v164_v60 = vld [vmem:[%s394_s3] sm:$0xf] }
  0xad   :  { %v173_v61 = vadd.f32 %v171_v59, %v164_v60 }
  0xaf   :  { %v174_v62 = vmax.f32 %v173_v61, 0.0 }
  0xb1   :  { %175 = vst [vmem:[%s394_s3] sm:$0xf] %v174_v62 }

// kernel: s_cnn_forward.21
= control target key start
LH: loop header
LB: loop body
LE: loop exit
PB: predicated region body
PF: predicated region fallthrough
CT: control target
= control target key end

     0   :  { %s2066_s12 = smov 0   ;;  %s2068_s13 = smov 0   ;;  %s2254_s0 = inlined_call_operand.vmem [shape: bf16[2,25088], index: 0, kind: input, shape index: {}]   ;;  %s2255_s1 = inlined_call_operand.vmem [shape: bf16[25088,128], index: 1, kind: input, shape index: {}]   ;;  %s2256_s2 = inlined_call_operand.vmem [shape: f32[1,128], index: 2, kind: input, shape index: {}]   ;;  %s2257_s3 = inlined_call_operand.vmem [shape: f32[2,128], index: 3, kind: output, shape index: {}]  }
   0x1   :  { %s2070_s14 = smov 0  }
   0x2 LB: > { %s22_s15 = sadd.s32 1, %s2040_s13  ;;  %p1429_p0 = scmp.ge.s32.totalorder %s2044_s14, 1  ;;  %s2044_s14 = sphi %s2070_s14, %s13_s14   ;;  %s2040_s13 = sphi %s2068_s13, %s2259_s13   ;;  %s2036_s12 = sphi %s2066_s12, %s2258_s12  }
   0x3   : > { %p23_p1 = scmp.ge.s32.totalorder %s22_s15, 14  ;;  %p166_p2 = scmp.lt.s32.totalorder %s2044_s14, 15 }
   0x5   : > { %s2261_s15 = smov (%p23_p1, %s22_s15), 0  ;;  %p167_p3 = pnand %p1429_p0, %p166_p2 }
   0x6   : > { %s206_s16 = smul.u32 (!%p167_p3), 224, %s2036_s12  ;;  %p1879_p6 = scmp.ne.s32.totalorder (!%p167_p3), %s2036_s12, 0 }
   0x7   : > { %170 = sbr.rel (%p167_p3) target bundleno = 304 (0x130), region = 32 }
   0x8   : > { %p207_p4 = scmp.lt.s32.totalorder (!%p167_p3), %s206_s16, 3135  ;;  %s197_s21 = smul.u32 (!%p167_p3), 14, %s2036_s12 }
   0xa   : > { %p200_p5 = scmp.lt.s32.totalorder (!%p167_p3), %s197_s21, 195 }
   0xc   : > { %s2263_s16 = smov (!%p207_p4, %s206_s16), 3135  ;;  %s2265_s21 = smov (!%p200_p5, %s197_s21), 195 }
   0xd   : > { %s1430_s17 = sshll.u32 %s2263_s16, 2  ;;  %s2114_s24 = scalar_lea.vmem %s2254_s0, %s2265_s21 }
   0xe   : > { %s2090_s20 = scalar_lea.vmem %s2255_s1, %s1430_s17  ;;  %v216_v20 = vld [vmem:[%s2114_s24] sm:$0xff]  ;;  %v217_v44 = vld [vmem:[%s2114_s24 + $0x8] sm:$0x3f] }
   0xf   : > { %v1892_v0 = vld [vmem:[%s2090_s20 + $0x38] sm:$0xff]  ;;  %v1891_v4 = vld [vmem:[%s2090_s20 + $0x30] sm:$0xff]  ;;  %v1890_v8 = vld [vmem:[%s2090_s20 + $0x28] sm:$0xff]  ;;  %443 = vst [vmem:[#allocation1] ss:$9 sm:$0xff] %v216_v20 }
  0x10   : > { %v1900_v1 = vld [vmem:[%s2090_s20 + $0x78] sm:$0xff]  ;;  %1146 = vmatpush.bf16.msra.mxu0 %v1892_v0  ;;  %v1899_v5 = vld [vmem:[%s2090_s20 + $0x70] sm:$0xff]  ;;  %v1898_v9 = vld [vmem:[%s2090_s20 + $0x68] sm:$0xff] }
  0x11   : > { %v1908_v2 = vld [vmem:[%s2090_s20 + $0xb8] sm:$0xff]  ;;  %1159 = vmatpush.bf16.msra.mxu1 %v1900_v1  ;;  %v1907_v6 = vld [vmem:[%s2090_s20 + $0xb0] sm:$0xff]  ;;  %v1906_v10 = vld [vmem:[%s2090_s20 + $0xa8] sm:$0xff] }
  0x12   : > { %v1916_v3 = vld [vmem:[%s2090_s20 + $0xf8] sm:$0xff]  ;;  %1172 = vmatpush.bf16.msra.mxu2 %v1908_v2  ;;  %v1915_v7 = vld [vmem:[%s2090_s20 + $0xf0] sm:$0xff]  ;;  %v1914_v11 = vld [vmem:[%s2090_s20 + $0xe8] sm:$0xff] }
  0x13   : > { %1185 = vmatpush.bf16.msra.mxu3 %v1916_v3  ;;  %v1889_v12 = vld [vmem:[%s2090_s20 + $0x20] sm:$0xff]  ;;  %v1888_v16 = vld [vmem:[%s2090_s20 + $0x18] sm:$0xff]  ;;  %v1887_v21 = vld [vmem:[%s2090_s20 + $0x10] sm:$0xff] }
  0x14   : > { %1147 = vmatpush.bf16.msra.mxu0 %v1891_v4  ;;  %v1897_v13 = vld [vmem:[%s2090_s20 + $0x60] sm:$0xff]  ;;  %v1896_v17 = vld [vmem:[%s2090_s20 + $0x58] sm:$0xff]  ;;  %v1895_v22 = vld [vmem:[%s2090_s20 + $0x50] sm:$0xff] }
  0x15   : > { %1160 = vmatpush.bf16.msra.mxu1 %v1899_v5  ;;  %v1905_v14 = vld [vmem:[%s2090_s20 + $0xa0] sm:$0xff]  ;;  %v1904_v18 = vld [vmem:[%s2090_s20 + $0x98] sm:$0xff]  ;;  %v1903_v23 = vld [vmem:[%s2090_s20 + $0x90] sm:$0xff] }
  0x16   : > { %1173 = vmatpush.bf16.msra.mxu2 %v1907_v6  ;;  %v1913_v15 = vld [vmem:[%s2090_s20 + $0xe0] sm:$0xff]  ;;  %v1912_v19 = vld [vmem:[%s2090_s20 + $0xd8] sm:$0xff]  ;;  %v1911_v24 = vld [vmem:[%s2090_s20 + $0xd0] sm:$0xff] }
  0x17   : > { %1186 = vmatpush.bf16.msra.mxu3 %v1915_v7  ;;  %v1886_v25 = vld [vmem:[%s2090_s20 + $0x8] sm:$0xff]  ;;  %v1885_v29 = vld [vmem:[%s2090_s20] sm:$0xff]  ;;  %v1924_v32 = vld [vmem:[%s2090_s20 + $0x138] sm:$0xff] }
  0x18   : > { %1148 = vmatpush.bf16.msra.mxu0 %v1890_v8  ;;  %v1894_v26 = vld [vmem:[%s2090_s20 + $0x48] sm:$0xff]  ;;  %v1893_v30 = vld [vmem:[%s2090_s20 + $0x40] sm:$0xff]  ;;  %v1932_v33 = vld [vmem:[%s2090_s20 + $0x178] sm:$0xff] }
  0x19   : > { %1161 = vmatpush.bf16.msra.mxu1 %v1898_v9  ;;  %v1902_v27 = vld [vmem:[%s2090_s20 + $0x88] sm:$0xff]  ;;  %v1901_v31 = vld [vmem:[%s2090_s20 + $0x80] sm:$0xff]  ;;  %v1940_v34 = vld [vmem:[%s2090_s20 + $0x1b8] sm:$0xff] }
  0x1a   : > { %1174 = vmatpush.bf16.msra.mxu2 %v1906_v10  ;;  %v1910_v28 = vld [vmem:[%s2090_s20 + $0xc8] sm:$0xff]  ;;  %v1909_v35 = vld [vmem:[%s2090_s20 + $0xc0] sm:$0xff]  ;;  %v1948_v36 = vld [vmem:[%s2090_s20 + $0x1f8] sm:$0xff] }
  0x1b   : > { %1187 = vmatpush.bf16.msra.mxu3 %v1914_v11  ;;  %v444_v37 = vld [vmem:[#allocation1] sm:$0xff]  ;;  %v1923_v38 = vld [vmem:[%s2090_s20 + $0x130] sm:$0xff]  ;;  %v1922_v45 = vld [vmem:[%s2090_s20 + $0x128] sm:$0xff] }
  0x1c   : > { %1149 = vmatpush.bf16.msra.mxu0 %v1889_v12  ;;  %v446_v39 = vld [vmem:[#allocation1 + $0x12] sm:$0xff]  ;;  %v445_v42 = vld [vmem:[#allocation1 + $0x9] sm:$0xff]  ;;  %v447_v46 = vld [vmem:[#allocation1 + $0x1b] sm:$0xff] }
  0x1d   : > { %1162 = vmatpush.bf16.msra.mxu1 %v1897_v13  ;;  %v1931_v40 = vld [vmem:[%s2090_s20 + $0x170] sm:$0xff]  ;;  %v2143_v48 = vld [vmem:[#allocation1 + $0x24] sm:$0xff]  ;;  %v1920_v58 = vld [vmem:[%s2090_s20 + $0x118] sm:$0xff] }
  0x1e   : > { %1175 = vmatpush.bf16.msra.mxu2 %v1905_v14  ;;  %v1939_v41 = vld [vmem:[%s2090_s20 + $0x1b0] sm:$0xff]  ;;  %v2145_v49 = vld [vmem:[#allocation1 + $0x3f] sm:$0xff]  ;;  %v1930_v51 = vld [vmem:[%s2090_s20 + $0x168] sm:$0xff] }
  0x1f   : > { %1188 = vmatpush.bf16.msra.mxu3 %v1913_v15  ;;  %v1947_v43 = vld [vmem:[%s2090_s20 + $0x1f0] sm:$0xff]  ;;  %v1938_v52 = vld [vmem:[%s2090_s20 + $0x1a8] sm:$0xff]  ;;  %v1921_v54 = vld [vmem:[%s2090_s20 + $0x120] sm:$0xff] }
  0x20   : > { %1150 = vmatpush.bf16.msra.mxu0 %v1888_v16  ;;  %v2141_v47 = vld [vmem:[#allocation1 + $0x36] sm:$0xff]  ;;  %v2147_v50 = vld [vmem:[#allocation1 + $0x2d] sm:$0xff]  ;;  %v1929_v55 = vld [vmem:[%s2090_s20 + $0x160] sm:$0xff] }
  0x21   : > { %1163 = vmatpush.bf16.msra.mxu1 %v1896_v17  ;;  %453 = vst [vmem:[#allocation1] ss:$9 sm:$0xff] %v217_v44  ;;  %v1946_v53 = vld [vmem:[%s2090_s20 + $0x1e8] sm:$0xff]  ;;  %v1937_v56 = vld [vmem:[%s2090_s20 + $0x1a0] sm:$0xff]  ;;  %v1928_v59 = vld [vmem:[%s2090_s20 + $0x158] sm:$0xff] }
  0x22   : > { %1176 = vmatpush.bf16.msra.mxu2 %v1904_v18  ;;  %v1945_v57 = vld [vmem:[%s2090_s20 + $0x1e0] sm:$0xff]  ;;  %v1936_v60 = vld [vmem:[%s2090_s20 + $0x198] sm:$0xff]  ;;  %v1919_v62 = vld [vmem:[%s2090_s20 + $0x110] sm:$0xff] }
  0x23   : > { %1189 = vmatpush.bf16.msra.mxu3 %v1912_v19  ;;  %v1944_v61 = vld [vmem:[%s2090_s20 + $0x1d8] sm:$0xff]  ;;  %v1927_v63 = vld [vmem:[%s2090_s20 + $0x150] sm:$0xff]  ;;  %v1918_v2 = vld [vmem:[%s2090_s20 + $0x108] sm:$0xff] }
  0x24   : > { %1151 = vmatpush.bf16.msra.mxu0 %v1887_v21  ;;  %v1935_v0 = vld [vmem:[%s2090_s20 + $0x190] sm:$0xff]  ;;  %v1926_v3 = vld [vmem:[%s2090_s20 + $0x148] sm:$0xff]  ;;  %v1917_v6 = vld [vmem:[%s2090_s20 + $0x100] sm:$0xff] }
  0x25   : > { %1164 = vmatpush.bf16.msra.mxu1 %v1895_v22  ;;  %v1943_v1 = vld [vmem:[%s2090_s20 + $0x1d0] sm:$0xff]  ;;  %v1934_v4 = vld [vmem:[%s2090_s20 + $0x188] sm:$0xff]  ;;  %v1925_v7 = vld [vmem:[%s2090_s20 + $0x140] sm:$0xff] }
  0x26   : > { %1177 = vmatpush.bf16.msra.mxu2 %v1903_v23  ;;  %v1942_v5 = vld [vmem:[%s2090_s20 + $0x1c8] sm:$0xff]  ;;  %v1933_v8 = vld [vmem:[%s2090_s20 + $0x180] sm:$0xff]  ;;  %v1956_v9 = vld [vmem:[%s2090_s20 + $0x238] sm:$0xff] }
  0x27   : > { %1190 = vmatpush.bf16.msra.mxu3 %v1911_v24  ;;  %v1964_v10 = vld [vmem:[%s2090_s20 + $0x278] sm:$0xff]  ;;  %v1941_v12 = vld [vmem:[%s2090_s20 + $0x1c0] sm:$0xff]  ;;  %v1955_v14 = vld [vmem:[%s2090_s20 + $0x230] sm:$0xff] }
  0x28   : > { %1152 = vmatpush.bf16.msra.mxu0 %v1886_v25  ;;  %v1972_v11 = vld [vmem:[%s2090_s20 + $0x2b8] sm:$0xff]  ;;  %v1963_v15 = vld [vmem:[%s2090_s20 + $0x270] sm:$0xff]  ;;  %v1954_v18 = vld [vmem:[%s2090_s20 + $0x228] sm:$0xff] }
  0x29   : > { %1165 = vmatpush.bf16.msra.mxu1 %v1894_v26  ;;  %v1980_v13 = vld [vmem:[%s2090_s20 + $0x2f8] sm:$0xff]  ;;  %v1971_v16 = vld [vmem:[%s2090_s20 + $0x2b0] sm:$0xff]  ;;  %v1962_v19 = vld [vmem:[%s2090_s20 + $0x268] sm:$0xff] }
  0x2a   : > { %1178 = vmatpush.bf16.msra.mxu2 %v1902_v27  ;;  %v1979_v17 = vld [vmem:[%s2090_s20 + $0x2f0] sm:$0xff]  ;;  %v1970_v20 = vld [vmem:[%s2090_s20 + $0x2a8] sm:$0xff]  ;;  %v1953_v22 = vld [vmem:[%s2090_s20 + $0x220] sm:$0xff] }
  0x2b   : > { %1191 = vmatpush.bf16.msra.mxu3 %v1910_v28  ;;  %v1978_v21 = vld [vmem:[%s2090_s20 + $0x2e8] sm:$0xff]  ;;  %v1961_v23 = vld [vmem:[%s2090_s20 + $0x260] sm:$0xff]  ;;  %v1952_v26 = vld [vmem:[%s2090_s20 + $0x218] sm:$0xff] }
  0x2c   : > { %1153 = vmatpush.bf16.msra.mxu0 %v1885_v29  ;;  %v1969_v24 = vld [vmem:[%s2090_s20 + $0x2a0] sm:$0xff]  ;;  %v1960_v27 = vld [vmem:[%s2090_s20 + $0x258] sm:$0xff] }
  0x2d   : > { %1166 = vmatpush.bf16.msra.mxu1 %v1893_v30  ;;  %v1977_v25 = vld [vmem:[%s2090_s20 + $0x2e0] sm:$0xff]  ;;  %v1968_v28 = vld [vmem:[%s2090_s20 + $0x298] sm:$0xff]  ;;  %v1951_v30 = vld [vmem:[%s2090_s20 + $0x210] sm:$0xff] }
  0x2e   : > { %1179 = vmatpush.bf16.msra.mxu2 %v1901_v31  ;;  %v1976_v29 = vld [vmem:[%s2090_s20 + $0x2d8] sm:$0xff]  ;;  %v1959_v31 = vld [vmem:[%s2090_s20 + $0x250] sm:$0xff]  ;;  %v454_v44 = vld [vmem:[#allocation1] sm:$0xff] }
  0x2f   : > { %1192 = vmatpush.bf16.msra.mxu3 %v1909_v35  ;;  %1154 = vmatmul.bf16.vlgmr.msra.gmra.mxu0 %v444_v37  ;;  %v1958_v35 = vld [vmem:[%s2090_s20 + $0x248] sm:$0xff] }
  0x30   : > { %1198 = vmatpush.bf16.msrb.mxu0 %v1924_v32  ;;  %1167 = vmatmul.bf16.vlgmr.msra.gmra.mxu1 %v445_v42  ;;  %v1967_v32 = vld [vmem:[%s2090_s20 + $0x290] sm:$0xff]  ;;  %v1974_v37 = vld [vmem:[%s2090_s20 + $0x2c8] sm:$0xff]  ;;  %v1996_v42 = vld [vmem:[%s2090_s20 + $0x378] sm:$0xff] }
  0x31   : > { %1211 = vmatpush.bf16.msrb.mxu1 %v1932_v33  ;;  %1180 = vmatmul.bf16.vlgmr.msra.gmra.mxu2 %v446_v39  ;;  %v1975_v33 = vld [vmem:[%s2090_s20 + $0x2d0] sm:$0xff]  ;;  %v1957_v39 = vld [vmem:[%s2090_s20 + $0x240] sm:$0xff] }
  0x32   : > { %1224 = vmatpush.bf16.msrb.mxu2 %v1940_v34  ;;  %1193 = vmatmul.bf16.vlgmr.msra.gmra.mxu3 %v447_v46  ;;  %v1950_v34 = vld [vmem:[%s2090_s20 + $0x208] sm:$0xff]  ;;  %v456_v46 = vld [vmem:[#allocation1 + $0x12] sm:$0xff] }
  0x33   : > { %1237 = vmatpush.bf16.msrb.mxu3 %v1948_v36  ;;  %v1966_v36 = vld [vmem:[%s2090_s20 + $0x288] sm:$0xff] }
  0x34   : > { %1199 = vmatpush.bf16.msrb.mxu0 %v1923_v38  ;;  %v1949_v38 = vld [vmem:[%s2090_s20 + $0x200] sm:$0xff] }
  0x35   : > { %1212 = vmatpush.bf16.msrb.mxu1 %v1931_v40  ;;  %v1965_v40 = vld [vmem:[%s2090_s20 + $0x280] sm:$0xff] }
  0x36   : > { %1225 = vmatpush.bf16.msrb.mxu2 %v1939_v41  ;;  %v1988_v41 = vld [vmem:[%s2090_s20 + $0x338] sm:$0xff] }
  0x37   : > { %1238 = vmatpush.bf16.msrb.mxu3 %v1947_v43  ;;  %v1973_v43 = vld [vmem:[%s2090_s20 + $0x2c0] sm:$0xff] }
  0x38   : > { %1200 = vmatpush.bf16.msrb.mxu0 %v1922_v45  ;;  %v455_v45 = vld [vmem:[#allocation1 + $0x9] sm:$0xff] }
  0x39   : > { %1213 = vmatpush.bf16.msrb.mxu1 %v1930_v51  ;;  %v1994_v51 = vld [vmem:[%s2090_s20 + $0x368] sm:$0xff] }
  0x3a   : > { %1226 = vmatpush.bf16.msrb.mxu2 %v1938_v52  ;;  %v1985_v52 = vld [vmem:[%s2090_s20 + $0x320] sm:$0xff] }
  0x3b   : > { %1239 = vmatpush.bf16.msrb.mxu3 %v1946_v53  ;;  %v1993_v53 = vld [vmem:[%s2090_s20 + $0x360] sm:$0xff] }
  0x3c   : > { %1201 = vmatpush.bf16.msrb.mxu0 %v1921_v54  ;;  %v1984_v54 = vld [vmem:[%s2090_s20 + $0x318] sm:$0xff] }
  0x3d   : > { %1214 = vmatpush.bf16.msrb.mxu1 %v1929_v55  ;;  %v1992_v55 = vld [vmem:[%s2090_s20 + $0x358] sm:$0xff] }
  0x3e   : > { %1227 = vmatpush.bf16.msrb.mxu2 %v1937_v56  ;;  %v1983_v56 = vld [vmem:[%s2090_s20 + $0x310] sm:$0xff] }
  0x3f   : > { %1240 = vmatpush.bf16.msrb.mxu3 %v1945_v57  ;;  %v1991_v57 = vld [vmem:[%s2090_s20 + $0x350] sm:$0xff] }
  0x40   : > { %1202 = vmatpush.bf16.msrb.mxu0 %v1920_v58  ;;  %v1982_v58 = vld [vmem:[%s2090_s20 + $0x308] sm:$0xff] }
  0x41   : > { %1215 = vmatpush.bf16.msrb.mxu1 %v1928_v59  ;;  %v1990_v59 = vld [vmem:[%s2090_s20 + $0x348] sm:$0xff] }
  0x42   : > { %1228 = vmatpush.bf16.msrb.mxu2 %v1936_v60  ;;  %v1981_v60 = vld [vmem:[%s2090_s20 + $0x300] sm:$0xff] }
  0x43   : > { %1241 = vmatpush.bf16.msrb.mxu3 %v1944_v61  ;;  %v1989_v61 = vld [vmem:[%s2090_s20 + $0x340] sm:$0xff] }
  0x44   : > { %1203 = vmatpush.bf16.msrb.mxu0 %v1919_v62  ;;  %v458_v62 = vld [vmem:[#allocation1 + $0x24] sm:$0xff] }
  0x45   : > { %1216 = vmatpush.bf16.msrb.mxu1 %v1927_v63  ;;  %v459_v63 = vld [vmem:[#allocation1 + $0x2d] sm:$0xff] }
  0x46   : > { %1229 = vmatpush.bf16.msrb.mxu2 %v1935_v0 }
  0x47   : > { %1242 = vmatpush.bf16.msrb.mxu3 %v1943_v1 }
  0x48   : > { %1204 = vmatpush.bf16.msrb.mxu0 %v1918_v2 }
  0x49   : > { %1217 = vmatpush.bf16.msrb.mxu1 %v1926_v3 }
  0x4a   : > { %1230 = vmatpush.bf16.msrb.mxu2 %v1934_v4 }
  0x4b   : > { %1243 = vmatpush.bf16.msrb.mxu3 %v1942_v5 }
  0x4c   : > { %1205 = vmatpush.bf16.msrb.mxu0 %v1917_v6 }
  0x4d   : > { %1218 = vmatpush.bf16.msrb.mxu1 %v1925_v7 }
  0x4e   : > { %1231 = vmatpush.bf16.msrb.mxu2 %v1933_v8 }
  0x4f   : > { %1244 = vmatpush.bf16.msrb.mxu3 %v1941_v12  ;;  %1206 = vmatmul.bf16.vlgmr.msrb.gmra.mxu0 %v2143_v48  ;;  %v457_v48 = vld [vmem:[#allocation1 + $0x1b] sm:$0xff] }
  0x50   : > { %1250 = vmatpush.bf16.msra.mxu0 %v1956_v9  ;;  %1219 = vmatmul.bf16.vlgmr.msrb.gmra.mxu1 %v2147_v50  ;;  %v1986_v50 = vld [vmem:[%s2090_s20 + $0x328] sm:$0xff] }
  0x51   : > { %1263 = vmatpush.bf16.msra.mxu1 %v1964_v10  ;;  %1232 = vmatmul.bf16.vlgmr.msrb.gmra.mxu2 %v2141_v47  ;;  %v1987_v47 = vld [vmem:[%s2090_s20 + $0x330] sm:$0xff] }
  0x52   : > { %1276 = vmatpush.bf16.msra.mxu2 %v1972_v11  ;;  %1245 = vmatmul.bf16.vlgmr.msrb.gmra.mxu3 %v2145_v49  ;;  %v1995_v49 = vld [vmem:[%s2090_s20 + $0x370] sm:$0xff] }
  0x53   : > { %1289 = vmatpush.bf16.msra.mxu3 %v1980_v13 }
  0x54   : > { %1251 = vmatpush.bf16.msra.mxu0 %v1955_v14 }
  0x55   : > { %1264 = vmatpush.bf16.msra.mxu1 %v1963_v15 }
  0x56   : > { %1277 = vmatpush.bf16.msra.mxu2 %v1971_v16 }
  0x57   : > { %1290 = vmatpush.bf16.msra.mxu3 %v1979_v17 }
  0x58   : > { %1252 = vmatpush.bf16.msra.mxu0 %v1954_v18 }
  0x59   : > { %1265 = vmatpush.bf16.msra.mxu1 %v1962_v19 }
  0x5a   : > { %1278 = vmatpush.bf16.msra.mxu2 %v1970_v20 }
  0x5b   : > { %1291 = vmatpush.bf16.msra.mxu3 %v1978_v21 }
  0x5c   : > { %1253 = vmatpush.bf16.msra.mxu0 %v1953_v22 }
  0x5d   : > { %1266 = vmatpush.bf16.msra.mxu1 %v1961_v23 }
  0x5e   : > { %1279 = vmatpush.bf16.msra.mxu2 %v1969_v24 }
  0x5f   : > { %1292 = vmatpush.bf16.msra.mxu3 %v1977_v25 }
  0x60   : > { %1254 = vmatpush.bf16.msra.mxu0 %v1952_v26 }
  0x61   : > { %1267 = vmatpush.bf16.msra.mxu1 %v1960_v27 }
  0x62   : > { %1280 = vmatpush.bf16.msra.mxu2 %v1968_v28 }
  0x63   : > { %1293 = vmatpush.bf16.msra.mxu3 %v1976_v29 }
  0x64   : > { %1255 = vmatpush.bf16.msra.mxu0 %v1951_v30 }
  0x65   : > { %1268 = vmatpush.bf16.msra.mxu1 %v1959_v31 }
  0x66   : > { %1281 = vmatpush.bf16.msra.mxu2 %v1967_v32 }
  0x67   : > { %1294 = vmatpush.bf16.msra.mxu3 %v1975_v33 }
  0x68   : > { %1256 = vmatpush.bf16.msra.mxu0 %v1950_v34 }
  0x69   : > { %1269 = vmatpush.bf16.msra.mxu1 %v1958_v35 }
  0x6a   : > { %1282 = vmatpush.bf16.msra.mxu2 %v1966_v36 }
  0x6b   : > { %1295 = vmatpush.bf16.msra.mxu3 %v1974_v37 }
  0x6c   : > { %1257 = vmatpush.bf16.msra.mxu0 %v1949_v38 }
  0x6d   : > { %1270 = vmatpush.bf16.msra.mxu1 %v1957_v39 }
  0x6e   : > { %1283 = vmatpush.bf16.msra.mxu2 %v1965_v40 }
  0x6f   : > { %1296 = vmatpush.bf16.msra.mxu3 %v1973_v43  ;;  %1258 = vmatmul.bf16.vlgmr.msra.gmra.mxu0 %v454_v44 }
  0x70   : > { %1302 = vmatpush.bf16.msrb.mxu0 %v1988_v41  ;;  %1271 = vmatmul.bf16.vlgmr.msra.gmra.mxu1 %v455_v45 }
  0x71   : > { %1315 = vmatpush.bf16.msrb.mxu1 %v1996_v42  ;;  %1284 = vmatmul.bf16.vlgmr.msra.gmra.mxu2 %v456_v46 }
  0x72   : > { %1297 = vmatmul.bf16.vlgmr.msra.gmra.mxu3 %v457_v48 }
  0x74   : > { %1303 = vmatpush.bf16.msrb.mxu0 %v1987_v47 }
  0x75   : > { %1316 = vmatpush.bf16.msrb.mxu1 %v1995_v49 }
  0x78   : > { %1304 = vmatpush.bf16.msrb.mxu0 %v1986_v50 }
  0x79   : > { %1317 = vmatpush.bf16.msrb.mxu1 %v1994_v51 }
  0x7c   : > { %1305 = vmatpush.bf16.msrb.mxu0 %v1985_v52 }
  0x7d   : > { %1318 = vmatpush.bf16.msrb.mxu1 %v1993_v53 }
  0x80   : > { %1306 = vmatpush.bf16.msrb.mxu0 %v1984_v54 }
  0x81   : > { %1319 = vmatpush.bf16.msrb.mxu1 %v1992_v55 }
  0x84   : > { %1307 = vmatpush.bf16.msrb.mxu0 %v1983_v56 }
  0x85   : > { %1320 = vmatpush.bf16.msrb.mxu1 %v1991_v57 }
  0x88   : > { %1308 = vmatpush.bf16.msrb.mxu0 %v1982_v58 }
  0x89   : > { %1321 = vmatpush.bf16.msrb.mxu1 %v1990_v59 }
  0x8c   : > { %1309 = vmatpush.bf16.msrb.mxu0 %v1981_v60 }
  0x8d   : > { %1322 = vmatpush.bf16.msrb.mxu1 %v1989_v61 }
  0x8f   : > { %1310 = vmatmul.bf16.vlgmr.msrb.gmra.mxu0 %v458_v62 }
  0x90   : > { %1323 = vmatmul.bf16.vlgmr.msrb.gmra.mxu1 %v459_v63 }
  0xac   : > { %v1155_v0 = vpop.f32.mrf.mxu0 }
  0xad   : > { %v1168_v1 = vpop.f32.mrf.mxu1 }
  0xae   : > { %v1169_v2 = vadd.f32 %v1168_v1, %v1155_v0 }
  0xb4   : > { %v1181_v3 = vpop.f32.mrf.mxu2  ;;  %v1157_v5 = vpop.f32.mrf.mxu0 }
  0xb5   : > { %v1182_v4 = vadd.f32 %v1181_v3, %v1169_v2  ;;  %v1194_v6 = vpop.f32.mrf.mxu3  ;;  %v1170_v7 = vpop.f32.mrf.mxu1 }
  0xb7   : > { %v1195_v8 = vadd.f32 %v1194_v6, %v1182_v4 }
  0xbc   : > { %v1183_v9 = vpop.f32.mrf.mxu2 }
  0xbd   : > { %v1196_v10 = vpop.f32.mrf.mxu3 }
  0xcc   : > { %v1207_v11 = vpop.f32.mrf.mxu0 }
  0xcd   : > { %v1220_v12 = vpop.f32.mrf.mxu1  ;;  %v1208_v21 = vadd.f32 %v1207_v11, %v1195_v8 }
  0xcf   : > { %v1221_v23 = vadd.f32 %v1220_v12, %v1208_v21 }
  0xd4   : > { %v1233_v13 = vpop.f32.mrf.mxu2  ;;  %v1209_v15 = vpop.f32.mrf.mxu0 }
  0xd5   : > { %v1246_v14 = vpop.f32.mrf.mxu3  ;;  %v1222_v16 = vpop.f32.mrf.mxu1  ;;  %v1234_v27 = vadd.f32 %v1233_v13, %v1221_v23 }
  0xd7   : > { %v1247_v29 = vadd.f32 %v1246_v14, %v1234_v27 }
  0xdc   : > { %v1235_v17 = vpop.f32.mrf.mxu2 }
  0xdd   : > { %v1248_v18 = vpop.f32.mrf.mxu3 }
  0xec   : > { %v1259_v19 = vpop.f32.mrf.mxu0 }
  0xed   : > { %v1272_v20 = vpop.f32.mrf.mxu1  ;;  %v1260_v31 = vadd.f32 %v1259_v19, %v1247_v29 }
  0xef   : > { %v1273_v32 = vadd.f32 %v1272_v20, %v1260_v31 }
  0xf4   : > { %v1285_v22 = vpop.f32.mrf.mxu2  ;;  %v1261_v25 = vpop.f32.mrf.mxu0 }
  0xf5   : > { %v1298_v24 = vpop.f32.mrf.mxu3  ;;  %v1274_v26 = vpop.f32.mrf.mxu1  ;;  %v1286_v33 = vadd.f32 %v1285_v22, %v1273_v32 }
  0xf7   : > { %v1299_v34 = vadd.f32 %v1298_v24, %v1286_v33 }
  0xfc   : > { %v1287_v28 = vpop.f32.mrf.mxu2 }
  0xfd   : > { %v1300_v30 = vpop.f32.mrf.mxu3 }
 0x10c   : > { %v1311_v35 = vpop.f32.mrf.mxu0 }
 0x10d   : > { %v1312_v36 = vadd.f32 %v1311_v35, %v1299_v34  ;;  %v1324_v37 = vpop.f32.mrf.mxu1 }
 0x10f   : > { %v1325_v38 = vadd.f32 %v1324_v37, %v1312_v36 }
 0x111   : > { %1331 = sbr.rel (%p1879_p6) target bundleno = 279 (0x117), region = 36 }
 0x114   : > { %v1313_v39 = vpop.f32.mrf.mxu0 }
 0x115   : > { %v1326_v40 = vpop.f32.mrf.mxu1 }
 0x116   : > { %1332 = vst [vmem:[%s2257_s3] sm:$0x3] %v1325_v38 }
 0x117 PF: > { %p1880_p7 = scmp.le.s32.totalorder %s2036_s12, 0 }
 0x119   : > { %1336 = sbr.rel (%p1880_p7) target bundleno = 290 (0x122), region = 40 }
 0x11e   : > { %v1337_v41 = vld [vmem:[%s2257_s3] sm:$0x3] }
 0x11f   : > { %v1338_v42 = vadd.f32 %v1337_v41, %v1325_v38 }
 0x121   : > { %1339 = vst [vmem:[%s2257_s3] sm:$0x3] %v1338_v42 }
 0x122 PF: > { %p1881_p8 = scmp.ne.s32.totalorder %s2036_s12, 13 }
 0x124   : > { %1343 = sbr.rel (%p1881_p8) target bundleno = 304 (0x130), region = 44 }
 0x129   : > { %v1344_v43 = vld [vmem:[%s2257_s3] sm:$0x3] }
 0x12a   : > { %v2021_v44 = vld [vmem:[%s2256_s2] ss:$0 sm:$0xff] }
 0x12b   : > { %v1349_v45 = vadd.f32 %v2021_v44, %v1344_v43 }
 0x12d   : > { %v1350_v46 = vmax.f32 %v1349_v45, 0.0 }
 0x12f   : > { %1351 = vst [vmem:[%s2257_s3] sm:$0x3] %v1350_v46 }
 0x130 PF: > { %s13_s14 = sadd.s32 1, %s2044_s14   ;;  %s2258_s12 = smov %s2040_s13 }
 0x131   : > { %p10_p9 = scmp.ge.s32.totalorder %s13_s14, 16   ;;  %s2259_s13 = smov %s2261_s15 }
 0x133   :  { %12 = sbr.rel (!%p10_p9) target bundleno = 2 (0x2), region = 77 }

// kernel: s_cnn_forward.23
= control target key start
LH: loop header
LB: loop body
LE: loop exit
PB: predicated region body
PF: predicated region fallthrough
CT: control target
= control target key end

     0   :  { %s401_s0 = inlined_call_operand.vmem [shape: bf16[2,256], index: 0, kind: input, shape index: {}]   ;;  %s402_s1 = inlined_call_operand.vmem [shape: bf16[256,128], index: 1, kind: input, shape index: {}]   ;;  %s403_s2 = inlined_call_operand.vmem [shape: f32[1,128], index: 2, kind: input, shape index: {}]   ;;  %s404_s3 = inlined_call_operand.hbm [shape: f32[2,128], index: 3, kind: output, shape index: {}]  }
   0x1   :  { %v286_v0 = vld [vmem:[%s402_s1 + $0x38] sm:$0xff]  ;;  %v285_v2 = vld [vmem:[%s402_s1 + $0x30] sm:$0xff]  ;;  %v15_v4 = vld [vmem:[%s401_s0] sm:$0x3] }
   0x2   :  { %v294_v1 = vld [vmem:[%s402_s1 + $0x78] sm:$0xff]  ;;  %150 = vmatpush.bf16.msra.mxu0 %v286_v0  ;;  %v293_v3 = vld [vmem:[%s402_s1 + $0x70] sm:$0xff]  ;;  %v284_v5 = vld [vmem:[%s402_s1 + $0x28] sm:$0xff]  ;;  %49 = vst [vmem:[#allocation1] ss:$9 sm:$0xff] %v15_v4 }
   0x3   :  { %163 = vmatpush.bf16.msra.mxu1 %v294_v1  ;;  %v292_v6 = vld [vmem:[%s402_s1 + $0x68] sm:$0xff] }
   0x6   :  { %151 = vmatpush.bf16.msra.mxu0 %v285_v2 }
   0x7   :  { %164 = vmatpush.bf16.msra.mxu1 %v293_v3 }
   0x8   :  { %8 = vsyncpa [#allocation3], 0  ;;  %v283_v7 = vld [vmem:[%s402_s1 + $0x20] sm:$0xff]  ;;  %v282_v9 = vld [vmem:[%s402_s1 + $0x18] sm:$0xff]  ;;  %s323_s20 = smov [#allocation2]   ;;  %s206_s23 = sshll.u32 %s404_s3, 4  ;;  %s207_s23 = int_to_ptr.hbm [resolvable:$true] %s206_s23 }
   0x9   :  { %v291_v8 = vld [vmem:[%s402_s1 + $0x60] sm:$0xff]  ;;  %v290_v10 = vld [vmem:[%s402_s1 + $0x58] sm:$0xff]  ;;  %v281_v11 = vld [vmem:[%s402_s1 + $0x10] sm:$0xff]  ;;  %s204_s21 = sshll.u32 %s323_s20, 4  ;;  %s205_s21 = int_to_ptr.vmem [resolvable:$true] %s204_s21 }
   0xa   :  { %152 = vmatpush.bf16.msra.mxu0 %v284_v5  ;;  %v289_v12 = vld [vmem:[%s402_s1 + $0x50] sm:$0xff]  ;;  %v280_v13 = vld [vmem:[%s402_s1 + $0x8] sm:$0xff]  ;;  %v279_v15 = vld [vmem:[%s402_s1] sm:$0xff] }
   0xb   :  { %165 = vmatpush.bf16.msra.mxu1 %v292_v6  ;;  %v288_v14 = vld [vmem:[%s402_s1 + $0x48] sm:$0xff]  ;;  %v287_v16 = vld [vmem:[%s402_s1 + $0x40] sm:$0xff] }
   0xc   :  { %v50_v17 = vld [vmem:[#allocation1] sm:$0xff]  ;;  %v51_v18 = vld [vmem:[#allocation1 + $0x9] sm:$0xff] }
   0xd   :  { %v296_v22 = vld [vmem:[%s403_s2] ss:$0 sm:$0xff] }
   0xe   :  { %153 = vmatpush.bf16.msra.mxu0 %v283_v7 }
   0xf   :  { %166 = vmatpush.bf16.msra.mxu1 %v291_v8 }
  0x12   :  { %154 = vmatpush.bf16.msra.mxu0 %v282_v9 }
  0x13   :  { %167 = vmatpush.bf16.msra.mxu1 %v290_v10 }
  0x16   :  { %155 = vmatpush.bf16.msra.mxu0 %v281_v11 }
  0x17   :  { %168 = vmatpush.bf16.msra.mxu1 %v289_v12 }
  0x1a   :  { %156 = vmatpush.bf16.msra.mxu0 %v280_v13 }
  0x1b   :  { %169 = vmatpush.bf16.msra.mxu1 %v288_v14 }
  0x1e   :  { %157 = vmatpush.bf16.msra.mxu0 %v279_v15 }
  0x1f   :  { %170 = vmatpush.bf16.msra.mxu1 %v287_v16 }
  0x21   :  { %158 = vmatmul.bf16.vlgmr.msra.gmra.mxu0 %v50_v17 }
  0x22   :  { %171 = vmatmul.bf16.vlgmr.msra.gmra.mxu1 %v51_v18 }
  0x9e   :  { %v159_v19 = vpop.f32.mrf.mxu0 }
  0x9f   :  { %v172_v20 = vpop.f32.mrf.mxu1 }
  0xa0   :  { %v173_v21 = vadd.f32 %v172_v20, %v159_v19 }
  0xa2   :  { %180 = vst [vmem:[#allocation2] sm:$0x3] %v173_v21 }
  0xa6   :  { %v161_v23 = vpop.f32.mrf.mxu0 }
  0xa7   :  { %v174_v24 = vpop.f32.mrf.mxu1 }
  0xa9   :  { %v191_v25 = vld [vmem:[#allocation2] sm:$0x3] }
  0xaa   :  { %v196_v26 = vadd.f32 %v296_v22, %v191_v25 }
  0xac   :  { %v197_v27 = vmax.f32 %v196_v26, 0.0 }
  0xae   :  { %198 = vst [vmem:[#allocation2] sm:$0x3] %v197_v27 }
  0xaf   :  { %209 = dma.vmem_to_hbm [thread:$0]  %s205_s21, 32, %s207_s23, [#allocation3]  }
  0xb0   :  { %321 = dma.done.wait [#allocation3], 32  }
  0xb1   :  { %322 = vsyncadd [#allocation3], 4294967264 }
  0xb2   :  { %214 = vsyncpa [#allocation3], 1 }

</bundles_post_ra>
